<compile_context>
chip_gen: v5e
topology: v5e:2x2
jax: 0.10.0
libtpu: 0.0.40
codegen_flags: <defaults>
</compile_context>

<pallas_src>
import math
import functools

import jax
import jax.numpy as jnp
from jax import lax
from jax.experimental import pallas as pl
from jax.experimental.pallas import tpu as pltpu


def _pick_head_group(num_heads, head_dim):
    """Smallest divisor Hb of H with Hb*D a multiple of 128 (lane-dense output
    stores).  Falls back to all heads (block == full dim, always layout-legal)."""
    for hb in range(1, num_heads + 1):
        if num_heads % hb == 0 and (hb * head_dim) % 128 == 0:
            return hb
    return num_heads


def _flash_attn_kernel(qi_tab, ki_tab,               # scalar-prefetch SMEM refs
                       q_ref, k_ref, v_ref,          # (1, Hb, tq|tk, D)
                       o_ref,                        # (1, tq, Hb*D)
                       qs_sc, m_sc, l_sc, acc_sc,    # scratch
                       *, scale, causal, tq, tk, hb, head_dim, nk):
    p = pl.program_id(2)
    qi = qi_tab[p]
    ki = ki_tab[p]

    first = ki == 0
    if causal:
        last_ki = ((qi + 1) * tq - 1) // tk          # last live K block for this qi
    else:
        last_ki = nk - 1
    last = ki == last_ki

    @pl.when(first)
    def _init():
        m_sc[...] = jnp.full_like(m_sc, -1e30)
        l_sc[...] = jnp.zeros_like(l_sc)
        acc_sc[...] = jnp.zeros_like(acc_sc)
        # Hoist q*scale out of the KV loop: scaled once per (b, g, qi) block and
        # reused for every ki step (python float * bf16 stays bf16 -> MXU native).
        qs_sc[...] = q_ref[0] * scale

    def run(masked):
        if masked:
            q_pos = qi * tq + lax.broadcasted_iota(jnp.int32, (tq, tk), 0)
            k_pos = ki * tk + lax.broadcasted_iota(jnp.int32, (tq, tk), 1)
            mask = q_pos >= k_pos
        for h in range(hb):                          # static unroll over packed heads
            q = qs_sc[h]                             # (tq, D), already scaled
            k = k_ref[0, h]                          # (tk, D)
            v = v_ref[0, h]                          # (tk, D)
            # scores (tq, tk) in f32: q @ k^T on the MXU.
            s = lax.dot_general(q, k, (((1,), (1,)), ((), ())),
                                preferred_element_type=jnp.float32)
            if masked:
                s = jnp.where(mask, s, -1e30)
            m_prev = m_sc[h]
            m_new = jnp.maximum(m_prev, s.max(axis=-1, keepdims=True))
            alpha = jnp.exp(m_prev - m_new)          # correct old stats
            prob = jnp.exp(s - m_new)                # (tq, tk) f32
            # No second where on prob: masked scores are -1e30 (f32) and underflow
            # to exactly 0 after exp, since m_new is finite once ki==0 has run.
            l_sc[h] = alpha * l_sc[h] + prob.sum(axis=-1, keepdims=True)
            # bf16 operands, f32 accumulation (native MXU path).
            acc_sc[h] = alpha * acc_sc[h] + jnp.dot(
                prob.astype(v.dtype), v, preferred_element_type=jnp.float32)
            m_sc[h] = m_new

    if causal:
        # Live blocks only (flattened grid); mask needed iff block straddles diag.
        needs_mask = ki * tk + (tk - 1) > qi * tq

        @pl.when(needs_mask)
        def _diag():
            run(masked=True)

        @pl.when(jnp.logical_not(needs_mask))
        def _below():
            run(masked=False)
    else:
        run(masked=False)

    @pl.when(last)
    def _finalize():
        for h in range(hb):
            inv_l = pl.reciprocal(l_sc[h], approx=True)   # EUP slot, ~free
            o_ref[0, :, pl.ds(h * head_dim, head_dim)] = (
                acc_sc[h] * inv_l).astype(o_ref.dtype)


def flash_attention_heads_major(q, k, v, *, causal=False, softmax_scale=None,
                                tq=512, tk=512, kv_buffers=2, head_group=None):
    """q, k, v: (B, H, S, D) fp16/bf16.  Returns output in (B, S, H, D).

    Callers that already hold (B, H, S, D) tensors should call this directly and
    pay zero input transposes; the output is produced in the module's native
    (B, S, H, D) layout (written lane-dense as (B, S, H*D))."""
    B, H, S, D = q.shape
    scale = softmax_scale if softmax_scale is not None else 1.0 / math.sqrt(D)

    tq = min(tq, S)
    tk = min(tk, S)
    assert S % tq == 0 and S % tk == 0, "seq len must be divisible by tile sizes"
    assert tq % 8 == 0 or tq == S
    assert tk % 8 == 0 or tk == S

    hb = head_group if head_group is not None else _pick_head_group(H, D)
    assert H % hb == 0
    num_groups = H // hb

    # Flattened list of live (qi, ki) block pairs (qi outer, ki inner so each
    # output block is one contiguous run of grid steps).  For causal, dead blocks
    # above the diagonal are simply absent -> no wasted ~0.35us grid iterations.
    nq, nk = S // tq, S // tk
    if causal:
        pairs = [(qi, ki)
                 for qi in range(nq)
                 for ki in range(((qi + 1) * tq + tk - 1) // tk)]
    else:
        pairs = [(qi, ki) for qi in range(nq) for ki in range(nk)]
    qi_tab = jnp.asarray([pq for pq, _ in pairs], dtype=jnp.int32)
    ki_tab = jnp.asarray([pk for _, pk in pairs], dtype=jnp.int32)
    n_pairs = len(pairs)

    # Index maps receive the scalar-prefetch refs as trailing positional args.
    q_map = lambda b, g, p, qi_t, ki_t: (b, g, qi_t[p], 0)
    kv_map = lambda b, g, p, qi_t, ki_t: (b, g, ki_t[p], 0)
    o_map = lambda b, g, p, qi_t, ki_t: (b, qi_t[p], g)

    # Optional deeper K/V pipelining (recommended 3 on v5e, default 2 elsewhere).
    kv_kwargs = {} if kv_buffers == 2 else dict(pipeline_mode=pl.Buffered(kv_buffers))
    in_specs = [
        pl.BlockSpec((1, hb, tq, D), q_map),
        pl.BlockSpec((1, hb, tk, D), kv_map, **kv_kwargs),
        pl.BlockSpec((1, hb, tk, D), kv_map, **kv_kwargs),
    ]
    # Lane-dense output slab: last dim hb*D is a multiple of 128 (or the full H*D).
    out_spec = pl.BlockSpec((1, tq, hb * D), o_map)

    kernel = functools.partial(_flash_attn_kernel, scale=scale, causal=causal,
                               tq=tq, tk=tk, hb=hb, head_dim=D, nk=nk)

    out = pl.pallas_call(
        kernel,
        out_shape=jax.ShapeDtypeStruct((B, S, H * D), q.dtype),
        grid_spec=pltpu.PrefetchScalarGridSpec(
            num_scalar_prefetch=2,
            # Parallel extent is B * num_groups (keep >= 2 for v7x megacore); the
            # flattened (qi, ki) pair axis is the reduction -> "arbitrary".
            grid=(B, num_groups, n_pairs),
            in_specs=in_specs,
            out_specs=out_spec,
            scratch_shapes=[
                pltpu.VMEM((hb, tq, D), q.dtype),       # scaled q (hoisted)
                pltpu.VMEM((hb, tq, 1), jnp.float32),   # running max m
                pltpu.VMEM((hb, tq, 1), jnp.float32),   # running denom l
                pltpu.VMEM((hb, tq, D), jnp.float32),   # output accumulator
            ]),
        compiler_params=pltpu.CompilerParams(
            dimension_semantics=("parallel", "parallel", "arbitrary"),
            # 48 MiB fits v7x's 64 MiB/TC with headroom for the (tq,tk) f32 score
            # intermediates at tq=tk<=1024; v5e/v6e (128 MiB) can sweep larger
            # tiles and raise this further.
            vmem_limit_bytes=48 * 1024 * 1024),
    )(qi_tab, ki_tab, q, k, v)

    return out.reshape(B, S, H, D)


def flash_self_attention(q, k, v, *, causal=False, softmax_scale=None,
                         attention_dropout=0.0, tq=512, tk=512,
                         kv_buffers=2, head_group=None):
    """Module-contract entry point: q, k, v are (B, S, H, D); returns (B, S, H, D)."""
    assert q.dtype in (jnp.float16, jnp.bfloat16)
    # TODO(synk): training-time attention dropout not implemented (module passes 0.0 in eval).
    assert attention_dropout == 0.0, "dropout not supported in this kernel"

    # Only the 3 input transposes remain (kernel needs (S, D) as the minor dims);
    # the output is produced directly in (B, S, H, D) -- no output transpose.
    qt = jnp.transpose(q, (0, 2, 1, 3))
    kt = jnp.transpose(k, (0, 2, 1, 3))
    vt = jnp.transpose(v, (0, 2, 1, 3))

    return flash_attention_heads_major(qt, kt, vt, causal=causal,
                                       softmax_scale=softmax_scale, tq=tq, tk=tk,
                                       kv_buffers=kv_buffers, head_group=head_group)


def _reference_attention(q, k, v, *, causal, softmax_scale=None):
    B, S, H, D = q.shape
    scale = softmax_scale if softmax_scale is not None else 1.0 / math.sqrt(D)
    qf = q.astype(jnp.float32)
    kf = k.astype(jnp.float32)
    vf = v.astype(jnp.float32)
    s = jnp.einsum('bqhd,bkhd->bhqk', qf, kf) * scale
    if causal:
        mask = jnp.tril(jnp.ones((S, S), dtype=bool))
        s = jnp.where(mask[None, None], s, -1e30)
    p = jax.nn.softmax(s, axis=-1)
    o = jnp.einsum('bhqk,bkhd->bqhd', p, vf)
    return o.astype(q.dtype)


if __name__ == "__main__":
    key = jax.random.PRNGKey(0)
    B, S, H, D = 2, 256, 2, 64      # small shapes consistent with (B, S, H, D)
    kq, kk, kv = jax.random.split(key, 3)
    q = jax.random.normal(kq, (B, S, H, D), dtype=jnp.bfloat16)
    k = jax.random.normal(kk, (B, S, H, D), dtype=jnp.bfloat16)
    v = jax.random.normal(kv, (B, S, H, D), dtype=jnp.bfloat16)

    ok = True
    # Configs exercise: single-block defaults (tiles clamped to S), square
    # multi-block tiles (flattened causal grid), and tq > tk with 3-deep K/V
    # buffering (diagonal blocks with fully-masked rows -> guards the dropped
    # second where; pl.Buffered path).
    tile_cfgs = [(256, 256, 2), (64, 64, 2), (128, 64, 3)]
    for causal in (False, True):    # module default causal=False; ChatGLM uses True
        ref = _reference_attention(q, k, v, causal=causal)
        for (tqi, tki, nbuf) in tile_cfgs:
            out = flash_self_attention(q, k, v, causal=causal,
                                       tq=tqi, tk=tki, kv_buffers=nbuf)
            out = jax.block_until_ready(out)
            err = jnp.max(jnp.abs(out.astype(jnp.float32) - ref.astype(jnp.float32)))
            if not bool(err < 3e-2):
                ok = False
                print(f"mismatch (causal={causal}, tq={tqi}, tk={tki}, "
                      f"kv_buffers={nbuf}): max abs err = {err}")

    if ok:
        print("KERNEL_OK")
</pallas_src>

<mosaic_0001>
module attributes {stable_mosaic.version = 11 : i64} {
  func.func @_flash_attn_kernel(%arg0: i32, %arg1: i32, %arg2: i32, %arg3: memref<1xi32, #tpu.memory_space<smem>>, %arg4: memref<1xi32, #tpu.memory_space<smem>>, %arg5: memref<1x2x256x64xbf16, #tpu.memory_space<vmem>>, %arg6: memref<1x2x256x64xbf16, #tpu.memory_space<vmem>>, %arg7: memref<1x2x256x64xbf16, #tpu.memory_space<vmem>>, %arg8: memref<1x256x128xbf16, #tpu.memory_space<vmem>>, %arg9: memref<2x256x64xbf16, #tpu.memory_space<vmem>>, %arg10: memref<2x256x1xf32, #tpu.memory_space<vmem>>, %arg11: memref<2x256x1xf32, #tpu.memory_space<vmem>>, %arg12: memref<2x256x64xf32, #tpu.memory_space<vmem>>) attributes {dimension_semantics = [#tpu.dimension_semantics<parallel>, #tpu.dimension_semantics<parallel>, #tpu.dimension_semantics<arbitrary>], iteration_bounds = array<i64: 2, 1, 1>, scalar_prefetch = 2 : i64, scratch_operands = 4 : i64, tpu.core_type = #tpu.core_type<tc>, window_params = [{transform_indices = @transform_0, window_bounds = array<i64: 1, 2, 256, 64>}, {transform_indices = @transform_1, window_bounds = array<i64: 1, 2, 256, 64>}, {transform_indices = @transform_2, window_bounds = array<i64: 1, 2, 256, 64>}, {transform_indices = @transform_3, window_bounds = array<i64: 1, 256, 128>}]} {
    %0 = arith.index_cast %arg2 : i32 to index
    %1 = memref.load %arg4[%0] : memref<1xi32, #tpu.memory_space<smem>>
    %c0_i32 = arith.constant 0 : i32
    %2 = arith.cmpi eq, %1, %c0_i32 : i32
    %c0_i32_0 = arith.constant 0 : i32
    %3 = arith.cmpi eq, %1, %c0_i32_0 : i32
    %4 = arith.extui %2 : i1 to i32
    %c0_i32_1 = arith.constant 0 : i32
    %5 = arith.cmpi ne, %4, %c0_i32_1 : i32
    scf.if %5 {
      %cst_66 = arith.constant -1.000000e+30 : f32
      %86 = vector.broadcast %cst_66 : f32 to vector<2x256x1xf32>
      %c0_67 = arith.constant 0 : index
      %c0_68 = arith.constant 0 : index
      %c0_69 = arith.constant 0 : index
      %87 = vector.load %arg10[%c0_67, %c0_68, %c0_69] : memref<2x256x1xf32, #tpu.memory_space<vmem>>, vector<2x256x1xf32>
      tpu.vector_store %arg10[%c0_67, %c0_68, %c0_69], %86 {strides = array<i32>} : memref<2x256x1xf32, #tpu.memory_space<vmem>>, vector<2x256x1xf32>,
      %cst_70 = arith.constant 0.000000e+00 : f32
      %88 = vector.broadcast %cst_70 : f32 to vector<2x256x1xf32>
      %c0_71 = arith.constant 0 : index
      %c0_72 = arith.constant 0 : index
      %c0_73 = arith.constant 0 : index
      %89 = vector.load %arg11[%c0_71, %c0_72, %c0_73] : memref<2x256x1xf32, #tpu.memory_space<vmem>>, vector<2x256x1xf32>
      tpu.vector_store %arg11[%c0_71, %c0_72, %c0_73], %88 {strides = array<i32>} : memref<2x256x1xf32, #tpu.memory_space<vmem>>, vector<2x256x1xf32>,
      %cst_74 = arith.constant 0.000000e+00 : f32
      %90 = vector.broadcast %cst_74 : f32 to vector<2x256x64xf32>
      %c0_75 = arith.constant 0 : index
      %c0_76 = arith.constant 0 : index
      %c0_77 = arith.constant 0 : index
      %91 = vector.load %arg12[%c0_75, %c0_76, %c0_77] : memref<2x256x64xf32, #tpu.memory_space<vmem>>, vector<2x256x64xf32>
      tpu.vector_store %arg12[%c0_75, %c0_76, %c0_77], %90 {strides = array<i32>} : memref<2x256x64xf32, #tpu.memory_space<vmem>>, vector<2x256x64xf32>,
      %c0_78 = arith.constant 0 : index
      %c0_79 = arith.constant 0 : index
      %c0_80 = arith.constant 0 : index
      %c0_81 = arith.constant 0 : index
      %92 = vector.load %arg5[%c0_78, %c0_79, %c0_80, %c0_81] : memref<1x2x256x64xbf16, #tpu.memory_space<vmem>>, vector<1x2x256x64xbf16>
      %93 = vector.shape_cast %92 : vector<1x2x256x64xbf16> to vector<2x256x64xbf16>
      %cst_82 = arith.constant 1.250000e-01 : bf16
      %94 = vector.broadcast %cst_82 : bf16 to vector<2x256x64xbf16>
      %95 = arith.mulf %93, %94 : vector<2x256x64xbf16>
      %c0_83 = arith.constant 0 : index
      %c0_84 = arith.constant 0 : index
      %c0_85 = arith.constant 0 : index
      %96 = vector.load %arg9[%c0_83, %c0_84, %c0_85] : memref<2x256x64xbf16, #tpu.memory_space<vmem>>, vector<2x256x64xbf16>
      tpu.vector_store %arg9[%c0_83, %c0_84, %c0_85], %95 {strides = array<i32>} : memref<2x256x64xbf16, #tpu.memory_space<vmem>>, vector<2x256x64xbf16>,
    } else {
    }
    %c0 = arith.constant 0 : index
    %c0_2 = arith.constant 0 : index
    %c0_3 = arith.constant 0 : index
    %6 = vector.load %arg9[%c0, %c0_2, %c0_3] : memref<2x256x64xbf16, #tpu.memory_space<vmem>>, vector<1x256x64xbf16>
    %7 = vector.shape_cast %6 : vector<1x256x64xbf16> to vector<256x64xbf16>
    %c0_4 = arith.constant 0 : index
    %c0_5 = arith.constant 0 : index
    %c0_6 = arith.constant 0 : index
    %c0_7 = arith.constant 0 : index
    %8 = vector.load %arg6[%c0_4, %c0_5, %c0_6, %c0_7] : memref<1x2x256x64xbf16, #tpu.memory_space<vmem>>, vector<1x1x256x64xbf16>
    %9 = vector.shape_cast %8 : vector<1x1x256x64xbf16> to vector<256x64xbf16>
    %c0_8 = arith.constant 0 : index
    %c0_9 = arith.constant 0 : index
    %c0_10 = arith.constant 0 : index
    %c0_11 = arith.constant 0 : index
    %10 = vector.load %arg7[%c0_8, %c0_9, %c0_10, %c0_11] : memref<1x2x256x64xbf16, #tpu.memory_space<vmem>>, vector<1x1x256x64xbf16>
    %11 = vector.shape_cast %10 : vector<1x1x256x64xbf16> to vector<256x64xbf16>
    %cst = arith.constant dense<0.000000e+00> : vector<256x256xf32>
    %12 = tpu.matmul %7, %9, %cst {dimension_numbers = #tpu.dot_dimension_numbers<[1], [1], [0], [0], [0, 0, 1, 0], [], []>} : vector<256x64xbf16>, vector<256x64xbf16>, vector<256x256xf32> -> vector<256x256xf32>
    %c0_12 = arith.constant 0 : index
    %c0_13 = arith.constant 0 : index
    %c0_14 = arith.constant 0 : index
    %13 = vector.load %arg10[%c0_12, %c0_13, %c0_14] : memref<2x256x1xf32, #tpu.memory_space<vmem>>, vector<1x256x1xf32>
    %14 = vector.shape_cast %13 : vector<1x256x1xf32> to vector<256x1xf32>
    %cst_15 = arith.constant dense<0xFF800000> : vector<256xf32>
    %15 = vector.multi_reduction <maximumf>, %12, %cst_15 [1] : vector<256x256xf32> to vector<256xf32>
    %16 = vector.shape_cast %15 : vector<256xf32> to vector<256x1xf32>
    %17 = arith.maximumf %14, %16 : vector<256x1xf32>
    %18 = arith.subf %14, %17 : vector<256x1xf32>
    %19 = math.exp %18 : vector<256x1xf32>
    %20 = vector.broadcast %17 : vector<256x1xf32> to vector<256x256xf32>
    %21 = arith.subf %12, %20 : vector<256x256xf32>
    %22 = math.exp %21 : vector<256x256xf32>
    %c0_16 = arith.constant 0 : index
    %c0_17 = arith.constant 0 : index
    %c0_18 = arith.constant 0 : index
    %23 = vector.load %arg11[%c0_16, %c0_17, %c0_18] : memref<2x256x1xf32, #tpu.memory_space<vmem>>, vector<1x256x1xf32>
    %24 = vector.shape_cast %23 : vector<1x256x1xf32> to vector<256x1xf32>
    %25 = arith.mulf %19, %24 : vector<256x1xf32>
    %cst_19 = arith.constant dense<0.000000e+00> : vector<256xf32>
    %26 = vector.multi_reduction <add>, %22, %cst_19 [1] : vector<256x256xf32> to vector<256xf32>
    %27 = vector.shape_cast %26 : vector<256xf32> to vector<256x1xf32>
    %28 = arith.addf %25, %27 : vector<256x1xf32>
    %c0_20 = arith.constant 0 : index
    %c0_21 = arith.constant 0 : index
    %c0_22 = arith.constant 0 : index
    %29 = vector.load %arg11[%c0_20, %c0_21, %c0_22] : memref<2x256x1xf32, #tpu.memory_space<vmem>>, vector<1x256x1xf32>
    %30 = vector.shape_cast %29 : vector<1x256x1xf32> to vector<256x1xf32>
    %31 = vector.shape_cast %28 : vector<256x1xf32> to vector<1x256x1xf32>
    tpu.vector_store %arg11[%c0_20, %c0_21, %c0_22], %31 {strides = array<i32>} : memref<2x256x1xf32, #tpu.memory_space<vmem>>, vector<1x256x1xf32>,
    %c0_23 = arith.constant 0 : index
    %c0_24 = arith.constant 0 : index
    %c0_25 = arith.constant 0 : index
    %32 = vector.load %arg12[%c0_23, %c0_24, %c0_25] : memref<2x256x64xf32, #tpu.memory_space<vmem>>, vector<1x256x64xf32>
    %33 = vector.shape_cast %32 : vector<1x256x64xf32> to vector<256x64xf32>
    %34 = vector.broadcast %19 : vector<256x1xf32> to vector<256x64xf32>
    %35 = arith.mulf %34, %33 : vector<256x64xf32>
    %36 = arith.truncf %22 : vector<256x256xf32> to vector<256x256xbf16>
    %cst_26 = arith.constant dense<0.000000e+00> : vector<256x64xf32>
    %37 = tpu.matmul %36, %11, %cst_26 {dimension_numbers = #tpu.dot_dimension_numbers<[1], [0], [0], [1], [0, 0, 1, 1], [], []>} : vector<256x256xbf16>, vector<256x64xbf16>, vector<256x64xf32> -> vector<256x64xf32>
    %38 = arith.addf %35, %37 : vector<256x64xf32>
    %c0_27 = arith.constant 0 : index
    %c0_28 = arith.constant 0 : index
    %c0_29 = arith.constant 0 : index
    %39 = vector.load %arg12[%c0_27, %c0_28, %c0_29] : memref<2x256x64xf32, #tpu.memory_space<vmem>>, vector<1x256x64xf32>
    %40 = vector.shape_cast %39 : vector<1x256x64xf32> to vector<256x64xf32>
    %41 = vector.shape_cast %38 : vector<256x64xf32> to vector<1x256x64xf32>
    tpu.vector_store %arg12[%c0_27, %c0_28, %c0_29], %41 {strides = array<i32>} : memref<2x256x64xf32, #tpu.memory_space<vmem>>, vector<1x256x64xf32>,
    %c0_30 = arith.constant 0 : index
    %c0_31 = arith.constant 0 : index
    %c0_32 = arith.constant 0 : index
    %42 = vector.load %arg10[%c0_30, %c0_31, %c0_32] : memref<2x256x1xf32, #tpu.memory_space<vmem>>, vector<1x256x1xf32>
    %43 = vector.shape_cast %42 : vector<1x256x1xf32> to vector<256x1xf32>
    %44 = vector.shape_cast %17 : vector<256x1xf32> to vector<1x256x1xf32>
    tpu.vector_store %arg10[%c0_30, %c0_31, %c0_32], %44 {strides = array<i32>} : memref<2x256x1xf32, #tpu.memory_space<vmem>>, vector<1x256x1xf32>,
    %c1 = arith.constant 1 : index
    %c0_33 = arith.constant 0 : index
    %c0_34 = arith.constant 0 : index
    %45 = vector.load %arg9[%c1, %c0_33, %c0_34] : memref<2x256x64xbf16, #tpu.memory_space<vmem>>, vector<1x256x64xbf16>
    %46 = vector.shape_cast %45 : vector<1x256x64xbf16> to vector<256x64xbf16>
    %c0_35 = arith.constant 0 : index
    %c1_36 = arith.constant 1 : index
    %c0_37 = arith.constant 0 : index
    %c0_38 = arith.constant 0 : index
    %47 = vector.load %arg6[%c0_35, %c1_36, %c0_37, %c0_38] : memref<1x2x256x64xbf16, #tpu.memory_space<vmem>>, vector<1x1x256x64xbf16>
    %48 = vector.shape_cast %47 : vector<1x1x256x64xbf16> to vector<256x64xbf16>
    %c0_39 = arith.constant 0 : index
    %c1_40 = arith.constant 1 : index
    %c0_41 = arith.constant 0 : index
    %c0_42 = arith.constant 0 : index
    %49 = vector.load %arg7[%c0_39, %c1_40, %c0_41, %c0_42] : memref<1x2x256x64xbf16, #tpu.memory_space<vmem>>, vector<1x1x256x64xbf16>
    %50 = vector.shape_cast %49 : vector<1x1x256x64xbf16> to vector<256x64xbf16>
    %cst_43 = arith.constant dense<0.000000e+00> : vector<256x256xf32>
    %51 = tpu.matmul %46, %48, %cst_43 {dimension_numbers = #tpu.dot_dimension_numbers<[1], [1], [0], [0], [0, 0, 1, 0], [], []>} : vector<256x64xbf16>, vector<256x64xbf16>, vector<256x256xf32> -> vector<256x256xf32>
    %c1_44 = arith.constant 1 : index
    %c0_45 = arith.constant 0 : index
    %c0_46 = arith.constant 0 : index
    %52 = vector.load %arg10[%c1_44, %c0_45, %c0_46] : memref<2x256x1xf32, #tpu.memory_space<vmem>>, vector<1x256x1xf32>
    %53 = vector.shape_cast %52 : vector<1x256x1xf32> to vector<256x1xf32>
    %cst_47 = arith.constant dense<0xFF800000> : vector<256xf32>
    %54 = vector.multi_reduction <maximumf>, %51, %cst_47 [1] : vector<256x256xf32> to vector<256xf32>
    %55 = vector.shape_cast %54 : vector<256xf32> to vector<256x1xf32>
    %56 = arith.maximumf %53, %55 : vector<256x1xf32>
    %57 = arith.subf %53, %56 : vector<256x1xf32>
    %58 = math.exp %57 : vector<256x1xf32>
    %59 = vector.broadcast %56 : vector<256x1xf32> to vector<256x256xf32>
    %60 = arith.subf %51, %59 : vector<256x256xf32>
    %61 = math.exp %60 : vector<256x256xf32>
    %c1_48 = arith.constant 1 : index
    %c0_49 = arith.constant 0 : index
    %c0_50 = arith.constant 0 : index
    %62 = vector.load %arg11[%c1_48, %c0_49, %c0_50] : memref<2x256x1xf32, #tpu.memory_space<vmem>>, vector<1x256x1xf32>
    %63 = vector.shape_cast %62 : vector<1x256x1xf32> to vector<256x1xf32>
    %64 = arith.mulf %58, %63 : vector<256x1xf32>
    %cst_51 = arith.constant dense<0.000000e+00> : vector<256xf32>
    %65 = vector.multi_reduction <add>, %61, %cst_51 [1] : vector<256x256xf32> to vector<256xf32>
    %66 = vector.shape_cast %65 : vector<256xf32> to vector<256x1xf32>
    %67 = arith.addf %64, %66 : vector<256x1xf32>
    %c1_52 = arith.constant 1 : index
    %c0_53 = arith.constant 0 : index
    %c0_54 = arith.constant 0 : index
    %68 = vector.load %arg11[%c1_52, %c0_53, %c0_54] : memref<2x256x1xf32, #tpu.memory_space<vmem>>, vector<1x256x1xf32>
    %69 = vector.shape_cast %68 : vector<1x256x1xf32> to vector<256x1xf32>
    %70 = vector.shape_cast %67 : vector<256x1xf32> to vector<1x256x1xf32>
    tpu.vector_store %arg11[%c1_52, %c0_53, %c0_54], %70 {strides = array<i32>} : memref<2x256x1xf32, #tpu.memory_space<vmem>>, vector<1x256x1xf32>,
    %c1_55 = arith.constant 1 : index
    %c0_56 = arith.constant 0 : index
    %c0_57 = arith.constant 0 : index
    %71 = vector.load %arg12[%c1_55, %c0_56, %c0_57] : memref<2x256x64xf32, #tpu.memory_space<vmem>>, vector<1x256x64xf32>
    %72 = vector.shape_cast %71 : vector<1x256x64xf32> to vector<256x64xf32>
    %73 = vector.broadcast %58 : vector<256x1xf32> to vector<256x64xf32>
    %74 = arith.mulf %73, %72 : vector<256x64xf32>
    %75 = arith.truncf %61 : vector<256x256xf32> to vector<256x256xbf16>
    %cst_58 = arith.constant dense<0.000000e+00> : vector<256x64xf32>
    %76 = tpu.matmul %75, %50, %cst_58 {dimension_numbers = #tpu.dot_dimension_numbers<[1], [0], [0], [1], [0, 0, 1, 1], [], []>} : vector<256x256xbf16>, vector<256x64xbf16>, vector<256x64xf32> -> vector<256x64xf32>
    %77 = arith.addf %74, %76 : vector<256x64xf32>
    %c1_59 = arith.constant 1 : index
    %c0_60 = arith.constant 0 : index
    %c0_61 = arith.constant 0 : index
    %78 = vector.load %arg12[%c1_59, %c0_60, %c0_61] : memref<2x256x64xf32, #tpu.memory_space<vmem>>, vector<1x256x64xf32>
    %79 = vector.shape_cast %78 : vector<1x256x64xf32> to vector<256x64xf32>
    %80 = vector.shape_cast %77 : vector<256x64xf32> to vector<1x256x64xf32>
    tpu.vector_store %arg12[%c1_59, %c0_60, %c0_61], %80 {strides = array<i32>} : memref<2x256x64xf32, #tpu.memory_space<vmem>>, vector<1x256x64xf32>,
    %c1_62 = arith.constant 1 : index
    %c0_63 = arith.constant 0 : index
    %c0_64 = arith.constant 0 : index
    %81 = vector.load %arg10[%c1_62, %c0_63, %c0_64] : memref<2x256x1xf32, #tpu.memory_space<vmem>>, vector<1x256x1xf32>
    %82 = vector.shape_cast %81 : vector<1x256x1xf32> to vector<256x1xf32>
    %83 = vector.shape_cast %56 : vector<256x1xf32> to vector<1x256x1xf32>
    tpu.vector_store %arg10[%c1_62, %c0_63, %c0_64], %83 {strides = array<i32>} : memref<2x256x1xf32, #tpu.memory_space<vmem>>, vector<1x256x1xf32>,
    %84 = arith.extui %3 : i1 to i32
    %c0_i32_65 = arith.constant 0 : i32
    %85 = arith.cmpi ne, %84, %c0_i32_65 : i32
    scf.if %85 {
      %c0_66 = arith.constant 0 : index
      %c0_67 = arith.constant 0 : index
      %c0_68 = arith.constant 0 : index
      %86 = vector.load %arg11[%c0_66, %c0_67, %c0_68] : memref<2x256x1xf32, #tpu.memory_space<vmem>>, vector<1x256x1xf32>
      %87 = vector.shape_cast %86 : vector<1x256x1xf32> to vector<256x1xf32>
      %88 = tpu.reciprocal %87 {approx = true} : vector<256x1xf32> -> vector<256x1xf32>
      %c0_69 = arith.constant 0 : index
      %c0_70 = arith.constant 0 : index
      %c0_71 = arith.constant 0 : index
      %89 = vector.load %arg12[%c0_69, %c0_70, %c0_71] : memref<2x256x64xf32, #tpu.memory_space<vmem>>, vector<1x256x64xf32>
      %90 = vector.shape_cast %89 : vector<1x256x64xf32> to vector<256x64xf32>
      %91 = vector.broadcast %88 : vector<256x1xf32> to vector<256x64xf32>
      %92 = arith.mulf %90, %91 : vector<256x64xf32>
      %93 = arith.truncf %92 : vector<256x64xf32> to vector<256x64xbf16>
      %c0_72 = arith.constant 0 : index
      %c0_73 = arith.constant 0 : index
      %c0_74 = arith.constant 0 : index
      %94 = vector.load %arg8[%c0_72, %c0_73, %c0_74] : memref<1x256x128xbf16, #tpu.memory_space<vmem>>, vector<1x256x64xbf16>
      %95 = vector.shape_cast %94 : vector<1x256x64xbf16> to vector<256x64xbf16>
      %96 = vector.shape_cast %93 : vector<256x64xbf16> to vector<1x256x64xbf16>
      tpu.vector_store %arg8[%c0_72, %c0_73, %c0_74], %96 {strides = array<i32>} : memref<1x256x128xbf16, #tpu.memory_space<vmem>>, vector<1x256x64xbf16>,
      %c1_75 = arith.constant 1 : index
      %c0_76 = arith.constant 0 : index
      %c0_77 = arith.constant 0 : index
      %97 = vector.load %arg11[%c1_75, %c0_76, %c0_77] : memref<2x256x1xf32, #tpu.memory_space<vmem>>, vector<1x256x1xf32>
      %98 = vector.shape_cast %97 : vector<1x256x1xf32> to vector<256x1xf32>
      %99 = tpu.reciprocal %98 {approx = true} : vector<256x1xf32> -> vector<256x1xf32>
      %c1_78 = arith.constant 1 : index
      %c0_79 = arith.constant 0 : index
      %c0_80 = arith.constant 0 : index
      %100 = vector.load %arg12[%c1_78, %c0_79, %c0_80] : memref<2x256x64xf32, #tpu.memory_space<vmem>>, vector<1x256x64xf32>
      %101 = vector.shape_cast %100 : vector<1x256x64xf32> to vector<256x64xf32>
      %102 = vector.broadcast %99 : vector<256x1xf32> to vector<256x64xf32>
      %103 = arith.mulf %101, %102 : vector<256x64xf32>
      %104 = arith.truncf %103 : vector<256x64xf32> to vector<256x64xbf16>
      %c0_81 = arith.constant 0 : index
      %c0_82 = arith.constant 0 : index
      %c64 = arith.constant 64 : index
      %105 = vector.load %arg8[%c0_81, %c0_82, %c64] : memref<1x256x128xbf16, #tpu.memory_space<vmem>>, vector<1x256x64xbf16>
      %106 = vector.shape_cast %105 : vector<1x256x64xbf16> to vector<256x64xbf16>
      %107 = vector.shape_cast %104 : vector<256x64xbf16> to vector<1x256x64xbf16>
      tpu.vector_store %arg8[%c0_81, %c0_82, %c64], %107 {strides = array<i32>} : memref<1x256x128xbf16, #tpu.memory_space<vmem>>, vector<1x256x64xbf16>,
    } else {
    }
    return
  }
  func.func @transform_0(%arg0: i32, %arg1: i32, %arg2: i32, %arg3: memref<1xi32, #tpu.memory_space<smem>>, %arg4: memref<1xi32, #tpu.memory_space<smem>>) -> (i32, i32, i32, i32) {
    %0 = arith.index_cast %arg2 : i32 to index
    %1 = memref.load %arg3[%0] : memref<1xi32, #tpu.memory_space<smem>>
    %c0_i32 = arith.constant 0 : i32
    %c0_i32_0 = arith.constant 0 : i32
    return %arg0, %arg1, %1, %c0_i32 : i32, i32, i32, i32
  }
  func.func @transform_1(%arg0: i32, %arg1: i32, %arg2: i32, %arg3: memref<1xi32, #tpu.memory_space<smem>>, %arg4: memref<1xi32, #tpu.memory_space<smem>>) -> (i32, i32, i32, i32) {
    %0 = arith.index_cast %arg2 : i32 to index
    %1 = memref.load %arg4[%0] : memref<1xi32, #tpu.memory_space<smem>>
    %c0_i32 = arith.constant 0 : i32
    %c0_i32_0 = arith.constant 0 : i32
    return %arg0, %arg1, %1, %c0_i32 : i32, i32, i32, i32
  }
  func.func @transform_2(%arg0: i32, %arg1: i32, %arg2: i32, %arg3: memref<1xi32, #tpu.memory_space<smem>>, %arg4: memref<1xi32, #tpu.memory_space<smem>>) -> (i32, i32, i32, i32) {
    %0 = arith.index_cast %arg2 : i32 to index
    %1 = memref.load %arg4[%0] : memref<1xi32, #tpu.memory_space<smem>>
    %c0_i32 = arith.constant 0 : i32
    %c0_i32_0 = arith.constant 0 : i32
    return %arg0, %arg1, %1, %c0_i32 : i32, i32, i32, i32
  }
  func.func @transform_3(%arg0: i32, %arg1: i32, %arg2: i32, %arg3: memref<1xi32, #tpu.memory_space<smem>>, %arg4: memref<1xi32, #tpu.memory_space<smem>>) -> (i32, i32, i32) {
    %0 = arith.index_cast %arg2 : i32 to index
    %1 = memref.load %arg3[%0] : memref<1xi32, #tpu.memory_space<smem>>
    %c0_i32 = arith.constant 0 : i32
    return %arg0, %1, %arg1 : i32, i32, i32
  }
}

</mosaic_0001>

<bundles_post_ra>
// kernel: tpu_custom_call.1
= control target key start
LH: loop header
LB: loop body
LE: loop exit
PB: predicated region body
PF: predicated region fallthrough
CT: control target
= control target key end

     0   :  { %s10198_s0 = inlined_call_operand.<no memory space> [shape: s32[1], index: 0, kind: input, shape index: {}]   ;;  %s10199_s1 = inlined_call_operand.<no memory space> [shape: s32[1], index: 1, kind: input, shape index: {}]   ;;  %s10200_s2 = inlined_call_operand.vmem [shape: bf16[2,2,256,64], index: 2, kind: input, shape index: {}]   ;;  %s10201_s3 = inlined_call_operand.vmem [shape: bf16[2,2,256,64], index: 3, kind: input, shape index: {}]   ;;  %s10202_s4 = inlined_call_operand.vmem [shape: bf16[2,2,256,64], index: 4, kind: input, shape index: {}]   ;;  %s10203_s5 = inlined_call_operand.hbm [shape: bf16[2,256,128], index: 5, kind: output, shape index: {}]  }
   0x1   :  { %10 = sst [smem:[#allocation7]] %s10198_s0 }
   0x2   :  { %11 = sst [smem:[#allocation8]] %s10199_s1 }
   0x3   :  { %12 = vsyncpa [#allocation10], 0 }
   0x4   :  { %14 = vsyncpa [#allocation10 + $0x1], 0  ;;  %s7373_s22 = smov 0   ;;  %s7375_s23 = smov 0  }
   0x5   :  { %s7377_s24 = smov 0   ;;  %s7379_s25 = smov 0  }
   0x6   :  { %s7381_s26 = smov 0   ;;  %s7383_s27 = smov 0  }
   0x7 LB: > { %s5864_s0 = sadd.s32 4294967295, %s7328_s27   ;;  %s5865_s1 = sadd.s32 4294967294, %s7328_s27   ;;  %s7328_s27 = sphi %s7383_s27, %s20_s27   ;;  %s7324_s26 = sphi %s7381_s26, %s10550_s26   ;;  %s7320_s25 = sphi %s7379_s25, %s10549_s25   ;;  %s7316_s24 = sphi %s7377_s24, %s10548_s24   ;;  %s7312_s23 = sphi %s7375_s23, %s10547_s23   ;;  %s7308_s22 = sphi %s7373_s22, %s10546_s22  }
   0x8   : > { %s39_s28 = sadd.s32 1, %s7324_s26  ;;  %s148_s29 = sadd.s32 1, %s7316_s24 }
   0x9   : > { %p41_p0 = scmp.ge.s32.totalorder %s39_s28, 2  ;;  %p158_p1 = scmp.ne.s32.totalorder %s7316_s24, %s7312_s23 }
   0xa   : > { %p159_p2 = scmp.eq.s32.totalorder %s5864_s0, 1  ;;  %p164_p4 = scmp.ne.s32.totalorder %s7312_s23, %s7308_s22 }
   0xb   : > { %s10552_s28 = smov (%p41_p0, %s39_s28), 0  ;;  %p165_p5 = scmp.eq.s32.totalorder %s5865_s1, 1 }
   0xc   : > { %10315 = sst [smem:[#allocation12_spill]] %s10552_s28  ;;  %p7411_p3 = por %p159_p2, %p158_p1 }
   0xd   : > { %s141_s6 = ssub.s32 %s7324_s26, %s10552_s28  ;;  %p5868_p6 = scmp.ge.s32.totalorder %s7328_s27, 1 }
   0xe   : > { %p7420_p7 = por %p165_p5, %p164_p4  ;;  %p146_p8 = scmp.eq.s32.totalorder %s141_s6, 0 }
   0xf   : > { %p246_p9 = scmp.lt.s32.totalorder %s7328_s27, 3 }
  0x10   : > { %s7426_s8 = scalar_select %p146_p8, %s7316_s24, %s148_s29  }
  0x11   : > { %p247_p10 = pnand %p5868_p6, %p246_p9 }
  0x13   : > { %250 = sbr.rel (%p247_p10) target bundleno = 3181 (0xc6d), region = 32 }
  0x18   : > { %s10204_s9 = sand.u32 1, %s7312_s23   ;;  %s310_s10 = sld [smem:[#allocation7]] }
  0x19   : > { %s5869_s11 = sshll.u32 %s10204_s9, 7  ;;  %p313_p11 = scmp.lt.s32.totalorder %s7320_s25, 1 }
  0x1a   : > { %s7432_s12 = sld [smem:[#allocation8]] }
  0x1b   : > { %s314_s13 = scalar_select %p313_p11, %s7320_s25, 1 }
  0x1d   : > { %s5871_s15 = sshll.u32 %s314_s13, 6 }
  0x1e   : > { %s5870_s14 = sshll.u32 %s310_s10, 5 }
  0x1f   : > { %p317_p12 = scmp.lt.s32.totalorder %s5870_s14, 31 }
  0x20   : > { %s5873_s16 = sshll.u32 %s7432_s12, 5  ;;  %p5879_p0 = scmp.ne.s32.totalorder %s7432_s12, 0 }
  0x21   : > { %s10554_s14 = smov (!%p317_p12, %s5870_s14), 31  ;;  %p335_p13 = scmp.lt.s32.totalorder %s5873_s16, 31 }
  0x22   : > { %s322_s17 = sadd.s32 %s5871_s15, %s10554_s14  ;;  %s7451_s14 = scalar_lea.vmem [#allocation9], %s5869_s11 }
  0x23   : > { %s5872_s18 = sshll.u32 %s322_s17, 2  ;;  %s10556_s16 = smov (!%p335_p13, %s5873_s16), 31 }
  0x24   : > { %s7439_s21 = scalar_lea.vmem %s10200_s2, %s5872_s18  ;;  %s340_s0 = sadd.s32 %s5871_s15, %s10556_s16 }
  0x25   : > { %s5875_s1 = sshll.u32 %s340_s0, 2  ;;  %370 = sbr.rel (%p5879_p0) target bundleno = 299 (0x12b), region = 36 }
  0x26   : > { %s7444_s9 = scalar_lea.vmem %s10201_s3, %s5875_s1  ;;  %s7449_s28 = scalar_lea.vmem %s10202_s4, %s5875_s1 }
  0x2a   : > { %vm371_vm0 = vcmask 7168   ;;  %v7330_v0 = vmov -1e+30   ;;  %v7331_v1 = vmov 0.0   ;;  %vm500_vm1 = vcmask 523264   ;;  %v6496_v2 = vld [vmem:[%s7439_s21] sm:$0xff]  }
  0x2b   : > { %372 = vst.msk [vmem:[#allocation3] sm:$0xff] %vm371_vm0, %v7330_v0  ;;  %v6623_v3 = vld [vmem:[%s7439_s21 + $0x8] sm:$0xff]   ;;  %v6497_v4 = vunpack.c.l.bf16 %v6496_v2  ;;  %v6498_v5 = vunpack.c.h.bf16 %v6496_v2  ;;  %v6624_v6 = vld [vmem:[%s7439_s21 + $0x10] sm:$0xff]   ;;  %v6625_v9 = vld [vmem:[%s7439_s21 + $0x18] sm:$0xff]   ;;  %vm821_vm2 = vcmask 519168  }
  0x2c   : > { %373 = vst.msk [vmem:[#allocation3 + $0x8] sm:$0xff] %vm371_vm0, %v7330_v0  ;;  %v6501_v7 = vunpack.c.l.bf16 %v6623_v3  ;;  %v6502_v8 = vunpack.c.h.bf16 %v6623_v3  ;;  %v6505_v11 = vunpack.c.l.bf16 %v6624_v6  ;;  %v6506_v13 = vunpack.c.h.bf16 %v6624_v6  ;;  %v6626_v14 = vld [vmem:[%s7439_s21 + $0x20] sm:$0xff]   ;;  %v6627_v19 = vld [vmem:[%s7439_s21 + $0x28] sm:$0xff]   ;;  %v6628_v26 = vld [vmem:[%s7439_s21 + $0x30] sm:$0xff]  }
  0x2d   : > { %374 = vst.msk [vmem:[#allocation3 + $0x10] sm:$0xff] %vm371_vm0, %v7330_v0  ;;  %v693_v10 = vmul.f32 0.125, %v6497_v4  ;;  %v694_v12 = vmul.f32 0.125, %v6498_v5  ;;  %v6509_v16 = vunpack.c.l.bf16 %v6625_v9  ;;  %v6510_v18 = vunpack.c.h.bf16 %v6625_v9  ;;  %v6629_v33 = vld [vmem:[%s7439_s21 + $0x38] sm:$0xff]   ;;  %v6630_v40 = vld [vmem:[%s7439_s21 + $0x40] sm:$0xff]   ;;  %v6631_v47 = vld [vmem:[%s7439_s21 + $0x48] sm:$0xff]  }
  0x2e   : > { %375 = vst.msk [vmem:[#allocation3 + $0x18] sm:$0xff] %vm371_vm0, %v7330_v0  ;;  %v695_v15 = vmul.f32 0.125, %v6501_v7  ;;  %v696_v17 = vmul.f32 0.125, %v6502_v8  ;;  %v697_v21 = vmul.f32 0.125, %v6505_v11  ;;  %v6513_v22 = vunpack.c.l.bf16 %v6626_v14  ;;  %v6632_v54 = vld [vmem:[%s7439_s21 + $0x50] sm:$0xff]   ;;  %v6633_v61 = vld [vmem:[%s7439_s21 + $0x58] sm:$0xff]  }
  0x2f   : > { %376 = vst.msk [vmem:[#allocation3 + $0x20] sm:$0xff] %vm371_vm0, %v7330_v0  ;;  %v757_v20 = vpack.c.bf16 %v693_v10, %v693_v10  ;;  %v758_v23 = vpack.c.bf16 %v694_v12, %v694_v12  ;;  %v698_v24 = vmul.f32 0.125, %v6506_v13  ;;  %v6514_v25 = vunpack.c.h.bf16 %v6626_v14  ;;  %v6634_v4 = vld [vmem:[%s7439_s21 + $0x60] sm:$0xff]   ;;  %v6635_v11 = vld [vmem:[%s7439_s21 + $0x68] sm:$0xff]  }
  0x30   : > { %377 = vst.msk [vmem:[#allocation3 + $0x28] sm:$0xff] %vm371_vm0, %v7330_v0  ;;  %v759_v27 = vpack.c.bf16 %v695_v15, %v695_v15  ;;  %v699_v28 = vmul.f32 0.125, %v6509_v16  ;;  %v6517_v29 = vunpack.c.l.bf16 %v6627_v19  ;;  %v760_v30 = vpack.c.bf16 %v696_v17, %v696_v17 }
  0x31   : > { %378 = vst.msk [vmem:[#allocation3 + $0x30] sm:$0xff] %vm371_vm0, %v7330_v0  ;;  %v700_v31 = vmul.f32 0.125, %v6510_v18  ;;  %v6518_v32 = vunpack.c.h.bf16 %v6627_v19  ;;  %v761_v34 = vpack.c.bf16 %v697_v21, %v697_v21  ;;  %v701_v35 = vmul.f32 0.125, %v6513_v22  ;;  %v6636_v18 = vld [vmem:[%s7439_s21 + $0x70] sm:$0xff]  }
  0x32   : > { %379 = vst.msk [vmem:[#allocation3 + $0x38] sm:$0xff] %vm371_vm0, %v7330_v0  ;;  %v6521_v36 = vunpack.c.l.bf16 %v6628_v26  ;;  %v762_v37 = vpack.c.bf16 %v698_v24, %v698_v24  ;;  %v702_v38 = vmul.f32 0.125, %v6514_v25  ;;  %v6522_v39 = vunpack.c.h.bf16 %v6628_v26  ;;  %v6637_v25 = vld [vmem:[%s7439_s21 + $0x78] sm:$0xff]  }
  0x33   : > { %380 = vst.msk [vmem:[#allocation3 + $0x40] sm:$0xff] %vm371_vm0, %v7330_v0  ;;  %v763_v41 = vpack.c.bf16 %v699_v28, %v699_v28  ;;  %v703_v42 = vmul.f32 0.125, %v6517_v29  ;;  %v6525_v43 = vunpack.c.l.bf16 %v6629_v33  ;;  %v764_v44 = vpack.c.bf16 %v700_v31, %v700_v31 }
  0x34   : > { %381 = vst.msk [vmem:[#allocation3 + $0x48] sm:$0xff] %vm371_vm0, %v7330_v0  ;;  %v704_v45 = vmul.f32 0.125, %v6518_v32  ;;  %v6526_v46 = vunpack.c.h.bf16 %v6629_v33  ;;  %v765_v48 = vpack.c.bf16 %v701_v35, %v701_v35  ;;  %v705_v49 = vmul.f32 0.125, %v6521_v36  ;;  %v6638_v32 = vld [vmem:[%s7439_s21 + $0x80] sm:$0xff]  }
  0x35   : > { %382 = vst.msk [vmem:[#allocation3 + $0x50] sm:$0xff] %vm371_vm0, %v7330_v0  ;;  %v6529_v50 = vunpack.c.l.bf16 %v6630_v40  ;;  %v766_v51 = vpack.c.bf16 %v702_v38, %v702_v38  ;;  %v706_v52 = vmul.f32 0.125, %v6522_v39  ;;  %v6530_v53 = vunpack.c.h.bf16 %v6630_v40  ;;  %v6639_v39 = vld [vmem:[%s7439_s21 + $0x88] sm:$0xff]  }
  0x36   : > { %383 = vst.msk [vmem:[#allocation3 + $0x58] sm:$0xff] %vm371_vm0, %v7330_v0  ;;  %v767_v55 = vpack.c.bf16 %v703_v42, %v703_v42  ;;  %v707_v56 = vmul.f32 0.125, %v6525_v43  ;;  %v6533_v57 = vunpack.c.l.bf16 %v6631_v47  ;;  %v768_v58 = vpack.c.bf16 %v704_v45, %v704_v45 }
  0x37   : > { %384 = vst.msk [vmem:[#allocation3 + $0x60] sm:$0xff] %vm371_vm0, %v7330_v0  ;;  %v708_v59 = vmul.f32 0.125, %v6526_v46  ;;  %v6534_v60 = vunpack.c.h.bf16 %v6631_v47  ;;  %v769_v62 = vpack.c.bf16 %v705_v49, %v705_v49  ;;  %v709_v63 = vmul.f32 0.125, %v6529_v50  ;;  %v6640_v46 = vld [vmem:[%s7439_s21 + $0x90] sm:$0xff]  }
  0x38   : > { %385 = vst.msk [vmem:[#allocation3 + $0x68] sm:$0xff] %vm371_vm0, %v7330_v0  ;;  %v710_v2 = vmul.f32 0.125, %v6530_v53  ;;  %v6538_v3 = vunpack.c.h.bf16 %v6632_v54  ;;  %v771_v5 = vpack.c.bf16 %v707_v56, %v707_v56  ;;  %v711_v6 = vmul.f32 0.125, %v6533_v57  ;;  %v6641_v53 = vld [vmem:[%s7439_s21 + $0x98] sm:$0xff]  }
  0x39   : > { %386 = vst.msk [vmem:[#allocation3 + $0x70] sm:$0xff] %vm371_vm0, %v7330_v0  ;;  %v6541_v7 = vunpack.c.l.bf16 %v6633_v61  ;;  %v772_v8 = vpack.c.bf16 %v708_v59, %v708_v59  ;;  %v712_v9 = vmul.f32 0.125, %v6534_v60  ;;  %v6542_v10 = vunpack.c.h.bf16 %v6633_v61  ;;  %v6642_v60 = vld [vmem:[%s7439_s21 + $0xa0] sm:$0xff]  }
  0x3a   : > { %387 = vst.msk [vmem:[#allocation3 + $0x78] sm:$0xff] %vm371_vm0, %v7330_v0  ;;  %v773_v12 = vpack.c.bf16 %v709_v63, %v709_v63  ;;  %v6545_v14 = vunpack.c.l.bf16 %v6634_v4  ;;  %v774_v15 = vpack.c.bf16 %v710_v2, %v710_v2  ;;  %v714_v16 = vmul.f32 0.125, %v6538_v3  ;;  %v6643_v3 = vld [vmem:[%s7439_s21 + $0xa8] sm:$0xff]  }
  0x3b   : > { %388 = vst.msk [vmem:[#allocation3 + $0x80] sm:$0xff] %vm371_vm0, %v7330_v0  ;;  %v6546_v17 = vunpack.c.h.bf16 %v6634_v4  ;;  %v775_v19 = vpack.c.bf16 %v711_v6, %v711_v6  ;;  %v6549_v21 = vunpack.c.l.bf16 %v6635_v11  ;;  %v776_v22 = vpack.c.bf16 %v712_v9, %v712_v9 }
  0x3c   : > { %389 = vst.msk [vmem:[#allocation3 + $0x88] sm:$0xff] %vm371_vm0, %v7330_v0  ;;  %v6550_v24 = vunpack.c.h.bf16 %v6635_v11  ;;  %v6553_v28 = vunpack.c.l.bf16 %v6636_v18  ;;  %v778_v29 = vpack.c.bf16 %v714_v16, %v714_v16  ;;  %v6554_v31 = vunpack.c.h.bf16 %v6636_v18 }
  0x3d   : > { %390 = vst.msk [vmem:[#allocation3 + $0x90] sm:$0xff] %vm371_vm0, %v7330_v0  ;;  %v6557_v35 = vunpack.c.l.bf16 %v6637_v25  ;;  %v6558_v38 = vunpack.c.h.bf16 %v6637_v25  ;;  %v6561_v42 = vunpack.c.l.bf16 %v6638_v32  ;;  %v6562_v45 = vunpack.c.h.bf16 %v6638_v32 }
  0x3e   : > { %391 = vst.msk [vmem:[#allocation3 + $0x98] sm:$0xff] %vm371_vm0, %v7330_v0  ;;  %v6565_v49 = vunpack.c.l.bf16 %v6639_v39  ;;  %v6569_v56 = vunpack.c.l.bf16 %v6640_v46  ;;  %v6570_v59 = vunpack.c.h.bf16 %v6640_v46  ;;  %v6573_v63 = vunpack.c.l.bf16 %v6641_v53 }
  0x3f   : > { %392 = vst.msk [vmem:[#allocation3 + $0xa0] sm:$0xff] %vm371_vm0, %v7330_v0  ;;  %v6574_v2 = vunpack.c.h.bf16 %v6641_v53  ;;  %v6577_v6 = vunpack.c.l.bf16 %v6642_v60  ;;  %v6578_v9 = vunpack.c.h.bf16 %v6642_v60  ;;  %v6582_v16 = vunpack.c.h.bf16 %v6643_v3 }
  0x40   : > { %393 = vst.msk [vmem:[#allocation3 + $0xa8] sm:$0xff] %vm371_vm0, %v7330_v0 }
  0x41   : > { %394 = vst.msk [vmem:[#allocation3 + $0xb0] sm:$0xff] %vm371_vm0, %v7330_v0 }
  0x42   : > { %395 = vst.msk [vmem:[#allocation3 + $0xb8] sm:$0xff] %vm371_vm0, %v7330_v0 }
  0x43   : > { %396 = vst.msk [vmem:[#allocation3 + $0xc0] sm:$0xff] %vm371_vm0, %v7330_v0 }
  0x44   : > { %397 = vst.msk [vmem:[#allocation3 + $0xc8] sm:$0xff] %vm371_vm0, %v7330_v0 }
  0x45   : > { %398 = vst.msk [vmem:[#allocation3 + $0xd0] sm:$0xff] %vm371_vm0, %v7330_v0 }
  0x46   : > { %399 = vst.msk [vmem:[#allocation3 + $0xd8] sm:$0xff] %vm371_vm0, %v7330_v0 }
  0x47   : > { %400 = vst.msk [vmem:[#allocation3 + $0xe0] sm:$0xff] %vm371_vm0, %v7330_v0 }
  0x48   : > { %401 = vst.msk [vmem:[#allocation3 + $0xe8] sm:$0xff] %vm371_vm0, %v7330_v0 }
  0x49   : > { %402 = vst.msk [vmem:[#allocation3 + $0xf0] sm:$0xff] %vm371_vm0, %v7330_v0 }
  0x4a   : > { %403 = vst.msk [vmem:[#allocation3 + $0xf8] sm:$0xff] %vm371_vm0, %v7330_v0 }
  0x4b   : > { %404 = vst.msk [vmem:[#allocation3 + $0x100] sm:$0xff] %vm371_vm0, %v7330_v0 }
  0x4c   : > { %405 = vst.msk [vmem:[#allocation3 + $0x108] sm:$0xff] %vm371_vm0, %v7330_v0 }
  0x4d   : > { %406 = vst.msk [vmem:[#allocation3 + $0x110] sm:$0xff] %vm371_vm0, %v7330_v0 }
  0x4e   : > { %407 = vst.msk [vmem:[#allocation3 + $0x118] sm:$0xff] %vm371_vm0, %v7330_v0 }
  0x4f   : > { %408 = vst.msk [vmem:[#allocation3 + $0x120] sm:$0xff] %vm371_vm0, %v7330_v0 }
  0x50   : > { %409 = vst.msk [vmem:[#allocation3 + $0x128] sm:$0xff] %vm371_vm0, %v7330_v0 }
  0x51   : > { %410 = vst.msk [vmem:[#allocation3 + $0x130] sm:$0xff] %vm371_vm0, %v7330_v0 }
  0x52   : > { %411 = vst.msk [vmem:[#allocation3 + $0x138] sm:$0xff] %vm371_vm0, %v7330_v0 }
  0x53   : > { %412 = vst.msk [vmem:[#allocation3 + $0x140] sm:$0xff] %vm371_vm0, %v7330_v0 }
  0x54   : > { %413 = vst.msk [vmem:[#allocation3 + $0x148] sm:$0xff] %vm371_vm0, %v7330_v0 }
  0x55   : > { %414 = vst.msk [vmem:[#allocation3 + $0x150] sm:$0xff] %vm371_vm0, %v7330_v0 }
  0x56   : > { %415 = vst.msk [vmem:[#allocation3 + $0x158] sm:$0xff] %vm371_vm0, %v7330_v0 }
  0x57   : > { %416 = vst.msk [vmem:[#allocation3 + $0x160] sm:$0xff] %vm371_vm0, %v7330_v0 }
  0x58   : > { %417 = vst.msk [vmem:[#allocation3 + $0x168] sm:$0xff] %vm371_vm0, %v7330_v0 }
  0x59   : > { %418 = vst.msk [vmem:[#allocation3 + $0x170] sm:$0xff] %vm371_vm0, %v7330_v0 }
  0x5a   : > { %419 = vst.msk [vmem:[#allocation3 + $0x178] sm:$0xff] %vm371_vm0, %v7330_v0 }
  0x5b   : > { %420 = vst.msk [vmem:[#allocation3 + $0x180] sm:$0xff] %vm371_vm0, %v7330_v0 }
  0x5c   : > { %421 = vst.msk [vmem:[#allocation3 + $0x188] sm:$0xff] %vm371_vm0, %v7330_v0 }
  0x5d   : > { %422 = vst.msk [vmem:[#allocation3 + $0x190] sm:$0xff] %vm371_vm0, %v7330_v0 }
  0x5e   : > { %423 = vst.msk [vmem:[#allocation3 + $0x198] sm:$0xff] %vm371_vm0, %v7330_v0 }
  0x5f   : > { %424 = vst.msk [vmem:[#allocation3 + $0x1a0] sm:$0xff] %vm371_vm0, %v7330_v0 }
  0x60   : > { %425 = vst.msk [vmem:[#allocation3 + $0x1a8] sm:$0xff] %vm371_vm0, %v7330_v0 }
  0x61   : > { %426 = vst.msk [vmem:[#allocation3 + $0x1b0] sm:$0xff] %vm371_vm0, %v7330_v0 }
  0x62   : > { %427 = vst.msk [vmem:[#allocation3 + $0x1b8] sm:$0xff] %vm371_vm0, %v7330_v0 }
  0x63   : > { %428 = vst.msk [vmem:[#allocation3 + $0x1c0] sm:$0xff] %vm371_vm0, %v7330_v0 }
  0x64   : > { %429 = vst.msk [vmem:[#allocation3 + $0x1c8] sm:$0xff] %vm371_vm0, %v7330_v0 }
  0x65   : > { %430 = vst.msk [vmem:[#allocation3 + $0x1d0] sm:$0xff] %vm371_vm0, %v7330_v0 }
  0x66   : > { %431 = vst.msk [vmem:[#allocation3 + $0x1d8] sm:$0xff] %vm371_vm0, %v7330_v0 }
  0x67   : > { %432 = vst.msk [vmem:[#allocation3 + $0x1e0] sm:$0xff] %vm371_vm0, %v7330_v0 }
  0x68   : > { %433 = vst.msk [vmem:[#allocation3 + $0x1e8] sm:$0xff] %vm371_vm0, %v7330_v0 }
  0x69   : > { %434 = vst.msk [vmem:[#allocation3 + $0x1f0] sm:$0xff] %vm371_vm0, %v7330_v0 }
  0x6a   : > { %435 = vst.msk [vmem:[#allocation3 + $0x1f8] sm:$0xff] %vm371_vm0, %v7330_v0  ;;  %v6537_v0 = vunpack.c.l.bf16 %v6632_v54 }
  0x6b   : > { %436 = vst.msk [vmem:[#allocation4] sm:$0xff] %vm371_vm0, %v7331_v1 }
  0x6c   : > { %437 = vst.msk [vmem:[#allocation4 + $0x8] sm:$0xff] %vm371_vm0, %v7331_v1  ;;  %v713_v13 = vmul.f32 0.125, %v6537_v0 }
  0x6d   : > { %438 = vst.msk [vmem:[#allocation4 + $0x10] sm:$0xff] %vm371_vm0, %v7331_v1 }
  0x6e   : > { %439 = vst.msk [vmem:[#allocation4 + $0x18] sm:$0xff] %vm371_vm0, %v7331_v1  ;;  %v777_v26 = vpack.c.bf16 %v713_v13, %v713_v13  ;;  %v6581_v13 = vunpack.c.l.bf16 %v6643_v3 }
  0x6f   : > { %440 = vst.msk [vmem:[#allocation4 + $0x20] sm:$0xff] %vm371_vm0, %v7331_v1 }
  0x70   : > { %441 = vst.msk [vmem:[#allocation4 + $0x28] sm:$0xff] %vm371_vm0, %v7331_v1 }
  0x71   : > { %442 = vst.msk [vmem:[#allocation4 + $0x30] sm:$0xff] %vm371_vm0, %v7331_v1 }
  0x72   : > { %443 = vst.msk [vmem:[#allocation4 + $0x38] sm:$0xff] %vm371_vm0, %v7331_v1 }
  0x73   : > { %444 = vst.msk [vmem:[#allocation4 + $0x40] sm:$0xff] %vm371_vm0, %v7331_v1 }
  0x74   : > { %445 = vst.msk [vmem:[#allocation4 + $0x48] sm:$0xff] %vm371_vm0, %v7331_v1 }
  0x75   : > { %446 = vst.msk [vmem:[#allocation4 + $0x50] sm:$0xff] %vm371_vm0, %v7331_v1 }
  0x76   : > { %447 = vst.msk [vmem:[#allocation4 + $0x58] sm:$0xff] %vm371_vm0, %v7331_v1 }
  0x77   : > { %448 = vst.msk [vmem:[#allocation4 + $0x60] sm:$0xff] %vm371_vm0, %v7331_v1 }
  0x78   : > { %449 = vst.msk [vmem:[#allocation4 + $0x68] sm:$0xff] %vm371_vm0, %v7331_v1 }
  0x79   : > { %450 = vst.msk [vmem:[#allocation4 + $0x70] sm:$0xff] %vm371_vm0, %v7331_v1 }
  0x7a   : > { %451 = vst.msk [vmem:[#allocation4 + $0x78] sm:$0xff] %vm371_vm0, %v7331_v1 }
  0x7b   : > { %452 = vst.msk [vmem:[#allocation4 + $0x80] sm:$0xff] %vm371_vm0, %v7331_v1 }
  0x7c   : > { %453 = vst.msk [vmem:[#allocation4 + $0x88] sm:$0xff] %vm371_vm0, %v7331_v1 }
  0x7d   : > { %454 = vst.msk [vmem:[#allocation4 + $0x90] sm:$0xff] %vm371_vm0, %v7331_v1 }
  0x7e   : > { %455 = vst.msk [vmem:[#allocation4 + $0x98] sm:$0xff] %vm371_vm0, %v7331_v1 }
  0x7f   : > { %456 = vst.msk [vmem:[#allocation4 + $0xa0] sm:$0xff] %vm371_vm0, %v7331_v1 }
  0x80   : > { %457 = vst.msk [vmem:[#allocation4 + $0xa8] sm:$0xff] %vm371_vm0, %v7331_v1 }
  0x81   : > { %458 = vst.msk [vmem:[#allocation4 + $0xb0] sm:$0xff] %vm371_vm0, %v7331_v1 }
  0x82   : > { %459 = vst.msk [vmem:[#allocation4 + $0xb8] sm:$0xff] %vm371_vm0, %v7331_v1 }
  0x83   : > { %460 = vst.msk [vmem:[#allocation4 + $0xc0] sm:$0xff] %vm371_vm0, %v7331_v1 }
  0x84   : > { %461 = vst.msk [vmem:[#allocation4 + $0xc8] sm:$0xff] %vm371_vm0, %v7331_v1 }
  0x85   : > { %462 = vst.msk [vmem:[#allocation4 + $0xd0] sm:$0xff] %vm371_vm0, %v7331_v1 }
  0x86   : > { %463 = vst.msk [vmem:[#allocation4 + $0xd8] sm:$0xff] %vm371_vm0, %v7331_v1 }
  0x87   : > { %464 = vst.msk [vmem:[#allocation4 + $0xe0] sm:$0xff] %vm371_vm0, %v7331_v1 }
  0x88   : > { %465 = vst.msk [vmem:[#allocation4 + $0xe8] sm:$0xff] %vm371_vm0, %v7331_v1 }
  0x89   : > { %466 = vst.msk [vmem:[#allocation4 + $0xf0] sm:$0xff] %vm371_vm0, %v7331_v1 }
  0x8a   : > { %467 = vst.msk [vmem:[#allocation4 + $0xf8] sm:$0xff] %vm371_vm0, %v7331_v1 }
  0x8b   : > { %468 = vst.msk [vmem:[#allocation4 + $0x100] sm:$0xff] %vm371_vm0, %v7331_v1 }
  0x8c   : > { %469 = vst.msk [vmem:[#allocation4 + $0x108] sm:$0xff] %vm371_vm0, %v7331_v1 }
  0x8d   : > { %470 = vst.msk [vmem:[#allocation4 + $0x110] sm:$0xff] %vm371_vm0, %v7331_v1 }
  0x8e   : > { %471 = vst.msk [vmem:[#allocation4 + $0x118] sm:$0xff] %vm371_vm0, %v7331_v1 }
  0x8f   : > { %472 = vst.msk [vmem:[#allocation4 + $0x120] sm:$0xff] %vm371_vm0, %v7331_v1 }
  0x90   : > { %473 = vst.msk [vmem:[#allocation4 + $0x128] sm:$0xff] %vm371_vm0, %v7331_v1 }
  0x91   : > { %474 = vst.msk [vmem:[#allocation4 + $0x130] sm:$0xff] %vm371_vm0, %v7331_v1 }
  0x92   : > { %475 = vst.msk [vmem:[#allocation4 + $0x138] sm:$0xff] %vm371_vm0, %v7331_v1 }
  0x93   : > { %476 = vst.msk [vmem:[#allocation4 + $0x140] sm:$0xff] %vm371_vm0, %v7331_v1 }
  0x94   : > { %477 = vst.msk [vmem:[#allocation4 + $0x148] sm:$0xff] %vm371_vm0, %v7331_v1 }
  0x95   : > { %478 = vst.msk [vmem:[#allocation4 + $0x150] sm:$0xff] %vm371_vm0, %v7331_v1 }
  0x96   : > { %479 = vst.msk [vmem:[#allocation4 + $0x158] sm:$0xff] %vm371_vm0, %v7331_v1 }
  0x97   : > { %480 = vst.msk [vmem:[#allocation4 + $0x160] sm:$0xff] %vm371_vm0, %v7331_v1 }
  0x98   : > { %481 = vst.msk [vmem:[#allocation4 + $0x168] sm:$0xff] %vm371_vm0, %v7331_v1 }
  0x99   : > { %482 = vst.msk [vmem:[#allocation4 + $0x170] sm:$0xff] %vm371_vm0, %v7331_v1 }
  0x9a   : > { %483 = vst.msk [vmem:[#allocation4 + $0x178] sm:$0xff] %vm371_vm0, %v7331_v1 }
  0x9b   : > { %484 = vst.msk [vmem:[#allocation4 + $0x180] sm:$0xff] %vm371_vm0, %v7331_v1 }
  0x9c   : > { %485 = vst.msk [vmem:[#allocation4 + $0x188] sm:$0xff] %vm371_vm0, %v7331_v1 }
  0x9d   : > { %486 = vst.msk [vmem:[#allocation4 + $0x190] sm:$0xff] %vm371_vm0, %v7331_v1 }
  0x9e   : > { %487 = vst.msk [vmem:[#allocation4 + $0x198] sm:$0xff] %vm371_vm0, %v7331_v1 }
  0x9f   : > { %488 = vst.msk [vmem:[#allocation4 + $0x1a0] sm:$0xff] %vm371_vm0, %v7331_v1 }
  0xa0   : > { %489 = vst.msk [vmem:[#allocation4 + $0x1a8] sm:$0xff] %vm371_vm0, %v7331_v1 }
  0xa1   : > { %490 = vst.msk [vmem:[#allocation4 + $0x1b0] sm:$0xff] %vm371_vm0, %v7331_v1 }
  0xa2   : > { %491 = vst.msk [vmem:[#allocation4 + $0x1b8] sm:$0xff] %vm371_vm0, %v7331_v1 }
  0xa3   : > { %492 = vst.msk [vmem:[#allocation4 + $0x1c0] sm:$0xff] %vm371_vm0, %v7331_v1 }
  0xa4   : > { %493 = vst.msk [vmem:[#allocation4 + $0x1c8] sm:$0xff] %vm371_vm0, %v7331_v1 }
  0xa5   : > { %494 = vst.msk [vmem:[#allocation4 + $0x1d0] sm:$0xff] %vm371_vm0, %v7331_v1 }
  0xa6   : > { %495 = vst.msk [vmem:[#allocation4 + $0x1d8] sm:$0xff] %vm371_vm0, %v7331_v1 }
  0xa7   : > { %496 = vst.msk [vmem:[#allocation4 + $0x1e0] sm:$0xff] %vm371_vm0, %v7331_v1 }
  0xa8   : > { %497 = vst.msk [vmem:[#allocation4 + $0x1e8] sm:$0xff] %vm371_vm0, %v7331_v1 }
  0xa9   : > { %498 = vst.msk [vmem:[#allocation4 + $0x1f0] sm:$0xff] %vm371_vm0, %v7331_v1 }
  0xaa   : > { %499 = vst.msk [vmem:[#allocation4 + $0x1f8] sm:$0xff] %vm371_vm0, %v7331_v1 }
  0xab   : > { %501 = vst.msk [vmem:[#allocation5] sm:$0xff] %vm500_vm1, %v7331_v1 }
  0xac   : > { %502 = vst.msk [vmem:[#allocation5 + $0x8] sm:$0xff] %vm500_vm1, %v7331_v1 }
  0xad   : > { %503 = vst.msk [vmem:[#allocation5 + $0x10] sm:$0xff] %vm500_vm1, %v7331_v1 }
  0xae   : > { %504 = vst.msk [vmem:[#allocation5 + $0x18] sm:$0xff] %vm500_vm1, %v7331_v1 }
  0xaf   : > { %505 = vst.msk [vmem:[#allocation5 + $0x20] sm:$0xff] %vm500_vm1, %v7331_v1 }
  0xb0   : > { %506 = vst.msk [vmem:[#allocation5 + $0x28] sm:$0xff] %vm500_vm1, %v7331_v1 }
  0xb1   : > { %507 = vst.msk [vmem:[#allocation5 + $0x30] sm:$0xff] %vm500_vm1, %v7331_v1 }
  0xb2   : > { %508 = vst.msk [vmem:[#allocation5 + $0x38] sm:$0xff] %vm500_vm1, %v7331_v1 }
  0xb3   : > { %509 = vst.msk [vmem:[#allocation5 + $0x40] sm:$0xff] %vm500_vm1, %v7331_v1 }
  0xb4   : > { %510 = vst.msk [vmem:[#allocation5 + $0x48] sm:$0xff] %vm500_vm1, %v7331_v1 }
  0xb5   : > { %511 = vst.msk [vmem:[#allocation5 + $0x50] sm:$0xff] %vm500_vm1, %v7331_v1 }
  0xb6   : > { %512 = vst.msk [vmem:[#allocation5 + $0x58] sm:$0xff] %vm500_vm1, %v7331_v1 }
  0xb7   : > { %513 = vst.msk [vmem:[#allocation5 + $0x60] sm:$0xff] %vm500_vm1, %v7331_v1 }
  0xb8   : > { %514 = vst.msk [vmem:[#allocation5 + $0x68] sm:$0xff] %vm500_vm1, %v7331_v1 }
  0xb9   : > { %515 = vst.msk [vmem:[#allocation5 + $0x70] sm:$0xff] %vm500_vm1, %v7331_v1 }
  0xba   : > { %516 = vst.msk [vmem:[#allocation5 + $0x78] sm:$0xff] %vm500_vm1, %v7331_v1 }
  0xbb   : > { %517 = vst.msk [vmem:[#allocation5 + $0x80] sm:$0xff] %vm500_vm1, %v7331_v1 }
  0xbc   : > { %518 = vst.msk [vmem:[#allocation5 + $0x88] sm:$0xff] %vm500_vm1, %v7331_v1 }
  0xbd   : > { %519 = vst.msk [vmem:[#allocation5 + $0x90] sm:$0xff] %vm500_vm1, %v7331_v1 }
  0xbe   : > { %520 = vst.msk [vmem:[#allocation5 + $0x98] sm:$0xff] %vm500_vm1, %v7331_v1 }
  0xbf   : > { %521 = vst.msk [vmem:[#allocation5 + $0xa0] sm:$0xff] %vm500_vm1, %v7331_v1 }
  0xc0   : > { %522 = vst.msk [vmem:[#allocation5 + $0xa8] sm:$0xff] %vm500_vm1, %v7331_v1 }
  0xc1   : > { %523 = vst.msk [vmem:[#allocation5 + $0xb0] sm:$0xff] %vm500_vm1, %v7331_v1 }
  0xc2   : > { %524 = vst.msk [vmem:[#allocation5 + $0xb8] sm:$0xff] %vm500_vm1, %v7331_v1 }
  0xc3   : > { %525 = vst.msk [vmem:[#allocation5 + $0xc0] sm:$0xff] %vm500_vm1, %v7331_v1 }
  0xc4   : > { %526 = vst.msk [vmem:[#allocation5 + $0xc8] sm:$0xff] %vm500_vm1, %v7331_v1 }
  0xc5   : > { %527 = vst.msk [vmem:[#allocation5 + $0xd0] sm:$0xff] %vm500_vm1, %v7331_v1 }
  0xc6   : > { %528 = vst.msk [vmem:[#allocation5 + $0xd8] sm:$0xff] %vm500_vm1, %v7331_v1 }
  0xc7   : > { %529 = vst.msk [vmem:[#allocation5 + $0xe0] sm:$0xff] %vm500_vm1, %v7331_v1 }
  0xc8   : > { %530 = vst.msk [vmem:[#allocation5 + $0xe8] sm:$0xff] %vm500_vm1, %v7331_v1 }
  0xc9   : > { %531 = vst.msk [vmem:[#allocation5 + $0xf0] sm:$0xff] %vm500_vm1, %v7331_v1 }
  0xca   : > { %532 = vst.msk [vmem:[#allocation5 + $0xf8] sm:$0xff] %vm500_vm1, %v7331_v1 }
  0xcb   : > { %533 = vst.msk [vmem:[#allocation5 + $0x100] sm:$0xff] %vm500_vm1, %v7331_v1 }
  0xcc   : > { %534 = vst.msk [vmem:[#allocation5 + $0x108] sm:$0xff] %vm500_vm1, %v7331_v1 }
  0xcd   : > { %535 = vst.msk [vmem:[#allocation5 + $0x110] sm:$0xff] %vm500_vm1, %v7331_v1 }
  0xce   : > { %536 = vst.msk [vmem:[#allocation5 + $0x118] sm:$0xff] %vm500_vm1, %v7331_v1 }
  0xcf   : > { %537 = vst.msk [vmem:[#allocation5 + $0x120] sm:$0xff] %vm500_vm1, %v7331_v1 }
  0xd0   : > { %538 = vst.msk [vmem:[#allocation5 + $0x128] sm:$0xff] %vm500_vm1, %v7331_v1 }
  0xd1   : > { %539 = vst.msk [vmem:[#allocation5 + $0x130] sm:$0xff] %vm500_vm1, %v7331_v1 }
  0xd2   : > { %540 = vst.msk [vmem:[#allocation5 + $0x138] sm:$0xff] %vm500_vm1, %v7331_v1 }
  0xd3   : > { %541 = vst.msk [vmem:[#allocation5 + $0x140] sm:$0xff] %vm500_vm1, %v7331_v1 }
  0xd4   : > { %542 = vst.msk [vmem:[#allocation5 + $0x148] sm:$0xff] %vm500_vm1, %v7331_v1 }
  0xd5   : > { %543 = vst.msk [vmem:[#allocation5 + $0x150] sm:$0xff] %vm500_vm1, %v7331_v1 }
  0xd6   : > { %544 = vst.msk [vmem:[#allocation5 + $0x158] sm:$0xff] %vm500_vm1, %v7331_v1 }
  0xd7   : > { %545 = vst.msk [vmem:[#allocation5 + $0x160] sm:$0xff] %vm500_vm1, %v7331_v1 }
  0xd8   : > { %546 = vst.msk [vmem:[#allocation5 + $0x168] sm:$0xff] %vm500_vm1, %v7331_v1 }
  0xd9   : > { %547 = vst.msk [vmem:[#allocation5 + $0x170] sm:$0xff] %vm500_vm1, %v7331_v1 }
  0xda   : > { %548 = vst.msk [vmem:[#allocation5 + $0x178] sm:$0xff] %vm500_vm1, %v7331_v1 }
  0xdb   : > { %549 = vst.msk [vmem:[#allocation5 + $0x180] sm:$0xff] %vm500_vm1, %v7331_v1 }
  0xdc   : > { %550 = vst.msk [vmem:[#allocation5 + $0x188] sm:$0xff] %vm500_vm1, %v7331_v1 }
  0xdd   : > { %551 = vst.msk [vmem:[#allocation5 + $0x190] sm:$0xff] %vm500_vm1, %v7331_v1 }
  0xde   : > { %552 = vst.msk [vmem:[#allocation5 + $0x198] sm:$0xff] %vm500_vm1, %v7331_v1 }
  0xdf   : > { %553 = vst.msk [vmem:[#allocation5 + $0x1a0] sm:$0xff] %vm500_vm1, %v7331_v1 }
  0xe0   : > { %554 = vst.msk [vmem:[#allocation5 + $0x1a8] sm:$0xff] %vm500_vm1, %v7331_v1 }
  0xe1   : > { %555 = vst.msk [vmem:[#allocation5 + $0x1b0] sm:$0xff] %vm500_vm1, %v7331_v1 }
  0xe2   : > { %556 = vst.msk [vmem:[#allocation5 + $0x1b8] sm:$0xff] %vm500_vm1, %v7331_v1 }
  0xe3   : > { %557 = vst.msk [vmem:[#allocation5 + $0x1c0] sm:$0xff] %vm500_vm1, %v7331_v1 }
  0xe4   : > { %558 = vst.msk [vmem:[#allocation5 + $0x1c8] sm:$0xff] %vm500_vm1, %v7331_v1 }
  0xe5   : > { %559 = vst.msk [vmem:[#allocation5 + $0x1d0] sm:$0xff] %vm500_vm1, %v7331_v1 }
  0xe6   : > { %560 = vst.msk [vmem:[#allocation5 + $0x1d8] sm:$0xff] %vm500_vm1, %v7331_v1 }
  0xe7   : > { %561 = vst.msk [vmem:[#allocation5 + $0x1e0] sm:$0xff] %vm500_vm1, %v7331_v1 }
  0xe8   : > { %562 = vst.msk [vmem:[#allocation5 + $0x1e8] sm:$0xff] %vm500_vm1, %v7331_v1 }
  0xe9   : > { %563 = vst.msk [vmem:[#allocation5 + $0x1f0] sm:$0xff] %vm500_vm1, %v7331_v1 }
  0xea   : > { %564 = vst.msk [vmem:[#allocation5 + $0x1f8] sm:$0xff] %vm500_vm1, %v7331_v1  ;;  %v770_v1 = vpack.c.bf16 %v706_v52, %v706_v52  ;;  %v6566_v52 = vunpack.c.h.bf16 %v6639_v39 }
  0xeb   : > { %822 = vst.msk [vmem:[#allocation2] sm:$0xf] %vm821_vm2, %v757_v20  ;;  %v715_v20 = vmul.f32 0.125, %v6541_v7 }
  0xec   : > { %823 = vst.msk [vmem:[#allocation2 + $0x4] sm:$0xf] %vm821_vm2, %v758_v23  ;;  %v716_v23 = vmul.f32 0.125, %v6542_v10  ;;  %v6644_v10 = vld [vmem:[%s7439_s21 + $0xb0] sm:$0xff]  }
  0xed   : > { %824 = vst.msk [vmem:[#allocation2 + $0x8] sm:$0xf] %vm821_vm2, %v759_v27  ;;  %v717_v27 = vmul.f32 0.125, %v6545_v14  ;;  %v779_v33 = vpack.c.bf16 %v715_v20, %v715_v20  ;;  %v6585_v20 = vunpack.c.l.bf16 %v6644_v10 }
  0xee   : > { %825 = vst.msk [vmem:[#allocation2 + $0xc] sm:$0xf] %vm821_vm2, %v760_v30  ;;  %v718_v30 = vmul.f32 0.125, %v6546_v17  ;;  %v780_v36 = vpack.c.bf16 %v716_v23, %v716_v23  ;;  %v6645_v17 = vld [vmem:[%s7439_s21 + $0xb8] sm:$0xff]   ;;  %v6586_v23 = vunpack.c.h.bf16 %v6644_v10 }
  0xef   : > { %826 = vst.msk [vmem:[#allocation2 + $0x10] sm:$0xf] %vm821_vm2, %v761_v34  ;;  %v719_v34 = vmul.f32 0.125, %v6549_v21  ;;  %v781_v40 = vpack.c.bf16 %v717_v27, %v717_v27  ;;  %v6589_v27 = vunpack.c.l.bf16 %v6645_v17 }
  0xf0   : > { %827 = vst.msk [vmem:[#allocation2 + $0x14] sm:$0xf] %vm821_vm2, %v762_v37  ;;  %v720_v37 = vmul.f32 0.125, %v6550_v24  ;;  %v782_v43 = vpack.c.bf16 %v718_v30, %v718_v30  ;;  %v6646_v24 = vld [vmem:[%s7439_s21 + $0xc0] sm:$0xff]   ;;  %v6590_v30 = vunpack.c.h.bf16 %v6645_v17 }
  0xf1   : > { %828 = vst.msk [vmem:[#allocation2 + $0x18] sm:$0xf] %vm821_vm2, %v763_v41  ;;  %v721_v41 = vmul.f32 0.125, %v6553_v28  ;;  %v783_v47 = vpack.c.bf16 %v719_v34, %v719_v34  ;;  %v6593_v34 = vunpack.c.l.bf16 %v6646_v24 }
  0xf2   : > { %829 = vst.msk [vmem:[#allocation2 + $0x1c] sm:$0xf] %vm821_vm2, %v764_v44  ;;  %v722_v44 = vmul.f32 0.125, %v6554_v31  ;;  %v784_v50 = vpack.c.bf16 %v720_v37, %v720_v37  ;;  %v6647_v31 = vld [vmem:[%s7439_s21 + $0xc8] sm:$0xff]   ;;  %v6594_v37 = vunpack.c.h.bf16 %v6646_v24 }
  0xf3   : > { %830 = vst.msk [vmem:[#allocation2 + $0x20] sm:$0xf] %vm821_vm2, %v765_v48  ;;  %v723_v48 = vmul.f32 0.125, %v6557_v35  ;;  %v785_v54 = vpack.c.bf16 %v721_v41, %v721_v41  ;;  %v6597_v41 = vunpack.c.l.bf16 %v6647_v31 }
  0xf4   : > { %831 = vst.msk [vmem:[#allocation2 + $0x24] sm:$0xf] %vm821_vm2, %v766_v51  ;;  %v724_v51 = vmul.f32 0.125, %v6558_v38  ;;  %v786_v57 = vpack.c.bf16 %v722_v44, %v722_v44  ;;  %v6648_v38 = vld [vmem:[%s7439_s21 + $0xd0] sm:$0xff]   ;;  %v6598_v44 = vunpack.c.h.bf16 %v6647_v31 }
  0xf5   : > { %832 = vst.msk [vmem:[#allocation2 + $0x28] sm:$0xf] %vm821_vm2, %v767_v55  ;;  %v725_v55 = vmul.f32 0.125, %v6561_v42  ;;  %v787_v61 = vpack.c.bf16 %v723_v48, %v723_v48  ;;  %v6601_v48 = vunpack.c.l.bf16 %v6648_v38 }
  0xf6   : > { %833 = vst.msk [vmem:[#allocation2 + $0x2c] sm:$0xf] %vm821_vm2, %v768_v58  ;;  %v726_v58 = vmul.f32 0.125, %v6562_v45  ;;  %v788_v0 = vpack.c.bf16 %v724_v51, %v724_v51  ;;  %v6649_v45 = vld [vmem:[%s7439_s21 + $0xd8] sm:$0xff]   ;;  %v6602_v51 = vunpack.c.h.bf16 %v6648_v38 }
  0xf7   : > { %834 = vst.msk [vmem:[#allocation2 + $0x30] sm:$0xf] %vm821_vm2, %v769_v62  ;;  %v727_v62 = vmul.f32 0.125, %v6565_v49  ;;  %v789_v4 = vpack.c.bf16 %v725_v55, %v725_v55  ;;  %v6605_v55 = vunpack.c.l.bf16 %v6649_v45 }
  0xf8   : > { %835 = vst.msk [vmem:[#allocation2 + $0x34] sm:$0xf] %vm821_vm2, %v770_v1  ;;  %v728_v1 = vmul.f32 0.125, %v6566_v52  ;;  %v790_v7 = vpack.c.bf16 %v726_v58, %v726_v58  ;;  %v6650_v52 = vld [vmem:[%s7439_s21 + $0xe0] sm:$0xff]   ;;  %v6606_v58 = vunpack.c.h.bf16 %v6649_v45 }
  0xf9   : > { %836 = vst.msk [vmem:[#allocation2 + $0x38] sm:$0xf] %vm821_vm2, %v771_v5  ;;  %v729_v5 = vmul.f32 0.125, %v6569_v56  ;;  %v791_v11 = vpack.c.bf16 %v727_v62, %v727_v62  ;;  %v6609_v62 = vunpack.c.l.bf16 %v6650_v52 }
  0xfa   : > { %837 = vst.msk [vmem:[#allocation2 + $0x3c] sm:$0xf] %vm821_vm2, %v772_v8  ;;  %v730_v8 = vmul.f32 0.125, %v6570_v59  ;;  %v792_v14 = vpack.c.bf16 %v728_v1, %v728_v1  ;;  %v6651_v59 = vld [vmem:[%s7439_s21 + $0xe8] sm:$0xff]   ;;  %v6610_v1 = vunpack.c.h.bf16 %v6650_v52 }
  0xfb   : > { %838 = vst.msk [vmem:[#allocation2 + $0x40] sm:$0xf] %vm821_vm2, %v773_v12  ;;  %v731_v12 = vmul.f32 0.125, %v6573_v63  ;;  %v793_v18 = vpack.c.bf16 %v729_v5, %v729_v5  ;;  %v6613_v5 = vunpack.c.l.bf16 %v6651_v59 }
  0xfc   : > { %839 = vst.msk [vmem:[#allocation2 + $0x44] sm:$0xf] %vm821_vm2, %v774_v15  ;;  %v732_v15 = vmul.f32 0.125, %v6574_v2  ;;  %v794_v21 = vpack.c.bf16 %v730_v8, %v730_v8  ;;  %v6652_v2 = vld [vmem:[%s7439_s21 + $0xf0] sm:$0xff]   ;;  %v6614_v8 = vunpack.c.h.bf16 %v6651_v59 }
  0xfd   : > { %840 = vst.msk [vmem:[#allocation2 + $0x48] sm:$0xf] %vm821_vm2, %v775_v19  ;;  %v733_v19 = vmul.f32 0.125, %v6577_v6  ;;  %v795_v25 = vpack.c.bf16 %v731_v12, %v731_v12  ;;  %v6617_v12 = vunpack.c.l.bf16 %v6652_v2  ;;  %v751_v17 = vmul.f32 0.125, %v6613_v5 }
  0xfe   : > { %841 = vst.msk [vmem:[#allocation2 + $0x4c] sm:$0xf] %vm821_vm2, %v776_v22  ;;  %v734_v22 = vmul.f32 0.125, %v6578_v9  ;;  %v796_v28 = vpack.c.bf16 %v732_v15, %v732_v15  ;;  %v6653_v9 = vld [vmem:[%s7439_s21 + $0xf8] sm:$0xff]   ;;  %v6618_v15 = vunpack.c.h.bf16 %v6652_v2 }
  0xff   : > { %842 = vst.msk [vmem:[#allocation2 + $0x50] sm:$0xf] %vm821_vm2, %v777_v26  ;;  %v735_v26 = vmul.f32 0.125, %v6581_v13  ;;  %v797_v32 = vpack.c.bf16 %v733_v19, %v733_v19 }
 0x100   : > { %843 = vst.msk [vmem:[#allocation2 + $0x54] sm:$0xf] %vm821_vm2, %v778_v29  ;;  %v736_v29 = vmul.f32 0.125, %v6582_v16  ;;  %v798_v35 = vpack.c.bf16 %v734_v22, %v734_v22 }
 0x101   : > { %844 = vst.msk [vmem:[#allocation2 + $0x58] sm:$0xf] %vm821_vm2, %v779_v33  ;;  %v737_v33 = vmul.f32 0.125, %v6585_v20  ;;  %v799_v39 = vpack.c.bf16 %v735_v26, %v735_v26  ;;  %v752_v20 = vmul.f32 0.125, %v6614_v8  ;;  %v815_v26 = vpack.c.bf16 %v751_v17, %v751_v17 }
 0x102   : > { %845 = vst.msk [vmem:[#allocation2 + $0x5c] sm:$0xf] %vm821_vm2, %v780_v36  ;;  %v738_v36 = vmul.f32 0.125, %v6586_v23  ;;  %v800_v42 = vpack.c.bf16 %v736_v29, %v736_v29  ;;  %v753_v23 = vmul.f32 0.125, %v6617_v12 }
 0x103   : > { %846 = vst.msk [vmem:[#allocation2 + $0x60] sm:$0xf] %vm821_vm2, %v781_v40  ;;  %v739_v40 = vmul.f32 0.125, %v6589_v27  ;;  %v801_v46 = vpack.c.bf16 %v737_v33, %v737_v33 }
 0x104   : > { %847 = vst.msk [vmem:[#allocation2 + $0x64] sm:$0xf] %vm821_vm2, %v782_v43  ;;  %v740_v43 = vmul.f32 0.125, %v6590_v30  ;;  %v802_v49 = vpack.c.bf16 %v738_v36, %v738_v36  ;;  %v817_v30 = vpack.c.bf16 %v753_v23, %v753_v23 }
 0x105   : > { %848 = vst.msk [vmem:[#allocation2 + $0x68] sm:$0xf] %vm821_vm2, %v783_v47  ;;  %v741_v47 = vmul.f32 0.125, %v6593_v34  ;;  %v803_v53 = vpack.c.bf16 %v739_v40, %v739_v40 }
 0x106   : > { %849 = vst.msk [vmem:[#allocation2 + $0x6c] sm:$0xf] %vm821_vm2, %v784_v50  ;;  %v742_v50 = vmul.f32 0.125, %v6594_v37  ;;  %v804_v56 = vpack.c.bf16 %v740_v43, %v740_v43 }
 0x107   : > { %850 = vst.msk [vmem:[#allocation2 + $0x70] sm:$0xf] %vm821_vm2, %v785_v54  ;;  %v743_v54 = vmul.f32 0.125, %v6597_v41  ;;  %v805_v60 = vpack.c.bf16 %v741_v47, %v741_v47 }
 0x108   : > { %851 = vst.msk [vmem:[#allocation2 + $0x74] sm:$0xf] %vm821_vm2, %v786_v57  ;;  %v744_v57 = vmul.f32 0.125, %v6598_v44  ;;  %v806_v63 = vpack.c.bf16 %v742_v50, %v742_v50 }
 0x109   : > { %852 = vst.msk [vmem:[#allocation2 + $0x78] sm:$0xf] %vm821_vm2, %v787_v61  ;;  %v745_v61 = vmul.f32 0.125, %v6601_v48  ;;  %v807_v3 = vpack.c.bf16 %v743_v54, %v743_v54 }
 0x10a   : > { %853 = vst.msk [vmem:[#allocation2 + $0x7c] sm:$0xf] %vm821_vm2, %v788_v0  ;;  %v746_v0 = vmul.f32 0.125, %v6602_v51  ;;  %v808_v6 = vpack.c.bf16 %v744_v57, %v744_v57 }
 0x10b   : > { %854 = vst.msk [vmem:[#allocation2 + $0x80] sm:$0xf] %vm821_vm2, %v789_v4  ;;  %v747_v4 = vmul.f32 0.125, %v6605_v55  ;;  %v809_v10 = vpack.c.bf16 %v745_v61, %v745_v61 }
 0x10c   : > { %855 = vst.msk [vmem:[#allocation2 + $0x84] sm:$0xf] %vm821_vm2, %v790_v7  ;;  %v748_v7 = vmul.f32 0.125, %v6606_v58  ;;  %v810_v13 = vpack.c.bf16 %v746_v0, %v746_v0 }
 0x10d   : > { %856 = vst.msk [vmem:[#allocation2 + $0x88] sm:$0xf] %vm821_vm2, %v791_v11  ;;  %v749_v11 = vmul.f32 0.125, %v6609_v62  ;;  %v811_v16 = vpack.c.bf16 %v747_v4, %v747_v4 }
 0x10e   : > { %857 = vst.msk [vmem:[#allocation2 + $0x8c] sm:$0xf] %vm821_vm2, %v792_v14  ;;  %v750_v14 = vmul.f32 0.125, %v6610_v1  ;;  %v812_v19 = vpack.c.bf16 %v748_v7, %v748_v7 }
 0x10f   : > { %858 = vst.msk [vmem:[#allocation2 + $0x90] sm:$0xf] %vm821_vm2, %v793_v18  ;;  %v6621_v18 = vunpack.c.l.bf16 %v6653_v9  ;;  %v813_v22 = vpack.c.bf16 %v749_v11, %v749_v11 }
 0x110   : > { %859 = vst.msk [vmem:[#allocation2 + $0x94] sm:$0xf] %vm821_vm2, %v794_v21  ;;  %v6622_v21 = vunpack.c.h.bf16 %v6653_v9  ;;  %v814_v24 = vpack.c.bf16 %v750_v14, %v750_v14 }
 0x111   : > { %860 = vst.msk [vmem:[#allocation2 + $0x98] sm:$0xf] %vm821_vm2, %v795_v25  ;;  %v754_v25 = vmul.f32 0.125, %v6618_v15  ;;  %v755_v27 = vmul.f32 0.125, %v6621_v18 }
 0x112   : > { %861 = vst.msk [vmem:[#allocation2 + $0x9c] sm:$0xf] %vm821_vm2, %v796_v28  ;;  %v816_v28 = vpack.c.bf16 %v752_v20, %v752_v20  ;;  %v756_v29 = vmul.f32 0.125, %v6622_v21 }
 0x113   : > { %862 = vst.msk [vmem:[#allocation2 + $0xa0] sm:$0xf] %vm821_vm2, %v797_v32  ;;  %v818_v31 = vpack.c.bf16 %v754_v25, %v754_v25  ;;  %v819_v32 = vpack.c.bf16 %v755_v27, %v755_v27 }
 0x114   : > { %863 = vst.msk [vmem:[#allocation2 + $0xa4] sm:$0xf] %vm821_vm2, %v798_v35  ;;  %v820_v33 = vpack.c.bf16 %v756_v29, %v756_v29 }
 0x115   : > { %864 = vst.msk [vmem:[#allocation2 + $0xa8] sm:$0xf] %vm821_vm2, %v799_v39 }
 0x116   : > { %865 = vst.msk [vmem:[#allocation2 + $0xac] sm:$0xf] %vm821_vm2, %v800_v42 }
 0x117   : > { %866 = vst.msk [vmem:[#allocation2 + $0xb0] sm:$0xf] %vm821_vm2, %v801_v46 }
 0x118   : > { %867 = vst.msk [vmem:[#allocation2 + $0xb4] sm:$0xf] %vm821_vm2, %v802_v49 }
 0x119   : > { %868 = vst.msk [vmem:[#allocation2 + $0xb8] sm:$0xf] %vm821_vm2, %v803_v53 }
 0x11a   : > { %869 = vst.msk [vmem:[#allocation2 + $0xbc] sm:$0xf] %vm821_vm2, %v804_v56 }
 0x11b   : > { %870 = vst.msk [vmem:[#allocation2 + $0xc0] sm:$0xf] %vm821_vm2, %v805_v60 }
 0x11c   : > { %871 = vst.msk [vmem:[#allocation2 + $0xc4] sm:$0xf] %vm821_vm2, %v806_v63 }
 0x11d   : > { %872 = vst.msk [vmem:[#allocation2 + $0xc8] sm:$0xf] %vm821_vm2, %v807_v3 }
 0x11e   : > { %873 = vst.msk [vmem:[#allocation2 + $0xcc] sm:$0xf] %vm821_vm2, %v808_v6 }
 0x11f   : > { %874 = vst.msk [vmem:[#allocation2 + $0xd0] sm:$0xf] %vm821_vm2, %v809_v10 }
 0x120   : > { %875 = vst.msk [vmem:[#allocation2 + $0xd4] sm:$0xf] %vm821_vm2, %v810_v13 }
 0x121   : > { %876 = vst.msk [vmem:[#allocation2 + $0xd8] sm:$0xf] %vm821_vm2, %v811_v16 }
 0x122   : > { %877 = vst.msk [vmem:[#allocation2 + $0xdc] sm:$0xf] %vm821_vm2, %v812_v19 }
 0x123   : > { %878 = vst.msk [vmem:[#allocation2 + $0xe0] sm:$0xf] %vm821_vm2, %v813_v22 }
 0x124   : > { %879 = vst.msk [vmem:[#allocation2 + $0xe4] sm:$0xf] %vm821_vm2, %v814_v24 }
 0x125   : > { %880 = vst.msk [vmem:[#allocation2 + $0xe8] sm:$0xf] %vm821_vm2, %v815_v26 }
 0x126   : > { %881 = vst.msk [vmem:[#allocation2 + $0xec] sm:$0xf] %vm821_vm2, %v816_v28 }
 0x127   : > { %882 = vst.msk [vmem:[#allocation2 + $0xf0] sm:$0xf] %vm821_vm2, %v817_v30 }
 0x128   : > { %883 = vst.msk [vmem:[#allocation2 + $0xf4] sm:$0xf] %vm821_vm2, %v818_v31 }
 0x129   : > { %884 = vst.msk [vmem:[#allocation2 + $0xf8] sm:$0xf] %vm821_vm2, %v819_v32 }
 0x12a   : > { %885 = vst.msk [vmem:[#allocation2 + $0xfc] sm:$0xf] %vm821_vm2, %v820_v33 }
 0x12b PF: > { %v6422_v34 = vld [vmem:[%s7444_s9 + $0x38] sm:$0xff]  ;;  %vm1142_vm3 = vcmask 523264   ;;  %v6421_v38 = vld [vmem:[%s7444_s9 + $0x30] sm:$0xff]  ;;  %v6420_v42 = vld [vmem:[%s7444_s9 + $0x28] sm:$0xff]  ;;  %vm2217_vm4 = vcmask 7168  }
 0x12c   : > { %v6430_v35 = vld [vmem:[%s7444_s9 + $0x78] sm:$0xff]  ;;  %v1213_v36 = vsel %vm1142_vm3, %v6422_v34, 0  ;;  %v6429_v39 = vld [vmem:[%s7444_s9 + $0x70] sm:$0xff]  ;;  %v1210_v40 = vsel %vm1142_vm3, %v6421_v38, 0  ;;  %v6428_v43 = vld [vmem:[%s7444_s9 + $0x68] sm:$0xff]  ;;  %v1207_v44 = vsel %vm1142_vm3, %v6420_v42, 0 }
 0x12d   : > { %v1237_v37 = vsel %vm1142_vm3, %v6430_v35, 0  ;;  %1239 = vmatpush.bf16.xpose.msra.mxu0 %v1213_v36  ;;  %v1234_v41 = vsel %vm1142_vm3, %v6429_v39, 0  ;;  %v1231_v45 = vsel %vm1142_vm3, %v6428_v43, 0  ;;  %v6419_v46 = vld [vmem:[%s7444_s9 + $0x20] sm:$0xff]  ;;  %v6418_v50 = vld [vmem:[%s7444_s9 + $0x18] sm:$0xff]  ;;  %v6417_v54 = vld [vmem:[%s7444_s9 + $0x10] sm:$0xff] }
 0x12e   : > { %1328 = vmatpush.bf16.xpose.msra.mxu1 %v1237_v37  ;;  %v6427_v47 = vld [vmem:[%s7444_s9 + $0x60] sm:$0xff]  ;;  %v1204_v48 = vsel %vm1142_vm3, %v6419_v46, 0  ;;  %v6426_v51 = vld [vmem:[%s7444_s9 + $0x58] sm:$0xff]  ;;  %v1201_v52 = vsel %vm1142_vm3, %v6418_v50, 0  ;;  %v6425_v55 = vld [vmem:[%s7444_s9 + $0x50] sm:$0xff]  ;;  %v1198_v56 = vsel %vm1142_vm3, %v6417_v54, 0 }
 0x12f   : > { %v1228_v49 = vsel %vm1142_vm3, %v6427_v47, 0  ;;  %v1225_v53 = vsel %vm1142_vm3, %v6426_v51, 0  ;;  %v1222_v57 = vsel %vm1142_vm3, %v6425_v55, 0  ;;  %v6416_v58 = vld [vmem:[%s7444_s9 + $0x8] sm:$0xff]  ;;  %v6415_v62 = vld [vmem:[%s7444_s9] sm:$0xff]  ;;  %v6401_v4 = vld [vmem:[#allocation2 + $0x10] sm:$0xff] }
 0x130   : > { %v6424_v59 = vld [vmem:[%s7444_s9 + $0x48] sm:$0xff]  ;;  %v1195_v60 = vsel %vm1142_vm3, %v6416_v58, 0  ;;  %v6423_v63 = vld [vmem:[%s7444_s9 + $0x40] sm:$0xff]  ;;  %v1192_v0 = vsel %vm1142_vm3, %v6415_v62, 0  ;;  %v6402_v5 = vld [vmem:[#allocation2 + $0x18] sm:$0xff]  ;;  %v7332_v55 = vmov 0  }
 0x131   : > { %v1219_v61 = vsel %vm1142_vm3, %v6424_v59, 0  ;;  %v1216_v1 = vsel %vm1142_vm3, %v6423_v63, 0  ;;  %v6399_v2 = vld [vmem:[#allocation2] sm:$0xff]  ;;  %v6400_v3 = vld [vmem:[#allocation2 + $0x8] sm:$0xff]  ;;  %v6405_v8 = vld [vmem:[#allocation2 + $0x30] sm:$0xff]  ;;  %6732 = vset.pattern.permute.xlu2 %v7332_v55  ;;  %6733 = vset.pattern.permute.xlu0 %v7332_v55 }
 0x132   : > { %v6403_v6 = vld [vmem:[#allocation2 + $0x20] sm:$0xff]  ;;  %v6404_v7 = vld [vmem:[#allocation2 + $0x28] sm:$0xff]  ;;  %v6406_v9 = vld [vmem:[#allocation2 + $0x38] sm:$0xff]  ;;  %6734 = vset.pattern.permute.xlu1 %v7332_v55 }
 0x133   : > { %v6407_v10 = vld [vmem:[#allocation2 + $0x40] sm:$0xff]  ;;  %v6408_v22 = vld [vmem:[#allocation2 + $0x48] sm:$0xff] }
 0x134   : > { %v1417_v59 = vld [vmem:[#allocation3] sm:$0xff] }
 0x135   : > { %1240 = vmatpush.bf16.xpose.msra.mxu0 %v1210_v40 }
 0x136   : > { %1329 = vmatpush.bf16.xpose.msra.mxu1 %v1234_v41 }
 0x13d   : > { %1241 = vmatpush.bf16.xpose.msra.mxu0 %v1207_v44 }
 0x13e   : > { %1330 = vmatpush.bf16.xpose.msra.mxu1 %v1231_v45  ;;  %v6409_v45 = vld [vmem:[#allocation2 + $0x50] sm:$0xff] }
 0x145   : > { %1242 = vmatpush.bf16.xpose.msra.mxu0 %v1204_v48 }
 0x146   : > { %1331 = vmatpush.bf16.xpose.msra.mxu1 %v1228_v49 }
 0x14d   : > { %1243 = vmatpush.bf16.xpose.msra.mxu0 %v1201_v52 }
 0x14e   : > { %1332 = vmatpush.bf16.xpose.msra.mxu1 %v1225_v53 }
 0x155   : > { %1244 = vmatpush.bf16.xpose.msra.mxu0 %v1198_v56 }
 0x156   : > { %1333 = vmatpush.bf16.xpose.msra.mxu1 %v1222_v57 }
 0x15d   : > { %1245 = vmatpush.bf16.xpose.msra.mxu0 %v1195_v60 }
 0x15e   : > { %1334 = vmatpush.bf16.xpose.msra.mxu1 %v1219_v61 }
 0x165   : > { %1246 = vmatpush.bf16.xpose.msra.mxu0 %v1192_v0  ;;  %v6410_v0 = vld [vmem:[#allocation2 + $0x58] sm:$0xff] }
 0x166   : > { %1335 = vmatpush.bf16.xpose.msra.mxu1 %v1216_v1 }
 0x16c   : > { %6008 = vmatmul.msk.bf16.vlgmr.msra.gmra.mxu0 %vm1142_vm3, %v6399_v2 }
 0x16d   : > { %6024 = vmatmul.msk.bf16.vlgmr.msra.gmra.mxu1 %vm1142_vm3, %v6399_v2  ;;  %v1418_v2 = vld [vmem:[#allocation3 + $0x8] sm:$0xff] }
 0x17c   : > { %6009 = vmatmul.msk.bf16.gmra.mxu0 %vm1142_vm3, %v6400_v3 }
 0x17d   : > { %6025 = vmatmul.msk.bf16.gmra.mxu1 %vm1142_vm3, %v6400_v3 }
 0x18c   : > { %6010 = vmatmul.msk.bf16.gmra.mxu0 %vm1142_vm3, %v6401_v4 }
 0x18d   : > { %6026 = vmatmul.msk.bf16.gmra.mxu1 %vm1142_vm3, %v6401_v4 }
 0x19c   : > { %6011 = vmatmul.msk.bf16.gmra.mxu0 %vm1142_vm3, %v6402_v5 }
 0x19d   : > { %6027 = vmatmul.msk.bf16.gmra.mxu1 %vm1142_vm3, %v6402_v5 }
 0x1ac   : > { %6012 = vmatmul.msk.bf16.gmra.mxu0 %vm1142_vm3, %v6403_v6 }
 0x1ad   : > { %6028 = vmatmul.msk.bf16.gmra.mxu1 %vm1142_vm3, %v6403_v6 }
 0x1bc   : > { %6013 = vmatmul.msk.bf16.gmra.mxu0 %vm1142_vm3, %v6404_v7 }
 0x1bd   : > { %6029 = vmatmul.msk.bf16.gmra.mxu1 %vm1142_vm3, %v6404_v7 }
 0x1cc   : > { %6014 = vmatmul.msk.bf16.gmra.mxu0 %vm1142_vm3, %v6405_v8 }
 0x1cd   : > { %6030 = vmatmul.msk.bf16.gmra.mxu1 %vm1142_vm3, %v6405_v8 }
 0x1dc   : > { %6015 = vmatmul.msk.bf16.gmra.mxu0 %vm1142_vm3, %v6406_v9 }
 0x1dd   : > { %6031 = vmatmul.msk.bf16.gmra.mxu1 %vm1142_vm3, %v6406_v9  ;;  %v1419_v9 = vld [vmem:[#allocation3 + $0x10] sm:$0xff] }
 0x1e9   : > { %v7984_v11 = vpop.f32.mrf.mxu0 }
 0x1ea   : > { %v7986_v12 = vpop.f32.mrf.mxu1 }
 0x1eb   : > { %v1449_v13 = vmax.f32 %v7984_v11, %v7986_v12 }
 0x1ec   : > { %6016 = vmatmul.msk.bf16.gmra.mxu0 %vm1142_vm3, %v6407_v10 }
 0x1ed   : > { %6032 = vmatmul.msk.bf16.gmra.mxu1 %vm1142_vm3, %v6407_v10  ;;  %1450 = vmax.xlane.f32.xlu0 %v1449_v13 }
 0x1f1   : > { %v7992_v14 = vpop.f32.mrf.mxu0 }
 0x1f2   : > { %v7994_v15 = vpop.f32.mrf.mxu1 }
 0x1f3   : > { %v1452_v16 = vmax.f32 %v7992_v14, %v7994_v15 }
 0x1f5   : > { %1453 = vmax.xlane.f32.xlu0 %v1452_v16  ;;  %v8097_v16 = vld [vmem:[#allocation3 + $0x18] sm:$0xff] }
 0x1f9   : > { %v7998_v17 = vpop.f32.mrf.mxu0 }
 0x1fa   : > { %v8000_v18 = vpop.f32.mrf.mxu1 }
 0x1fb   : > { %v1455_v19 = vmax.f32 %v7998_v17, %v8000_v18 }
 0x1fc   : > { %6017 = vmatmul.msk.bf16.gmra.mxu0 %vm1142_vm3, %v6408_v22 }
 0x1fd   : > { %1456 = vmax.xlane.f32.xlu1 %v1455_v19  ;;  %6033 = vmatmul.msk.bf16.gmra.mxu1 %vm1142_vm3, %v6408_v22 }
 0x201   : > { %v8004_v20 = vpop.f32.mrf.mxu0 }
 0x202   : > { %v8006_v21 = vpop.f32.mrf.mxu1 }
 0x203   : > { %v1458_v23 = vmax.f32 %v8004_v20, %v8006_v21 }
 0x205   : > { %1459 = vmax.xlane.f32.xlu1 %v1458_v23 }
 0x209   : > { %v8012_v24 = vpop.f32.mrf.mxu0 }
 0x20a   : > { %v8014_v25 = vpop.f32.mrf.mxu1 }
 0x20b   : > { %v1461_v26 = vmax.f32 %v8012_v24, %v8014_v25 }
 0x20c   : > { %6018 = vmatmul.msk.bf16.gmra.mxu0 %vm1142_vm3, %v6409_v45 }
 0x20d   : > { %1462 = vmax.xlane.f32.xlu2 %v1461_v26  ;;  %6034 = vmatmul.msk.bf16.gmra.mxu1 %vm1142_vm3, %v6409_v45 }
 0x211   : > { %v8018_v27 = vpop.f32.mrf.mxu0 }
 0x212   : > { %v8020_v28 = vpop.f32.mrf.mxu1 }
 0x213   : > { %v1464_v29 = vmax.f32 %v8018_v27, %v8020_v28 }
 0x215   : > { %1465 = vmax.xlane.f32.xlu2 %v1464_v29  ;;  %v1421_v29 = vld [vmem:[#allocation3 + $0x20] sm:$0xff] }
 0x219   : > { %v8024_v30 = vpop.f32.mrf.mxu0 }
 0x21a   : > { %v8026_v31 = vpop.f32.mrf.mxu1 }
 0x21b   : > { %v1467_v32 = vmax.f32 %v8024_v30, %v8026_v31 }
 0x21c   : > { %6019 = vmatmul.msk.bf16.gmra.mxu0 %vm1142_vm3, %v6410_v0 }
 0x21d   : > { %1468 = vmax.xlane.f32.xlu0 %v1467_v32  ;;  %6035 = vmatmul.msk.bf16.gmra.mxu1 %vm1142_vm3, %v6410_v0 }
 0x221   : > { %v8030_v33 = vpop.f32.mrf.mxu0 }
 0x222   : > { %v8032_v34 = vpop.f32.mrf.mxu1 }
 0x223   : > { %v1470_v35 = vmax.f32 %v8030_v33, %v8032_v34 }
 0x225   : > { %1471 = vmax.xlane.f32.xlu1 %v1470_v35 }
 0x229   : > { %v8036_v36 = vpop.f32.mrf.mxu0 }
 0x22a   : > { %v8038_v37 = vpop.f32.mrf.mxu1 }
 0x22b   : > { %v1473_v38 = vmax.f32 %v8036_v36, %v8038_v37 }
 0x22d   : > { %1474 = vmax.xlane.f32.xlu2 %v1473_v38 }
 0x231   : > { %v8042_v39 = vpop.f32.mrf.mxu0 }
 0x232   : > { %v8044_v40 = vpop.f32.mrf.mxu1 }
 0x233   : > { %v1476_v41 = vmax.f32 %v8042_v39, %v8044_v40 }
 0x235   : > { %1477 = vmax.xlane.f32.xlu0 %v1476_v41  ;;  %v8111_v41 = vld [vmem:[#allocation3 + $0x28] sm:$0xff] }
 0x239   : > { %v8048_v42 = vpop.f32.mrf.mxu0 }
 0x23a   : > { %v8050_v43 = vpop.f32.mrf.mxu1 }
 0x23b   : > { %v1479_v44 = vmax.f32 %v8048_v42, %v8050_v43 }
 0x23d   : > { %1480 = vmax.xlane.f32.xlu1 %v1479_v44 }
 0x241   : > { %v8054_v46 = vpop.f32.mrf.mxu0 }
 0x242   : > { %v8056_v47 = vpop.f32.mrf.mxu1 }
 0x243   : > { %v1482_v48 = vmax.f32 %v8054_v46, %v8056_v47 }
 0x245   : > { %1483 = vmax.xlane.f32.xlu2 %v1482_v48  ;;  %v8118_v48 = vld [vmem:[#allocation3 + $0x30] sm:$0xff] }
 0x249   : > { %v8062_v49 = vpop.f32.mrf.mxu0 }
 0x24a   : > { %10318 = vst [vmem:[#allocation13_spill] sm:$0xff] %v8062_v49  ;;  %v8064_v50 = vpop.f32.mrf.mxu1 }
 0x24b   : > { %10319 = vst [vmem:[#allocation14_spill] sm:$0xff] %v8064_v50  ;;  %v1485_v51 = vmax.f32 %v8062_v49, %v8064_v50 }
 0x24d   : > { %1486 = vmax.xlane.f32.xlu0 %v1485_v51  ;;  %v6411_v51 = vld [vmem:[#allocation2 + $0x60] sm:$0xff] }
 0x24e   : > { %6020 = vmatmul.msk.bf16.gmra.mxu0 %vm1142_vm3, %v6411_v51  ;;  %6036 = vmatmul.msk.bf16.gmra.mxu1 %vm1142_vm3, %v6411_v51 }
 0x251   : > { %v8068_v52 = vpop.f32.mrf.mxu0 }
 0x252   : > { %v8070_v53 = vpop.f32.mrf.mxu1 }
 0x253   : > { %10320 = vst [vmem:[#allocation15_spill] sm:$0xff] %v8070_v53  ;;  %v1488_v54 = vmax.f32 %v8068_v52, %v8070_v53  ;;  %v6413_v53 = vld [vmem:[#allocation2 + $0x70] sm:$0xff] }
 0x255   : > { %1489 = vmax.xlane.f32.xlu1 %v1488_v54 }
 0x259   : > { %v8074_v56 = vpop.f32.mrf.mxu0 }
 0x25a   : > { %10321 = vst [vmem:[#allocation16_spill] sm:$0xff] %v8074_v56  ;;  %v8076_v57 = vpop.f32.mrf.mxu1 }
 0x25b   : > { %10322 = vst [vmem:[#allocation17_spill] sm:$0xff] %v8076_v57  ;;  %v1491_v58 = vmax.f32 %v8074_v56, %v8076_v57 }
 0x25d   : > { %1492 = vmax.xlane.f32.xlu2 %v1491_v58 }
 0x260   : > { %v1451_v60 = vpop.xlane.xlu0 %1450 }
 0x261   : > { %v1545_v61 = vmax.f32 %v1417_v59, %v1451_v60  ;;  %v8080_v62 = vpop.f32.mrf.mxu0  ;;  %v8131_v60 = vld [vmem:[#allocation3 + $0x38] sm:$0xff] }
 0x262   : > { %10323 = vst [vmem:[#allocation18_spill] sm:$0xff] %v8080_v62  ;;  %v8082_v63 = vpop.f32.mrf.mxu1 }
 0x263   : > { %10324 = vst [vmem:[#allocation19_spill] sm:$0xff] %v8082_v63  ;;  %v1494_v1 = vmax.f32 %v8080_v62, %v8082_v63  ;;  %v1577_v19 = vsub.f32 %v1417_v59, %v1545_v61 }
 0x264   : > { %2844 = vst.msk [vmem:[#allocation3] sm:$0xff] %vm2217_vm4, %v1545_v61 }
 0x265   : > { %1495 = vmax.xlane.f32.xlu0 %v1494_v1  ;;  %v1609_v26 = vmul.f32 1.442695, %v1577_v19 }
 0x267   : > { %6735 = vpow2.f32 %v1609_v26 }
 0x268   : > { %v1454_v3 = vpop.xlane.xlu0 %1453 }
 0x269   : > { %v1546_v4 = vmax.f32 %v1418_v2, %v1454_v3  ;;  %v8089_v5 = vpop.f32.mrf.mxu0 }
 0x26a   : > { %10325 = vst [vmem:[#allocation20_spill] sm:$0xff] %v8089_v5  ;;  %v8091_v6 = vpop.f32.mrf.mxu1 }
 0x26b   : > { %10326 = vst [vmem:[#allocation21_spill] sm:$0xff] %v8091_v6  ;;  %v1497_v7 = vmax.f32 %v8089_v5, %v8091_v6  ;;  %v1578_v8 = vsub.f32 %v1418_v2, %v1546_v4 }
 0x26c   : > { %2845 = vst.msk [vmem:[#allocation3 + $0x8] sm:$0xff] %vm2217_vm4, %v1546_v4 }
 0x26d   : > { %1498 = vmax.xlane.f32.xlu1 %v1497_v7  ;;  %v8108_v38 = vpop.eup %6735  ;;  %v1611_v51 = vmul.f32 1.442695, %v1578_v8 }
 0x26e   : > { %10327 = vst [vmem:[#allocation22_spill] sm:$0xff] %v8108_v38 }
 0x26f   : > { %6737 = vpow2.f32 %v1611_v51 }
 0x270   : > { %v1457_v10 = vpop.xlane.xlu1 %1456 }
 0x271   : > { %v1547_v13 = vmax.f32 %v1419_v9, %v1457_v10  ;;  %v8127_v58 = vpop.f32.mrf.mxu0 }
 0x272   : > { %10328 = vst [vmem:[#allocation23_spill] sm:$0xff] %v8127_v58  ;;  %v8129_v59 = vpop.f32.mrf.mxu1 }
 0x273   : > { %2846 = vst.msk [vmem:[#allocation3 + $0x10] sm:$0xff] %vm2217_vm4, %v1547_v13  ;;  %v1500_v1 = vmax.f32 %v8127_v58, %v8129_v59  ;;  %v1579_v26 = vsub.f32 %v1419_v9, %v1547_v13  ;;  %v6439_v58 = vld [vmem:[%s7449_s28 + $0x40] sm:$0xff] }
 0x274   : > { %10329 = vst [vmem:[#allocation24_spill] sm:$0xff] %v8129_v59 }
 0x275   : > { %1675 = vperm.xlu2 %6732, %v1545_v61  }
 0x278   : > { %v1460_v22 = vpop.xlane.xlu1 %1459 }
 0x279   : > { %v8100_v23 = vmax.f32 %v8097_v16, %v1460_v22  ;;  %1680 = vperm.xlu0 %6733, %v1546_v4   ;;  %v8142_v3 = vpop.f32.mrf.mxu0  ;;  %v8144_v4 = vld [vmem:[#allocation3 + $0x40] sm:$0xff]  ;;  %v8153_v22 = vld [vmem:[#allocation3 + $0x48] sm:$0xff] }
 0x27a   : > { %v8140_v2 = vpop.f32.mrf.mxu1  ;;  %10331 = vst [vmem:[#allocation26_spill] sm:$0xff] %v8142_v3 }
 0x27b   : > { %2847 = vst.msk [vmem:[#allocation3 + $0x18] sm:$0xff] %vm2217_vm4, %v8100_v23  ;;  %v1503_v7 = vmax.f32 %v8142_v3, %v8140_v2  ;;  %v6437_v3 = vld [vmem:[%s7449_s28 + $0x30] sm:$0xff] }
 0x27c   : > { %10330 = vst [vmem:[#allocation25_spill] sm:$0xff] %v8140_v2  ;;  %v6446_v2 = vld [vmem:[%s7449_s28 + $0x78] sm:$0xff] }
 0x27d   : > { %2691 = vmatpush.bf16.msra.mxu3 %v6446_v2  ;;  %v6436_v2 = vld [vmem:[%s7449_s28 + $0x28] sm:$0xff] }
 0x280   : > { %v1463_v32 = vpop.xlane.xlu2 %1462 }
 0x281   : > { %v8104_v35 = vmax.f32 %v1421_v29, %v1463_v32  ;;  %v8166_v9 = vpop.f32.mrf.mxu0 }
 0x282   : > { %10332 = vst [vmem:[#allocation27_spill] sm:$0xff] %v8166_v9 }
 0x283   : > { %2848 = vst.msk [vmem:[#allocation3 + $0x20] sm:$0xff] %vm2217_vm4, %v8104_v35 }
 0x286   : > { %2284 = vperm.xlu1 %6734, %v8108_v38  }
 0x288   : > { %v1466_v44 = vpop.xlane.xlu2 %1465 }
 0x289   : > { %v8114_v45 = vmax.f32 %v8111_v41, %v1466_v44 }
 0x28b   : > { %2849 = vst.msk [vmem:[#allocation3 + $0x28] sm:$0xff] %vm2217_vm4, %v8114_v45 }
 0x28e   : > { %1685 = vperm.xlu1 %6734, %v1547_v13   ;;  %v8168_v13 = vpop.f32.mrf.mxu1 }
 0x28f   : > { %10333 = vst [vmem:[#allocation28_spill] sm:$0xff] %v8168_v13  ;;  %v1506_v51 = vmax.f32 %v8166_v9, %v8168_v13  ;;  %v6445_v13 = vld [vmem:[%s7449_s28 + $0x70] sm:$0xff] }
 0x290   : > { %v1469_v54 = vpop.xlane.xlu0 %1468  ;;  %2692 = vmatpush.bf16.msra.mxu3 %v6445_v13 }
 0x291   : > { %v8123_v55 = vmax.f32 %v8118_v48, %v1469_v54  ;;  %v1613_v54 = vmul.f32 1.442695, %v1579_v26  ;;  %v8172_v26 = vpop.eup %6737 }
 0x292   : > { %10334 = vst [vmem:[#allocation29_spill] sm:$0xff] %v8172_v26 }
 0x293   : > { %2850 = vst.msk [vmem:[#allocation3 + $0x30] sm:$0xff] %vm2217_vm4, %v8123_v55  ;;  %6739 = vpow2.f32 %v1613_v54 }
 0x296   : > { %v8240_v63 = vpop.f32.mrf.mxu1 }
 0x297   : > { %10339 = vst [vmem:[#allocation34_spill] sm:$0xff] %v8240_v63 }
 0x298   : > { %v1472_v61 = vpop.xlane.xlu1 %1471 }
 0x299   : > { %v8134_v0 = vmax.f32 %v8131_v60, %v1472_v61  ;;  %v8160_v61 = vld [vmem:[#allocation3 + $0x50] sm:$0xff] }
 0x29b   : > { %2851 = vst.msk [vmem:[#allocation3 + $0x38] sm:$0xff] %vm2217_vm4, %v8134_v0 }
 0x29e   : > { %1501 = vmax.xlane.f32.xlu2 %v1500_v1  ;;  %v1581_v1 = vsub.f32 %v1421_v29, %v8104_v35  ;;  %v8177_v29 = vld [vmem:[#allocation3 + $0x58] sm:$0xff] }
 0x2a0   : > { %v1475_v10 = vpop.xlane.xlu2 %1474  ;;  %v1617_v8 = vmul.f32 1.442695, %v1581_v1 }
 0x2a1   : > { %v8149_v19 = vmax.f32 %v8144_v4, %v1475_v10 }
 0x2a2   : > { %6741 = vpow2.f32 %v1617_v8  ;;  %v8194_v8 = vld [vmem:[#allocation3 + $0x60] sm:$0xff] }
 0x2a3   : > { %2852 = vst.msk [vmem:[#allocation3 + $0x40] sm:$0xff] %vm2217_vm4, %v8149_v19  ;;  %1504 = vmax.xlane.f32.xlu0 %v1503_v7 }
 0x2a8   : > { %v1478_v32 = vpop.xlane.xlu0 %1477 }
 0x2a9   : > { %v8156_v44 = vmax.f32 %v8153_v22, %v1478_v32  ;;  %v8174_v32 = vpop.eup %6739 }
 0x2aa   : > { %10335 = vst [vmem:[#allocation30_spill] sm:$0xff] %v8174_v32  ;;  %v8191_v9 = vpop.eup %6741 }
 0x2ab   : > { %2853 = vst.msk [vmem:[#allocation3 + $0x48] sm:$0xff] %vm2217_vm4, %v8156_v44 }
 0x2ac   : > { %10336 = vst [vmem:[#allocation31_spill] sm:$0xff] %v8191_v9 }
 0x2b0   : > { %v1481_v10 = vpop.xlane.xlu1 %1480 }
 0x2b1   : > { %v8164_v7 = vmax.f32 %v8160_v61, %v1481_v10  ;;  %v6438_v10 = vld [vmem:[%s7449_s28 + $0x38] sm:$0xff] }
 0x2b2   : > { %2602 = vmatpush.bf16.msra.mxu2 %v6438_v10  ;;  %v6444_v10 = vld [vmem:[%s7449_s28 + $0x68] sm:$0xff] }
 0x2b3   : > { %2854 = vst.msk [vmem:[#allocation3 + $0x50] sm:$0xff] %vm2217_vm4, %v8164_v7  ;;  %2693 = vmatpush.bf16.msra.mxu3 %v6444_v10 }
 0x2b6   : > { %2289 = vperm.xlu2 %6732, %v8172_v26   ;;  %2603 = vmatpush.bf16.msra.mxu2 %v6437_v3  ;;  %v6435_v26 = vld [vmem:[%s7449_s28 + $0x20] sm:$0xff] }
 0x2b7   : > { %2294 = vperm.xlu0 %6733, %v8174_v32   ;;  %v1580_v32 = vsub.f32 %v8097_v16, %v8100_v23  ;;  %v6443_v3 = vld [vmem:[%s7449_s28 + $0x60] sm:$0xff]  ;;  %v6434_v16 = vld [vmem:[%s7449_s28 + $0x18] sm:$0xff] }
 0x2b8   : > { %v1484_v54 = vpop.xlane.xlu2 %1483  ;;  %1507 = vmax.xlane.f32.xlu1 %v1506_v51  ;;  %2694 = vmatpush.bf16.msra.mxu3 %v6443_v3 }
 0x2b9   : > { %v8183_v1 = vmax.f32 %v8177_v29, %v1484_v54  ;;  %v1615_v13 = vmul.f32 1.442695, %v1580_v32  ;;  %v6412_v32 = vld [vmem:[#allocation2 + $0x68] sm:$0xff] }
 0x2ba   : > { %2604 = vmatpush.bf16.msra.mxu2 %v6436_v2  ;;  %v6441_v2 = vld [vmem:[%s7449_s28 + $0x50] sm:$0xff]  ;;  %6021 = vmatmul.msk.bf16.gmra.mxu0 %vm1142_vm3, %v6412_v32 }
 0x2bb   : > { %2855 = vst.msk [vmem:[#allocation3 + $0x58] sm:$0xff] %vm2217_vm4, %v8183_v1  ;;  %6743 = vpow2.f32 %v1615_v13  ;;  %6037 = vmatmul.msk.bf16.gmra.mxu1 %vm1142_vm3, %v6412_v32  ;;  %v6432_v13 = vld [vmem:[%s7449_s28 + $0x8] sm:$0xff]  ;;  %v8236_v32 = vld [vmem:[#allocation3 + $0x78] sm:$0xff] }
 0x2bc   : > { %10338 = vst [vmem:[#allocation33_spill] sm:$0xff] %v8236_v32 }
 0x2be   : > { %1690 = vperm.xlu2 %6732, %v8100_v23   ;;  %2605 = vmatpush.bf16.msra.mxu2 %v6435_v26  ;;  %v6442_v23 = vld [vmem:[%s7449_s28 + $0x58] sm:$0xff]  ;;  %v8220_v26 = vld [vmem:[#allocation3 + $0x70] sm:$0xff] }
 0x2bf   : > { %2304 = vperm.xlu0 %6733, %v8191_v9   ;;  %2695 = vmatpush.bf16.msra.mxu3 %v6442_v23  ;;  %v6431_v23 = vld [vmem:[%s7449_s28] sm:$0xff] }
 0x2c0   : > { %v1487_v51 = vpop.xlane.xlu0 %1486 }
 0x2c1   : > { %v8198_v54 = vmax.f32 %v8194_v8, %v1487_v51  ;;  %v8209_v51 = vld [vmem:[#allocation3 + $0x68] sm:$0xff] }
 0x2c2   : > { %2606 = vmatpush.bf16.msra.mxu2 %v6434_v16  ;;  %v6440_v16 = vld [vmem:[%s7449_s28 + $0x48] sm:$0xff] }
 0x2c3   : > { %2856 = vst.msk [vmem:[#allocation3 + $0x60] sm:$0xff] %vm2217_vm4, %v8198_v54  ;;  %2696 = vmatpush.bf16.msra.mxu3 %v6441_v2 }
 0x2c6   : > { %1695 = vperm.xlu2 %6732, %v8104_v35   ;;  %v6433_v35 = vld [vmem:[%s7449_s28 + $0x10] sm:$0xff] }
 0x2c7   : > { %2607 = vmatpush.bf16.msra.mxu2 %v6433_v35  ;;  %2697 = vmatpush.bf16.msra.mxu3 %v6440_v16  ;;  %v8238_v35 = vpop.f32.mrf.mxu0 }
 0x2c8   : > { %v1490_v9 = vpop.xlane.xlu1 %1489 }
 0x2c9   : > { %v8212_v59 = vmax.f32 %v8209_v51, %v1490_v9  ;;  %v8224_v9 = vpop.eup %6743 }
 0x2ca   : > { %10337 = vst [vmem:[#allocation32_spill] sm:$0xff] %v8224_v9  ;;  %6022 = vmatmul.msk.bf16.gmra.mxu0 %vm1142_vm3, %v6413_v53 }
 0x2cb   : > { %2857 = vst.msk [vmem:[#allocation3 + $0x68] sm:$0xff] %vm2217_vm4, %v8212_v59  ;;  %2608 = vmatpush.bf16.msra.mxu2 %v6432_v13  ;;  %2698 = vmatpush.bf16.msra.mxu3 %v6439_v58 }
 0x2cc   : > { %6038 = vmatmul.msk.bf16.gmra.mxu1 %vm1142_vm3, %v6413_v53 }
 0x2cf   : > { %2609 = vmatpush.bf16.msra.mxu2 %v6431_v23  ;;  %v8250_v23 = vld [vmem:[#allocation3 + $0x80] sm:$0xff] }
 0x2d0   : > { %v1493_v10 = vpop.xlane.xlu2 %1492 }
 0x2d1   : > { %v8227_v3 = vmax.f32 %v8220_v26, %v1493_v10  ;;  %2299 = vperm.xlu1 %6734, %v8224_v9  }
 0x2d3   : > { %2858 = vst.msk [vmem:[#allocation3 + $0x70] sm:$0xff] %vm2217_vm4, %v8227_v3 }
 0x2d8   : > { %v1676_v2 = vpop.permute.xlu2 %1675  ;;  %v1496_v10 = vpop.xlane.xlu0 %1495 }
 0x2d9   : > { %v1833_v9 = vsub.f32 %v7984_v11, %v1676_v2  ;;  %v1834_v62 = vsub.f32 %v7986_v12, %v1676_v2  ;;  %v8245_v57 = vmax.f32 %v8236_v32, %v1496_v10  ;;  %1700 = vperm.xlu1 %6734, %v8114_v45   ;;  %v8256_v11 = vpop.f32.mrf.mxu0  ;;  %v8258_v12 = vpop.f32.mrf.mxu1 }
 0x2da   : > { %10340 = vst [vmem:[#allocation35_spill] sm:$0xff] %v8256_v11 }
 0x2db   : > { %v1897_v13 = vmul.f32 1.442695, %v1833_v9  ;;  %v1899_v16 = vmul.f32 1.442695, %v1834_v62  ;;  %2859 = vst.msk [vmem:[#allocation3 + $0x78] sm:$0xff] %vm2217_vm4, %v8245_v57  ;;  %v1512_v9 = vmax.f32 %v8256_v11, %v8258_v12 }
 0x2dc   : > { %10341 = vst [vmem:[#allocation36_spill] sm:$0xff] %v8258_v12  ;;  %v1584_v12 = vsub.f32 %v8131_v60, %v8134_v0 }
 0x2dd   : > { %6745 = vpow2.f32 %v1897_v13 }
 0x2de   : > { %6747 = vpow2.f32 %v1899_v16 }
 0x2e0   : > { %v1499_v56 = vpop.xlane.xlu1 %1498 }
 0x2e1   : > { %v8253_v58 = vmax.f32 %v8250_v23, %v1499_v56  ;;  %1710 = vperm.xlu1 %6734, %v8134_v0   ;;  %v1509_v56 = vmax.f32 %v8238_v35, %v8240_v63  ;;  %v8286_v53 = vpop.f32.mrf.mxu1 }
 0x2e2   : > { %10342 = vst [vmem:[#allocation37_spill] sm:$0xff] %v8286_v53 }
 0x2e3   : > { %v6746_v2 = vpop.eup %6745  ;;  %2860 = vst.msk [vmem:[#allocation3 + $0x80] sm:$0xff] %vm2217_vm4, %v8253_v58 }
 0x2e4   : > { %v6748_v62 = vpop.eup %6747 }
 0x2e5   : > { %v8264_v10 = vadd.f32 %v6748_v62, %v6746_v2 }
 0x2e9   : > { %1513 = vmax.xlane.f32.xlu0 %v1512_v9 }
 0x2eb   : > { %v1681_v13 = vpop.permute.xlu0 %1680 }
 0x2ec   : > { %v1835_v16 = vsub.f32 %v7992_v14, %v1681_v13  ;;  %v1836_v38 = vsub.f32 %v7994_v15, %v1681_v13  ;;  %v1623_v14 = vmul.f32 1.442695, %v1584_v12  ;;  %v1582_v15 = vsub.f32 %v8111_v41, %v8114_v45  ;;  %v8298_v12 = vld [vmem:[#allocation3 + $0x88] sm:$0xff]  ;;  %v8305_v13 = vld [vmem:[#allocation3 + $0x90] sm:$0xff] }
 0x2ee   : > { %v1901_v6 = vmul.f32 1.442695, %v1835_v16  ;;  %v1903_v5 = vmul.f32 1.442695, %v1836_v38  ;;  %v1619_v0 = vmul.f32 1.442695, %v1582_v15 }
 0x2ef   : > { %1510 = vmax.xlane.f32.xlu2 %v1509_v56  ;;  %v1583_v56 = vsub.f32 %v8118_v48, %v8123_v55  ;;  %v6414_v15 = vld [vmem:[#allocation2 + $0x78] sm:$0xff] }
 0x2f0   : > { %6749 = vpow2.f32 %v1901_v6  ;;  %6023 = vmatmul.msk.bf16.gmra.mxu0 %vm1142_vm3, %v6414_v15  ;;  %6039 = vmatmul.msk.bf16.gmra.mxu1 %vm1142_vm3, %v6414_v15 }
 0x2f1   : > { %6751 = vpow2.f32 %v1903_v5 }
 0x2f2   : > { %6753 = vpow2.f32 %v1623_v14 }
 0x2f6   : > { %v6750_v50 = vpop.eup %6749 }
 0x2f7   : > { %v6752_v11 = vpop.eup %6751  ;;  %v2474_v49 = vpack.c.bf16 %v6750_v50, %v6746_v2 }
 0x2f8   : > { %v8272_v9 = vpop.permute.xlu1 %2284  ;;  %v2475_v32 = vpack.c.bf16 %v6752_v11, %v6748_v62  ;;  %v8274_v63 = vadd.f32 %v6752_v11, %v6750_v50 }
 0x2f9   : > { %2610 = vmatmul.bf16.vlgmr.msra.gmra.mxu2 %v2474_v49  ;;  %v8283_v49 = vpop.eup %6753 }
 0x2fa   : > { %2699 = vmatmul.bf16.vlgmr.msra.gmra.mxu3 %v2475_v32  ;;  %v8288_v32 = vpop.f32.mrf.mxu0 }
 0x2fb   : > { %10343 = vst [vmem:[#allocation38_spill] sm:$0xff] %v8288_v32 }
 0x2fd   : > { %1715 = vperm.xlu0 %6733, %v8149_v19  }
 0x300   : > { %v1686_v5 = vpop.permute.xlu1 %1685 }
 0x301   : > { %v1837_v6 = vsub.f32 %v7998_v17, %v1686_v5  ;;  %v1838_v38 = vsub.f32 %v8000_v18, %v1686_v5  ;;  %v1515_v17 = vmax.f32 %v8288_v32, %v8286_v53  ;;  %v1621_v5 = vmul.f32 1.442695, %v1583_v56 }
 0x303   : > { %v1905_v50 = vmul.f32 1.442695, %v1837_v6  ;;  %v1907_v60 = vmul.f32 1.442695, %v1838_v38  ;;  %v8318_v38 = vpop.f32.mrf.mxu0 }
 0x304   : > { %10345 = vst [vmem:[#allocation40_spill] sm:$0xff] %v8318_v38 }
 0x305   : > { %6755 = vpow2.f32 %v1905_v50  ;;  %2319 = vperm.xlu0 %6733, %v8283_v49   ;;  %v8320_v50 = vpop.f32.mrf.mxu1 }
 0x306   : > { %6757 = vpow2.f32 %v1907_v60  ;;  %10346 = vst [vmem:[#allocation41_spill] sm:$0xff] %v8320_v50 }
 0x307   : > { %1705 = vperm.xlu2 %6732, %v8123_v55   ;;  %6759 = vpow2.f32 %v1619_v0 }
 0x308   : > { %6761 = vpow2.f32 %v1621_v5  ;;  %v8331_v5 = vld [vmem:[#allocation3 + $0x98] sm:$0xff] }
 0x30b   : > { %v6756_v18 = vpop.eup %6755  ;;  %1516 = vmax.xlane.f32.xlu1 %v1515_v17 }
 0x30c   : > { %v6758_v41 = vpop.eup %6757 }
 0x30d   : > { %v8293_v45 = vadd.f32 %v6758_v41, %v6756_v18  ;;  %v8295_v11 = vpop.eup %6759  ;;  %v8327_v56 = vpop.f32.mrf.mxu1 }
 0x30e   : > { %10344 = vst [vmem:[#allocation39_spill] sm:$0xff] %v8295_v11  ;;  %v8324_v0 = vpop.eup %6761 }
 0x30f   : > { %2309 = vperm.xlu2 %6732, %v8295_v11   ;;  %10347 = vst [vmem:[#allocation42_spill] sm:$0xff] %v8324_v0 }
 0x310   : > { %10348 = vst [vmem:[#allocation43_spill] sm:$0xff] %v8327_v56 }
 0x311   : > { %v1502_v2 = vpop.xlane.xlu2 %1501 }
 0x312   : > { %v8301_v62 = vmax.f32 %v8298_v12, %v1502_v2 }
 0x314   : > { %2861 = vst.msk [vmem:[#allocation3 + $0x88] sm:$0xff] %vm2217_vm4, %v8301_v62 }
 0x316   : > { %v1505_v16 = vpop.xlane.xlu0 %1504 }
 0x317   : > { %v8310_v14 = vmax.f32 %v8305_v13, %v1505_v16  ;;  %v8329_v16 = vpop.f32.mrf.mxu0 }
 0x318   : > { %10349 = vst [vmem:[#allocation44_spill] sm:$0xff] %v8329_v16 }
 0x319   : > { %v8312_v6 = vpop.permute.xlu2 %2289  ;;  %2862 = vst.msk [vmem:[#allocation3 + $0x90] sm:$0xff] %vm2217_vm4, %v8310_v14 }
 0x321   : > { %v1691_v48 = vpop.permute.xlu2 %1690 }
 0x322   : > { %v1839_v55 = vsub.f32 %v8004_v20, %v1691_v48  ;;  %v1840_v60 = vsub.f32 %v8006_v21, %v1691_v48  ;;  %v1521_v48 = vmax.f32 %v8329_v16, %v8327_v56 }
 0x324   : > { %v1909_v17 = vmul.f32 1.442695, %v1839_v55  ;;  %v1911_v2 = vmul.f32 1.442695, %v1840_v60  ;;  %2314 = vperm.xlu1 %6734, %v8324_v0  }
 0x326   : > { %6763 = vpow2.f32 %v1909_v17 }
 0x327   : > { %6765 = vpow2.f32 %v1911_v2 }
 0x329   : > { %v1696_v15 = vpop.permute.xlu2 %1695 }
 0x32a   : > { %v1841_v53 = vsub.f32 %v8012_v24, %v1696_v15  ;;  %v1842_v20 = vsub.f32 %v8014_v25, %v1696_v15 }
 0x32b   : > { %v1508_v21 = vpop.xlane.xlu1 %1507 }
 0x32c   : > { %v6764_v55 = vpop.eup %6763  ;;  %v1913_v60 = vmul.f32 1.442695, %v1841_v53  ;;  %v1915_v0 = vmul.f32 1.442695, %v1842_v20  ;;  %v8338_v17 = vmax.f32 %v8331_v5, %v1508_v21  ;;  %1725 = vperm.xlu1 %6734, %v8164_v7   ;;  %v1518_v20 = vmax.f32 %v8318_v38, %v8320_v50 }
 0x32d   : > { %v6766_v2 = vpop.eup %6765  ;;  %v2476_v32 = vpack.c.bf16 %v6764_v55, %v6756_v18  ;;  %v1587_v18 = vsub.f32 %v8160_v61, %v8164_v7 }
 0x32e   : > { %6767 = vpow2.f32 %v1913_v60  ;;  %2863 = vst.msk [vmem:[#allocation3 + $0x98] sm:$0xff] %vm2217_vm4, %v8338_v17  ;;  %v2477_v24 = vpack.c.bf16 %v6766_v2, %v6758_v41  ;;  %v8343_v25 = vadd.f32 %v6766_v2, %v6764_v55 }
 0x32f   : > { %6769 = vpow2.f32 %v1915_v0  ;;  %2615 = vmatmul.bf16.gmra.mxu2 %v2476_v32  ;;  %1522 = vmax.xlane.f32.xlu0 %v1521_v48  ;;  %v1629_v60 = vmul.f32 1.442695, %v1587_v18  ;;  %v1585_v32 = vsub.f32 %v8144_v4, %v8149_v19  ;;  %v8358_v0 = vpop.permute.xlu0 %2294  ;;  %v8366_v4 = vpop.f32.mrf.mxu0 }
 0x330   : > { %2704 = vmatmul.bf16.gmra.mxu3 %v2477_v24  ;;  %10352 = vst [vmem:[#allocation47_spill] sm:$0xff] %v8366_v4 }
 0x331   : > { %6771 = vpow2.f32 %v1629_v60  ;;  %v1625_v48 = vmul.f32 1.442695, %v1585_v32 }
 0x333   : > { %6773 = vpow2.f32 %v1625_v48 }
 0x334   : > { %v6768_v53 = vpop.eup %6767 }
 0x335   : > { %v6770_v15 = vpop.eup %6769 }
 0x336   : > { %v8347_v21 = vadd.f32 %v6770_v15, %v6768_v53 }
 0x337   : > { %v8356_v41 = vpop.eup %6771  ;;  %v8368_v18 = vpop.permute.xlu0 %2304 }
 0x338   : > { %1519 = vmax.xlane.f32.xlu2 %v1518_v20  ;;  %10350 = vst [vmem:[#allocation45_spill] sm:$0xff] %v8356_v41  ;;  %v8364_v20 = vpop.f32.mrf.mxu1 }
 0x339   : > { %10351 = vst [vmem:[#allocation46_spill] sm:$0xff] %v8364_v20  ;;  %v8374_v32 = vpop.eup %6773 }
 0x33a   : > { %10353 = vst [vmem:[#allocation48_spill] sm:$0xff] %v8374_v32 }
 0x343   : > { %v8351_v56 = vpop.permute.xlu1 %2299  ;;  %1730 = vperm.xlu0 %6733, %v8183_v1  }
 0x34b   : > { %v1701_v55 = vpop.permute.xlu1 %1700  ;;  %2334 = vperm.xlu0 %6733, %v8356_v41  }
 0x34c   : > { %v1843_v2 = vsub.f32 %v8018_v27, %v1701_v55  ;;  %v1844_v61 = vsub.f32 %v8020_v28, %v1701_v55  ;;  %v1524_v28 = vmax.f32 %v8366_v4, %v8364_v20 }
 0x34e   : > { %v1917_v7 = vmul.f32 1.442695, %v1843_v2  ;;  %v1919_v24 = vmul.f32 1.442695, %v1844_v61 }
 0x350   : > { %6775 = vpow2.f32 %v1917_v7  ;;  %1720 = vperm.xlu2 %6732, %v8156_v44  }
 0x351   : > { %6777 = vpow2.f32 %v1919_v24 }
 0x353   : > { %v1711_v19 = vpop.permute.xlu1 %1710 }
 0x354   : > { %v1847_v60 = vsub.f32 %v8030_v33, %v1711_v19  ;;  %v1848_v27 = vsub.f32 %v8032_v34, %v1711_v19  ;;  %v8379_v33 = vld [vmem:[#allocation3 + $0xa8] sm:$0xff] }
 0x356   : > { %v6776_v48 = vpop.eup %6775  ;;  %v1925_v55 = vmul.f32 1.442695, %v1847_v60  ;;  %v1927_v2 = vmul.f32 1.442695, %v1848_v27  ;;  %1525 = vmax.xlane.f32.xlu1 %v1524_v28 }
 0x357   : > { %v6778_v61 = vpop.eup %6777  ;;  %v2478_v7 = vpack.c.bf16 %v6776_v48, %v6768_v53  ;;  %v1586_v53 = vsub.f32 %v8153_v22, %v8156_v44 }
 0x358   : > { %6779 = vpow2.f32 %v1925_v55  ;;  %2324 = vperm.xlu2 %6732, %v8374_v32   ;;  %v2479_v24 = vpack.c.bf16 %v6778_v61, %v6770_v15  ;;  %v8377_v16 = vadd.f32 %v6778_v61, %v6776_v48  ;;  %v8388_v15 = vld [vmem:[#allocation3 + $0xa0] sm:$0xff]  ;;  %v8395_v61 = vpop.f32.mrf.mxu1 }
 0x359   : > { %6781 = vpow2.f32 %v1927_v2  ;;  %2620 = vmatmul.bf16.gmra.mxu2 %v2478_v7  ;;  %v1627_v2 = vmul.f32 1.442695, %v1586_v53  ;;  %10354 = vst [vmem:[#allocation49_spill] sm:$0xff] %v8395_v61  ;;  %v8397_v7 = vpop.f32.mrf.mxu0 }
 0x35a   : > { %2709 = vmatmul.bf16.gmra.mxu3 %v2479_v24  ;;  %10355 = vst [vmem:[#allocation50_spill] sm:$0xff] %v8397_v7 }
 0x35b   : > { %6783 = vpow2.f32 %v1627_v2 }
 0x35c   : > { %v1514_v34 = vpop.xlane.xlu0 %1513 }
 0x35d   : > { %v8382_v19 = vmax.f32 %v8379_v33, %v1514_v34 }
 0x35e   : > { %v6780_v60 = vpop.eup %6779 }
 0x35f   : > { %v6782_v27 = vpop.eup %6781  ;;  %2865 = vst.msk [vmem:[#allocation3 + $0xa8] sm:$0xff] %vm2217_vm4, %v8382_v19 }
 0x360   : > { %v8390_v28 = vadd.f32 %v6782_v27, %v6780_v60 }
 0x361   : > { %v8403_v4 = vpop.eup %6783  ;;  %v8407_v53 = vpop.f32.mrf.mxu0 }
 0x362   : > { %v1511_v48 = vpop.xlane.xlu2 %1510  ;;  %10356 = vst [vmem:[#allocation51_spill] sm:$0xff] %v8403_v4 }
 0x363   : > { %v8393_v55 = vmax.f32 %v8388_v15, %v1511_v48  ;;  %v8405_v48 = vpop.f32.mrf.mxu1  ;;  %10358 = vst [vmem:[#allocation53_spill] sm:$0xff] %v8407_v53 }
 0x364   : > { %10357 = vst [vmem:[#allocation52_spill] sm:$0xff] %v8405_v48  ;;  %v1530_v2 = vmax.f32 %v8407_v53, %v8405_v48 }
 0x365   : > { %2864 = vst.msk [vmem:[#allocation3 + $0xa0] sm:$0xff] %vm2217_vm4, %v8393_v55 }
 0x36a   : > { %v1706_v24 = vpop.permute.xlu2 %1705 }
 0x36b   : > { %v1845_v22 = vsub.f32 %v8024_v30, %v1706_v24  ;;  %v1846_v44 = vsub.f32 %v8026_v31, %v1706_v24 }
 0x36d   : > { %v1921_v34 = vmul.f32 1.442695, %v1845_v22  ;;  %v1923_v20 = vmul.f32 1.442695, %v1846_v44  ;;  %v2250_v22 = vld [vmem:[#allocation5] sm:$0xff] }
 0x36e   : > { %v2442_v48 = vmul.f32 %v8272_v9, %v2250_v22 }
 0x36f   : > { %6785 = vpow2.f32 %v1921_v34  ;;  %2329 = vperm.xlu1 %6734, %v8403_v4   ;;  %v8415_v34 = vld [vmem:[#allocation3 + $0xb0] sm:$0xff] }
 0x370   : > { %6787 = vpow2.f32 %v1923_v20  ;;  %v1527_v20 = vmax.f32 %v8397_v7, %v8395_v61 }
 0x375   : > { %v6786_v32 = vpop.eup %6785  ;;  %1531 = vmax.xlane.f32.xlu0 %v1530_v2 }
 0x376   : > { %v6788_v30 = vpop.eup %6787  ;;  %v2480_v41 = vpack.c.bf16 %v6780_v60, %v6786_v32 }
 0x377   : > { %1740 = vperm.xlu1 %6734, %v8212_v59   ;;  %v2481_v31 = vpack.c.bf16 %v6782_v27, %v6788_v30  ;;  %v8413_v24 = vadd.f32 %v6788_v30, %v6786_v32  ;;  %v2251_v32 = vld [vmem:[#allocation5 + $0x8] sm:$0xff] }
 0x378   : > { %2625 = vmatmul.bf16.gmra.mxu2 %v2480_v41  ;;  %v1590_v41 = vsub.f32 %v8209_v51, %v8212_v59  ;;  %v2443_v9 = vmul.f32 %v8312_v6, %v2251_v32  ;;  %v1588_v59 = vsub.f32 %v8177_v29, %v8183_v1  ;;  %v8451_v32 = vld [vmem:[#allocation3 + $0xc0] sm:$0xff] }
 0x379   : > { %2714 = vmatmul.bf16.gmra.mxu3 %v2481_v31  ;;  %10363 = vst [vmem:[#allocation58_spill] sm:$0xff] %v8451_v32 }
 0x37a   : > { %v1635_v61 = vmul.f32 1.442695, %v1590_v41  ;;  %v1631_v51 = vmul.f32 1.442695, %v1588_v59 }
 0x37c   : > { %v2611_v44 = vpop.f32.mrf.mxu2  ;;  %6789 = vpow2.f32 %v1635_v61  ;;  %v8443_v61 = vpop.f32.mrf.mxu0 }
 0x37d   : > { %v2700_v4 = vpop.f32.mrf.mxu3  ;;  %6791 = vpow2.f32 %v1631_v51  ;;  %10361 = vst [vmem:[#allocation56_spill] sm:$0xff] %v8443_v61  ;;  %v1589_v51 = vsub.f32 %v8194_v8, %v8198_v54 }
 0x37e   : > { %v2701_v2 = vadd.f32 %v2700_v4, %v2611_v44  ;;  %v1517_v53 = vpop.xlane.xlu1 %1516 }
 0x37f   : > { %v8421_v60 = vmax.f32 %v8415_v34, %v1517_v53  ;;  %v1716_v53 = vpop.permute.xlu0 %1715 }
 0x380   : > { %v2780_v27 = vadd.f32 %v2701_v2, %v2442_v48  ;;  %v1850_v8 = vsub.f32 %v8038_v37, %v1716_v53 }
 0x381   : > { %2866 = vst.msk [vmem:[#allocation3 + $0xb0] sm:$0xff] %vm2217_vm4, %v8421_v60  ;;  %1528 = vmax.xlane.f32.xlu2 %v1527_v20  ;;  %v8441_v20 = vpop.f32.mrf.mxu1 }
 0x382   : > { %2812 = vst.msk [vmem:[#allocation5] sm:$0xff] %vm1142_vm3, %v2780_v27  ;;  %v8431_v48 = vpop.eup %6789  ;;  %v1533_v2 = vmax.f32 %v8443_v61, %v8441_v20 }
 0x383   : > { %10359 = vst [vmem:[#allocation54_spill] sm:$0xff] %v8431_v48  ;;  %v8449_v1 = vpop.eup %6791 }
 0x384   : > { %v2613_v30 = vpop.f32.mrf.mxu2  ;;  %10360 = vst [vmem:[#allocation55_spill] sm:$0xff] %v8441_v20 }
 0x385   : > { %v2702_v31 = vpop.f32.mrf.mxu3  ;;  %10362 = vst [vmem:[#allocation57_spill] sm:$0xff] %v8449_v1 }
 0x386   : > { %v2703_v4 = vadd.f32 %v2702_v31, %v2613_v30 }
 0x387   : > { %v8439_v6 = vpop.permute.xlu0 %2319 }
 0x388   : > { %v2781_v22 = vadd.f32 %v2703_v4, %v2443_v9  ;;  %v8454_v4 = vpop.permute.xlu2 %2309 }
 0x389   : > { %1745 = vperm.xlu0 %6733, %v8227_v3  }
 0x38a   : > { %2813 = vst.msk [vmem:[#allocation5 + $0x8] sm:$0xff] %vm1142_vm3, %v2781_v22 }
 0x391   : > { %2349 = vperm.xlu0 %6733, %v8431_v48  }
 0x396   : > { %v8436_v44 = vpop.permute.xlu1 %2314 }
 0x399   : > { %1735 = vperm.xlu2 %6732, %v8198_v54   ;;  %v2252_v54 = vld [vmem:[#allocation5 + $0x10] sm:$0xff] }
 0x39a   : > { %v2444_v50 = vmul.f32 %v8358_v0, %v2252_v54 }
 0x39e   : > { %v1726_v27 = vpop.permute.xlu1 %1725 }
 0x39f   : > { %v1853_v41 = vsub.f32 %v8048_v42, %v1726_v27  ;;  %v1854_v29 = vsub.f32 %v8050_v43, %v1726_v27  ;;  %v8463_v43 = vld [vmem:[#allocation3 + $0xb8] sm:$0xff] }
 0x3a1   : > { %v1937_v30 = vmul.f32 1.442695, %v1853_v41  ;;  %v1939_v31 = vmul.f32 1.442695, %v1854_v29  ;;  %2339 = vperm.xlu2 %6732, %v8449_v1   ;;  %1534 = vmax.xlane.f32.xlu1 %v1533_v2  ;;  %v8473_v41 = vpop.f32.mrf.mxu1  ;;  %v8475_v29 = vpop.f32.mrf.mxu0  ;;  %v1931_v1 = vmul.f32 1.442695, %v1850_v8 }
 0x3a2   : > { %v1523_v9 = vpop.xlane.xlu0 %1522  ;;  %10364 = vst [vmem:[#allocation59_spill] sm:$0xff] %v8473_v41 }
 0x3a3   : > { %6793 = vpow2.f32 %v1937_v30  ;;  %v8457_v22 = vmax.f32 %v8451_v32, %v1523_v9  ;;  %10365 = vst [vmem:[#allocation60_spill] sm:$0xff] %v8475_v29  ;;  %v1633_v9 = vmul.f32 1.442695, %v1589_v51 }
 0x3a4   : > { %6795 = vpow2.f32 %v1939_v31  ;;  %v1849_v31 = vsub.f32 %v8036_v36, %v1716_v53 }
 0x3a5   : > { %2868 = vst.msk [vmem:[#allocation3 + $0xc0] sm:$0xff] %vm2217_vm4, %v8457_v22  ;;  %6797 = vpow2.f32 %v1633_v9 }
 0x3a6   : > { %v1929_v20 = vmul.f32 1.442695, %v1849_v31 }
 0x3a8   : > { %6799 = vpow2.f32 %v1929_v20 }
 0x3a9   : > { %v8461_v42 = vpop.eup %6793  ;;  %v8487_v11 = vpop.f32.mrf.mxu0  ;;  %6801 = vpow2.f32 %v1931_v1 }
 0x3aa   : > { %v8465_v59 = vpop.eup %6795  ;;  %10366 = vst [vmem:[#allocation61_spill] sm:$0xff] %v8487_v11  ;;  %v8489_v32 = vpop.f32.mrf.mxu1 }
 0x3ab   : > { %v1520_v2 = vpop.xlane.xlu2 %1519  ;;  %v8471_v27 = vadd.f32 %v8465_v59, %v8461_v42  ;;  %10367 = vst [vmem:[#allocation62_spill] sm:$0xff] %v8489_v32  ;;  %v1539_v0 = vmax.f32 %v8487_v11, %v8489_v32  ;;  %v2257_v32 = vld [vmem:[#allocation5 + $0x38] sm:$0xff] }
 0x3ac   : > { %v8478_v30 = vmax.f32 %v8463_v43, %v1520_v2 }
 0x3ae   : > { %2867 = vst.msk [vmem:[#allocation3 + $0xb8] sm:$0xff] %vm2217_vm4, %v8478_v30 }
 0x3b2   : > { %v2616_v61 = vpop.f32.mrf.mxu2 }
 0x3b3   : > { %v2705_v7 = vpop.f32.mrf.mxu3  ;;  %v1721_v48 = vpop.permute.xlu2 %1720 }
 0x3b4   : > { %v2706_v38 = vadd.f32 %v2705_v7, %v2616_v61  ;;  %v1851_v2 = vsub.f32 %v8042_v39, %v1721_v48  ;;  %v1852_v36 = vsub.f32 %v8044_v40, %v1721_v48  ;;  %v8496_v40 = vpop.eup %6797  ;;  %v2253_v7 = vld [vmem:[#allocation5 + $0x18] sm:$0xff] }
 0x3b5   : > { %v1731_v37 = vpop.permute.xlu0 %1730  ;;  %10368 = vst [vmem:[#allocation63_spill] sm:$0xff] %v8496_v40 }
 0x3b6   : > { %v2782_v53 = vadd.f32 %v2706_v38, %v2444_v50  ;;  %v1933_v51 = vmul.f32 1.442695, %v1851_v2  ;;  %v1935_v31 = vmul.f32 1.442695, %v1852_v36  ;;  %v1855_v9 = vsub.f32 %v8054_v46, %v1731_v37  ;;  %v8499_v46 = vpop.eup %6799 }
 0x3b7   : > { %v1856_v8 = vsub.f32 %v8056_v47, %v1731_v37  ;;  %v2445_v50 = vmul.f32 %v8351_v56, %v2253_v7  ;;  %v8502_v61 = vpop.eup %6801 }
 0x3b8   : > { %2814 = vst.msk [vmem:[#allocation5 + $0x10] sm:$0xff] %vm1142_vm3, %v2782_v53  ;;  %6803 = vpow2.f32 %v1933_v51  ;;  %v1941_v39 = vmul.f32 1.442695, %v1855_v9  ;;  %v8513_v9 = vld [vmem:[#allocation3 + $0xc8] sm:$0xff] }
 0x3b9   : > { %6805 = vpow2.f32 %v1935_v31  ;;  %v1943_v48 = vmul.f32 1.442695, %v1856_v8  ;;  %v1536_v8 = vmax.f32 %v8475_v29, %v8473_v41 }
 0x3ba   : > { %6807 = vpow2.f32 %v1941_v39  ;;  %v2618_v38 = vpop.f32.mrf.mxu2  ;;  %2344 = vperm.xlu1 %6734, %v8496_v40  }
 0x3bb   : > { %6809 = vpow2.f32 %v1943_v48  ;;  %v2707_v47 = vpop.f32.mrf.mxu3  ;;  %1540 = vmax.xlane.f32.xlu0 %v1539_v0  ;;  %v1593_v48 = vsub.f32 %v8250_v23, %v8253_v58 }
 0x3bc   : > { %v2708_v20 = vadd.f32 %v2707_v47, %v2618_v38  ;;  %v1591_v47 = vsub.f32 %v8220_v26, %v8227_v3  ;;  %v2255_v26 = vld [vmem:[#allocation5 + $0x28] sm:$0xff] }
 0x3bd   : > { %v1641_v38 = vmul.f32 1.442695, %v1593_v48 }
 0x3be   : > { %v6804_v1 = vpop.eup %6803  ;;  %v2783_v54 = vadd.f32 %v2708_v20, %v2445_v50  ;;  %v2254_v50 = vld [vmem:[#allocation5 + $0x20] sm:$0xff]  ;;  %v1637_v23 = vmul.f32 1.442695, %v1591_v47 }
 0x3bf   : > { %v6806_v2 = vpop.eup %6805  ;;  %v2482_v36 = vpack.c.bf16 %v6804_v1, %v8499_v46  ;;  %6811 = vpow2.f32 %v1641_v38 }
 0x3c0   : > { %v6808_v37 = vpop.eup %6807  ;;  %2815 = vst.msk [vmem:[#allocation5 + $0x18] sm:$0xff] %vm1142_vm3, %v2783_v54  ;;  %v2483_v53 = vpack.c.bf16 %v6806_v2, %v8502_v61  ;;  %v8507_v51 = vadd.f32 %v6806_v2, %v6804_v1  ;;  %6813 = vpow2.f32 %v1637_v23 }
 0x3c1   : > { %v6810_v31 = vpop.eup %6809  ;;  %2630 = vmatmul.bf16.gmra.mxu2 %v2482_v36  ;;  %v2484_v7 = vpack.c.bf16 %v6808_v37, %v8461_v42  ;;  %v2446_v42 = vmul.f32 %v8368_v18, %v2254_v50  ;;  %v10372_v50 = vld [vmem:[#allocation15_spill] sm:$0xff] }
 0x3c2   : > { %2719 = vmatmul.bf16.gmra.mxu3 %v2483_v53  ;;  %1755 = vperm.xlu1 %6734, %v8253_v58   ;;  %v8510_v56 = vadd.f32 %v6810_v31, %v6808_v37  ;;  %v8533_v58 = vpop.permute.xlu0 %2334  ;;  %v2447_v53 = vmul.f32 %v8454_v4, %v2255_v26 }
 0x3c3   : > { %2090 = vadd.xlane.f32.xlu0 %v8264_v10  ;;  %v2485_v10 = vpack.c.bf16 %v6810_v31, %v8465_v59  ;;  %v8540_v31 = vld [vmem:[#allocation3 + $0xd8] sm:$0xff] }
 0x3c5   : > { %v8529_v54 = vpop.eup %6811 }
 0x3c9   : > { %v1526_v0 = vpop.xlane.xlu1 %1525 }
 0x3ca   : > { %v8518_v39 = vmax.f32 %v8513_v9, %v1526_v0  ;;  %1537 = vmax.xlane.f32.xlu2 %v1536_v8  ;;  %v8542_v8 = vpop.f32.mrf.mxu1  ;;  %v8544_v0 = vpop.f32.mrf.mxu0 }
 0x3cb   : > { %10369 = vst [vmem:[#allocation64_spill] sm:$0xff] %v8542_v8 }
 0x3cc   : > { %2869 = vst.msk [vmem:[#allocation3 + $0xc8] sm:$0xff] %vm2217_vm4, %v8518_v39 }
 0x3cd   : > { %10370 = vst [vmem:[#allocation65_spill] sm:$0xff] %v8544_v0 }
 0x3d1   : > { %2635 = vmatmul.bf16.gmra.mxu2 %v2484_v7 }
 0x3d2   : > { %2724 = vmatmul.bf16.gmra.mxu3 %v2485_v10  ;;  %v8547_v10 = vpop.eup %6813 }
 0x3d3   : > { %10371 = vst [vmem:[#allocation66_spill] sm:$0xff] %v8547_v10 }
 0x3d7   : > { %1760 = vperm.xlu0 %6733, %v8301_v62  }
 0x3dc   : > { %v2621_v20 = vpop.f32.mrf.mxu2 }
 0x3dd   : > { %v2710_v1 = vpop.f32.mrf.mxu3 }
 0x3de   : > { %v2711_v2 = vadd.f32 %v2710_v1, %v2621_v20  ;;  %v1542_v1 = vmax.f32 %v8544_v0, %v8542_v8 }
 0x3df   : > { %2364 = vperm.xlu0 %6733, %v8529_v54  }
 0x3e0   : > { %v2784_v59 = vadd.f32 %v2711_v2, %v2446_v42  ;;  %v8560_v42 = vpop.permute.xlu2 %2324 }
 0x3e1   : > { %v8535_v36 = vpop.permute.xlu1 %2329 }
 0x3e2   : > { %2816 = vst.msk [vmem:[#allocation5 + $0x20] sm:$0xff] %vm1142_vm3, %v2784_v59  ;;  %1750 = vperm.xlu2 %6732, %v8245_v57   ;;  %v8562_v59 = vld [vmem:[#allocation3 + $0xd0] sm:$0xff] }
 0x3e4   : > { %v2623_v3 = vpop.f32.mrf.mxu2 }
 0x3e5   : > { %v2712_v37 = vpop.f32.mrf.mxu3 }
 0x3e6   : > { %v2713_v18 = vadd.f32 %v2712_v37, %v2623_v3 }
 0x3e7   : > { %1775 = vperm.xlu0 %6733, %v8393_v55  }
 0x3e8   : > { %v2785_v7 = vadd.f32 %v2713_v18, %v2447_v53  ;;  %v1532_v48 = vpop.xlane.xlu0 %1531  ;;  %v10373_v53 = vld [vmem:[#allocation33_spill] sm:$0xff] }
 0x3e9   : > { %v1741_v38 = vpop.permute.xlu1 %1740  ;;  %v8550_v47 = vmax.f32 %v8540_v31, %v1532_v48  ;;  %v1592_v18 = vsub.f32 %v10373_v53, %v8245_v57 }
 0x3ea   : > { %2817 = vst.msk [vmem:[#allocation5 + $0x28] sm:$0xff] %vm1142_vm3, %v2785_v7  ;;  %v1859_v4 = vsub.f32 %v8068_v52, %v1741_v38  ;;  %v1860_v20 = vsub.f32 %v10372_v50, %v1741_v38  ;;  %2354 = vperm.xlu2 %6732, %v8547_v10   ;;  %v2256_v38 = vld [vmem:[#allocation5 + $0x30] sm:$0xff] }
 0x3eb   : > { %2871 = vst.msk [vmem:[#allocation3 + $0xd8] sm:$0xff] %vm2217_vm4, %v8550_v47  ;;  %v1639_v48 = vmul.f32 1.442695, %v1592_v18 }
 0x3ec   : > { %v1949_v2 = vmul.f32 1.442695, %v1859_v4  ;;  %v1951_v23 = vmul.f32 1.442695, %v1860_v20  ;;  %1543 = vmax.xlane.f32.xlu1 %v1542_v1  ;;  %v2448_v1 = vmul.f32 %v8436_v44, %v2256_v38  ;;  %v2449_v44 = vmul.f32 %v8439_v6, %v2257_v32 }
 0x3ee   : > { %6815 = vpow2.f32 %v1949_v2 }
 0x3ef   : > { %6817 = vpow2.f32 %v1951_v23  ;;  %v10374_v23 = vld [vmem:[#allocation13_spill] sm:$0xff] }
 0x3f0   : > { %6819 = vpow2.f32 %v1639_v48 }
 0x3f4   : > { %v6816_v52 = vpop.eup %6815  ;;  %v1529_v26 = vpop.xlane.xlu2 %1528 }
 0x3f5   : > { %v6818_v3 = vpop.eup %6817  ;;  %v8565_v37 = vmax.f32 %v8562_v59, %v1529_v26  ;;  %v10375_v26 = vld [vmem:[#allocation14_spill] sm:$0xff] }
 0x3f6   : > { %v8569_v7 = vadd.f32 %v6818_v3, %v6816_v52  ;;  %v8577_v11 = vpop.eup %6819 }
 0x3f7   : > { %2870 = vst.msk [vmem:[#allocation3 + $0xd0] sm:$0xff] %vm2217_vm4, %v8565_v37 }
 0x3f8   : > { %10376 = vst [vmem:[#allocation15_spill] sm:$0xff] %v8577_v11 }
 0x3fb   : > { %v2626_v4 = vpop.f32.mrf.mxu2 }
 0x3fc   : > { %v2715_v50 = vpop.f32.mrf.mxu3  ;;  %v1736_v20 = vpop.permute.xlu2 %1735 }
 0x3fd   : > { %v2716_v2 = vadd.f32 %v2715_v50, %v2626_v4  ;;  %v1857_v8 = vsub.f32 %v10374_v23, %v1736_v20  ;;  %v1858_v0 = vsub.f32 %v10375_v26, %v1736_v20  ;;  %v8585_v20 = vld [vmem:[#allocation3 + $0xe0] sm:$0xff]  ;;  %v8605_v23 = vld [vmem:[#allocation3 + $0xf0] sm:$0xff] }
 0x3ff   : > { %v2786_v10 = vadd.f32 %v2716_v2, %v2448_v1  ;;  %v1945_v57 = vmul.f32 1.442695, %v1857_v8  ;;  %v1947_v53 = vmul.f32 1.442695, %v1858_v0 }
 0x401   : > { %2818 = vst.msk [vmem:[#allocation5 + $0x30] sm:$0xff] %vm1142_vm3, %v2786_v10  ;;  %6821 = vpow2.f32 %v1945_v57 }
 0x402   : > { %6823 = vpow2.f32 %v1947_v53 }
 0x403   : > { %v2628_v18 = vpop.f32.mrf.mxu2 }
 0x404   : > { %v2717_v40 = vpop.f32.mrf.mxu3 }
 0x405   : > { %v2718_v38 = vadd.f32 %v2717_v40, %v2628_v18  ;;  %2359 = vperm.xlu1 %6734, %v8577_v11   ;;  %v1596_v40 = vsub.f32 %v8331_v5, %v8338_v17  ;;  %v8617_v18 = vpop.permute.xlu2 %2339 }
 0x407   : > { %v2787_v4 = vadd.f32 %v2718_v38, %v2449_v44  ;;  %v6822_v50 = vpop.eup %6821  ;;  %v10379_v44 = vld [vmem:[#allocation20_spill] sm:$0xff] }
 0x408   : > { %v6824_v48 = vpop.eup %6823  ;;  %v2486_v8 = vpack.c.bf16 %v6816_v52, %v6822_v50  ;;  %v1647_v52 = vmul.f32 1.442695, %v1596_v40 }
 0x409   : > { %2819 = vst.msk [vmem:[#allocation5 + $0x38] sm:$0xff] %vm1142_vm3, %v2787_v4  ;;  %v2487_v0 = vpack.c.bf16 %v6818_v3, %v6824_v48  ;;  %v8582_v10 = vadd.f32 %v6824_v48, %v6822_v50  ;;  %v1746_v3 = vpop.permute.xlu0 %1745  ;;  %v10380_v4 = vld [vmem:[#allocation21_spill] sm:$0xff]  ;;  %v10381_v48 = vld [vmem:[#allocation22_spill] sm:$0xff] }
 0x40a   : > { %2640 = vmatmul.bf16.gmra.mxu2 %v2486_v8  ;;  %6825 = vpow2.f32 %v1647_v52  ;;  %v8623_v52 = vld [vmem:[#allocation3 + $0xe8] sm:$0xff] }
 0x40b   : > { %2729 = vmatmul.bf16.gmra.mxu3 %v2487_v0 }
 0x410   : > { %v8595_v1 = vpop.eup %6825 }
 0x411   : > { %2102 = vadd.xlane.f32.xlu0 %v8347_v21  ;;  %10377 = vst [vmem:[#allocation33_spill] sm:$0xff] %v8595_v1  ;;  %v1594_v21 = vsub.f32 %v8298_v12, %v8301_v62  ;;  %v2025_v62 = vld [vmem:[#allocation4] sm:$0xff] }
 0x412   : > { %v2057_v8 = vmul.f32 %v10381_v48, %v2025_v62 }
 0x413   : > { %2093 = vadd.xlane.f32.xlu2 %v8274_v63  ;;  %v8600_v63 = vpop.permute.xlu0 %2349  ;;  %v1643_v2 = vmul.f32 1.442695, %v1594_v21 }
 0x414   : > { %v1535_v6 = vpop.xlane.xlu1 %1534 }
 0x415   : > { %v8589_v32 = vmax.f32 %v8585_v20, %v1535_v6  ;;  %6827 = vpow2.f32 %v1643_v2 }
 0x417   : > { %2872 = vst.msk [vmem:[#allocation3 + $0xe0] sm:$0xff] %vm2217_vm4, %v8589_v32 }
 0x41b   : > { %v8614_v12 = vpop.eup %6827 }
 0x41c   : > { %10378 = vst [vmem:[#allocation13_spill] sm:$0xff] %v8614_v12 }
 0x425   : > { %2379 = vperm.xlu0 %6733, %v8595_v1   ;;  %v10385_v1 = vld [vmem:[#allocation19_spill] sm:$0xff] }
 0x42b   : > { %1765 = vperm.xlu2 %6732, %v8310_v14  }
 0x42c   : > { %v8603_v5 = vpop.permute.xlu1 %2344 }
 0x42d   : > { %1790 = vperm.xlu0 %6733, %v8478_v30  }
 0x42e   : > { %v1541_v26 = vpop.xlane.xlu0 %1540 }
 0x42f   : > { %v8609_v57 = vmax.f32 %v8605_v23, %v1541_v26  ;;  %2096 = vadd.xlane.f32.xlu1 %v8293_v45 }
 0x431   : > { %2874 = vst.msk [vmem:[#allocation3 + $0xf0] sm:$0xff] %vm2217_vm4, %v8609_v57 }
 0x433   : > { %2369 = vperm.xlu2 %6732, %v8614_v12  }
 0x434   : > { %v1756_v53 = vpop.permute.xlu1 %1755 }
 0x435   : > { %v1865_v38 = vsub.f32 %v10379_v44, %v1756_v53  ;;  %v1866_v50 = vsub.f32 %v10380_v4, %v1756_v53  ;;  %v1595_v53 = vsub.f32 %v8305_v13, %v8310_v14  ;;  %v10382_v44 = vld [vmem:[#allocation16_spill] sm:$0xff]  ;;  %v10383_v4 = vld [vmem:[#allocation17_spill] sm:$0xff] }
 0x436   : > { %v2091_v0 = vpop.xlane.xlu0 %2090 }
 0x437   : > { %v1961_v6 = vmul.f32 1.442695, %v1865_v38  ;;  %v1963_v45 = vmul.f32 1.442695, %v1866_v50  ;;  %v2185_v40 = vadd.f32 %v2091_v0, %v2057_v8  ;;  %v1861_v38 = vsub.f32 %v10382_v44, %v1746_v3  ;;  %v2258_v0 = vld [vmem:[#allocation5 + $0x40] sm:$0xff]  ;;  %v10384_v44 = vld [vmem:[#allocation18_spill] sm:$0xff] }
 0x438   : > { %v1862_v50 = vsub.f32 %v10383_v4, %v1746_v3  ;;  %v1645_v8 = vmul.f32 1.442695, %v1595_v53  ;;  %v2450_v14 = vmul.f32 %v8560_v42, %v2258_v0  ;;  %v10387_v42 = vld [vmem:[#allocation24_spill] sm:$0xff] }
 0x439   : > { %6829 = vpow2.f32 %v1961_v6  ;;  %2218 = vst.msk [vmem:[#allocation4] sm:$0xff] %vm2217_vm4, %v2185_v40  ;;  %v1953_v6 = vmul.f32 1.442695, %v1861_v38  ;;  %v10386_v38 = vld [vmem:[#allocation23_spill] sm:$0xff] }
 0x43a   : > { %6831 = vpow2.f32 %v1963_v45  ;;  %v1955_v40 = vmul.f32 1.442695, %v1862_v50 }
 0x43b   : > { %6833 = vpow2.f32 %v1645_v8 }
 0x43c   : > { %6835 = vpow2.f32 %v1953_v6 }
 0x43d   : > { %v1538_v21 = vpop.xlane.xlu2 %1537  ;;  %6837 = vpow2.f32 %v1955_v40 }
 0x43e   : > { %v8626_v2 = vmax.f32 %v8623_v52, %v1538_v21 }
 0x43f   : > { %v8628_v26 = vpop.eup %6829 }
 0x440   : > { %v8632_v62 = vpop.eup %6831  ;;  %2873 = vst.msk [vmem:[#allocation3 + $0xe8] sm:$0xff] %vm2217_vm4, %v8626_v2 }
 0x441   : > { %v8640_v48 = vadd.f32 %v8632_v62, %v8628_v26  ;;  %v8649_v6 = vpop.eup %6833 }
 0x444   : > { %v2631_v45 = vpop.f32.mrf.mxu2 }
 0x445   : > { %v2720_v21 = vpop.f32.mrf.mxu3  ;;  %v1751_v13 = vpop.permute.xlu2 %1750 }
 0x446   : > { %v2721_v12 = vadd.f32 %v2720_v21, %v2631_v45  ;;  %v1863_v11 = vsub.f32 %v10384_v44, %v1751_v13  ;;  %v1864_v41 = vsub.f32 %v10385_v1, %v1751_v13  ;;  %v2259_v45 = vld [vmem:[#allocation5 + $0x48] sm:$0xff] }
 0x448   : > { %v2788_v3 = vadd.f32 %v2721_v12, %v2450_v14  ;;  %v1957_v4 = vmul.f32 1.442695, %v1863_v11  ;;  %v1959_v29 = vmul.f32 1.442695, %v1864_v41  ;;  %1770 = vperm.xlu1 %6734, %v8338_v17   ;;  %v8651_v41 = vpop.eup %6835  ;;  %v2451_v17 = vmul.f32 %v8535_v36, %v2259_v45 }
 0x449   : > { %v1761_v53 = vpop.permute.xlu0 %1760  ;;  %v8654_v40 = vpop.eup %6837 }
 0x44a   : > { %2820 = vst.msk [vmem:[#allocation5 + $0x40] sm:$0xff] %vm1142_vm3, %v2788_v3  ;;  %6839 = vpow2.f32 %v1957_v4  ;;  %v1867_v50 = vsub.f32 %v10386_v38, %v1761_v53  ;;  %v1868_v0 = vsub.f32 %v10387_v42, %v1761_v53  ;;  %v2260_v53 = vld [vmem:[#allocation5 + $0x50] sm:$0xff] }
 0x44b   : > { %6841 = vpow2.f32 %v1959_v29 }
 0x44c   : > { %v1965_v21 = vmul.f32 1.442695, %v1867_v50  ;;  %v1967_v1 = vmul.f32 1.442695, %v1868_v0  ;;  %v2633_v8 = vpop.f32.mrf.mxu2  ;;  %v2452_v0 = vmul.f32 %v8533_v58, %v2260_v53 }
 0x44d   : > { %v2722_v11 = vpop.f32.mrf.mxu3 }
 0x44e   : > { %6843 = vpow2.f32 %v1965_v21  ;;  %v2723_v12 = vadd.f32 %v2722_v11, %v2633_v8  ;;  %v2261_v8 = vld [vmem:[#allocation5 + $0x58] sm:$0xff]  ;;  %v1599_v11 = vsub.f32 %v8415_v34, %v8421_v60 }
 0x44f   : > { %6845 = vpow2.f32 %v1967_v1  ;;  %v2453_v58 = vmul.f32 %v8617_v18, %v2261_v8  ;;  %v1597_v18 = vsub.f32 %v8388_v15, %v8393_v55  ;;  %v2026_v15 = vld [vmem:[#allocation4 + $0x8] sm:$0xff]  ;;  %v10388_v55 = vld [vmem:[#allocation31_spill] sm:$0xff]  ;;  %v10389_v8 = vld [vmem:[#allocation29_spill] sm:$0xff] }
 0x450   : > { %v6840_v13 = vpop.eup %6839  ;;  %v2789_v14 = vadd.f32 %v2723_v12, %v2451_v17  ;;  %2374 = vperm.xlu1 %6734, %v8649_v6  }
 0x451   : > { %v6842_v29 = vpop.eup %6841  ;;  %v2488_v44 = vpack.c.bf16 %v6840_v13, %v8651_v41 }
 0x452   : > { %2821 = vst.msk [vmem:[#allocation5 + $0x48] sm:$0xff] %vm1142_vm3, %v2789_v14  ;;  %v2489_v3 = vpack.c.bf16 %v6842_v29, %v8654_v40  ;;  %v8660_v4 = vadd.f32 %v6842_v29, %v6840_v13  ;;  %v8670_v13 = vld [vmem:[#allocation3 + $0xf8] sm:$0xff] }
 0x453   : > { %2645 = vmatmul.bf16.gmra.mxu2 %v2488_v44  ;;  %v1653_v44 = vmul.f32 1.442695, %v1599_v11  ;;  %v2058_v11 = vmul.f32 %v10389_v8, %v2026_v15 }
 0x454   : > { %v6844_v36 = vpop.eup %6843  ;;  %2734 = vmatmul.bf16.gmra.mxu3 %v2489_v3  ;;  %v2636_v38 = vpop.f32.mrf.mxu2 }
 0x455   : > { %v6846_v50 = vpop.eup %6845  ;;  %v2725_v42 = vpop.f32.mrf.mxu3  ;;  %v2490_v53 = vpack.c.bf16 %v6844_v36, %v8628_v26  ;;  %6847 = vpow2.f32 %v1653_v44 }
 0x456   : > { %v2726_v45 = vadd.f32 %v2725_v42, %v2636_v38  ;;  %v8663_v21 = vadd.f32 %v6846_v50, %v6844_v36  ;;  %v2491_v34 = vpack.c.bf16 %v6846_v50, %v8632_v62  ;;  %v1649_v38 = vmul.f32 1.442695, %v1597_v18  ;;  %v8686_v42 = vpop.permute.xlu0 %2364  ;;  %v8696_v36 = vpop.permute.xlu2 %2354  ;;  %v2029_v50 = vld [vmem:[#allocation4 + $0x20] sm:$0xff] }
 0x457   : > { %2111 = vadd.xlane.f32.xlu0 %v8390_v28  ;;  %v10391_v18 = vld [vmem:[#allocation25_spill] sm:$0xff] }
 0x458   : > { %v2790_v1 = vadd.f32 %v2726_v45, %v2452_v0  ;;  %6849 = vpow2.f32 %v1649_v38  ;;  %v2061_v0 = vmul.f32 %v10388_v55, %v2029_v50 }
 0x45a   : > { %2822 = vst.msk [vmem:[#allocation5 + $0x50] sm:$0xff] %vm1142_vm3, %v2790_v1 }
 0x45c   : > { %v2638_v17 = vpop.f32.mrf.mxu2  ;;  %2099 = vadd.xlane.f32.xlu2 %v8343_v25  ;;  %v8681_v25 = vpop.eup %6847 }
 0x45d   : > { %v2727_v12 = vpop.f32.mrf.mxu3 }
 0x45e   : > { %v2728_v14 = vadd.f32 %v2727_v12, %v2638_v17  ;;  %v8691_v26 = vpop.eup %6849  ;;  %v8693_v62 = vpop.permute.xlu0 %1775  ;;  %v1598_v12 = vsub.f32 %v8379_v33, %v8382_v19  ;;  %v2263_v33 = vld [vmem:[#allocation5 + $0x68] sm:$0xff] }
 0x45f   : > { %v1544_v29 = vpop.xlane.xlu1 %1543 }
 0x460   : > { %v2791_v3 = vadd.f32 %v2728_v14, %v2453_v58  ;;  %v8674_v28 = vmax.f32 %v8670_v13, %v1544_v29  ;;  %v2262_v58 = vld [vmem:[#allocation5 + $0x60] sm:$0xff]  ;;  %v1651_v14 = vmul.f32 1.442695, %v1598_v12 }
 0x461   : > { %v2454_v50 = vmul.f32 %v8603_v5, %v2262_v58 }
 0x462   : > { %2823 = vst.msk [vmem:[#allocation5 + $0x58] sm:$0xff] %vm1142_vm3, %v2791_v3  ;;  %6851 = vpow2.f32 %v1651_v14 }
 0x463   : > { %2875 = vst.msk [vmem:[#allocation3 + $0xf8] sm:$0xff] %vm2217_vm4, %v8674_v28  ;;  %2650 = vmatmul.bf16.gmra.mxu2 %v2490_v53  ;;  %v10390_v53 = vld [vmem:[#allocation26_spill] sm:$0xff] }
 0x464   : > { %2739 = vmatmul.bf16.gmra.mxu3 %v2491_v34 }
 0x468   : > { %v8709_v8 = vpop.eup %6851 }
 0x46b   : > { %2394 = vperm.xlu0 %6733, %v8681_v25  }
 0x473   : > { %1805 = vperm.xlu0 %6733, %v8565_v37  }
 0x474   : > { %1780 = vperm.xlu2 %6732, %v8382_v19  }
 0x477   : > { %v8712_v12 = vpop.permute.xlu1 %2359 }
 0x47a   : > { %2105 = vadd.xlane.f32.xlu1 %v8377_v16 }
 0x47c   : > { %2384 = vperm.xlu2 %6732, %v8691_v26  }
 0x484   : > { %v2103_v45 = vpop.xlane.xlu0 %2102 }
 0x485   : > { %v2189_v1 = vadd.f32 %v2103_v45, %v2061_v0 }
 0x486   : > { %v2094_v17 = vpop.xlane.xlu2 %2093 }
 0x487   : > { %2222 = vst.msk [vmem:[#allocation4 + $0x20] sm:$0xff] %vm2217_vm4, %v2189_v1  ;;  %v2186_v16 = vadd.f32 %v2094_v17, %v2058_v11  ;;  %v2455_v11 = vmul.f32 %v8600_v63, %v2263_v33  ;;  %v1602_v63 = vsub.f32 %v8513_v9, %v8518_v39 }
 0x489   : > { %2219 = vst.msk [vmem:[#allocation4 + $0x8] sm:$0xff] %vm2217_vm4, %v2186_v16 }
 0x48d   : > { %v2641_v29 = vpop.f32.mrf.mxu2 }
 0x48e   : > { %v1766_v44 = vpop.permute.xlu2 %1765  ;;  %v2730_v3 = vpop.f32.mrf.mxu3 }
 0x48f   : > { %v1869_v34 = vsub.f32 %v10390_v53, %v1766_v44  ;;  %v1870_v38 = vsub.f32 %v10391_v18, %v1766_v44  ;;  %v2731_v15 = vadd.f32 %v2730_v3, %v2641_v29  ;;  %v10392_v29 = vld [vmem:[#allocation30_spill] sm:$0xff] }
 0x491   : > { %v1969_v55 = vmul.f32 1.442695, %v1869_v34  ;;  %v1971_v0 = vmul.f32 1.442695, %v1870_v38  ;;  %v2792_v45 = vadd.f32 %v2731_v15, %v2454_v50  ;;  %v1659_v34 = vmul.f32 1.442695, %v1602_v63 }
 0x492   : > { %v10393_v15 = vld [vmem:[#allocation27_spill] sm:$0xff] }
 0x493   : > { %6853 = vpow2.f32 %v1969_v55  ;;  %1785 = vperm.xlu1 %6734, %v8421_v60   ;;  %2824 = vst.msk [vmem:[#allocation5 + $0x60] sm:$0xff] %vm1142_vm3, %v2792_v45  ;;  %v2027_v60 = vld [vmem:[#allocation4 + $0x10] sm:$0xff] }
 0x494   : > { %6855 = vpow2.f32 %v1971_v0  ;;  %v2059_v44 = vmul.f32 %v10392_v29, %v2027_v60  ;;  %v10394_v0 = vld [vmem:[#allocation28_spill] sm:$0xff] }
 0x495   : > { %v2643_v19 = vpop.f32.mrf.mxu2  ;;  %6857 = vpow2.f32 %v1659_v34 }
 0x496   : > { %v2732_v1 = vpop.f32.mrf.mxu3  ;;  %v8742_v60 = vpop.permute.xlu2 %2369 }
 0x497   : > { %v2733_v17 = vadd.f32 %v2732_v1, %v2643_v19  ;;  %v8729_v38 = vpop.permute.xlu0 %2379 }
 0x499   : > { %v6854_v5 = vpop.eup %6853  ;;  %v2793_v58 = vadd.f32 %v2733_v17, %v2455_v11 }
 0x49a   : > { %v6856_v16 = vpop.eup %6855 }
 0x49b   : > { %2389 = vperm.xlu1 %6734, %v8709_v8   ;;  %v8715_v14 = vadd.f32 %v6856_v16, %v6854_v5  ;;  %2825 = vst.msk [vmem:[#allocation5 + $0x68] sm:$0xff] %vm1142_vm3, %v2793_v58  ;;  %v8724_v18 = vpop.eup %6857  ;;  %v2032_v58 = vld [vmem:[#allocation4 + $0x38] sm:$0xff] }
 0x49c   : > { %v2064_v63 = vmul.f32 %v8283_v49, %v2032_v58  ;;  %v2264_v49 = vld [vmem:[#allocation5 + $0x70] sm:$0xff] }
 0x49d   : > { %2120 = vadd.xlane.f32.xlu0 %v8471_v27  ;;  %v1600_v27 = vsub.f32 %v8463_v43, %v8478_v30  ;;  %v2113_v43 = vadd.f32 %v8502_v61, %v8499_v46  ;;  %v2028_v61 = vld [vmem:[#allocation4 + $0x18] sm:$0xff] }
 0x49f   : > { %v1655_v9 = vmul.f32 1.442695, %v1600_v27  ;;  %v8735_v19 = vpop.permute.xlu0 %1790 }
 0x4a1   : > { %6859 = vpow2.f32 %v1655_v9  ;;  %v10396_v9 = vld [vmem:[#allocation34_spill] sm:$0xff] }
 0x4a2   : > { %v2097_v3 = vpop.xlane.xlu1 %2096 }
 0x4a3   : > { %v2187_v53 = vadd.f32 %v2097_v3, %v2059_v44 }
 0x4a5   : > { %2220 = vst.msk [vmem:[#allocation4 + $0x10] sm:$0xff] %vm2217_vm4, %v2187_v53  ;;  %2108 = vadd.xlane.f32.xlu2 %v8413_v24  ;;  %v10395_v53 = vld [vmem:[#allocation32_spill] sm:$0xff] }
 0x4a6   : > { %v2060_v34 = vmul.f32 %v10395_v53, %v2028_v61 }
 0x4a7   : > { %v8739_v30 = vpop.eup %6859 }
 0x4b1   : > { %2409 = vperm.xlu0 %6733, %v8724_v18  }
 0x4b9   : > { %1820 = vperm.xlu0 %6733, %v8626_v2  }
 0x4ba   : > { %v1771_v50 = vpop.permute.xlu1 %1770 }
 0x4bb   : > { %v1871_v55 = vsub.f32 %v10393_v15, %v1771_v50  ;;  %v1872_v45 = vsub.f32 %v10394_v0, %v1771_v50  ;;  %v1874_v50 = vsub.f32 %v10396_v9, %v8693_v62  ;;  %v10397_v0 = vld [vmem:[#allocation58_spill] sm:$0xff] }
 0x4bd   : > { %v1973_v24 = vmul.f32 1.442695, %v1871_v55  ;;  %v1975_v33 = vmul.f32 1.442695, %v1872_v45  ;;  %1795 = vperm.xlu2 %6732, %v8457_v22   ;;  %v1601_v45 = vsub.f32 %v10397_v0, %v8457_v22 }
 0x4bf   : > { %6861 = vpow2.f32 %v1973_v24  ;;  %v1979_v24 = vmul.f32 1.442695, %v1874_v50 }
 0x4c0   : > { %6863 = vpow2.f32 %v1975_v33 }
 0x4c5   : > { %v6862_v1 = vpop.eup %6861  ;;  %2399 = vperm.xlu2 %6732, %v8739_v30   ;;  %2114 = vadd.xlane.f32.xlu1 %v2113_v43 }
 0x4c6   : > { %v6864_v11 = vpop.eup %6863  ;;  %v2492_v17 = vpack.c.bf16 %v6862_v1, %v6854_v5 }
 0x4c7   : > { %v2493_v29 = vpack.c.bf16 %v6864_v11, %v6856_v16  ;;  %v8744_v44 = vadd.f32 %v6864_v11, %v6862_v1  ;;  %v1873_v16 = vsub.f32 %v8238_v35, %v8693_v62  ;;  %v6470_v1 = vld [vmem:[%s7444_s9 + $0xb8] sm:$0xff]  ;;  %v10398_v35 = vld [vmem:[#allocation35_spill] sm:$0xff] }
 0x4c8   : > { %2655 = vmatmul.bf16.gmra.mxu2 %v2492_v17  ;;  %v6478_v11 = vld [vmem:[%s7444_s9 + $0xf8] sm:$0xff]  ;;  %v2456_v17 = vmul.f32 %v8696_v36, %v2264_v49  ;;  %v3205_v62 = vsel %vm1142_vm3, %v6470_v1, 0 }
 0x4c9   : > { %2744 = vmatmul.bf16.gmra.mxu3 %v2493_v29  ;;  %v1977_v15 = vmul.f32 1.442695, %v1873_v16  ;;  %3231 = vmatpush.bf16.xpose.msrb.mxu2 %v3205_v62  ;;  %v2265_v36 = vld [vmem:[#allocation5 + $0x78] sm:$0xff] }
 0x4ca   : > { %v2112_v3 = vpop.xlane.xlu0 %2111  ;;  %v2457_v9 = vmul.f32 %v8712_v12, %v2265_v36  ;;  %v8778_v12 = vpop.permute.xlu1 %2374 }
 0x4cb   : > { %v2192_v46 = vadd.f32 %v2112_v3, %v2064_v63  ;;  %v10399_v63 = vld [vmem:[#allocation36_spill] sm:$0xff]  ;;  %6865 = vpow2.f32 %v1977_v15 }
 0x4cc   : > { %6867 = vpow2.f32 %v1979_v24 }
 0x4cd   : > { %2225 = vst.msk [vmem:[#allocation4 + $0x38] sm:$0xff] %vm2217_vm4, %v2192_v46  ;;  %v3229_v46 = vsel %vm1142_vm3, %v6478_v11, 0 }
 0x4ce   : > { %3320 = vmatpush.bf16.xpose.msrb.mxu3 %v3229_v46  ;;  %v2267_v46 = vld [vmem:[#allocation5 + $0x88] sm:$0xff] }
 0x4cf   : > { %v2100_v5 = vpop.xlane.xlu2 %2099 }
 0x4d0   : > { %v2188_v27 = vadd.f32 %v2100_v5, %v2060_v34  ;;  %v1657_v34 = vmul.f32 1.442695, %v1601_v45 }
 0x4d1   : > { %v8765_v16 = vpop.eup %6865 }
 0x4d2   : > { %2221 = vst.msk [vmem:[#allocation4 + $0x18] sm:$0xff] %vm2217_vm4, %v2188_v27  ;;  %v8768_v49 = vpop.eup %6867 }
 0x4d6   : > { %v2646_v55 = vpop.f32.mrf.mxu2 }
 0x4d7   : > { %v2735_v33 = vpop.f32.mrf.mxu3  ;;  %v1781_v43 = vpop.permute.xlu2 %1780 }
 0x4d8   : > { %v2736_v58 = vadd.f32 %v2735_v33, %v2646_v55  ;;  %v1875_v29 = vsub.f32 %v10398_v35, %v1781_v43  ;;  %v1876_v3 = vsub.f32 %v10399_v63, %v1781_v43  ;;  %v2266_v43 = vld [vmem:[#allocation5 + $0x80] sm:$0xff]  ;;  %v2030_v35 = vld [vmem:[#allocation4 + $0x28] sm:$0xff] }
 0x4da   : > { %v2794_v61 = vadd.f32 %v2736_v58, %v2456_v17  ;;  %v1981_v53 = vmul.f32 1.442695, %v1875_v29  ;;  %v1983_v22 = vmul.f32 1.442695, %v1876_v3  ;;  %v2458_v17 = vmul.f32 %v8686_v42, %v2266_v43  ;;  %v10400_v3 = vld [vmem:[#allocation39_spill] sm:$0xff]  ;;  %v10403_v43 = vld [vmem:[#allocation38_spill] sm:$0xff] }
 0x4db   : > { %v2062_v62 = vmul.f32 %v10400_v3, %v2030_v35  ;;  %v2035_v3 = vld [vmem:[#allocation4 + $0x50] sm:$0xff] }
 0x4dc   : > { %2826 = vst.msk [vmem:[#allocation5 + $0x70] sm:$0xff] %vm1142_vm3, %v2794_v61  ;;  %6869 = vpow2.f32 %v1981_v53 }
 0x4dd   : > { %6871 = vpow2.f32 %v1983_v22 }
 0x4de   : > { %v2648_v5 = vpop.f32.mrf.mxu2  ;;  %1800 = vperm.xlu1 %6734, %v8518_v39   ;;  %6873 = vpow2.f32 %v1657_v34 }
 0x4df   : > { %v2737_v27 = vpop.f32.mrf.mxu3 }
 0x4e0   : > { %v2738_v50 = vadd.f32 %v2737_v27, %v2648_v5  ;;  %v8795_v27 = vpop.permute.xlu0 %2394 }
 0x4e2   : > { %v6870_v15 = vpop.eup %6869  ;;  %v2795_v55 = vadd.f32 %v2738_v50, %v2457_v9  ;;  %v10401_v9 = vld [vmem:[#allocation40_spill] sm:$0xff]  ;;  %v10402_v50 = vld [vmem:[#allocation41_spill] sm:$0xff] }
 0x4e3   : > { %v6872_v0 = vpop.eup %6871  ;;  %2129 = vadd.xlane.f32.xlu0 %v8569_v7  ;;  %v2494_v45 = vpack.c.bf16 %v6870_v15, %v8765_v16  ;;  %v1605_v7 = vsub.f32 %v8585_v20, %v8589_v32  ;;  %v2459_v20 = vmul.f32 %v8742_v60, %v2267_v46  ;;  %v1879_v60 = vsub.f32 %v10401_v9, %v8735_v19 }
 0x4e4   : > { %2827 = vst.msk [vmem:[#allocation5 + $0x78] sm:$0xff] %vm1142_vm3, %v2795_v55  ;;  %v2495_v39 = vpack.c.bf16 %v6872_v0, %v8768_v49  ;;  %v8774_v24 = vadd.f32 %v6872_v0, %v6870_v15  ;;  %v8776_v33 = vpop.eup %6873  ;;  %v1880_v15 = vsub.f32 %v10402_v50, %v8735_v19  ;;  %v2031_v50 = vld [vmem:[#allocation4 + $0x30] sm:$0xff] }
 0x4e5   : > { %2660 = vmatmul.bf16.gmra.mxu2 %v2494_v45  ;;  %v1665_v63 = vmul.f32 1.442695, %v1605_v7  ;;  %v1989_v0 = vmul.f32 1.442695, %v1879_v60 }
 0x4e6   : > { %2749 = vmatmul.bf16.gmra.mxu3 %v2495_v39  ;;  %v2651_v1 = vpop.f32.mrf.mxu2  ;;  %2404 = vperm.xlu1 %6734, %v8776_v33   ;;  %v1991_v45 = vmul.f32 1.442695, %v1880_v15  ;;  %v10406_v15 = vld [vmem:[#allocation42_spill] sm:$0xff] }
 0x4e7   : > { %v2740_v11 = vpop.f32.mrf.mxu3  ;;  %6875 = vpow2.f32 %v1665_v63 }
 0x4e8   : > { %v2741_v58 = vadd.f32 %v2740_v11, %v2651_v1  ;;  %v10404_v11 = vld [vmem:[#allocation37_spill] sm:$0xff] }
 0x4ea   : > { %v2796_v29 = vadd.f32 %v2741_v58, %v2458_v17  ;;  %v8806_v17 = vpop.permute.xlu0 %1805 }
 0x4ec   : > { %2828 = vst.msk [vmem:[#allocation5 + $0x80] sm:$0xff] %vm1142_vm3, %v2796_v29 }
 0x4ed   : > { %v2106_v61 = vpop.xlane.xlu1 %2105  ;;  %v8790_v5 = vpop.eup %6875 }
 0x4ee   : > { %v2190_v53 = vadd.f32 %v2106_v61, %v2062_v62  ;;  %2117 = vadd.xlane.f32.xlu2 %v8507_v51  ;;  %v2653_v22 = vpop.f32.mrf.mxu2  ;;  %v1603_v51 = vsub.f32 %v8562_v59, %v8565_v37  ;;  %v6469_v59 = vld [vmem:[%s7444_s9 + $0xb0] sm:$0xff]  ;;  %v10405_v61 = vld [vmem:[#allocation45_spill] sm:$0xff] }
 0x4ef   : > { %v2742_v34 = vpop.f32.mrf.mxu3  ;;  %v6477_v37 = vld [vmem:[%s7444_s9 + $0xf0] sm:$0xff]  ;;  %v3202_v19 = vsel %vm1142_vm3, %v6469_v59, 0  ;;  %v1608_v59 = vsub.f32 %v8670_v13, %v8674_v28 }
 0x4f0   : > { %2223 = vst.msk [vmem:[#allocation4 + $0x28] sm:$0xff] %vm2217_vm4, %v2190_v53  ;;  %v2743_v42 = vadd.f32 %v2742_v34, %v2653_v22  ;;  %v1661_v55 = vmul.f32 1.442695, %v1603_v51  ;;  %v3226_v29 = vsel %vm1142_vm3, %v6477_v37, 0  ;;  %3232 = vmatpush.bf16.xpose.msrb.mxu2 %v3202_v19  ;;  %v2067_v53 = vmul.f32 %v10405_v61, %v2035_v3  ;;  %v8818_v34 = vpop.permute.xlu2 %2384  ;;  %v6467_v3 = vld [vmem:[%s7444_s9 + $0xa0] sm:$0xff] }
 0x4f1   : > { %3321 = vmatpush.bf16.xpose.msrb.mxu3 %v3226_v29  ;;  %v1671_v37 = vmul.f32 1.442695, %v1608_v59  ;;  %v6475_v61 = vld [vmem:[%s7444_s9 + $0xe0] sm:$0xff]  ;;  %v10411_v59 = vld [vmem:[#allocation46_spill] sm:$0xff] }
 0x4f2   : > { %v2797_v36 = vadd.f32 %v2743_v42, %v2459_v20  ;;  %6877 = vpow2.f32 %v1661_v55  ;;  %v2063_v55 = vmul.f32 %v10406_v15, %v2031_v50  ;;  %v10409_v15 = vld [vmem:[#allocation43_spill] sm:$0xff] }
 0x4f3   : > { %6879 = vpow2.f32 %v1989_v0 }
 0x4f4   : > { %2829 = vst.msk [vmem:[#allocation5 + $0x88] sm:$0xff] %vm1142_vm3, %v2797_v36  ;;  %6881 = vpow2.f32 %v1991_v45 }
 0x4f7   : > { %2424 = vperm.xlu0 %6733, %v8790_v5  }
 0x4f8   : > { %v8810_v63 = vpop.eup %6877 }
 0x4f9   : > { %v8812_v62 = vpop.eup %6879 }
 0x4fa   : > { %v8815_v46 = vpop.eup %6881 }
 0x505   : > { %v1786_v39 = vpop.permute.xlu1 %1785 }
 0x506   : > { %v1877_v1 = vsub.f32 %v10403_v43, %v1786_v39  ;;  %v1878_v7 = vsub.f32 %v10404_v11, %v1786_v39  ;;  %1810 = vperm.xlu2 %6732, %v8550_v47   ;;  %v6476_v39 = vld [vmem:[%s7444_s9 + $0xe8] sm:$0xff]  ;;  %v1604_v11 = vsub.f32 %v8540_v31, %v8550_v47  ;;  %v2033_v31 = vld [vmem:[#allocation4 + $0x40] sm:$0xff]  ;;  %v10407_v47 = vld [vmem:[#allocation48_spill] sm:$0xff] }
 0x508   : > { %v1985_v58 = vmul.f32 1.442695, %v1877_v1  ;;  %v1987_v35 = vmul.f32 1.442695, %v1878_v7  ;;  %v3223_v1 = vsel %vm1142_vm3, %v6476_v39, 0 }
 0x509   : > { %3322 = vmatpush.bf16.xpose.msrb.mxu3 %v3223_v1  ;;  %v1663_v7 = vmul.f32 1.442695, %v1604_v11  ;;  %v10410_v11 = vld [vmem:[#allocation47_spill] sm:$0xff] }
 0x50a   : > { %6883 = vpow2.f32 %v1985_v58 }
 0x50b   : > { %6885 = vpow2.f32 %v1987_v35 }
 0x50c   : > { %6887 = vpow2.f32 %v1663_v7 }
 0x50d   : > { %6889 = vpow2.f32 %v1671_v37  ;;  %v8840_v35 = vpop.permute.xlu1 %2389 }
 0x50e   : > { %2414 = vperm.xlu2 %6732, %v8810_v63  }
 0x510   : > { %v6884_v22 = vpop.eup %6883  ;;  %v2121_v20 = vpop.xlane.xlu0 %2120  ;;  %2123 = vadd.xlane.f32.xlu1 %v8510_v56  ;;  %v6468_v56 = vld [vmem:[%s7444_s9 + $0xa8] sm:$0xff] }
 0x511   : > { %v6886_v42 = vpop.eup %6885  ;;  %v2195_v36 = vadd.f32 %v2121_v20, %v2067_v53  ;;  %v2496_v51 = vpack.c.bf16 %v8812_v62, %v6884_v22  ;;  %v3199_v43 = vsel %vm1142_vm3, %v6468_v56, 0  ;;  %v3196_v53 = vsel %vm1142_vm3, %v6467_v3, 0 }
 0x512   : > { %v2497_v9 = vpack.c.bf16 %v8815_v46, %v6886_v42  ;;  %v8823_v60 = vadd.f32 %v6886_v42, %v6884_v22  ;;  %3233 = vmatpush.bf16.xpose.msrb.mxu2 %v3199_v43  ;;  %v8838_v58 = vpop.eup %6887  ;;  %v3220_v22 = vsel %vm1142_vm3, %v6475_v61, 0  ;;  %v1606_v20 = vsub.f32 %v8623_v52, %v8626_v2  ;;  %v2268_v42 = vld [vmem:[#allocation5 + $0x90] sm:$0xff] }
 0x513   : > { %2228 = vst.msk [vmem:[#allocation4 + $0x50] sm:$0xff] %vm2217_vm4, %v2195_v36  ;;  %2665 = vmatmul.bf16.gmra.mxu2 %v2496_v51  ;;  %3323 = vmatpush.bf16.xpose.msrb.mxu3 %v3220_v22  ;;  %v10408_v36 = vld [vmem:[#allocation44_spill] sm:$0xff] }
 0x514   : > { %2754 = vmatmul.bf16.gmra.mxu3 %v2497_v9  ;;  %v1667_v50 = vmul.f32 1.442695, %v1606_v20 }
 0x516   : > { %6891 = vpow2.f32 %v1667_v50 }
 0x518   : > { %v2109_v0 = vpop.xlane.xlu2 %2108 }
 0x519   : > { %v2191_v45 = vadd.f32 %v2109_v0, %v2063_v55 }
 0x51a   : > { %3234 = vmatpush.bf16.xpose.msrb.mxu2 %v3196_v53  ;;  %v10412_v53 = vld [vmem:[#allocation54_spill] sm:$0xff] }
 0x51b   : > { %2224 = vst.msk [vmem:[#allocation4 + $0x30] sm:$0xff] %vm2217_vm4, %v2191_v45  ;;  %v2460_v45 = vmul.f32 %v8778_v12, %v2268_v42 }
 0x521   : > { %2138 = vadd.xlane.f32.xlu0 %v8640_v48  ;;  %v8843_v48 = vpop.eup %6889 }
 0x522   : > { %v8868_v20 = vpop.eup %6891 }
 0x523   : > { %v8849_v29 = vpop.permute.xlu0 %2409 }
 0x529   : > { %1815 = vperm.xlu1 %6734, %v8589_v32   ;;  %v2065_v32 = vmul.f32 %v10407_v47, %v2033_v31  ;;  %v2269_v31 = vld [vmem:[#allocation5 + $0x98] sm:$0xff]  ;;  %v2038_v47 = vld [vmem:[#allocation4 + $0x68] sm:$0xff] }
 0x52a   : > { %v2461_v3 = vmul.f32 %v8729_v38, %v2269_v31  ;;  %v2070_v22 = vmul.f32 %v10412_v53, %v2038_v47  ;;  %v2131_v38 = vadd.f32 %v8654_v40, %v8651_v41  ;;  %v2270_v31 = vld [vmem:[#allocation5 + $0xa0] sm:$0xff] }
 0x52b   : > { %v8860_v39 = vpop.permute.xlu0 %1820 }
 0x531   : > { %2419 = vperm.xlu1 %6734, %v8838_v58  }
 0x535   : > { %2439 = vperm.xlu0 %6733, %v8843_v48  }
 0x537   : > { %2126 = vadd.xlane.f32.xlu2 %v8582_v10  ;;  %v1796_v10 = vpop.permute.xlu2 %1795 }
 0x538   : > { %v2115_v13 = vpop.xlane.xlu1 %2114  ;;  %v1881_v51 = vsub.f32 %v10408_v36, %v1796_v10  ;;  %v1882_v55 = vsub.f32 %v10409_v15, %v1796_v10 }
 0x539   : > { %v2193_v19 = vadd.f32 %v2115_v13, %v2065_v32 }
 0x53a   : > { %v1993_v43 = vmul.f32 1.442695, %v1881_v51  ;;  %v1995_v52 = vmul.f32 1.442695, %v1882_v55 }
 0x53b   : > { %2226 = vst.msk [vmem:[#allocation4 + $0x40] sm:$0xff] %vm2217_vm4, %v2193_v19 }
 0x53c   : > { %6893 = vpow2.f32 %v1993_v43  ;;  %v10413_v43 = vld [vmem:[#allocation51_spill] sm:$0xff] }
 0x53d   : > { %6895 = vpow2.f32 %v1995_v52  ;;  %v10414_v52 = vld [vmem:[#allocation50_spill] sm:$0xff] }
 0x542   : > { %v8871_v51 = vpop.eup %6893 }
 0x543   : > { %v8878_v50 = vpop.eup %6895 }
 0x54b   : > { %v2656_v9 = vpop.f32.mrf.mxu2 }
 0x54c   : > { %v2745_v0 = vpop.f32.mrf.mxu3 }
 0x54d   : > { %v2746_v56 = vadd.f32 %v2745_v0, %v2656_v9  ;;  %v8873_v9 = vpop.permute.xlu2 %2399 }
 0x54f   : > { %v2798_v1 = vadd.f32 %v2746_v56, %v2460_v45  ;;  %1825 = vperm.xlu2 %6732, %v8609_v57   ;;  %v2034_v56 = vld [vmem:[#allocation4 + $0x48] sm:$0xff] }
 0x550   : > { %v1801_v2 = vpop.permute.xlu1 %1800  ;;  %v2066_v41 = vmul.f32 %v10413_v43, %v2034_v56  ;;  %v2271_v56 = vld [vmem:[#allocation5 + $0xa8] sm:$0xff] }
 0x551   : > { %2830 = vst.msk [vmem:[#allocation5 + $0x90] sm:$0xff] %vm1142_vm3, %v2798_v1  ;;  %v1883_v7 = vsub.f32 %v10410_v11, %v1801_v2  ;;  %v1884_v37 = vsub.f32 %v10411_v59, %v1801_v2  ;;  %v1885_v2 = vsub.f32 %v10414_v52, %v8806_v17  ;;  %v10415_v11 = vld [vmem:[#allocation49_spill] sm:$0xff]  ;;  %v6466_v59 = vld [vmem:[%s7444_s9 + $0x98] sm:$0xff] }
 0x553   : > { %v1997_v12 = vmul.f32 1.442695, %v1883_v7  ;;  %v1999_v32 = vmul.f32 1.442695, %v1884_v37  ;;  %v2658_v13 = vpop.f32.mrf.mxu2  ;;  %v1886_v7 = vsub.f32 %v10415_v11, %v8806_v17  ;;  %v6474_v37 = vld [vmem:[%s7444_s9 + $0xd8] sm:$0xff]  ;;  %v10416_v17 = vld [vmem:[#allocation53_spill] sm:$0xff] }
 0x554   : > { %v2747_v19 = vpop.f32.mrf.mxu3  ;;  %v2001_v47 = vmul.f32 1.442695, %v1885_v2 }
 0x555   : > { %6897 = vpow2.f32 %v1997_v12  ;;  %v2748_v61 = vadd.f32 %v2747_v19, %v2658_v13  ;;  %v2003_v13 = vmul.f32 1.442695, %v1886_v7 }
 0x556   : > { %6899 = vpow2.f32 %v1999_v32  ;;  %v2130_v10 = vpop.xlane.xlu0 %2129  ;;  %v3217_v32 = vsel %vm1142_vm3, %v6474_v37, 0 }
 0x557   : > { %v2799_v42 = vadd.f32 %v2748_v61, %v2461_v3  ;;  %v2198_v36 = vadd.f32 %v2130_v10, %v2070_v22  ;;  %2429 = vperm.xlu2 %6732, %v8868_v20   ;;  %3324 = vmatpush.bf16.xpose.msrb.mxu3 %v3217_v32  ;;  %v2462_v61 = vmul.f32 %v8818_v34, %v2270_v31  ;;  %v10417_v10 = vld [vmem:[#allocation52_spill] sm:$0xff]  ;;  %6901 = vpow2.f32 %v2001_v47 }
 0x558   : > { %6903 = vpow2.f32 %v2003_v13  ;;  %v8912_v7 = vpop.permute.xlu1 %2404 }
 0x559   : > { %2831 = vst.msk [vmem:[#allocation5 + $0x98] sm:$0xff] %vm1142_vm3, %v2799_v42 }
 0x55a   : > { %2231 = vst.msk [vmem:[#allocation4 + $0x68] sm:$0xff] %vm2217_vm4, %v2198_v36 }
 0x55b   : > { %v6898_v15 = vpop.eup %6897  ;;  %2132 = vadd.xlane.f32.xlu1 %v2131_v38 }
 0x55c   : > { %v6900_v55 = vpop.eup %6899  ;;  %v2498_v0 = vpack.c.bf16 %v6898_v15, %v8871_v51 }
 0x55d   : > { %v2499_v45 = vpack.c.bf16 %v6900_v55, %v8878_v50 }
 0x55e   : > { %2670 = vmatmul.bf16.gmra.mxu2 %v2498_v0  ;;  %v1607_v0 = vsub.f32 %v8605_v23, %v8609_v57 }
 0x55f   : > { %2759 = vmatmul.bf16.gmra.mxu3 %v2499_v45  ;;  %2147 = vadd.xlane.f32.xlu0 %v8744_v44  ;;  %v3193_v44 = vsel %vm1142_vm3, %v6466_v59, 0  ;;  %v2164_v45 = vadd.f32 %v6900_v55, %v6898_v15  ;;  %v2036_v59 = vld [vmem:[#allocation4 + $0x58] sm:$0xff] }
 0x560   : > { %3235 = vmatpush.bf16.xpose.msrb.mxu2 %v3193_v44  ;;  %v1669_v43 = vmul.f32 1.442695, %v1607_v0  ;;  %v6473_v44 = vld [vmem:[%s7444_s9 + $0xd0] sm:$0xff] }
 0x561   : > { %v2118_v40 = vpop.xlane.xlu2 %2117  ;;  %v3214_v13 = vsel %vm1142_vm3, %v6473_v44, 0 }
 0x562   : > { %v2194_v1 = vadd.f32 %v2118_v40, %v2066_v41  ;;  %v8901_v40 = vpop.eup %6901  ;;  %3325 = vmatpush.bf16.xpose.msrb.mxu3 %v3214_v13 }
 0x563   : > { %v8904_v2 = vpop.eup %6903 }
 0x564   : > { %2227 = vst.msk [vmem:[#allocation4 + $0x48] sm:$0xff] %vm2217_vm4, %v2194_v1  ;;  %v2463_v1 = vmul.f32 %v8840_v35, %v2271_v56 }
 0x567   : > { %2156 = vadd.xlane.f32.xlu0 %v8823_v60 }
 0x568   : > { %v2661_v12 = vpop.f32.mrf.mxu2 }
 0x569   : > { %v2750_v19 = vpop.f32.mrf.mxu3  ;;  %v1811_v3 = vpop.permute.xlu2 %1810 }
 0x56a   : > { %v2751_v53 = vadd.f32 %v2750_v19, %v2661_v12  ;;  %v1887_v22 = vsub.f32 %v10416_v17, %v1811_v3  ;;  %v1888_v42 = vsub.f32 %v10417_v10, %v1811_v3  ;;  %v6465_v12 = vld [vmem:[%s7444_s9 + $0x90] sm:$0xff]  ;;  %v8923_v19 = vpop.permute.xlu0 %2424 }
 0x56b   : > { %v3190_v32 = vsel %vm1142_vm3, %v6465_v12, 0 }
 0x56c   : > { %v2800_v60 = vadd.f32 %v2751_v53, %v2462_v61  ;;  %v2005_v36 = vmul.f32 1.442695, %v1887_v22  ;;  %v2007_v38 = vmul.f32 1.442695, %v1888_v42  ;;  %3236 = vmatpush.bf16.xpose.msrb.mxu2 %v3190_v32  ;;  %v2272_v53 = vld [vmem:[#allocation5 + $0xb0] sm:$0xff]  ;;  %v10419_v22 = vld [vmem:[#allocation60_spill] sm:$0xff] }
 0x56d   : > { %v1891_v10 = vsub.f32 %v10419_v22, %v8860_v39 }
 0x56e   : > { %2832 = vst.msk [vmem:[#allocation5 + $0xa0] sm:$0xff] %vm1142_vm3, %v2800_v60  ;;  %6905 = vpow2.f32 %v2005_v36  ;;  %v2161_v60 = vadd.f32 %v8878_v50, %v8871_v51  ;;  %v10420_v36 = vld [vmem:[#allocation59_spill] sm:$0xff] }
 0x56f   : > { %6907 = vpow2.f32 %v2007_v38  ;;  %2165 = vadd.xlane.f32.xlu0 %v2164_v45  ;;  %v10422_v51 = vld [vmem:[#allocation55_spill] sm:$0xff] }
 0x570   : > { %v2663_v34 = vpop.f32.mrf.mxu2  ;;  %6909 = vpow2.f32 %v1669_v43  ;;  %v10421_v43 = vld [vmem:[#allocation56_spill] sm:$0xff] }
 0x571   : > { %v2752_v41 = vpop.f32.mrf.mxu3 }
 0x572   : > { %v2753_v52 = vadd.f32 %v2752_v41, %v2663_v34 }
 0x574   : > { %v6906_v11 = vpop.eup %6905  ;;  %v2801_v23 = vadd.f32 %v2753_v52, %v2463_v1  ;;  %1830 = vperm.xlu1 %6734, %v8674_v28   ;;  %v10418_v28 = vld [vmem:[#allocation57_spill] sm:$0xff] }
 0x575   : > { %v6908_v57 = vpop.eup %6907  ;;  %v2500_v15 = vpack.c.bf16 %v6906_v11, %v8901_v40  ;;  %v2068_v37 = vmul.f32 %v10418_v28, %v2036_v59  ;;  %v6464_v28 = vld [vmem:[%s7444_s9 + $0x88] sm:$0xff] }
 0x576   : > { %2833 = vst.msk [vmem:[#allocation5 + $0xa8] sm:$0xff] %vm1142_vm3, %v2801_v23  ;;  %v2501_v55 = vpack.c.bf16 %v6908_v57, %v8904_v2  ;;  %v8910_v35 = vpop.eup %6909  ;;  %v3187_v12 = vsel %vm1142_vm3, %v6464_v28, 0  ;;  %v2047_v28 = vld [vmem:[#allocation4 + $0xb0] sm:$0xff] }
 0x577   : > { %2675 = vmatmul.bf16.gmra.mxu2 %v2500_v15 }
 0x578   : > { %2764 = vmatmul.bf16.gmra.mxu3 %v2501_v55  ;;  %3237 = vmatpush.bf16.xpose.msrb.mxu2 %v3187_v12 }
 0x57c   : > { %2434 = vperm.xlu1 %6734, %v8910_v35  }
 0x580   : > { %2135 = vadd.xlane.f32.xlu2 %v8660_v4  ;;  %v2041_v4 = vld [vmem:[#allocation4 + $0x80] sm:$0xff] }
 0x581   : > { %v2073_v3 = vmul.f32 %v8529_v54, %v2041_v4  ;;  %v2013_v54 = vmul.f32 1.442695, %v1891_v10 }
 0x583   : > { %v2124_v31 = vpop.xlane.xlu1 %2123  ;;  %6911 = vpow2.f32 %v2013_v54 }
 0x584   : > { %v2196_v47 = vadd.f32 %v2124_v31, %v2068_v37  ;;  %v6472_v37 = vld [vmem:[%s7444_s9 + $0xc8] sm:$0xff]  ;;  %v8941_v31 = vpop.permute.xlu2 %2414 }
 0x585   : > { %v3211_v44 = vsel %vm1142_vm3, %v6472_v37, 0  ;;  %v2079_v37 = vmul.f32 %v8681_v25, %v2047_v28  ;;  %v10428_v25 = vld [vmem:[#allocation65_spill] sm:$0xff] }
 0x586   : > { %2229 = vst.msk [vmem:[#allocation4 + $0x58] sm:$0xff] %vm2217_vm4, %v2196_v47  ;;  %3326 = vmatpush.bf16.xpose.msrb.mxu3 %v3211_v44  ;;  %v2050_v44 = vld [vmem:[#allocation4 + $0xc8] sm:$0xff]  ;;  %v6447_v28 = vld [vmem:[#allocation2 + $0x80] sm:$0xff] }
 0x588   : > { %2144 = vadd.xlane.f32.xlu2 %v8715_v14  ;;  %v1892_v14 = vsub.f32 %v10420_v36, %v8860_v39  ;;  %v2273_v39 = vld [vmem:[#allocation5 + $0xb8] sm:$0xff] }
 0x589   : > { %v2465_v55 = vmul.f32 %v8873_v9, %v2273_v39  ;;  %v6912_v32 = vpop.eup %6911 }
 0x58a   : > { %v2015_v56 = vmul.f32 1.442695, %v1892_v14  ;;  %v10425_v14 = vld [vmem:[#allocation62_spill] sm:$0xff] }
 0x58c   : > { %6913 = vpow2.f32 %v2015_v56 }
 0x590   : > { %2153 = vadd.xlane.f32.xlu2 %v8774_v24  ;;  %v2464_v24 = vmul.f32 %v8795_v27, %v2272_v53  ;;  %v2170_v27 = vadd.f32 %v6908_v57, %v6906_v11  ;;  %v2037_v57 = vld [vmem:[#allocation4 + $0x60] sm:$0xff]  ;;  %v10423_v53 = vld [vmem:[#allocation63_spill] sm:$0xff] }
 0x592   : > { %v6914_v11 = vpop.eup %6913 }
 0x594   : > { %v2139_v61 = vpop.xlane.xlu0 %2138 }
 0x595   : > { %v2201_v17 = vadd.f32 %v2139_v61, %v2073_v3 }
 0x596   : > { %v2666_v42 = vpop.f32.mrf.mxu2 }
 0x597   : > { %2234 = vst.msk [vmem:[#allocation4 + $0x80] sm:$0xff] %vm2217_vm4, %v2201_v17  ;;  %v2755_v38 = vpop.f32.mrf.mxu3  ;;  %v2069_v17 = vmul.f32 %v10423_v53, %v2037_v57 }
 0x598   : > { %v2756_v0 = vadd.f32 %v2755_v38, %v2666_v42  ;;  %2162 = vadd.xlane.f32.xlu2 %v2161_v60  ;;  %v2149_v42 = vadd.f32 %v8768_v49, %v8765_v16  ;;  %v2167_v16 = vadd.f32 %v8904_v2, %v8901_v40  ;;  %v2039_v2 = vld [vmem:[#allocation4 + $0x70] sm:$0xff] }
 0x59a   : > { %v2802_v45 = vadd.f32 %v2756_v0, %v2464_v24  ;;  %v2158_v24 = vadd.f32 %v8815_v46, %v8812_v62  ;;  %v6463_v46 = vld [vmem:[%s7444_s9 + $0x80] sm:$0xff] }
 0x59b   : > { %v1816_v34 = vpop.permute.xlu1 %1815 }
 0x59c   : > { %2834 = vst.msk [vmem:[#allocation5 + $0xb0] sm:$0xff] %vm1142_vm3, %v2802_v45  ;;  %v1889_v41 = vsub.f32 %v10421_v43, %v1816_v34  ;;  %v1890_v50 = vsub.f32 %v10422_v51, %v1816_v34  ;;  %v2176_v34 = vadd.f32 %v6914_v11, %v6912_v32  ;;  %v6471_v43 = vld [vmem:[%s7444_s9 + $0xc0] sm:$0xff] }
 0x59d   : > { %v3208_v51 = vsel %vm1142_vm3, %v6471_v43, 0 }
 0x59e   : > { %v2009_v1 = vmul.f32 1.442695, %v1889_v41  ;;  %v2011_v52 = vmul.f32 1.442695, %v1890_v50  ;;  %v2668_v23 = vpop.f32.mrf.mxu2  ;;  %v3184_v41 = vsel %vm1142_vm3, %v6463_v46, 0  ;;  %3327 = vmatpush.bf16.xpose.msrb.mxu3 %v3208_v51  ;;  %v10426_v50 = vld [vmem:[#allocation66_spill] sm:$0xff] }
 0x59f   : > { %v2757_v15 = vpop.f32.mrf.mxu3  ;;  %3238 = vmatpush.bf16.xpose.msrb.mxu2 %v3184_v41  ;;  %v2071_v39 = vmul.f32 %v10426_v50, %v2039_v2  ;;  %v2043_v50 = vld [vmem:[#allocation4 + $0x90] sm:$0xff] }
 0x5a0   : > { %6915 = vpow2.f32 %v2009_v1  ;;  %v2758_v59 = vadd.f32 %v2757_v15, %v2668_v23  ;;  %2171 = vadd.xlane.f32.xlu2 %v2170_v27  ;;  %v10427_v27 = vld [vmem:[#allocation33_spill] sm:$0xff] }
 0x5a1   : > { %6917 = vpow2.f32 %v2011_v52  ;;  %v2044_v52 = vld [vmem:[#allocation4 + $0x98] sm:$0xff] }
 0x5a2   : > { %v2803_v47 = vadd.f32 %v2758_v59, %v2465_v55  ;;  %v2076_v15 = vmul.f32 %v10427_v27, %v2044_v52  ;;  %v2075_v52 = vmul.f32 %v8649_v6, %v2043_v50 }
 0x5a3   : > { %v8963_v62 = vpop.permute.xlu1 %2419 }
 0x5a4   : > { %2835 = vst.msk [vmem:[#allocation5 + $0xb8] sm:$0xff] %vm1142_vm3, %v2803_v47 }
 0x5a6   : > { %v6916_v9 = vpop.eup %6915  ;;  %2141 = vadd.xlane.f32.xlu1 %v8663_v21  ;;  %v10424_v21 = vld [vmem:[#allocation61_spill] sm:$0xff] }
 0x5a7   : > { %v6918_v13 = vpop.eup %6917  ;;  %v2502_v4 = vpack.c.bf16 %v6912_v32, %v6916_v9  ;;  %v8969_v40 = vpop.permute.xlu0 %2439  ;;  %v2274_v32 = vld [vmem:[#allocation5 + $0xc0] sm:$0xff] }
 0x5a8   : > { %v2503_v3 = vpack.c.bf16 %v6914_v11, %v6918_v13  ;;  %v2173_v61 = vadd.f32 %v6918_v13, %v6916_v9  ;;  %v2082_v9 = vmul.f32 %v8724_v18, %v2050_v44 }
 0x5a9   : > { %2680 = vmatmul.bf16.gmra.mxu2 %v2502_v4  ;;  %v2466_v4 = vmul.f32 %v8912_v7, %v2274_v32 }
 0x5aa   : > { %2769 = vmatmul.bf16.gmra.mxu3 %v2503_v3  ;;  %2174 = vadd.xlane.f32.xlu0 %v2173_v61  ;;  %v2127_v22 = vpop.xlane.xlu2 %2126 }
 0x5ab   : > { %v2197_v10 = vadd.f32 %v2127_v22, %v2069_v17 }
 0x5ad   : > { %2230 = vst.msk [vmem:[#allocation4 + $0x60] sm:$0xff] %vm2217_vm4, %v2197_v10  ;;  %v10429_v10 = vld [vmem:[#allocation64_spill] sm:$0xff] }
 0x5ae   : > { %2150 = vadd.xlane.f32.xlu1 %v2149_v42 }
 0x5b2   : > { %v1826_v60 = vpop.permute.xlu2 %1825 }
 0x5b3   : > { %v1893_v36 = vsub.f32 %v10424_v21, %v1826_v60  ;;  %v1894_v38 = vsub.f32 %v10425_v14, %v1826_v60  ;;  %v2275_v60 = vld [vmem:[#allocation5 + $0xc8] sm:$0xff] }
 0x5b5   : > { %v2017_v0 = vmul.f32 1.442695, %v1893_v36  ;;  %v2019_v54 = vmul.f32 1.442695, %v1894_v38  ;;  %v2467_v38 = vmul.f32 %v8849_v29, %v2275_v60  ;;  %v2053_v60 = vld [vmem:[#allocation4 + $0xe0] sm:$0xff] }
 0x5b6   : > { %2159 = vadd.xlane.f32.xlu1 %v2158_v24 }
 0x5b7   : > { %6919 = vpow2.f32 %v2017_v0 }
 0x5b8   : > { %6921 = vpow2.f32 %v2019_v54  ;;  %v2040_v54 = vld [vmem:[#allocation4 + $0x78] sm:$0xff] }
 0x5ba   : > { %v8984_v7 = vpop.permute.xlu2 %2429 }
 0x5bd   : > { %v8957_v49 = vpop.eup %6919 }
 0x5be   : > { %v8959_v45 = vpop.eup %6921  ;;  %2168 = vadd.xlane.f32.xlu1 %v2167_v16 }
 0x5bf   : > { %v2179_v56 = vadd.f32 %v8959_v45, %v8957_v49 }
 0x5c1   : > { %2180 = vadd.xlane.f32.xlu2 %v2179_v56 }
 0x5c6   : > { %2177 = vadd.xlane.f32.xlu1 %v2176_v34  ;;  %v10430_v34 = vld [vmem:[#allocation15_spill] sm:$0xff] }
 0x5c7   : > { %v2072_v46 = vmul.f32 %v10430_v34, %v2040_v54 }
 0x5ce   : > { %v2133_v1 = vpop.xlane.xlu1 %2132 }
 0x5cf   : > { %v2199_v23 = vadd.f32 %v2133_v1, %v2071_v39  ;;  %v2276_v39 = vld [vmem:[#allocation5 + $0xd0] sm:$0xff] }
 0x5d1   : > { %2232 = vst.msk [vmem:[#allocation4 + $0x70] sm:$0xff] %vm2217_vm4, %v2199_v23 }
 0x5d2   : > { %v2148_v55 = vpop.xlane.xlu0 %2147 }
 0x5d3   : > { %v2204_v59 = vadd.f32 %v2148_v55, %v2076_v15  ;;  %v2468_v15 = vmul.f32 %v8941_v31, %v2276_v39  ;;  %v2055_v39 = vld [vmem:[#allocation4 + $0xf0] sm:$0xff] }
 0x5d5   : > { %2237 = vst.msk [vmem:[#allocation4 + $0x98] sm:$0xff] %vm2217_vm4, %v2204_v59 }
 0x5da   : > { %v2157_v47 = vpop.xlane.xlu0 %2156 }
 0x5db   : > { %v2207_v12 = vadd.f32 %v2157_v47, %v2079_v37  ;;  %v2277_v37 = vld [vmem:[#allocation5 + $0xd8] sm:$0xff] }
 0x5dc   : > { %v2469_v6 = vmul.f32 %v8963_v62, %v2277_v37  ;;  %v6448_v62 = vld [vmem:[#allocation2 + $0x88] sm:$0xff] }
 0x5dd   : > { %2240 = vst.msk [vmem:[#allocation4 + $0xb0] sm:$0xff] %vm2217_vm4, %v2207_v12 }
 0x5e1   : > { %v2671_v11 = vpop.f32.mrf.mxu2 }
 0x5e2   : > { %v2760_v57 = vpop.f32.mrf.mxu3  ;;  %v2166_v13 = vpop.xlane.xlu0 %2165 }
 0x5e3   : > { %v2761_v3 = vadd.f32 %v2760_v57, %v2671_v11  ;;  %v2210_v61 = vadd.f32 %v2166_v13, %v2082_v9  ;;  %v2049_v57 = vld [vmem:[#allocation4 + $0xc0] sm:$0xff] }
 0x5e4   : > { %v2081_v13 = vmul.f32 %v8776_v33, %v2049_v57  ;;  %v10431_v33 = vld [vmem:[#allocation13_spill] sm:$0xff] }
 0x5e5   : > { %v2804_v53 = vadd.f32 %v2761_v3, %v2466_v4  ;;  %2243 = vst.msk [vmem:[#allocation4 + $0xc8] sm:$0xff] %vm2217_vm4, %v2210_v61  ;;  %v2052_v3 = vld [vmem:[#allocation4 + $0xd8] sm:$0xff] }
 0x5e6   : > { %v1831_v17 = vpop.permute.xlu1 %1830 }
 0x5e7   : > { %2836 = vst.msk [vmem:[#allocation5 + $0xc0] sm:$0xff] %vm1142_vm3, %v2804_v53  ;;  %v1895_v22 = vsub.f32 %v10428_v25, %v1831_v17  ;;  %v1896_v42 = vsub.f32 %v10429_v10, %v1831_v17  ;;  %v2084_v53 = vmul.f32 %v8838_v58, %v2052_v3  ;;  %v2045_v58 = vld [vmem:[#allocation4 + $0xa0] sm:$0xff] }
 0x5e9   : > { %v2021_v21 = vmul.f32 1.442695, %v1895_v22  ;;  %v2023_v36 = vmul.f32 1.442695, %v1896_v42  ;;  %v2673_v18 = vpop.f32.mrf.mxu2  ;;  %v2042_v22 = vld [vmem:[#allocation4 + $0x88] sm:$0xff] }
 0x5ea   : > { %v2762_v14 = vpop.f32.mrf.mxu3  ;;  %v2074_v10 = vmul.f32 %v10431_v33, %v2042_v22 }
 0x5eb   : > { %6923 = vpow2.f32 %v2021_v21  ;;  %v2763_v24 = vadd.f32 %v2762_v14, %v2673_v18 }
 0x5ec   : > { %6925 = vpow2.f32 %v2023_v36  ;;  %v2085_v36 = vmul.f32 %v8790_v5, %v2053_v60 }
 0x5ed   : > { %v2805_v0 = vadd.f32 %v2763_v24, %v2467_v38  ;;  %v2077_v38 = vmul.f32 %v8691_v26, %v2045_v58  ;;  %v6449_v24 = vld [vmem:[#allocation2 + $0x90] sm:$0xff] }
 0x5ee   : > { %v9003_v61 = vpop.permute.xlu1 %2434  ;;  %v2051_v26 = vld [vmem:[#allocation4 + $0xd0] sm:$0xff] }
 0x5ef   : > { %2837 = vst.msk [vmem:[#allocation5 + $0xc8] sm:$0xff] %vm1142_vm3, %v2805_v0  ;;  %v2083_v50 = vmul.f32 %v8810_v63, %v2051_v26  ;;  %v2054_v63 = vld [vmem:[#allocation4 + $0xe8] sm:$0xff] }
 0x5f0   : > { %v2086_v37 = vmul.f32 %v8868_v20, %v2054_v63  ;;  %v2056_v20 = vld [vmem:[#allocation4 + $0xf8] sm:$0xff] }
 0x5f1   : > { %v6924_v16 = vpop.eup %6923 }
 0x5f2   : > { %v6926_v56 = vpop.eup %6925  ;;  %v2504_v43 = vpack.c.bf16 %v6924_v16, %v8957_v49 }
 0x5f3   : > { %v2136_v41 = vpop.xlane.xlu2 %2135  ;;  %v2505_v51 = vpack.c.bf16 %v6926_v56, %v8959_v45  ;;  %v2182_v2 = vadd.f32 %v6926_v56, %v6924_v16  ;;  %v2046_v45 = vld [vmem:[#allocation4 + $0xa8] sm:$0xff]  ;;  %v2048_v16 = vld [vmem:[#allocation4 + $0xb8] sm:$0xff] }
 0x5f4   : > { %v2200_v29 = vadd.f32 %v2136_v41, %v2072_v46  ;;  %2685 = vmatmul.bf16.gmra.mxu2 %v2504_v43  ;;  %v2078_v12 = vmul.f32 %v8709_v8, %v2046_v45  ;;  %v2080_v56 = vmul.f32 %v8739_v30, %v2048_v16  ;;  %v2278_v46 = vld [vmem:[#allocation5 + $0xe0] sm:$0xff] }
 0x5f5   : > { %2774 = vmatmul.bf16.gmra.mxu3 %v2505_v51  ;;  %2183 = vadd.xlane.f32.xlu0 %v2182_v2  ;;  %v2470_v51 = vmul.f32 %v8923_v19, %v2278_v46 }
 0x5f6   : > { %2233 = vst.msk [vmem:[#allocation4 + $0x78] sm:$0xff] %vm2217_vm4, %v2200_v29 }
 0x5fa   : > { %v2676_v1 = vpop.f32.mrf.mxu2 }
 0x5fb   : > { %v2765_v23 = vpop.f32.mrf.mxu3  ;;  %v2145_v27 = vpop.xlane.xlu2 %2144 }
 0x5fc   : > { %v2766_v49 = vadd.f32 %v2765_v23, %v2676_v1  ;;  %v2203_v55 = vadd.f32 %v2145_v27, %v2075_v52  ;;  %v6450_v1 = vld [vmem:[#allocation2 + $0x98] sm:$0xff]  ;;  %v2279_v23 = vld [vmem:[#allocation5 + $0xe8] sm:$0xff]  ;;  %v2087_v27 = vmul.f32 %v8910_v35, %v2055_v39 }
 0x5fe   : > { %v2806_v59 = vadd.f32 %v2766_v49, %v2468_v15  ;;  %2236 = vst.msk [vmem:[#allocation4 + $0x90] sm:$0xff] %vm2217_vm4, %v2203_v55 }
 0x600   : > { %2838 = vst.msk [vmem:[#allocation5 + $0xd0] sm:$0xff] %vm1142_vm3, %v2806_v59  ;;  %v2471_v59 = vmul.f32 %v8984_v7, %v2279_v23  ;;  %v6453_v7 = vld [vmem:[#allocation2 + $0xb0] sm:$0xff] }
 0x602   : > { %v2678_v47 = vpop.f32.mrf.mxu2 }
 0x603   : > { %v2767_v44 = vpop.f32.mrf.mxu3  ;;  %v2154_v32 = vpop.xlane.xlu2 %2153 }
 0x604   : > { %v2768_v11 = vadd.f32 %v2767_v44, %v2678_v47  ;;  %v2206_v9 = vadd.f32 %v2154_v32, %v2078_v12  ;;  %6296 = vmatmul.msk.bf16.vlgmr.msrb.gmra.mxu2 %vm1142_vm3, %v6447_v28  ;;  %v6451_v12 = vld [vmem:[#allocation2 + $0xa0] sm:$0xff]  ;;  %v6452_v44 = vld [vmem:[#allocation2 + $0xa8] sm:$0xff]  ;;  %v2088_v32 = vmul.f32 %v8843_v48, %v2056_v20 }
 0x605   : > { %6312 = vmatmul.msk.bf16.vlgmr.msrb.gmra.mxu3 %vm1142_vm3, %v6447_v28 }
 0x606   : > { %v2807_v31 = vadd.f32 %v2768_v11, %v2469_v6  ;;  %2239 = vst.msk [vmem:[#allocation4 + $0xa8] sm:$0xff] %vm2217_vm4, %v2206_v9  ;;  %v6454_v9 = vld [vmem:[#allocation2 + $0xb8] sm:$0xff] }
 0x608   : > { %2839 = vst.msk [vmem:[#allocation5 + $0xd8] sm:$0xff] %vm1142_vm3, %v2807_v31  ;;  %v2280_v31 = vld [vmem:[#allocation5 + $0xf0] sm:$0xff] }
 0x60b   : > { %v2163_v4 = vpop.xlane.xlu2 %2162 }
 0x60c   : > { %v2209_v8 = vadd.f32 %v2163_v4, %v2081_v13  ;;  %v2472_v4 = vmul.f32 %v9003_v61, %v2280_v31 }
 0x60e   : > { %2242 = vst.msk [vmem:[#allocation4 + $0xc0] sm:$0xff] %vm2217_vm4, %v2209_v8 }
 0x613   : > { %v2172_v17 = vpop.xlane.xlu2 %2171 }
 0x614   : > { %v2212_v25 = vadd.f32 %v2172_v17, %v2084_v53  ;;  %6297 = vmatmul.msk.bf16.gmra.mxu2 %vm1142_vm3, %v6448_v62  ;;  %v6455_v17 = vld [vmem:[#allocation2 + $0xc0] sm:$0xff] }
 0x615   : > { %6313 = vmatmul.msk.bf16.gmra.mxu3 %vm1142_vm3, %v6448_v62  ;;  %v2281_v62 = vld [vmem:[#allocation5 + $0xf8] sm:$0xff] }
 0x616   : > { %2245 = vst.msk [vmem:[#allocation4 + $0xd8] sm:$0xff] %vm2217_vm4, %v2212_v25  ;;  %v2473_v25 = vmul.f32 %v8969_v40, %v2281_v62 }
 0x619   : > { %v2142_v42 = vpop.xlane.xlu1 %2141 }
 0x61a   : > { %v2202_v21 = vadd.f32 %v2142_v42, %v2074_v10 }
 0x61c   : > { %2235 = vst.msk [vmem:[#allocation4 + $0x88] sm:$0xff] %vm2217_vm4, %v2202_v21 }
 0x61d   : > { %v2175_v18 = vpop.xlane.xlu0 %2174 }
 0x61e   : > { %v2213_v14 = vadd.f32 %v2175_v18, %v2085_v36 }
 0x620   : > { %2246 = vst.msk [vmem:[#allocation4 + $0xe0] sm:$0xff] %vm2217_vm4, %v2213_v14  ;;  %v6456_v14 = vld [vmem:[#allocation2 + $0xc8] sm:$0xff] }
 0x621   : > { %v2151_v0 = vpop.xlane.xlu1 %2150 }
 0x622   : > { %v2205_v54 = vadd.f32 %v2151_v0, %v2077_v38 }
 0x624   : > { %2238 = vst.msk [vmem:[#allocation4 + $0xa0] sm:$0xff] %vm2217_vm4, %v2205_v54  ;;  %6298 = vmatmul.msk.bf16.gmra.mxu2 %vm1142_vm3, %v6449_v24 }
 0x625   : > { %6314 = vmatmul.msk.bf16.gmra.mxu3 %vm1142_vm3, %v6449_v24 }
 0x629   : > { %v2160_v5 = vpop.xlane.xlu1 %2159 }
 0x62a   : > { %v2208_v34 = vadd.f32 %v2160_v5, %v2080_v56 }
 0x62c   : > { %2241 = vst.msk [vmem:[#allocation4 + $0xb8] sm:$0xff] %vm2217_vm4, %v2208_v34  ;;  %v2681_v43 = vpop.f32.mrf.mxu2 }
 0x62d   : > { %v2770_v41 = vpop.f32.mrf.mxu3 }
 0x62e   : > { %v2771_v2 = vadd.f32 %v2770_v41, %v2681_v43 }
 0x630   : > { %v2808_v29 = vadd.f32 %v2771_v2, %v2470_v51 }
 0x631   : > { %v2169_v52 = vpop.xlane.xlu1 %2168 }
 0x632   : > { %2840 = vst.msk [vmem:[#allocation5 + $0xe0] sm:$0xff] %vm1142_vm3, %v2808_v29  ;;  %v2211_v30 = vadd.f32 %v2169_v52, %v2083_v50 }
 0x634   : > { %2244 = vst.msk [vmem:[#allocation4 + $0xd0] sm:$0xff] %vm2217_vm4, %v2211_v30  ;;  %v2181_v15 = vpop.xlane.xlu2 %2180  ;;  %v2683_v49 = vpop.f32.mrf.mxu2  ;;  %6299 = vmatmul.msk.bf16.gmra.mxu2 %vm1142_vm3, %v6450_v1 }
 0x635   : > { %v2215_v19 = vadd.f32 %v2181_v15, %v2087_v27  ;;  %v2772_v55 = vpop.f32.mrf.mxu3  ;;  %6315 = vmatmul.msk.bf16.gmra.mxu3 %vm1142_vm3, %v6450_v1 }
 0x636   : > { %v2773_v45 = vadd.f32 %v2772_v55, %v2683_v49 }
 0x637   : > { %2248 = vst.msk [vmem:[#allocation4 + $0xf0] sm:$0xff] %vm2217_vm4, %v2215_v19  ;;  %v6457_v19 = vld [vmem:[#allocation2 + $0xd0] sm:$0xff] }
 0x638   : > { %v2809_v28 = vadd.f32 %v2773_v45, %v2471_v59 }
 0x639   : > { %v2178_v35 = vpop.xlane.xlu1 %2177 }
 0x63a   : > { %2841 = vst.msk [vmem:[#allocation5 + $0xe8] sm:$0xff] %vm1142_vm3, %v2809_v28  ;;  %v2214_v47 = vadd.f32 %v2178_v35, %v2086_v37 }
 0x63c   : > { %2247 = vst.msk [vmem:[#allocation4 + $0xe8] sm:$0xff] %vm2217_vm4, %v2214_v47 }
 0x644   : > { %6300 = vmatmul.msk.bf16.gmra.mxu2 %vm1142_vm3, %v6451_v12 }
 0x645   : > { %6316 = vmatmul.msk.bf16.gmra.mxu3 %vm1142_vm3, %v6451_v12 }
 0x654   : > { %6301 = vmatmul.msk.bf16.gmra.mxu2 %vm1142_vm3, %v6452_v44 }
 0x655   : > { %6317 = vmatmul.msk.bf16.gmra.mxu3 %vm1142_vm3, %v6452_v44  ;;  %v6458_v44 = vld [vmem:[#allocation2 + $0xd8] sm:$0xff] }
 0x664   : > { %6302 = vmatmul.msk.bf16.gmra.mxu2 %vm1142_vm3, %v6453_v7 }
 0x665   : > { %6318 = vmatmul.msk.bf16.gmra.mxu3 %vm1142_vm3, %v6453_v7 }
 0x668   : > { %v2184_v6 = vpop.xlane.xlu0 %2183 }
 0x669   : > { %v2216_v11 = vadd.f32 %v2184_v6, %v2088_v32  ;;  %v3410_v6 = vld [vmem:[#allocation3 + $0x100] sm:$0xff] }
 0x66b   : > { %2249 = vst.msk [vmem:[#allocation4 + $0xf8] sm:$0xff] %vm2217_vm4, %v2216_v11 }
 0x674   : > { %6303 = vmatmul.msk.bf16.gmra.mxu2 %vm1142_vm3, %v6454_v9 }
 0x675   : > { %6319 = vmatmul.msk.bf16.gmra.mxu3 %vm1142_vm3, %v6454_v9 }
 0x677   : > { %v2686_v57 = vpop.f32.mrf.mxu2 }
 0x678   : > { %v2775_v13 = vpop.f32.mrf.mxu3 }
 0x679   : > { %v2776_v8 = vadd.f32 %v2775_v13, %v2686_v57 }
 0x67b   : > { %v2810_v3 = vadd.f32 %v2776_v8, %v2472_v4  ;;  %v3411_v4 = vld [vmem:[#allocation3 + $0x108] sm:$0xff] }
 0x67d   : > { %2842 = vst.msk [vmem:[#allocation5 + $0xf0] sm:$0xff] %vm1142_vm3, %v2810_v3 }
 0x67f   : > { %v2688_v48 = vpop.f32.mrf.mxu2 }
 0x680   : > { %v2777_v53 = vpop.f32.mrf.mxu3 }
 0x681   : > { %v2778_v22 = vadd.f32 %v2777_v53, %v2688_v48 }
 0x683   : > { %v2811_v33 = vadd.f32 %v2778_v22, %v2473_v25 }
 0x684   : > { %6304 = vmatmul.msk.bf16.gmra.mxu2 %vm1142_vm3, %v6455_v17 }
 0x685   : > { %2843 = vst.msk [vmem:[#allocation5 + $0xf8] sm:$0xff] %vm1142_vm3, %v2811_v33  ;;  %6320 = vmatmul.msk.bf16.gmra.mxu3 %vm1142_vm3, %v6455_v17  ;;  %v3412_v17 = vld [vmem:[#allocation3 + $0x110] sm:$0xff] }
 0x687   : > { %v9047_v10 = vpop.f32.mrf.mxu2 }
 0x688   : > { %v9049_v61 = vpop.f32.mrf.mxu3 }
 0x689   : > { %v3442_v42 = vmax.f32 %v9047_v10, %v9049_v61 }
 0x68b   : > { %3443 = vmax.xlane.f32.xlu2 %v3442_v42  ;;  %v9158_v42 = vld [vmem:[#allocation3 + $0x118] sm:$0xff] }
 0x68f   : > { %v9053_v60 = vpop.f32.mrf.mxu2 }
 0x690   : > { %v9055_v21 = vpop.f32.mrf.mxu3 }
 0x691   : > { %v3445_v40 = vmax.f32 %v9053_v60, %v9055_v21 }
 0x693   : > { %3446 = vmax.xlane.f32.xlu1 %v3445_v40 }
 0x694   : > { %6305 = vmatmul.msk.bf16.gmra.mxu2 %vm1142_vm3, %v6456_v14 }
 0x695   : > { %6321 = vmatmul.msk.bf16.gmra.mxu3 %vm1142_vm3, %v6456_v14 }
 0x697   : > { %v9059_v36 = vpop.f32.mrf.mxu2 }
 0x698   : > { %v9061_v18 = vpop.f32.mrf.mxu3 }
 0x699   : > { %v3448_v58 = vmax.f32 %v9059_v36, %v9061_v18 }
 0x69b   : > { %3449 = vmax.xlane.f32.xlu0 %v3448_v58 }
 0x69f   : > { %v9067_v38 = vpop.f32.mrf.mxu2 }
 0x6a0   : > { %v9069_v24 = vpop.f32.mrf.mxu3 }
 0x6a1   : > { %v3451_v0 = vmax.f32 %v9067_v38, %v9069_v24 }
 0x6a3   : > { %3452 = vmax.xlane.f32.xlu2 %v3451_v0  ;;  %v9165_v0 = vld [vmem:[#allocation3 + $0x120] sm:$0xff] }
 0x6a4   : > { %6306 = vmatmul.msk.bf16.gmra.mxu2 %vm1142_vm3, %v6457_v19 }
 0x6a5   : > { %6322 = vmatmul.msk.bf16.gmra.mxu3 %vm1142_vm3, %v6457_v19 }
 0x6a7   : > { %v9073_v54 = vpop.f32.mrf.mxu2 }
 0x6a8   : > { %v9075_v16 = vpop.f32.mrf.mxu3 }
 0x6a9   : > { %v3454_v56 = vmax.f32 %v9073_v54, %v9075_v16 }
 0x6ab   : > { %3455 = vmax.xlane.f32.xlu1 %v3454_v56 }
 0x6af   : > { %v9079_v5 = vpop.f32.mrf.mxu2 }
 0x6b0   : > { %v9081_v34 = vpop.f32.mrf.mxu3 }
 0x6b1   : > { %v3457_v46 = vmax.f32 %v9079_v5, %v9081_v34 }
 0x6b3   : > { %3458 = vmax.xlane.f32.xlu0 %v3457_v46 }
 0x6b4   : > { %6307 = vmatmul.msk.bf16.gmra.mxu2 %vm1142_vm3, %v6458_v44 }
 0x6b5   : > { %6323 = vmatmul.msk.bf16.gmra.mxu3 %vm1142_vm3, %v6458_v44 }
 0x6b7   : > { %v9085_v43 = vpop.f32.mrf.mxu2 }
 0x6b8   : > { %v9087_v41 = vpop.f32.mrf.mxu3 }
 0x6b9   : > { %v3460_v26 = vmax.f32 %v9085_v43, %v9087_v41 }
 0x6bb   : > { %3461 = vmax.xlane.f32.xlu2 %v3460_v26 }
 0x6bf   : > { %v9091_v51 = vpop.f32.mrf.mxu2 }
 0x6c0   : > { %v9093_v2 = vpop.f32.mrf.mxu3 }
 0x6c1   : > { %v3463_v29 = vmax.f32 %v9091_v51, %v9093_v2 }
 0x6c3   : > { %3464 = vmax.xlane.f32.xlu1 %v3463_v29 }
 0x6c7   : > { %v9097_v50 = vpop.f32.mrf.mxu2 }
 0x6c8   : > { %v9099_v39 = vpop.f32.mrf.mxu3 }
 0x6c9   : > { %v3466_v1 = vmax.f32 %v9097_v50, %v9099_v39 }
 0x6cb   : > { %3467 = vmax.xlane.f32.xlu0 %v3466_v1 }
 0x6cf   : > { %v9103_v52 = vpop.f32.mrf.mxu2 }
 0x6d0   : > { %v9105_v30 = vpop.f32.mrf.mxu3 }
 0x6d1   : > { %v3469_v23 = vmax.f32 %v9103_v52, %v9105_v30 }
 0x6d3   : > { %3470 = vmax.xlane.f32.xlu2 %v3469_v23  ;;  %v9175_v23 = vld [vmem:[#allocation3 + $0x128] sm:$0xff] }
 0x6d7   : > { %v9109_v27 = vpop.f32.mrf.mxu2 }
 0x6d8   : > { %v9111_v15 = vpop.f32.mrf.mxu3 }
 0x6d9   : > { %v3472_v49 = vmax.f32 %v9109_v27, %v9111_v15 }
 0x6db   : > { %3473 = vmax.xlane.f32.xlu1 %v3472_v49 }
 0x6df   : > { %v9115_v55 = vpop.f32.mrf.mxu2 }
 0x6e0   : > { %v9117_v63 = vpop.f32.mrf.mxu3 }
 0x6e1   : > { %v3475_v59 = vmax.f32 %v9115_v55, %v9117_v63 }
 0x6e3   : > { %3476 = vmax.xlane.f32.xlu0 %v3475_v59 }
 0x6e7   : > { %v9123_v45 = vpop.f32.mrf.mxu2 }
 0x6e8   : > { %v9125_v28 = vpop.f32.mrf.mxu3 }
 0x6e9   : > { %v3478_v37 = vmax.f32 %v9123_v45, %v9125_v28 }
 0x6eb   : > { %3479 = vmax.xlane.f32.xlu2 %v3478_v37 }
 0x6ef   : > { %v9129_v35 = vpop.f32.mrf.mxu2 }
 0x6f0   : > { %v9131_v47 = vpop.f32.mrf.mxu3 }
 0x6f1   : > { %v3481_v12 = vmax.f32 %v9129_v35, %v9131_v47 }
 0x6f3   : > { %3482 = vmax.xlane.f32.xlu1 %v3481_v12  ;;  %v9187_v12 = vld [vmem:[#allocation3 + $0x130] sm:$0xff] }
 0x6f7   : > { %v9137_v7 = vpop.f32.mrf.mxu2 }
 0x6f8   : > { %v9139_v20 = vpop.f32.mrf.mxu3 }
 0x6f9   : > { %v3484_v32 = vmax.f32 %v9137_v7, %v9139_v20 }
 0x6fb   : > { %3485 = vmax.xlane.f32.xlu0 %v3484_v32 }
 0x6fe   : > { %v3444_v11 = vpop.xlane.xlu2 %3443 }
 0x6ff   : > { %v3538_v9 = vmax.f32 %v3410_v6, %v3444_v11  ;;  %v9143_v31 = vpop.f32.mrf.mxu2 }
 0x700   : > { %v9145_v57 = vpop.f32.mrf.mxu3 }
 0x701   : > { %4838 = vst.msk [vmem:[#allocation3 + $0x100] sm:$0xff] %vm2217_vm4, %v3538_v9  ;;  %v3487_v13 = vmax.f32 %v9143_v31, %v9145_v57  ;;  %v3570_v33 = vsub.f32 %v3410_v6, %v3538_v9  ;;  %v6459_v6 = vld [vmem:[#allocation2 + $0xe0] sm:$0xff] }
 0x702   : > { %6308 = vmatmul.msk.bf16.gmra.mxu2 %vm1142_vm3, %v6459_v6  ;;  %6324 = vmatmul.msk.bf16.gmra.mxu3 %vm1142_vm3, %v6459_v6 }
 0x703   : > { %3488 = vmax.xlane.f32.xlu2 %v3487_v13  ;;  %v3602_v14 = vmul.f32 1.442695, %v3570_v33 }
 0x705   : > { %6927 = vpow2.f32 %v3602_v14 }
 0x706   : > { %v3447_v8 = vpop.xlane.xlu1 %3446 }
 0x707   : > { %v3539_v3 = vmax.f32 %v3411_v4, %v3447_v8  ;;  %v9150_v62 = vpop.f32.mrf.mxu2  ;;  %v9202_v8 = vld [vmem:[#allocation3 + $0x138] sm:$0xff] }
 0x708   : > { %v9152_v48 = vpop.f32.mrf.mxu3 }
 0x709   : > { %10432 = vst [vmem:[#allocation14_spill] sm:$0xff] %v9152_v48  ;;  %v3490_v53 = vmax.f32 %v9150_v62, %v9152_v48  ;;  %v3571_v33 = vsub.f32 %v3411_v4, %v3539_v3 }
 0x70a   : > { %4839 = vst.msk [vmem:[#allocation3 + $0x108] sm:$0xff] %vm2217_vm4, %v3539_v3 }
 0x70b   : > { %3491 = vmax.xlane.f32.xlu1 %v3490_v53  ;;  %v9172_v1 = vpop.eup %6927 }
 0x70e   : > { %v3450_v25 = vpop.xlane.xlu0 %3449 }
 0x70f   : > { %v3540_v22 = vmax.f32 %v3412_v17, %v3450_v25  ;;  %3668 = vperm.xlu0 %6733, %v3538_v9   ;;  %v9198_v9 = vpop.f32.mrf.mxu2 }
 0x710   : > { %10434 = vst [vmem:[#allocation21_spill] sm:$0xff] %v9198_v9  ;;  %v9200_v13 = vpop.f32.mrf.mxu3 }
 0x711   : > { %4840 = vst.msk [vmem:[#allocation3 + $0x110] sm:$0xff] %vm2217_vm4, %v3540_v22  ;;  %v3572_v56 = vsub.f32 %v3412_v17, %v3540_v22  ;;  %v3493_v25 = vmax.f32 %v9198_v9, %v9200_v13 }
 0x712   : > { %10435 = vst [vmem:[#allocation22_spill] sm:$0xff] %v9200_v13 }
 0x713   : > { %v3606_v29 = vmul.f32 1.442695, %v3572_v56  ;;  %v3604_v56 = vmul.f32 1.442695, %v3571_v33 }
 0x715   : > { %6929 = vpow2.f32 %v3606_v29 }
 0x716   : > { %v3453_v40 = vpop.xlane.xlu2 %3452  ;;  %6931 = vpow2.f32 %v3604_v56  ;;  %v6486_v56 = vld [vmem:[%s7449_s28 + $0xb8] sm:$0xff] }
 0x717   : > { %v9161_v58 = vmax.f32 %v9158_v42, %v3453_v40  ;;  %4596 = vmatpush.bf16.msrb.mxu0 %v6486_v56  ;;  %6654 = vmatpush.bf16.msra.mxu2 %v6486_v56  ;;  %v6484_v56 = vld [vmem:[%s7449_s28 + $0xa8] sm:$0xff] }
 0x719   : > { %4841 = vst.msk [vmem:[#allocation3 + $0x118] sm:$0xff] %vm2217_vm4, %v9161_v58 }
 0x71b   : > { %3673 = vperm.xlu2 %6732, %v3539_v3   ;;  %v9184_v37 = vpop.eup %6929 }
 0x71c   : > { %10433 = vst [vmem:[#allocation20_spill] sm:$0xff] %v9184_v37  ;;  %v9231_v6 = vpop.eup %6931 }
 0x71d   : > { %10438 = vst [vmem:[#allocation18_spill] sm:$0xff] %v9231_v6 }
 0x71e   : > { %v3456_v46 = vpop.xlane.xlu1 %3455 }
 0x71f   : > { %v9168_v26 = vmax.f32 %v9165_v0, %v3456_v46  ;;  %v9218_v46 = vld [vmem:[#allocation3 + $0x148] sm:$0xff] }
 0x721   : > { %4842 = vst.msk [vmem:[#allocation3 + $0x120] sm:$0xff] %vm2217_vm4, %v9168_v26 }
 0x723   : > { %4278 = vperm.xlu2 %6732, %v9172_v1  }
 0x724   : > { %3678 = vperm.xlu1 %6734, %v3540_v22   ;;  %v9211_v22 = vld [vmem:[#allocation3 + $0x140] sm:$0xff] }
 0x726   : > { %v3459_v49 = vpop.xlane.xlu0 %3458 }
 0x727   : > { %v9178_v19 = vmax.f32 %v9175_v23, %v3459_v49  ;;  %v9220_v49 = vpop.f32.mrf.mxu2 }
 0x728   : > { %10436 = vst [vmem:[#allocation16_spill] sm:$0xff] %v9220_v49 }
 0x729   : > { %4843 = vst.msk [vmem:[#allocation3 + $0x128] sm:$0xff] %vm2217_vm4, %v9178_v19 }
 0x72c   : > { %4288 = vperm.xlu1 %6734, %v9184_v37   ;;  %v6493_v37 = vld [vmem:[%s7449_s28 + $0xf0] sm:$0xff] }
 0x72e   : > { %v3462_v44 = vpop.xlane.xlu2 %3461 }
 0x72f   : > { %v9190_v32 = vmax.f32 %v9187_v12, %v3462_v44  ;;  %v9222_v44 = vpop.f32.mrf.mxu3  ;;  %v9243_v11 = vpop.f32.mrf.mxu2 }
 0x730   : > { %10437 = vst [vmem:[#allocation17_spill] sm:$0xff] %v9222_v44  ;;  %v3496_v3 = vmax.f32 %v9220_v49, %v9222_v44 }
 0x731   : > { %4844 = vst.msk [vmem:[#allocation3 + $0x130] sm:$0xff] %vm2217_vm4, %v9190_v32 }
 0x732   : > { %10441 = vst [vmem:[#allocation24_spill] sm:$0xff] %v9243_v11 }
 0x736   : > { %v3465_v53 = vpop.xlane.xlu1 %3464 }
 0x737   : > { %v9205_v17 = vmax.f32 %v9202_v8, %v3465_v53  ;;  %v9233_v53 = vld [vmem:[#allocation3 + $0x150] sm:$0xff]  ;;  %v9245_v59 = vpop.f32.mrf.mxu3 }
 0x738   : > { %10439 = vst [vmem:[#allocation19_spill] sm:$0xff] %v9233_v53 }
 0x739   : > { %4845 = vst.msk [vmem:[#allocation3 + $0x138] sm:$0xff] %vm2217_vm4, %v9205_v17  ;;  %3494 = vmax.xlane.f32.xlu0 %v3493_v25  ;;  %v3573_v25 = vsub.f32 %v9158_v42, %v9161_v58  ;;  %v6485_v42 = vld [vmem:[%s7449_s28 + $0xb0] sm:$0xff] }
 0x73a   : > { %10442 = vst [vmem:[#allocation31_spill] sm:$0xff] %v9245_v59  ;;  %4597 = vmatpush.bf16.msrb.mxu0 %v6485_v42  ;;  %6655 = vmatpush.bf16.msra.mxu2 %v6485_v42 }
 0x73e   : > { %v3468_v40 = vpop.xlane.xlu0 %3467  ;;  %4598 = vmatpush.bf16.msrb.mxu0 %v6484_v56  ;;  %6656 = vmatpush.bf16.msra.mxu2 %v6484_v56  ;;  %v6490_v56 = vld [vmem:[%s7449_s28 + $0xd8] sm:$0xff] }
 0x73f   : > { %v9214_v14 = vmax.f32 %v9211_v22, %v3468_v40  ;;  %v9323_v49 = vpop.f32.mrf.mxu3 }
 0x740   : > { %10453 = vst [vmem:[#allocation36_spill] sm:$0xff] %v9323_v49 }
 0x741   : > { %4846 = vst.msk [vmem:[#allocation3 + $0x140] sm:$0xff] %vm2217_vm4, %v9214_v14 }
 0x746   : > { %v3471_v29 = vpop.xlane.xlu2 %3470 }
 0x747   : > { %v9225_v4 = vmax.f32 %v9218_v46, %v3471_v29  ;;  %v6494_v29 = vld [vmem:[%s7449_s28 + $0xf8] sm:$0xff] }
 0x748   : > { %4685 = vmatpush.bf16.msrb.mxu1 %v6494_v29  ;;  %6662 = vmatpush.bf16.msra.mxu3 %v6494_v29  ;;  %v6492_v29 = vld [vmem:[%s7449_s28 + $0xe8] sm:$0xff] }
 0x749   : > { %4847 = vst.msk [vmem:[#allocation3 + $0x148] sm:$0xff] %vm2217_vm4, %v9225_v4 }
 0x74c   : > { %3497 = vmax.xlane.f32.xlu2 %v3496_v3  ;;  %v3608_v3 = vmul.f32 1.442695, %v3573_v25  ;;  %4686 = vmatpush.bf16.msrb.mxu1 %v6493_v37 }
 0x74d   : > { %4283 = vperm.xlu0 %6733, %v9231_v6   ;;  %6663 = vmatpush.bf16.msra.mxu3 %v6493_v37  ;;  %v3574_v37 = vsub.f32 %v9165_v0, %v9168_v26  ;;  %v6481_v0 = vld [vmem:[%s7449_s28 + $0x90] sm:$0xff] }
 0x74e   : > { %v3474_v33 = vpop.xlane.xlu1 %3473  ;;  %6933 = vpow2.f32 %v3608_v3 }
 0x74f   : > { %v9239_v40 = vmax.f32 %v9233_v53, %v3474_v33  ;;  %v3499_v33 = vmax.f32 %v9243_v11, %v9245_v59  ;;  %v9253_v53 = vld [vmem:[#allocation3 + $0x158] sm:$0xff]  ;;  %v6491_v59 = vld [vmem:[%s7449_s28 + $0xe0] sm:$0xff]  ;;  %v6489_v11 = vld [vmem:[%s7449_s28 + $0xd0] sm:$0xff] }
 0x750   : > { %10443 = vst [vmem:[#allocation29_spill] sm:$0xff] %v9253_v53  ;;  %4687 = vmatpush.bf16.msrb.mxu1 %v6492_v29 }
 0x751   : > { %10440 = vst [vmem:[#allocation23_spill] sm:$0xff] %v9239_v40  ;;  %6664 = vmatpush.bf16.msra.mxu3 %v6492_v29  ;;  %v3610_v29 = vmul.f32 1.442695, %v3574_v37  ;;  %v6480_v37 = vld [vmem:[%s7449_s28 + $0x88] sm:$0xff] }
 0x752   : > { %4848 = vst.msk [vmem:[#allocation3 + $0x150] sm:$0xff] %vm2217_vm4, %v9239_v40 }
 0x753   : > { %6935 = vpow2.f32 %v3610_v29 }
 0x754   : > { %v9265_v3 = vpop.eup %6933  ;;  %4688 = vmatpush.bf16.msrb.mxu1 %v6491_v59 }
 0x755   : > { %3683 = vperm.xlu0 %6733, %v9161_v58   ;;  %v6483_v58 = vld [vmem:[%s7449_s28 + $0xa0] sm:$0xff]  ;;  %10444 = vst [vmem:[#allocation26_spill] sm:$0xff] %v9265_v3  ;;  %6665 = vmatpush.bf16.msra.mxu3 %v6491_v59 }
 0x756   : > { %3500 = vmax.xlane.f32.xlu1 %v3499_v33  ;;  %v3477_v44 = vpop.xlane.xlu0 %3476  ;;  %4599 = vmatpush.bf16.msrb.mxu0 %v6483_v58 }
 0x757   : > { %v9257_v25 = vmax.f32 %v9253_v53, %v3477_v44  ;;  %v9267_v44 = vld [vmem:[#allocation3 + $0x160] sm:$0xff]  ;;  %v6482_v53 = vld [vmem:[%s7449_s28 + $0x98] sm:$0xff]  ;;  %6657 = vmatpush.bf16.msra.mxu2 %v6483_v58 }
 0x758   : > { %10445 = vst [vmem:[#allocation25_spill] sm:$0xff] %v9267_v44  ;;  %4689 = vmatpush.bf16.msrb.mxu1 %v6490_v56 }
 0x759   : > { %4849 = vst.msk [vmem:[#allocation3 + $0x158] sm:$0xff] %vm2217_vm4, %v9257_v25  ;;  %6666 = vmatpush.bf16.msra.mxu3 %v6490_v56  ;;  %v6487_v56 = vld [vmem:[%s7449_s28 + $0xc0] sm:$0xff]  ;;  %v9295_v29 = vpop.eup %6935 }
 0x75a   : > { %4600 = vmatpush.bf16.msrb.mxu0 %v6482_v53  ;;  %10449 = vst [vmem:[#allocation32_spill] sm:$0xff] %v9295_v29 }
 0x75b   : > { %6658 = vmatpush.bf16.msra.mxu2 %v6482_v53  ;;  %v6460_v53 = vld [vmem:[#allocation2 + $0xe8] sm:$0xff] }
 0x75c   : > { %4690 = vmatpush.bf16.msrb.mxu1 %v6489_v11  ;;  %6309 = vmatmul.msk.bf16.gmra.mxu2 %vm1142_vm3, %v6460_v53 }
 0x75d   : > { %4293 = vperm.xlu0 %6733, %v9265_v3   ;;  %6667 = vmatpush.bf16.msra.mxu3 %v6489_v11  ;;  %v9321_v3 = vpop.f32.mrf.mxu2 }
 0x75e   : > { %v3480_v42 = vpop.xlane.xlu2 %3479  ;;  %4601 = vmatpush.bf16.msrb.mxu0 %v6481_v0  ;;  %6325 = vmatmul.msk.bf16.gmra.mxu3 %vm1142_vm3, %v6460_v53  ;;  %v9307_v53 = vld [vmem:[#allocation3 + $0x178] sm:$0xff] }
 0x75f   : > { %v9273_v33 = vmax.f32 %v9267_v44, %v3480_v42  ;;  %v9282_v42 = vld [vmem:[#allocation3 + $0x168] sm:$0xff]  ;;  %6659 = vmatpush.bf16.msra.mxu2 %v6481_v0  ;;  %10451 = vst [vmem:[#allocation58_spill] sm:$0xff] %v9307_v53 }
 0x760   : > { %10447 = vst [vmem:[#allocation27_spill] sm:$0xff] %v9282_v42  ;;  %v6488_v44 = vld [vmem:[%s7449_s28 + $0xc8] sm:$0xff] }
 0x761   : > { %10446 = vst [vmem:[#allocation30_spill] sm:$0xff] %v9273_v33  ;;  %4691 = vmatpush.bf16.msrb.mxu1 %v6488_v44  ;;  %6668 = vmatpush.bf16.msra.mxu3 %v6488_v44  ;;  %v9314_v44 = vld [vmem:[#allocation3 + $0x180] sm:$0xff] }
 0x762   : > { %4850 = vst.msk [vmem:[#allocation3 + $0x160] sm:$0xff] %vm2217_vm4, %v9273_v33  ;;  %4602 = vmatpush.bf16.msrb.mxu0 %v6480_v37 }
 0x763   : > { %6660 = vmatpush.bf16.msra.mxu2 %v6480_v37  ;;  %10452 = vst [vmem:[#allocation35_spill] sm:$0xff] %v9314_v44 }
 0x764   : > { %3688 = vperm.xlu2 %6732, %v9168_v26   ;;  %v6479_v26 = vld [vmem:[%s7449_s28 + $0x80] sm:$0xff]  ;;  %s7334_s28 = smov (!%p5879_p0), 64  }
 0x765   : > { %3693 = vperm.xlu0 %6733, %v9178_v19   ;;  %4692 = vmatpush.bf16.msrb.mxu1 %v6487_v56 }
 0x766   : > { %v3483_v59 = vpop.xlane.xlu1 %3482  ;;  %4603 = vmatpush.bf16.msrb.mxu0 %v6479_v26  ;;  %6669 = vmatpush.bf16.msra.mxu3 %v6487_v56 }
 0x767   : > { %v9286_v58 = vmax.f32 %v9282_v42, %v3483_v59  ;;  %v9299_v59 = vld [vmem:[#allocation3 + $0x170] sm:$0xff]  ;;  %6661 = vmatpush.bf16.msra.mxu2 %v6479_v26 }
 0x768   : > { %10450 = vst [vmem:[#allocation34_spill] sm:$0xff] %v9299_v59 }
 0x769   : > { %10448 = vst [vmem:[#allocation28_spill] sm:$0xff] %v9286_v58 }
 0x76a   : > { %4851 = vst.msk [vmem:[#allocation3 + $0x168] sm:$0xff] %vm2217_vm4, %v9286_v58 }
 0x76c   : > { %4298 = vperm.xlu2 %6732, %v9295_v29  }
 0x76e   : > { %v3486_v11 = vpop.xlane.xlu0 %3485 }
 0x76f   : > { %v9302_v0 = vmax.f32 %v9299_v59, %v3486_v11  ;;  %3698 = vperm.xlu1 %6734, %v9190_v32  }
 0x771   : > { %4852 = vst.msk [vmem:[#allocation3 + $0x170] sm:$0xff] %vm2217_vm4, %v9302_v0 }
 0x776   : > { %v3489_v37 = vpop.xlane.xlu2 %3488 }
 0x777   : > { %v9310_v42 = vmax.f32 %v9307_v53, %v3489_v37 }
 0x779   : > { %4853 = vst.msk [vmem:[#allocation3 + $0x178] sm:$0xff] %vm2217_vm4, %v9310_v42 }
 0x77e   : > { %v3674_v11 = vpop.permute.xlu2 %3673  ;;  %v3492_v59 = vpop.xlane.xlu1 %3491 }
 0x77f   : > { %v3828_v29 = vsub.f32 %v9053_v60, %v3674_v11  ;;  %v3829_v26 = vsub.f32 %v9055_v21, %v3674_v11  ;;  %v9319_v56 = vmax.f32 %v9314_v44, %v3492_v59  ;;  %v6461_v60 = vld [vmem:[#allocation2 + $0xf0] sm:$0xff]  ;;  %v9333_v44 = vpop.f32.mrf.mxu3 }
 0x780   : > { %6310 = vmatmul.msk.bf16.gmra.mxu2 %vm1142_vm3, %v6461_v60  ;;  %6326 = vmatmul.msk.bf16.gmra.mxu3 %vm1142_vm3, %v6461_v60  ;;  %10455 = vst [vmem:[#allocation40_spill] sm:$0xff] %v9333_v44 }
 0x781   : > { %v3894_v37 = vmul.f32 1.442695, %v3828_v29  ;;  %v3896_v53 = vmul.f32 1.442695, %v3829_v26  ;;  %v3669_v6 = vpop.permute.xlu0 %3668  ;;  %4854 = vst.msk [vmem:[#allocation3 + $0x180] sm:$0xff] %vm2217_vm4, %v9319_v56  ;;  %v9331_v26 = vpop.f32.mrf.mxu2 }
 0x782   : > { %v3826_v13 = vsub.f32 %v9047_v10, %v3669_v6  ;;  %v3827_v9 = vsub.f32 %v9049_v61, %v3669_v6  ;;  %10454 = vst [vmem:[#allocation39_spill] sm:$0xff] %v9331_v26 }
 0x783   : > { %6937 = vpow2.f32 %v3894_v37 }
 0x784   : > { %6939 = vpow2.f32 %v3896_v53  ;;  %v3890_v21 = vmul.f32 1.442695, %v3826_v13  ;;  %v3892_v59 = vmul.f32 1.442695, %v3827_v9  ;;  %v3502_v13 = vmax.f32 %v9321_v3, %v9323_v49 }
 0x786   : > { %6941 = vpow2.f32 %v3890_v21 }
 0x787   : > { %6943 = vpow2.f32 %v3892_v59  ;;  %v9343_v21 = vpop.f32.mrf.mxu3  ;;  %v3505_v59 = vmax.f32 %v9331_v26, %v9333_v44 }
 0x788   : > { %10457 = vst [vmem:[#allocation38_spill] sm:$0xff] %v9343_v21 }
 0x789   : > { %v6938_v29 = vpop.eup %6937  ;;  %v9341_v60 = vpop.f32.mrf.mxu2 }
 0x78a   : > { %v6940_v11 = vpop.eup %6939  ;;  %10456 = vst [vmem:[#allocation41_spill] sm:$0xff] %v9341_v60  ;;  %v3508_v48 = vmax.f32 %v9341_v60, %v9343_v21 }
 0x78b   : > { %v9335_v10 = vadd.f32 %v6940_v11, %v6938_v29 }
 0x78c   : > { %v6942_v61 = vpop.eup %6941 }
 0x78d   : > { %v6944_v6 = vpop.eup %6943  ;;  %v4468_v9 = vpack.c.bf16 %v6938_v29, %v6942_v61  ;;  %v10458_v29 = vsub.f32 %v9175_v23, %v9178_v19  ;;  %v3577_v23 = vsub.f32 %v9202_v8, %v9205_v17  ;;  %v6462_v8 = vld [vmem:[#allocation2 + $0xf8] sm:$0xff] }
 0x78e   : > { %v4469_v53 = vpack.c.bf16 %v6940_v11, %v6944_v6  ;;  %v9339_v37 = vadd.f32 %v6944_v6, %v6942_v61 }
 0x78f   : > { %4604 = vmatmul.bf16.vlgmr.msrb.gmra.mxu0 %v4468_v9  ;;  %3503 = vmax.xlane.f32.xlu0 %v3502_v13  ;;  %v3612_v11 = vmul.f32 1.442695, %v10458_v29  ;;  %v3616_v19 = vmul.f32 1.442695, %v3577_v23 }
 0x790   : > { %4693 = vmatmul.bf16.vlgmr.msrb.gmra.mxu1 %v4469_v53  ;;  %6311 = vmatmul.msk.bf16.gmra.mxu2 %vm1142_vm3, %v6462_v8 }
 0x791   : > { %6945 = vpow2.f32 %v3612_v11  ;;  %6327 = vmatmul.msk.bf16.gmra.mxu3 %vm1142_vm3, %v6462_v8  ;;  %v9406_v49 = vpop.f32.mrf.mxu2 }
 0x795   : > { %3506 = vmax.xlane.f32.xlu2 %v3505_v59 }
 0x796   : > { %v3679_v61 = vpop.permute.xlu1 %3678 }
 0x797   : > { %v3830_v6 = vsub.f32 %v9059_v36, %v3679_v61  ;;  %v3831_v13 = vsub.f32 %v9061_v18, %v3679_v61  ;;  %v9354_v44 = vpop.eup %6945  ;;  %v10460_v36 = vsub.f32 %v9187_v12, %v9190_v32  ;;  %v9381_v32 = vpop.permute.xlu2 %4278 }
 0x798   : > { %10459 = vst [vmem:[#allocation37_spill] sm:$0xff] %v9354_v44 }
 0x799   : > { %v3898_v9 = vmul.f32 1.442695, %v3830_v6  ;;  %v3900_v53 = vmul.f32 1.442695, %v3831_v13  ;;  %3509 = vmax.xlane.f32.xlu1 %v3508_v48  ;;  %v3614_v18 = vmul.f32 1.442695, %v10460_v36 }
 0x79a   : > { %v9364_v48 = vld [vmem:[#allocation3 + $0x188] sm:$0xff] }
 0x79b   : > { %6947 = vpow2.f32 %v3898_v9  ;;  %10461 = vst [vmem:[#allocation45_spill] sm:$0xff] %v9364_v48 }
 0x79c   : > { %6949 = vpow2.f32 %v3900_v53 }
 0x79d   : > { %6951 = vpow2.f32 %v3614_v18  ;;  %v9395_v18 = vld [vmem:[#allocation3 + $0x198] sm:$0xff] }
 0x79e   : > { %6953 = vpow2.f32 %v3616_v19  ;;  %v9391_v53 = vpop.permute.xlu1 %4288  ;;  %10465 = vst [vmem:[#allocation43_spill] sm:$0xff] %v9395_v18 }
 0x7a1   : > { %v6948_v59 = vpop.eup %6947 }
 0x7a2   : > { %v6950_v26 = vpop.eup %6949 }
 0x7a3   : > { %4303 = vperm.xlu0 %6733, %v9354_v44   ;;  %v9357_v21 = vadd.f32 %v6950_v26, %v6948_v59  ;;  %v9373_v61 = vpop.eup %6951 }
 0x7a4   : > { %10462 = vst [vmem:[#allocation42_spill] sm:$0xff] %v9373_v61  ;;  %v9378_v12 = vpop.eup %6953 }
 0x7a5   : > { %10463 = vst [vmem:[#allocation48_spill] sm:$0xff] %v9378_v12 }
 0x7ab   : > { %3708 = vperm.xlu0 %6733, %v9214_v14  }
 0x7ac   : > { %v3495_v29 = vpop.xlane.xlu0 %3494 }
 0x7ad   : > { %v9368_v11 = vmax.f32 %v9364_v48, %v3495_v29  ;;  %3703 = vperm.xlu2 %6732, %v9205_v17   ;;  %v9384_v17 = vld [vmem:[#allocation3 + $0x190] sm:$0xff] }
 0x7ae   : > { %10464 = vst [vmem:[#allocation44_spill] sm:$0xff] %v9384_v17 }
 0x7af   : > { %4855 = vst.msk [vmem:[#allocation3 + $0x188] sm:$0xff] %vm2217_vm4, %v9368_v11 }
 0x7b2   : > { %4308 = vperm.xlu1 %6734, %v9373_v61  }
 0x7b5   : > { %4313 = vperm.xlu2 %6732, %v9378_v12  }
 0x7ba   : > { %3713 = vperm.xlu1 %6734, %v9225_v4  }
 0x7bf   : > { %v3498_v6 = vpop.xlane.xlu2 %3497  ;;  %v9386_v13 = vpop.permute.xlu0 %4283 }
 0x7c0   : > { %v9389_v9 = vmax.f32 %v9384_v17, %v3498_v6 }
 0x7c2   : > { %4856 = vst.msk [vmem:[#allocation3 + $0x190] sm:$0xff] %vm2217_vm4, %v9389_v9 }
 0x7c7   : > { %v3684_v23 = vpop.permute.xlu0 %3683  ;;  %v3689_v36 = vpop.permute.xlu2 %3688 }
 0x7c8   : > { %v3832_v19 = vsub.f32 %v9067_v38, %v3684_v23  ;;  %v3833_v29 = vsub.f32 %v9069_v24, %v3684_v23  ;;  %v3834_v8 = vsub.f32 %v9073_v54, %v3689_v36  ;;  %v3835_v48 = vsub.f32 %v9075_v16, %v3689_v36  ;;  %v9408_v38 = vpop.f32.mrf.mxu3 }
 0x7c9   : > { %v3501_v12 = vpop.xlane.xlu1 %3500  ;;  %10466 = vst [vmem:[#allocation47_spill] sm:$0xff] %v9408_v38 }
 0x7ca   : > { %v3902_v6 = vmul.f32 1.442695, %v3832_v19  ;;  %v3904_v17 = vmul.f32 1.442695, %v3833_v29  ;;  %v3906_v60 = vmul.f32 1.442695, %v3834_v8  ;;  %v9402_v44 = vmax.f32 %v9395_v18, %v3501_v12  ;;  %v9416_v8 = vpop.f32.mrf.mxu2 }
 0x7cb   : > { %v3908_v61 = vmul.f32 1.442695, %v3835_v48  ;;  %v3511_v12 = vmax.f32 %v9406_v49, %v9408_v38  ;;  %10467 = vst [vmem:[#allocation46_spill] sm:$0xff] %v9416_v8 }
 0x7cc   : > { %6955 = vpow2.f32 %v3902_v6  ;;  %4857 = vst.msk [vmem:[#allocation3 + $0x198] sm:$0xff] %vm2217_vm4, %v9402_v44 }
 0x7cd   : > { %6957 = vpow2.f32 %v3904_v17 }
 0x7ce   : > { %6959 = vpow2.f32 %v3906_v60 }
 0x7cf   : > { %6961 = vpow2.f32 %v3908_v61  ;;  %v9410_v24 = vpop.permute.xlu0 %4293 }
 0x7d0   : > { %v9418_v6 = vpop.f32.mrf.mxu3 }
 0x7d1   : > { %10468 = vst [vmem:[#allocation54_spill] sm:$0xff] %v9418_v6 }
 0x7d2   : > { %v6956_v54 = vpop.eup %6955 }
 0x7d3   : > { %v6958_v16 = vpop.eup %6957  ;;  %v4470_v23 = vpack.c.bf16 %v6956_v54, %v6948_v59  ;;  %v3514_v59 = vmax.f32 %v9416_v8, %v9418_v6 }
 0x7d4   : > { %v6960_v48 = vpop.eup %6959  ;;  %v4471_v36 = vpack.c.bf16 %v6958_v16, %v6950_v26  ;;  %v9414_v19 = vadd.f32 %v6958_v16, %v6956_v54  ;;  %v3578_v26 = vsub.f32 %v9211_v22, %v9214_v14 }
 0x7d5   : > { %v6962_v29 = vpop.eup %6961  ;;  %3512 = vmax.xlane.f32.xlu0 %v3511_v12  ;;  %4609 = vmatmul.bf16.gmra.mxu0 %v4470_v23  ;;  %v9428_v23 = vpop.f32.mrf.mxu2 }
 0x7d6   : > { %4698 = vmatmul.bf16.gmra.mxu1 %v4471_v36  ;;  %v9420_v60 = vadd.f32 %v6962_v29, %v6960_v48  ;;  %v3618_v12 = vmul.f32 1.442695, %v3578_v26  ;;  %10469 = vst [vmem:[#allocation51_spill] sm:$0xff] %v9428_v23 }
 0x7d7   : > { %v3694_v61 = vpop.permute.xlu0 %3693 }
 0x7d8   : > { %v3836_v17 = vsub.f32 %v9079_v5, %v3694_v61  ;;  %v3837_v18 = vsub.f32 %v9081_v34, %v3694_v61  ;;  %v9430_v36 = vpop.f32.mrf.mxu3 }
 0x7d9   : > { %10470 = vst [vmem:[#allocation50_spill] sm:$0xff] %v9430_v36  ;;  %v3517_v34 = vmax.f32 %v9428_v23, %v9430_v36 }
 0x7da   : > { %v3910_v54 = vmul.f32 1.442695, %v3836_v17  ;;  %v3912_v16 = vmul.f32 1.442695, %v3837_v18 }
 0x7dc   : > { %6963 = vpow2.f32 %v3910_v54 }
 0x7dd   : > { %6965 = vpow2.f32 %v3912_v16 }
 0x7de   : > { %3515 = vmax.xlane.f32.xlu2 %v3514_v59  ;;  %6967 = vpow2.f32 %v3618_v12 }
 0x7df   : > { %v9473_v36 = vpop.f32.mrf.mxu2 }
 0x7e1   : > { %v3699_v38 = vpop.permute.xlu1 %3698 }
 0x7e2   : > { %v6964_v5 = vpop.eup %6963  ;;  %v3838_v22 = vsub.f32 %v9085_v43, %v3699_v38  ;;  %v3839_v14 = vsub.f32 %v9087_v41, %v3699_v38  ;;  %v3579_v41 = vsub.f32 %v9218_v46, %v9225_v4  ;;  %v9460_v46 = vld [vmem:[#allocation3 + $0x1a8] sm:$0xff] }
 0x7e3   : > { %v6966_v61 = vpop.eup %6965  ;;  %v4472_v18 = vpack.c.bf16 %v6964_v5, %v6960_v48  ;;  %10472 = vst [vmem:[#allocation53_spill] sm:$0xff] %v9460_v46 }
 0x7e4   : > { %v3914_v17 = vmul.f32 1.442695, %v3838_v22  ;;  %v3916_v54 = vmul.f32 1.442695, %v3839_v14  ;;  %3518 = vmax.xlane.f32.xlu1 %v3517_v34  ;;  %v4473_v26 = vpack.c.bf16 %v6966_v61, %v6962_v29  ;;  %v9436_v59 = vadd.f32 %v6966_v61, %v6964_v5  ;;  %v9438_v16 = vpop.eup %6967  ;;  %v9450_v5 = vpop.permute.xlu2 %4298  ;;  %v9452_v34 = vld [vmem:[#allocation3 + $0x1a0] sm:$0xff] }
 0x7e5   : > { %4614 = vmatmul.bf16.gmra.mxu0 %v4472_v18  ;;  %10471 = vst [vmem:[#allocation49_spill] sm:$0xff] %v9438_v16  ;;  %v3620_v48 = vmul.f32 1.442695, %v3579_v41  ;;  %v9465_v18 = vld [vmem:[#allocation3 + $0x1b0] sm:$0xff] }
 0x7e6   : > { %6969 = vpow2.f32 %v3914_v17  ;;  %4703 = vmatmul.bf16.gmra.mxu1 %v4473_v26  ;;  %10473 = vst [vmem:[#allocation52_spill] sm:$0xff] %v9465_v18  ;;  %v4244_v17 = vld [vmem:[#allocation5 + $0x100] sm:$0xff] }
 0x7e7   : > { %6971 = vpow2.f32 %v3916_v54 }
 0x7e8   : > { %6973 = vpow2.f32 %v3620_v48 }
 0x7e9   : > { %4318 = vperm.xlu0 %6733, %v9438_v16  }
 0x7ec   : > { %v6970_v12 = vpop.eup %6969 }
 0x7ed   : > { %v6972_v43 = vpop.eup %6971 }
 0x7ee   : > { %v9443_v38 = vadd.f32 %v6972_v43, %v6970_v12  ;;  %v9447_v29 = vpop.eup %6973 }
 0x7f1   : > { %3723 = vperm.xlu0 %6733, %v9257_v25  }
 0x7f6   : > { %3718 = vperm.xlu2 %6732, %v9239_v40  }
 0x7fd   : > { %4323 = vperm.xlu1 %6734, %v9447_v29  }
 0x802   : > { %v3504_v22 = vpop.xlane.xlu0 %3503 }
 0x803   : > { %v9455_v14 = vmax.f32 %v9452_v34, %v3504_v22  ;;  %v4436_v22 = vmul.f32 %v9381_v32, %v4244_v17 }
 0x805   : > { %4858 = vst.msk [vmem:[#allocation3 + $0x1a0] sm:$0xff] %vm2217_vm4, %v9455_v14  ;;  %3728 = vperm.xlu1 %6734, %v9273_v33  }
 0x808   : > { %v3507_v4 = vpop.xlane.xlu2 %3506 }
 0x809   : > { %v9463_v61 = vmax.f32 %v9460_v46, %v3507_v4  ;;  %v9477_v4 = vpop.f32.mrf.mxu3 }
 0x80a   : > { %10474 = vst [vmem:[#allocation57_spill] sm:$0xff] %v9477_v4 }
 0x80b   : > { %4859 = vst.msk [vmem:[#allocation3 + $0x1a8] sm:$0xff] %vm2217_vm4, %v9463_v61 }
 0x80c   : > { %v4605_v54 = vpop.f32.mrf.mxu0  ;;  %v3510_v26 = vpop.xlane.xlu1 %3509 }
 0x80d   : > { %v4694_v41 = vpop.f32.mrf.mxu1  ;;  %v9470_v48 = vmax.f32 %v9465_v18, %v3510_v26  ;;  %v4245_v26 = vld [vmem:[#allocation5 + $0x108] sm:$0xff] }
 0x80e   : > { %v4695_v40 = vadd.f32 %v4694_v41, %v4605_v54  ;;  %v4437_v41 = vmul.f32 %v9386_v13, %v4245_v26 }
 0x80f   : > { %4860 = vst.msk [vmem:[#allocation3 + $0x1b0] sm:$0xff] %vm2217_vm4, %v9470_v48 }
 0x810   : > { %v4774_v46 = vadd.f32 %v4695_v40, %v4436_v22  ;;  %v3704_v23 = vpop.permute.xlu2 %3703  ;;  %v9487_v22 = vpop.f32.mrf.mxu2 }
 0x811   : > { %v3840_v6 = vsub.f32 %v9091_v51, %v3704_v23  ;;  %v3841_v8 = vsub.f32 %v9093_v2, %v3704_v23  ;;  %v3520_v51 = vmax.f32 %v9473_v36, %v9477_v4  ;;  %10475 = vst [vmem:[#allocation60_spill] sm:$0xff] %v9487_v22  ;;  %v9489_v2 = vpop.f32.mrf.mxu3 }
 0x812   : > { %4806 = vst.msk [vmem:[#allocation5 + $0x100] sm:$0xff] %vm1142_vm3, %v4774_v46  ;;  %v3523_v46 = vmax.f32 %v9487_v22, %v9489_v2  ;;  %v4247_v22 = vld [vmem:[#allocation5 + $0x118] sm:$0xff] }
 0x813   : > { %v3918_v18 = vmul.f32 1.442695, %v3840_v6  ;;  %v3920_v33 = vmul.f32 1.442695, %v3841_v8  ;;  %10476 = vst [vmem:[#allocation59_spill] sm:$0xff] %v9489_v2 }
 0x814   : > { %v4607_v32 = vpop.f32.mrf.mxu0 }
 0x815   : > { %6975 = vpow2.f32 %v3918_v18  ;;  %v4696_v17 = vpop.f32.mrf.mxu1  ;;  %v9482_v54 = vpop.permute.xlu0 %4303 }
 0x816   : > { %6977 = vpow2.f32 %v3920_v33  ;;  %v4697_v16 = vadd.f32 %v4696_v17, %v4607_v32 }
 0x818   : > { %v4775_v40 = vadd.f32 %v4697_v16, %v4437_v41 }
 0x81a   : > { %4807 = vst.msk [vmem:[#allocation5 + $0x108] sm:$0xff] %vm1142_vm3, %v4775_v40  ;;  %v9500_v40 = vpop.f32.mrf.mxu2 }
 0x81b   : > { %v6976_v8 = vpop.eup %6975  ;;  %3521 = vmax.xlane.f32.xlu0 %v3520_v51  ;;  %10477 = vst [vmem:[#allocation56_spill] sm:$0xff] %v9500_v40  ;;  %v9502_v51 = vpop.f32.mrf.mxu3 }
 0x81c   : > { %v6978_v6 = vpop.eup %6977  ;;  %v4474_v23 = vpack.c.bf16 %v6976_v8, %v6970_v12  ;;  %10478 = vst [vmem:[#allocation55_spill] sm:$0xff] %v9502_v51 }
 0x81d   : > { %v3709_v13 = vpop.permute.xlu0 %3708  ;;  %v4475_v33 = vpack.c.bf16 %v6978_v6, %v6972_v43  ;;  %v9494_v18 = vadd.f32 %v6978_v6, %v6976_v8 }
 0x81e   : > { %v3842_v16 = vsub.f32 %v9097_v50, %v3709_v13  ;;  %v3843_v26 = vsub.f32 %v9099_v39, %v3709_v13  ;;  %4619 = vmatmul.bf16.gmra.mxu0 %v4474_v23  ;;  %v3526_v50 = vmax.f32 %v9500_v40, %v9502_v51 }
 0x81f   : > { %4708 = vmatmul.bf16.gmra.mxu1 %v4475_v33  ;;  %3524 = vmax.xlane.f32.xlu2 %v3523_v46 }
 0x820   : > { %v3922_v32 = vmul.f32 1.442695, %v3842_v16  ;;  %v3924_v17 = vmul.f32 1.442695, %v3843_v26 }
 0x822   : > { %6979 = vpow2.f32 %v3922_v32 }
 0x823   : > { %6981 = vpow2.f32 %v3924_v17 }
 0x824   : > { %v9498_v41 = vpop.permute.xlu1 %4308 }
 0x828   : > { %v6980_v12 = vpop.eup %6979 }
 0x829   : > { %v6982_v43 = vpop.eup %6981 }
 0x82a   : > { %v9504_v8 = vadd.f32 %v6982_v43, %v6980_v12 }
 0x82c   : > { %v3714_v39 = vpop.permute.xlu1 %3713 }
 0x82d   : > { %v3844_v6 = vsub.f32 %v9103_v52, %v3714_v39  ;;  %v3845_v23 = vsub.f32 %v9105_v30, %v3714_v39  ;;  %v9514_v52 = vld [vmem:[#allocation3 + $0x1b8] sm:$0xff] }
 0x82f   : > { %v3926_v46 = vmul.f32 1.442695, %v3844_v6  ;;  %v3928_v13 = vmul.f32 1.442695, %v3845_v23  ;;  %3527 = vmax.xlane.f32.xlu1 %v3526_v50  ;;  %3738 = vperm.xlu0 %6733, %v9302_v0   ;;  %v9517_v50 = vpop.permute.xlu2 %4313  ;;  %v9524_v6 = vld [vmem:[#allocation3 + $0x1c0] sm:$0xff] }
 0x830   : > { %10479 = vst [vmem:[#allocation63_spill] sm:$0xff] %v9524_v6 }
 0x831   : > { %6983 = vpow2.f32 %v3926_v46  ;;  %v9528_v46 = vpop.f32.mrf.mxu3 }
 0x832   : > { %6985 = vpow2.f32 %v3928_v13  ;;  %10481 = vst [vmem:[#allocation62_spill] sm:$0xff] %v9528_v46 }
 0x837   : > { %v6984_v33 = vpop.eup %6983  ;;  %3733 = vperm.xlu2 %6732, %v9286_v58  }
 0x838   : > { %v6986_v16 = vpop.eup %6985  ;;  %v4476_v26 = vpack.c.bf16 %v6984_v33, %v6980_v12  ;;  %v4246_v12 = vld [vmem:[#allocation5 + $0x110] sm:$0xff] }
 0x839   : > { %v4477_v32 = vpack.c.bf16 %v6986_v16, %v6982_v43  ;;  %v9512_v17 = vadd.f32 %v6986_v16, %v6984_v33  ;;  %v9526_v43 = vpop.f32.mrf.mxu2 }
 0x83a   : > { %4624 = vmatmul.bf16.gmra.mxu0 %v4476_v26  ;;  %10480 = vst [vmem:[#allocation61_spill] sm:$0xff] %v9526_v43  ;;  %v4438_v26 = vmul.f32 %v9391_v53, %v4246_v12  ;;  %v3529_v40 = vmax.f32 %v9526_v43, %v9528_v46  ;;  %v9546_v12 = vpop.f32.mrf.mxu3 }
 0x83b   : > { %4713 = vmatmul.bf16.gmra.mxu1 %v4477_v32  ;;  %10483 = vst [vmem:[#allocation33_spill] sm:$0xff] %v9546_v12 }
 0x841   : > { %v9544_v58 = vpop.f32.mrf.mxu2 }
 0x848   : > { %3743 = vperm.xlu1 %6734, %v9310_v42   ;;  %v3513_v30 = vpop.xlane.xlu0 %3512 }
 0x849   : > { %v9520_v39 = vmax.f32 %v9514_v52, %v3513_v30  ;;  %v9536_v30 = vld [vmem:[#allocation3 + $0x1c8] sm:$0xff] }
 0x84a   : > { %10482 = vst [vmem:[#allocation66_spill] sm:$0xff] %v9536_v30 }
 0x84b   : > { %4861 = vst.msk [vmem:[#allocation3 + $0x1b8] sm:$0xff] %vm2217_vm4, %v9520_v39 }
 0x851   : > { %v3516_v23 = vpop.xlane.xlu2 %3515 }
 0x852   : > { %v9531_v13 = vmax.f32 %v9524_v6, %v3516_v23  ;;  %v4610_v33 = vpop.f32.mrf.mxu0 }
 0x853   : > { %v4699_v16 = vpop.f32.mrf.mxu1 }
 0x854   : > { %4862 = vst.msk [vmem:[#allocation3 + $0x1c0] sm:$0xff] %vm2217_vm4, %v9531_v13  ;;  %v4700_v32 = vadd.f32 %v4699_v16, %v4610_v33 }
 0x856   : > { %v4776_v51 = vadd.f32 %v4700_v32, %v4438_v26  ;;  %v4439_v32 = vmul.f32 %v9410_v24, %v4247_v22 }
 0x857   : > { %v3519_v2 = vpop.xlane.xlu1 %3518 }
 0x858   : > { %4808 = vst.msk [vmem:[#allocation5 + $0x110] sm:$0xff] %vm1142_vm3, %v4776_v51  ;;  %v9542_v23 = vmax.f32 %v9536_v30, %v3519_v2  ;;  %v3532_v2 = vmax.f32 %v9544_v58, %v9546_v12 }
 0x859   : > { %3530 = vmax.xlane.f32.xlu0 %v3529_v40  ;;  %v3719_v53 = vpop.permute.xlu2 %3718 }
 0x85a   : > { %4863 = vst.msk [vmem:[#allocation3 + $0x1c8] sm:$0xff] %vm2217_vm4, %v9542_v23  ;;  %v3846_v33 = vsub.f32 %v9109_v27, %v3719_v53  ;;  %v3847_v16 = vsub.f32 %v9111_v15, %v3719_v53  ;;  %v4612_v26 = vpop.f32.mrf.mxu0  ;;  %v4248_v27 = vld [vmem:[#allocation5 + $0x120] sm:$0xff] }
 0x85b   : > { %v4701_v51 = vpop.f32.mrf.mxu1  ;;  %v9553_v46 = vpop.permute.xlu0 %4318  ;;  %v4440_v53 = vmul.f32 %v9450_v5, %v4248_v27 }
 0x85c   : > { %v3930_v40 = vmul.f32 1.442695, %v3846_v33  ;;  %v3932_v43 = vmul.f32 1.442695, %v3847_v16  ;;  %v4702_v30 = vadd.f32 %v4701_v51, %v4612_v26 }
 0x85e   : > { %v4777_v6 = vadd.f32 %v4702_v30, %v4439_v32  ;;  %6987 = vpow2.f32 %v3930_v40 }
 0x85f   : > { %6989 = vpow2.f32 %v3932_v43 }
 0x860   : > { %4809 = vst.msk [vmem:[#allocation5 + $0x118] sm:$0xff] %vm1142_vm3, %v4777_v6  ;;  %3533 = vmax.xlane.f32.xlu2 %v3532_v2 }
 0x861   : > { %4084 = vadd.xlane.f32.xlu0 %v9339_v37  ;;  %v4249_v37 = vld [vmem:[#allocation5 + $0x128] sm:$0xff] }
 0x862   : > { %v4615_v15 = vpop.f32.mrf.mxu0  ;;  %v4441_v5 = vmul.f32 %v9482_v54, %v4249_v37 }
 0x863   : > { %v4704_v24 = vpop.f32.mrf.mxu1  ;;  %v3724_v22 = vpop.permute.xlu0 %3723 }
 0x864   : > { %v4705_v4 = vadd.f32 %v4704_v24, %v4615_v15  ;;  %v3848_v12 = vsub.f32 %v9115_v55, %v3724_v22  ;;  %v3849_v33 = vsub.f32 %v9117_v63, %v3724_v22  ;;  %v6988_v16 = vpop.eup %6987  ;;  %v9566_v55 = vpop.f32.mrf.mxu2 }
 0x865   : > { %v6990_v30 = vpop.eup %6989  ;;  %v9568_v63 = vpop.f32.mrf.mxu3 }
 0x866   : > { %v4778_v26 = vadd.f32 %v4705_v4, %v4440_v53  ;;  %v3934_v43 = vmul.f32 1.442695, %v3848_v12  ;;  %v3936_v32 = vmul.f32 1.442695, %v3849_v33  ;;  %v9562_v6 = vadd.f32 %v6990_v30, %v6988_v16 }
 0x867   : > { %v3535_v22 = vmax.f32 %v9566_v55, %v9568_v63 }
 0x868   : > { %4810 = vst.msk [vmem:[#allocation5 + $0x120] sm:$0xff] %vm1142_vm3, %v4778_v26  ;;  %6991 = vpow2.f32 %v3934_v43 }
 0x869   : > { %6993 = vpow2.f32 %v3936_v32 }
 0x86a   : > { %v4617_v51 = vpop.f32.mrf.mxu0 }
 0x86b   : > { %v4706_v2 = vpop.f32.mrf.mxu1 }
 0x86c   : > { %v4707_v40 = vadd.f32 %v4706_v2, %v4617_v51  ;;  %v9584_v2 = vld [vmem:[#allocation3 + $0x1d0] sm:$0xff] }
 0x86e   : > { %v6992_v27 = vpop.eup %6991  ;;  %v4779_v4 = vadd.f32 %v4707_v40, %v4441_v5 }
 0x86f   : > { %v6994_v12 = vpop.eup %6993  ;;  %v9570_v15 = vpop.permute.xlu1 %4323  ;;  %v4478_v24 = vpack.c.bf16 %v6992_v27, %v6988_v16 }
 0x870   : > { %4811 = vst.msk [vmem:[#allocation5 + $0x128] sm:$0xff] %vm1142_vm3, %v4779_v4  ;;  %v4479_v53 = vpack.c.bf16 %v6994_v12, %v6990_v30  ;;  %v9575_v33 = vadd.f32 %v6994_v12, %v6992_v27  ;;  %v4250_v27 = vld [vmem:[#allocation5 + $0x130] sm:$0xff] }
 0x871   : > { %4629 = vmatmul.bf16.gmra.mxu0 %v4478_v24 }
 0x872   : > { %4718 = vmatmul.bf16.gmra.mxu1 %v4479_v53  ;;  %3536 = vmax.xlane.f32.xlu1 %v3535_v22 }
 0x875   : > { %3753 = vperm.xlu0 %6733, %v9368_v11  }
 0x877   : > { %v3729_v54 = vpop.permute.xlu1 %3728 }
 0x878   : > { %v3850_v26 = vsub.f32 %v9123_v45, %v3729_v54  ;;  %v3851_v43 = vsub.f32 %v9125_v28, %v3729_v54  ;;  %3748 = vperm.xlu2 %6732, %v9319_v56   ;;  %v9589_v45 = vld [vmem:[#allocation3 + $0x1d8] sm:$0xff]  ;;  %v4442_v54 = vmul.f32 %v9498_v41, %v4250_v27 }
 0x87a   : > { %v3938_v16 = vmul.f32 1.442695, %v3850_v26  ;;  %v3940_v32 = vmul.f32 1.442695, %v3851_v43  ;;  %4087 = vadd.xlane.f32.xlu1 %v9335_v10 }
 0x87c   : > { %6995 = vpow2.f32 %v3938_v16 }
 0x87d   : > { %6997 = vpow2.f32 %v3940_v32 }
 0x882   : > { %v6996_v30 = vpop.eup %6995 }
 0x883   : > { %v6998_v37 = vpop.eup %6997 }
 0x884   : > { %v9582_v51 = vadd.f32 %v6998_v37, %v6996_v30 }
 0x88e   : > { %v3522_v5 = vpop.xlane.xlu0 %3521 }
 0x88f   : > { %v9587_v40 = vmax.f32 %v9584_v2, %v3522_v5  ;;  %v9603_v5 = vld [vmem:[#allocation3 + $0x1e0] sm:$0xff] }
 0x891   : > { %4864 = vst.msk [vmem:[#allocation3 + $0x1d0] sm:$0xff] %vm2217_vm4, %v9587_v40 }
 0x892   : > { %v3525_v28 = vpop.xlane.xlu2 %3524 }
 0x893   : > { %v9594_v10 = vmax.f32 %v9589_v45, %v3525_v28  ;;  %3758 = vperm.xlu1 %6734, %v9389_v9  }
 0x895   : > { %4865 = vst.msk [vmem:[#allocation3 + $0x1d8] sm:$0xff] %vm2217_vm4, %v9594_v10 }
 0x89a   : > { %v3734_v4 = vpop.permute.xlu2 %3733 }
 0x89b   : > { %v3852_v12 = vsub.f32 %v9129_v35, %v3734_v4  ;;  %v3853_v24 = vsub.f32 %v9131_v47, %v3734_v4  ;;  %v4620_v22 = vpop.f32.mrf.mxu0  ;;  %v4251_v35 = vld [vmem:[#allocation5 + $0x138] sm:$0xff] }
 0x89c   : > { %v4709_v53 = vpop.f32.mrf.mxu1 }
 0x89d   : > { %v3942_v26 = vmul.f32 1.442695, %v3852_v12  ;;  %v3944_v43 = vmul.f32 1.442695, %v3853_v24  ;;  %v4710_v16 = vadd.f32 %v4709_v53, %v4620_v22 }
 0x89f   : > { %6999 = vpow2.f32 %v3942_v26  ;;  %v4780_v32 = vadd.f32 %v4710_v16, %v4442_v54  ;;  %4093 = vadd.xlane.f32.xlu0 %v9414_v19  ;;  %v4443_v54 = vmul.f32 %v9517_v50, %v4251_v35  ;;  %v4252_v50 = vld [vmem:[#allocation5 + $0x140] sm:$0xff] }
 0x8a0   : > { %7001 = vpow2.f32 %v3944_v43 }
 0x8a1   : > { %4812 = vst.msk [vmem:[#allocation5 + $0x130] sm:$0xff] %vm1142_vm3, %v4780_v32  ;;  %v3739_v28 = vpop.permute.xlu0 %3738  ;;  %4090 = vadd.xlane.f32.xlu2 %v9357_v21 }
 0x8a2   : > { %v3854_v47 = vsub.f32 %v9137_v7, %v3739_v28  ;;  %v3855_v41 = vsub.f32 %v9139_v20, %v3739_v28  ;;  %v3528_v27 = vpop.xlane.xlu1 %3527 }
 0x8a3   : > { %v4622_v4 = vpop.f32.mrf.mxu0  ;;  %v9610_v12 = vmax.f32 %v9603_v5, %v3528_v27 }
 0x8a4   : > { %v3946_v24 = vmul.f32 1.442695, %v3854_v47  ;;  %v3948_v19 = vmul.f32 1.442695, %v3855_v41  ;;  %v4711_v22 = vpop.f32.mrf.mxu1 }
 0x8a5   : > { %v7000_v53 = vpop.eup %6999  ;;  %v4712_v26 = vadd.f32 %v4711_v22, %v4622_v4  ;;  %4866 = vst.msk [vmem:[#allocation3 + $0x1e0] sm:$0xff] %vm2217_vm4, %v9610_v12 }
 0x8a6   : > { %v7002_v21 = vpop.eup %7001  ;;  %7003 = vpow2.f32 %v3946_v24  ;;  %v4480_v7 = vpack.c.bf16 %v7000_v53, %v6996_v30  ;;  %v4444_v30 = vmul.f32 %v9553_v46, %v4252_v50 }
 0x8a7   : > { %7005 = vpow2.f32 %v3948_v19  ;;  %v4781_v20 = vadd.f32 %v4712_v26, %v4443_v54  ;;  %v4481_v43 = vpack.c.bf16 %v7002_v21, %v6998_v37  ;;  %v9615_v16 = vadd.f32 %v7002_v21, %v7000_v53  ;;  %v4253_v54 = vld [vmem:[#allocation5 + $0x148] sm:$0xff] }
 0x8a8   : > { %4634 = vmatmul.bf16.gmra.mxu0 %v4480_v7  ;;  %v4445_v21 = vmul.f32 %v9570_v15, %v4253_v54  ;;  %v4019_v15 = vld [vmem:[#allocation4 + $0x100] sm:$0xff] }
 0x8a9   : > { %4813 = vst.msk [vmem:[#allocation5 + $0x138] sm:$0xff] %vm1142_vm3, %v4781_v20  ;;  %4723 = vmatmul.bf16.gmra.mxu1 %v4481_v43 }
 0x8ac   : > { %v7004_v32 = vpop.eup %7003 }
 0x8ad   : > { %v7006_v28 = vpop.eup %7005 }
 0x8ae   : > { %v9618_v47 = vadd.f32 %v7006_v28, %v7004_v32 }
 0x8b3   : > { %3768 = vperm.xlu0 %6733, %v9455_v14  }
 0x8b7   : > { %v4625_v35 = vpop.f32.mrf.mxu0 }
 0x8b8   : > { %v4714_v41 = vpop.f32.mrf.mxu1 }
 0x8b9   : > { %v4715_v27 = vadd.f32 %v4714_v41, %v4625_v35  ;;  %3763 = vperm.xlu2 %6732, %v9402_v44  }
 0x8ba   : > { %v3744_v37 = vpop.permute.xlu1 %3743 }
 0x8bb   : > { %v4782_v4 = vadd.f32 %v4715_v27, %v4444_v30  ;;  %v3856_v24 = vsub.f32 %v9143_v31, %v3744_v37  ;;  %v3857_v19 = vsub.f32 %v9145_v57, %v3744_v37  ;;  %v9638_v27 = vld [vmem:[#allocation3 + $0x1f0] sm:$0xff] }
 0x8bc   : > { %10484 = vst [vmem:[#allocation65_spill] sm:$0xff] %v9638_v27 }
 0x8bd   : > { %4814 = vst.msk [vmem:[#allocation5 + $0x140] sm:$0xff] %vm1142_vm3, %v4782_v4  ;;  %v3950_v22 = vmul.f32 1.442695, %v3856_v24  ;;  %v3952_v53 = vmul.f32 1.442695, %v3857_v19  ;;  %4096 = vadd.xlane.f32.xlu1 %v9420_v60  ;;  %v9631_v60 = vld [vmem:[#allocation3 + $0x1e8] sm:$0xff] }
 0x8bf   : > { %7007 = vpow2.f32 %v3950_v22  ;;  %v4627_v26 = vpop.f32.mrf.mxu0 }
 0x8c0   : > { %7009 = vpow2.f32 %v3952_v53  ;;  %v4716_v46 = vpop.f32.mrf.mxu1  ;;  %v10485_v53 = vld [vmem:[#allocation14_spill] sm:$0xff] }
 0x8c1   : > { %v4717_v7 = vadd.f32 %v4716_v46, %v4627_v26  ;;  %v9652_v46 = vld [vmem:[#allocation3 + $0x1f8] sm:$0xff] }
 0x8c2   : > { %10486 = vst [vmem:[#allocation64_spill] sm:$0xff] %v9652_v46 }
 0x8c3   : > { %v4783_v20 = vadd.f32 %v4717_v7, %v4445_v21 }
 0x8c5   : > { %v7008_v43 = vpop.eup %7007  ;;  %4815 = vst.msk [vmem:[#allocation5 + $0x148] sm:$0xff] %vm1142_vm3, %v4783_v20 }
 0x8c6   : > { %v7010_v31 = vpop.eup %7009  ;;  %v4482_v57 = vpack.c.bf16 %v7008_v43, %v7004_v32  ;;  %v4051_v32 = vmul.f32 %v9172_v1, %v4019_v15  ;;  %v4020_v15 = vld [vmem:[#allocation4 + $0x108] sm:$0xff] }
 0x8c7   : > { %v4483_v50 = vpack.c.bf16 %v7010_v31, %v7006_v28  ;;  %v9629_v35 = vadd.f32 %v7010_v31, %v7008_v43 }
 0x8c8   : > { %4639 = vmatmul.bf16.gmra.mxu0 %v4482_v57  ;;  %v10488_v57 = vld [vmem:[#allocation22_spill] sm:$0xff] }
 0x8c9   : > { %4728 = vmatmul.bf16.gmra.mxu1 %v4483_v50 }
 0x8cc   : > { %v3531_v41 = vpop.xlane.xlu0 %3530 }
 0x8cd   : > { %v9634_v30 = vmax.f32 %v9631_v60, %v3531_v41 }
 0x8cf   : > { %4867 = vst.msk [vmem:[#allocation3 + $0x1e8] sm:$0xff] %vm2217_vm4, %v9634_v30 }
 0x8d3   : > { %v3534_v37 = vpop.xlane.xlu2 %3533 }
 0x8d4   : > { %v9642_v28 = vmax.f32 %v9638_v27, %v3534_v37  ;;  %v4085_v4 = vpop.xlane.xlu0 %4084 }
 0x8d5   : > { %v4179_v24 = vadd.f32 %v4085_v4, %v4051_v32  ;;  %v10489_v32 = vld [vmem:[#allocation18_spill] sm:$0xff] }
 0x8d6   : > { %4868 = vst.msk [vmem:[#allocation3 + $0x1f0] sm:$0xff] %vm2217_vm4, %v9642_v28  ;;  %3773 = vperm.xlu1 %6734, %v9463_v61   ;;  %v4052_v4 = vmul.f32 %v10489_v32, %v4020_v15  ;;  %v10492_v32 = vld [vmem:[#allocation17_spill] sm:$0xff] }
 0x8d7   : > { %4211 = vst.msk [vmem:[#allocation4 + $0x100] sm:$0xff] %vm2217_vm4, %v4179_v24 }
 0x8db   : > { %v3749_v19 = vpop.permute.xlu2 %3748 }
 0x8dc   : > { %v3858_v22 = vsub.f32 %v9150_v62, %v3749_v19  ;;  %v3859_v54 = vsub.f32 %v10485_v53, %v3749_v19  ;;  %v10487_v62 = vld [vmem:[#allocation21_spill] sm:$0xff] }
 0x8dd   : > { %4102 = vadd.xlane.f32.xlu0 %v9443_v38 }
 0x8de   : > { %v3954_v1 = vmul.f32 1.442695, %v3858_v22  ;;  %v3956_v26 = vmul.f32 1.442695, %v3859_v54 }
 0x8e0   : > { %7011 = vpow2.f32 %v3954_v1 }
 0x8e1   : > { %7013 = vpow2.f32 %v3956_v26 }
 0x8e2   : > { %4099 = vadd.xlane.f32.xlu2 %v9436_v59 }
 0x8e5   : > { %v3537_v21 = vpop.xlane.xlu1 %3536 }
 0x8e6   : > { %v7012_v7 = vpop.eup %7011  ;;  %v9655_v20 = vmax.f32 %v9652_v46, %v3537_v21 }
 0x8e7   : > { %v7014_v43 = vpop.eup %7013  ;;  %v3754_v31 = vpop.permute.xlu0 %3753 }
 0x8e8   : > { %4869 = vst.msk [vmem:[#allocation3 + $0x1f8] sm:$0xff] %vm2217_vm4, %v9655_v20  ;;  %v3860_v38 = vsub.f32 %v10487_v62, %v3754_v31  ;;  %v3861_v50 = vsub.f32 %v10488_v57, %v3754_v31  ;;  %v9661_v41 = vadd.f32 %v7014_v43, %v7012_v7 }
 0x8ea   : > { %v3958_v59 = vmul.f32 1.442695, %v3860_v38  ;;  %v3960_v37 = vmul.f32 1.442695, %v3861_v50 }
 0x8ec   : > { %7015 = vpow2.f32 %v3958_v59  ;;  %v10491_v59 = vld [vmem:[#allocation16_spill] sm:$0xff] }
 0x8ed   : > { %v4088_v24 = vpop.xlane.xlu1 %4087  ;;  %7017 = vpow2.f32 %v3960_v37 }
 0x8ee   : > { %v4180_v19 = vadd.f32 %v4088_v24, %v4052_v4  ;;  %v4630_v22 = vpop.f32.mrf.mxu0 }
 0x8ef   : > { %v4719_v53 = vpop.f32.mrf.mxu1 }
 0x8f0   : > { %4212 = vst.msk [vmem:[#allocation4 + $0x108] sm:$0xff] %vm2217_vm4, %v4180_v19  ;;  %v9665_v54 = vadd.f32 %v4719_v53, %v4630_v22  ;;  %v4021_v22 = vld [vmem:[#allocation4 + $0x110] sm:$0xff] }
 0x8f1   : > { %3783 = vperm.xlu0 %6733, %v9520_v39  }
 0x8f2   : > { %10490 = vst [vmem:[#allocation15_spill] sm:$0xff] %v9665_v54  ;;  %v7016_v1 = vpop.eup %7015 }
 0x8f3   : > { %v7018_v26 = vpop.eup %7017  ;;  %v4484_v21 = vpack.c.bf16 %v7016_v1, %v7012_v7 }
 0x8f4   : > { %v4485_v31 = vpack.c.bf16 %v7018_v26, %v7014_v43  ;;  %v9668_v62 = vadd.f32 %v7018_v26, %v7016_v1  ;;  %v4022_v43 = vld [vmem:[#allocation4 + $0x118] sm:$0xff]  ;;  %v10493_v1 = vld [vmem:[#allocation26_spill] sm:$0xff] }
 0x8f5   : > { %4644 = vmatmul.bf16.gmra.mxu0 %v4484_v21  ;;  %v4054_v26 = vmul.f32 %v10493_v1, %v4022_v43 }
 0x8f6   : > { %v4632_v38 = vpop.f32.mrf.mxu0  ;;  %4733 = vmatmul.bf16.gmra.mxu1 %v4485_v31 }
 0x8f7   : > { %v4721_v57 = vpop.f32.mrf.mxu1 }
 0x8f8   : > { %v9670_v50 = vadd.f32 %v4721_v57, %v4632_v38 }
 0x8fa   : > { %3778 = vperm.xlu2 %6732, %v9470_v48  }
 0x900   : > { %4105 = vadd.xlane.f32.xlu1 %v9494_v18  ;;  %v10494_v18 = vld [vmem:[#allocation20_spill] sm:$0xff] }
 0x901   : > { %v4053_v57 = vmul.f32 %v10494_v18, %v4021_v22 }
 0x905   : > { %v3759_v15 = vpop.permute.xlu1 %3758 }
 0x906   : > { %v3862_v37 = vsub.f32 %v10491_v59, %v3759_v15  ;;  %v3863_v4 = vsub.f32 %v10492_v32, %v3759_v15 }
 0x908   : > { %v3962_v24 = vmul.f32 1.442695, %v3862_v37  ;;  %v3964_v7 = vmul.f32 1.442695, %v3863_v4  ;;  %v10495_v37 = vld [vmem:[#allocation24_spill] sm:$0xff]  ;;  %v10496_v4 = vld [vmem:[#allocation31_spill] sm:$0xff] }
 0x90a   : > { %7019 = vpow2.f32 %v3962_v24 }
 0x90b   : > { %7021 = vpow2.f32 %v3964_v7 }
 0x910   : > { %v7020_v19 = vpop.eup %7019 }
 0x911   : > { %v7022_v53 = vpop.eup %7021 }
 0x912   : > { %v4094_v21 = vpop.xlane.xlu0 %4093  ;;  %v9677_v31 = vadd.f32 %v7022_v53, %v7020_v19 }
 0x913   : > { %v4182_v38 = vadd.f32 %v4094_v21, %v4054_v26  ;;  %v10497_v26 = vld [vmem:[#allocation36_spill] sm:$0xff] }
 0x914   : > { %v4091_v46 = vpop.xlane.xlu2 %4090 }
 0x915   : > { %4214 = vst.msk [vmem:[#allocation4 + $0x118] sm:$0xff] %vm2217_vm4, %v4182_v38  ;;  %v4181_v15 = vadd.f32 %v4091_v46, %v4053_v57 }
 0x917   : > { %4213 = vst.msk [vmem:[#allocation4 + $0x110] sm:$0xff] %vm2217_vm4, %v4181_v15 }
 0x919   : > { %3788 = vperm.xlu1 %6734, %v9531_v13  }
 0x91b   : > { %4111 = vadd.xlane.f32.xlu0 %v9512_v17 }
 0x91c   : > { %v3764_v59 = vpop.permute.xlu2 %3763 }
 0x91d   : > { %v3864_v32 = vsub.f32 %v10495_v37, %v3764_v59  ;;  %v3865_v24 = vsub.f32 %v10496_v4, %v3764_v59 }
 0x91f   : > { %v3966_v7 = vmul.f32 1.442695, %v3864_v32  ;;  %v3968_v43 = vmul.f32 1.442695, %v3865_v24 }
 0x921   : > { %7023 = vpow2.f32 %v3966_v7 }
 0x922   : > { %7025 = vpow2.f32 %v3968_v43  ;;  %v10499_v43 = vld [vmem:[#allocation32_spill] sm:$0xff] }
 0x923   : > { %4108 = vadd.xlane.f32.xlu2 %v9504_v8  ;;  %v4023_v8 = vld [vmem:[#allocation4 + $0x120] sm:$0xff] }
 0x925   : > { %v3769_v22 = vpop.permute.xlu0 %3768  ;;  %v4635_v1 = vpop.f32.mrf.mxu0 }
 0x926   : > { %v3866_v46 = vsub.f32 %v9321_v3, %v3769_v22  ;;  %v3867_v21 = vsub.f32 %v10497_v26, %v3769_v22  ;;  %v4724_v38 = vpop.f32.mrf.mxu1  ;;  %v4055_v22 = vmul.f32 %v10499_v43, %v4023_v8 }
 0x927   : > { %v7024_v18 = vpop.eup %7023  ;;  %v9689_v17 = vadd.f32 %v4724_v38, %v4635_v1 }
 0x928   : > { %v7026_v57 = vpop.eup %7025  ;;  %v3970_v15 = vmul.f32 1.442695, %v3866_v46  ;;  %v3972_v37 = vmul.f32 1.442695, %v3867_v21  ;;  %v4486_v59 = vpack.c.bf16 %v7024_v18, %v7020_v19 }
 0x929   : > { %v4487_v32 = vpack.c.bf16 %v7026_v57, %v7022_v53  ;;  %v9691_v4 = vadd.f32 %v7026_v57, %v7024_v18  ;;  %v10501_v57 = vld [vmem:[#allocation39_spill] sm:$0xff] }
 0x92a   : > { %7027 = vpow2.f32 %v3970_v15  ;;  %4649 = vmatmul.bf16.gmra.mxu0 %v4486_v59 }
 0x92b   : > { %7029 = vpow2.f32 %v3972_v37  ;;  %4738 = vmatmul.bf16.gmra.mxu1 %v4487_v32  ;;  %v10502_v37 = vld [vmem:[#allocation40_spill] sm:$0xff] }
 0x92d   : > { %v4637_v24 = vpop.f32.mrf.mxu0 }
 0x92e   : > { %v4726_v3 = vpop.f32.mrf.mxu1 }
 0x92f   : > { %v9693_v7 = vadd.f32 %v4726_v3, %v4637_v24  ;;  %3798 = vperm.xlu0 %6733, %v9587_v40   ;;  %v4025_v24 = vld [vmem:[#allocation4 + $0x130] sm:$0xff] }
 0x930   : > { %v7028_v1 = vpop.eup %7027  ;;  %v4097_v46 = vpop.xlane.xlu1 %4096 }
 0x931   : > { %10498 = vst [vmem:[#allocation13_spill] sm:$0xff] %v9693_v7  ;;  %v7030_v26 = vpop.eup %7029  ;;  %v4183_v19 = vadd.f32 %v4097_v46, %v4055_v22  ;;  %v10503_v46 = vld [vmem:[#allocation42_spill] sm:$0xff] }
 0x932   : > { %v9697_v53 = vadd.f32 %v7030_v26, %v7028_v1  ;;  %v4024_v7 = vld [vmem:[#allocation4 + $0x128] sm:$0xff] }
 0x933   : > { %4215 = vst.msk [vmem:[#allocation4 + $0x120] sm:$0xff] %vm2217_vm4, %v4183_v19 }
 0x934   : > { %10500 = vst [vmem:[#allocation14_spill] sm:$0xff] %v9697_v53  ;;  %v10504_v53 = vld [vmem:[#allocation37_spill] sm:$0xff] }
 0x93b   : > { %3793 = vperm.xlu2 %6732, %v9542_v23  }
 0x943   : > { %4114 = vadd.xlane.f32.xlu1 %v9562_v6  ;;  %v4057_v6 = vmul.f32 %v10503_v46, %v4025_v24 }
 0x945   : > { %v9702_v21 = vpop.f32.mrf.mxu0 }
 0x946   : > { %v9704_v38 = vpop.f32.mrf.mxu1 }
 0x948   : > { %v3774_v18 = vpop.permute.xlu1 %3773 }
 0x949   : > { %v3868_v15 = vsub.f32 %v10501_v57, %v3774_v18  ;;  %v3869_v59 = vsub.f32 %v10502_v37, %v3774_v18  ;;  %v4056_v18 = vmul.f32 %v10504_v53, %v4024_v7  ;;  %v10507_v53 = vld [vmem:[#allocation47_spill] sm:$0xff] }
 0x94b   : > { %v3974_v32 = vmul.f32 1.442695, %v3868_v15  ;;  %v3976_v8 = vmul.f32 1.442695, %v3869_v59 }
 0x94d   : > { %7031 = vpow2.f32 %v3974_v32  ;;  %v4642_v3 = vpop.f32.mrf.mxu0 }
 0x94e   : > { %7033 = vpow2.f32 %v3976_v8  ;;  %v4731_v43 = vpop.f32.mrf.mxu1 }
 0x94f   : > { %v9708_v22 = vadd.f32 %v4731_v43, %v4642_v3  ;;  %v10505_v3 = vld [vmem:[#allocation41_spill] sm:$0xff]  ;;  %v10506_v43 = vld [vmem:[#allocation38_spill] sm:$0xff] }
 0x950   : > { %v4103_v19 = vpop.xlane.xlu0 %4102 }
 0x951   : > { %v4185_v27 = vadd.f32 %v4103_v19, %v4057_v6 }
 0x953   : > { %v7032_v54 = vpop.eup %7031  ;;  %4217 = vst.msk [vmem:[#allocation4 + $0x130] sm:$0xff] %vm2217_vm4, %v4185_v27 }
 0x954   : > { %v7034_v57 = vpop.eup %7033  ;;  %v4488_v15 = vpack.c.bf16 %v7032_v54, %v7028_v1 }
 0x955   : > { %v4100_v37 = vpop.xlane.xlu2 %4099  ;;  %v4489_v59 = vpack.c.bf16 %v7034_v57, %v7030_v26  ;;  %v9713_v32 = vadd.f32 %v7034_v57, %v7032_v54 }
 0x956   : > { %v4184_v8 = vadd.f32 %v4100_v37, %v4056_v18  ;;  %4654 = vmatmul.bf16.gmra.mxu0 %v4488_v15 }
 0x957   : > { %4743 = vmatmul.bf16.gmra.mxu1 %v4489_v59 }
 0x958   : > { %4216 = vst.msk [vmem:[#allocation4 + $0x128] sm:$0xff] %vm2217_vm4, %v4184_v8 }
 0x959   : > { %4120 = vadd.xlane.f32.xlu0 %v9582_v51  ;;  %v10508_v51 = vld [vmem:[#allocation29_spill] sm:$0xff] }
 0x95a   : > { %v3581_v19 = vsub.f32 %v10508_v51, %v9257_v25 }
 0x95c   : > { %3803 = vperm.xlu1 %6734, %v9594_v10   ;;  %v3624_v59 = vmul.f32 1.442695, %v3581_v19 }
 0x95d   : > { %v3779_v24 = vpop.permute.xlu2 %3778 }
 0x95e   : > { %v3870_v27 = vsub.f32 %v10505_v3, %v3779_v24  ;;  %v3871_v46 = vsub.f32 %v10506_v43, %v3779_v24  ;;  %v4026_v43 = vld [vmem:[#allocation4 + $0x138] sm:$0xff] }
 0x960   : > { %v3978_v7 = vmul.f32 1.442695, %v3870_v27  ;;  %v3980_v1 = vmul.f32 1.442695, %v3871_v46 }
 0x962   : > { %7035 = vpow2.f32 %v3978_v7 }
 0x963   : > { %7037 = vpow2.f32 %v3980_v1  ;;  %v3784_v54 = vpop.permute.xlu0 %3783  ;;  %v10510_v1 = vld [vmem:[#allocation48_spill] sm:$0xff] }
 0x964   : > { %v3872_v26 = vsub.f32 %v9406_v49, %v3784_v54  ;;  %v3873_v6 = vsub.f32 %v10507_v53, %v3784_v54  ;;  %4117 = vadd.xlane.f32.xlu2 %v9575_v33  ;;  %v10509_v49 = vld [vmem:[#allocation34_spill] sm:$0xff]  ;;  %v4058_v54 = vmul.f32 %v10510_v1, %v4026_v43 }
 0x965   : > { %v3584_v3 = vsub.f32 %v10509_v49, %v9302_v0  ;;  %v10511_v0 = vld [vmem:[#allocation45_spill] sm:$0xff] }
 0x966   : > { %v3982_v57 = vmul.f32 1.442695, %v3872_v26  ;;  %v3984_v18 = vmul.f32 1.442695, %v3873_v6 }
 0x967   : > { %v3630_v7 = vmul.f32 1.442695, %v3584_v3 }
 0x968   : > { %v7036_v15 = vpop.eup %7035  ;;  %7039 = vpow2.f32 %v3982_v57 }
 0x969   : > { %v7038_v37 = vpop.eup %7037  ;;  %7041 = vpow2.f32 %v3984_v18  ;;  %v3587_v18 = vsub.f32 %v10511_v0, %v9368_v11  ;;  %v3593_v11 = vsub.f32 %v9514_v52, %v9520_v39  ;;  %v4027_v52 = vld [vmem:[#allocation4 + $0x140] sm:$0xff]  ;;  %v10516_v0 = vld [vmem:[#allocation54_spill] sm:$0xff] }
 0x96a   : > { %v9725_v8 = vadd.f32 %v7038_v37, %v7036_v15  ;;  %7043 = vpow2.f32 %v3624_v59  ;;  %v3590_v59 = vsub.f32 %v9452_v34, %v9455_v14  ;;  %v3596_v34 = vsub.f32 %v9584_v2, %v9587_v40  ;;  %v10515_v2 = vld [vmem:[#allocation46_spill] sm:$0xff] }
 0x96b   : > { %7045 = vpow2.f32 %v3630_v7  ;;  %v3648_v3 = vmul.f32 1.442695, %v3593_v11 }
 0x96c   : > { %v3654_v7 = vmul.f32 1.442695, %v3596_v34 }
 0x96d   : > { %3813 = vperm.xlu0 %6733, %v9634_v30  }
 0x96e   : > { %v7040_v24 = vpop.eup %7039 }
 0x96f   : > { %v7042_v33 = vpop.eup %7041  ;;  %v4490_v27 = vpack.c.bf16 %v7040_v24, %v7036_v15  ;;  %v3636_v15 = vmul.f32 1.442695, %v3587_v18 }
 0x970   : > { %v4491_v25 = vpack.c.bf16 %v7042_v33, %v7038_v37  ;;  %v9730_v46 = vadd.f32 %v7042_v33, %v7040_v24  ;;  %v9733_v6 = vpop.eup %7043  ;;  %v3642_v24 = vmul.f32 1.442695, %v3590_v59  ;;  %v4028_v33 = vld [vmem:[#allocation4 + $0x148] sm:$0xff] }
 0x971   : > { %4659 = vmatmul.bf16.gmra.mxu0 %v4490_v27  ;;  %v9741_v37 = vpop.eup %7045  ;;  %7047 = vpow2.f32 %v3636_v15  ;;  %v4060_v43 = vmul.f32 %v9447_v29, %v4028_v33 }
 0x972   : > { %4748 = vmatmul.bf16.gmra.mxu1 %v4491_v25  ;;  %v4645_v26 = vpop.f32.mrf.mxu0  ;;  %7049 = vpow2.f32 %v3642_v24 }
 0x973   : > { %v4106_v53 = vpop.xlane.xlu1 %4105  ;;  %v4734_v51 = vpop.f32.mrf.mxu1  ;;  %7051 = vpow2.f32 %v3648_v3 }
 0x974   : > { %v4186_v19 = vadd.f32 %v4106_v53, %v4058_v54  ;;  %v9735_v57 = vadd.f32 %v4734_v51, %v4645_v26  ;;  %7053 = vpow2.f32 %v3654_v7  ;;  %v10513_v53 = vld [vmem:[#allocation30_spill] sm:$0xff]  ;;  %v10514_v51 = vld [vmem:[#allocation25_spill] sm:$0xff] }
 0x975   : > { %4333 = vperm.xlu0 %6733, %v9733_v6   ;;  %v10519_v7 = vld [vmem:[#allocation58_spill] sm:$0xff] }
 0x976   : > { %4218 = vst.msk [vmem:[#allocation4 + $0x138] sm:$0xff] %vm2217_vm4, %v4186_v19  ;;  %v3582_v19 = vsub.f32 %v10514_v51, %v10513_v53  ;;  %v10520_v53 = vld [vmem:[#allocation57_spill] sm:$0xff] }
 0x977   : > { %v9747_v49 = vpop.eup %7047 }
 0x978   : > { %v9753_v27 = vpop.eup %7049  ;;  %v3626_v59 = vmul.f32 1.442695, %v3582_v19  ;;  %v10521_v19 = vld [vmem:[#allocation23_spill] sm:$0xff] }
 0x979   : > { %v9760_v39 = vpop.eup %7051 }
 0x97a   : > { %v9769_v15 = vpop.eup %7053  ;;  %v9772_v33 = vpop.f32.mrf.mxu0  ;;  %7055 = vpow2.f32 %v3626_v59 }
 0x97c   : > { %3808 = vperm.xlu2 %6732, %v9610_v12  }
 0x97d   : > { %4348 = vperm.xlu0 %6733, %v9741_v37  }
 0x985   : > { %4363 = vperm.xlu0 %6733, %v9747_v49  }
 0x986   : > { %4123 = vadd.xlane.f32.xlu1 %v9615_v16  ;;  %v10512_v16 = vld [vmem:[#allocation49_spill] sm:$0xff] }
 0x987   : > { %v4059_v1 = vmul.f32 %v10512_v16, %v4027_v52  ;;  %v3585_v52 = vsub.f32 %v10519_v7, %v9310_v42  ;;  %v9779_v16 = vpop.f32.mrf.mxu1  ;;  %v7056_v42 = vpop.eup %7055 }
 0x98b   : > { %v3789_v54 = vpop.permute.xlu1 %3788 }
 0x98c   : > { %v3874_v40 = vsub.f32 %v10515_v2, %v3789_v54  ;;  %v3875_v18 = vsub.f32 %v10516_v0, %v3789_v54  ;;  %v10522_v2 = vld [vmem:[#allocation19_spill] sm:$0xff]  ;;  %v3632_v0 = vmul.f32 1.442695, %v3585_v52 }
 0x98d   : > { %4378 = vperm.xlu0 %6733, %v9753_v27  }
 0x98e   : > { %v4112_v14 = vpop.xlane.xlu0 %4111  ;;  %v3986_v24 = vmul.f32 1.442695, %v3874_v40  ;;  %v3988_v11 = vmul.f32 1.442695, %v3875_v18  ;;  %v3580_v40 = vsub.f32 %v10522_v2, %v10521_v19  ;;  %v10524_v2 = vld [vmem:[#allocation53_spill] sm:$0xff] }
 0x98f   : > { %v4188_v25 = vadd.f32 %v4112_v14, %v4060_v43  ;;  %v10517_v43 = vld [vmem:[#allocation51_spill] sm:$0xff]  ;;  %v10518_v14 = vld [vmem:[#allocation50_spill] sm:$0xff] }
 0x990   : > { %7057 = vpow2.f32 %v3986_v24 }
 0x991   : > { %4220 = vst.msk [vmem:[#allocation4 + $0x148] sm:$0xff] %vm2217_vm4, %v4188_v25  ;;  %7059 = vpow2.f32 %v3988_v11 }
 0x995   : > { %4393 = vperm.xlu0 %6733, %v9760_v39  }
 0x996   : > { %v4109_v26 = vpop.xlane.xlu2 %4108  ;;  %v9786_v24 = vpop.eup %7057 }
 0x997   : > { %v4187_v29 = vadd.f32 %v4109_v26, %v4059_v1 }
 0x999   : > { %4219 = vst.msk [vmem:[#allocation4 + $0x140] sm:$0xff] %vm2217_vm4, %v4187_v29 }
 0x99d   : > { %4408 = vperm.xlu0 %6733, %v9769_v15  }
 0x99e   : > { %v3794_v3 = vpop.permute.xlu2 %3793 }
 0x99f   : > { %v3876_v34 = vsub.f32 %v10517_v43, %v3794_v3  ;;  %v3877_v25 = vsub.f32 %v10518_v14, %v3794_v3  ;;  %3818 = vperm.xlu1 %6734, %v9642_v28   ;;  %v3622_v3 = vmul.f32 1.442695, %v3580_v40  ;;  %v10523_v43 = vld [vmem:[#allocation44_spill] sm:$0xff]  ;;  %v3591_v40 = vsub.f32 %v10524_v2, %v9463_v61 }
 0x9a1   : > { %v3990_v1 = vmul.f32 1.442695, %v3876_v34  ;;  %v3992_v54 = vmul.f32 1.442695, %v3877_v25  ;;  %v3799_v26 = vpop.permute.xlu0 %3798  ;;  %v3588_v34 = vsub.f32 %v10523_v43, %v9389_v9 }
 0x9a2   : > { %v3878_v29 = vsub.f32 %v9473_v36, %v3799_v26  ;;  %v3879_v51 = vsub.f32 %v10520_v53, %v3799_v26  ;;  %v9788_v36 = vpop.eup %7059 }
 0x9a3   : > { %7061 = vpow2.f32 %v3990_v1 }
 0x9a4   : > { %7063 = vpow2.f32 %v3992_v54  ;;  %v3994_v18 = vmul.f32 1.442695, %v3878_v29  ;;  %v3996_v59 = vmul.f32 1.442695, %v3879_v51  ;;  %v3638_v29 = vmul.f32 1.442695, %v3588_v34 }
 0x9a5   : > { %4126 = vadd.xlane.f32.xlu2 %v9618_v47 }
 0x9a6   : > { %7065 = vpow2.f32 %v3994_v18 }
 0x9a7   : > { %7067 = vpow2.f32 %v3996_v59  ;;  %4338 = vperm.xlu1 %6734, %v7056_v42   ;;  %v4650_v11 = vpop.f32.mrf.mxu0 }
 0x9a8   : > { %7069 = vpow2.f32 %v3632_v0  ;;  %v4739_v14 = vpop.f32.mrf.mxu1 }
 0x9a9   : > { %v7062_v25 = vpop.eup %7061  ;;  %v9792_v7 = vadd.f32 %v4739_v14, %v4650_v11  ;;  %7071 = vpow2.f32 %v3622_v3  ;;  %v4029_v11 = vld [vmem:[#allocation4 + $0x150] sm:$0xff]  ;;  %v3644_v3 = vmul.f32 1.442695, %v3591_v40  ;;  %v3597_v40 = vsub.f32 %v9589_v45, %v9594_v10 }
 0x9aa   : > { %v7064_v52 = vpop.eup %7063  ;;  %v4492_v47 = vpack.c.bf16 %v7062_v25, %v9786_v24  ;;  %7073 = vpow2.f32 %v3638_v29  ;;  %v10526_v29 = vld [vmem:[#allocation28_spill] sm:$0xff] }
 0x9ab   : > { %v4493_v1 = vpack.c.bf16 %v7064_v52, %v9788_v36  ;;  %v9796_v54 = vadd.f32 %v7064_v52, %v7062_v25  ;;  %7075 = vpow2.f32 %v3644_v3  ;;  %v10525_v52 = vld [vmem:[#allocation63_spill] sm:$0xff] }
 0x9ac   : > { %v9798_v26 = vpop.eup %7065  ;;  %4664 = vmatmul.bf16.gmra.mxu0 %v4492_v47  ;;  %v3594_v47 = vsub.f32 %v10525_v52, %v9531_v13  ;;  %v10528_v3 = vld [vmem:[#allocation35_spill] sm:$0xff] }
 0x9ad   : > { %v9800_v53 = vpop.eup %7067  ;;  %4753 = vmatmul.bf16.gmra.mxu1 %v4493_v1 }
 0x9ae   : > { %v9802_v9 = vpop.eup %7069  ;;  %v9806_v51 = vadd.f32 %v9800_v53, %v9798_v26  ;;  %v3650_v61 = vmul.f32 1.442695, %v3594_v47 }
 0x9af   : > { %4353 = vperm.xlu1 %6734, %v9802_v9   ;;  %v4652_v19 = vpop.f32.mrf.mxu0  ;;  %v7072_v59 = vpop.eup %7071 }
 0x9b0   : > { %v4741_v0 = vpop.f32.mrf.mxu1  ;;  %v4061_v43 = vmul.f32 %v7072_v59, %v4029_v11  ;;  %v9813_v34 = vpop.eup %7073  ;;  %7077 = vpow2.f32 %v3650_v61  ;;  %v3656_v11 = vmul.f32 1.442695, %v3597_v40  ;;  %v10529_v61 = vld [vmem:[#allocation43_spill] sm:$0xff] }
 0x9b1   : > { %v9811_v18 = vadd.f32 %v4741_v0, %v4652_v19  ;;  %v9820_v1 = vpop.eup %7075  ;;  %v10527_v19 = vld [vmem:[#allocation27_spill] sm:$0xff] }
 0x9b2   : > { %v3583_v2 = vsub.f32 %v10527_v19, %v10526_v29 }
 0x9b4   : > { %v3628_v0 = vmul.f32 1.442695, %v3583_v2  ;;  %v10531_v2 = vld [vmem:[#allocation59_spill] sm:$0xff] }
 0x9b6   : > { %v4115_v14 = vpop.xlane.xlu1 %4114  ;;  %v9827_v13 = vpop.eup %7077  ;;  %7079 = vpow2.f32 %v3628_v0 }
 0x9b7   : > { %v4189_v25 = vadd.f32 %v4115_v14, %v4061_v43  ;;  %4368 = vperm.xlu1 %6734, %v9813_v34   ;;  %v3586_v43 = vsub.f32 %v10528_v3, %v9319_v56  ;;  %7081 = vpow2.f32 %v3656_v11  ;;  %v4031_v14 = vld [vmem:[#allocation4 + $0x160] sm:$0xff]  ;;  %v3589_v56 = vsub.f32 %v10529_v61, %v9402_v44  ;;  %v4030_v3 = vld [vmem:[#allocation4 + $0x158] sm:$0xff] }
 0x9b8   : > { %v4063_v52 = vmul.f32 %v7056_v42, %v4031_v14  ;;  %v10532_v44 = vld [vmem:[#allocation52_spill] sm:$0xff] }
 0x9b9   : > { %4221 = vst.msk [vmem:[#allocation4 + $0x150] sm:$0xff] %vm2217_vm4, %v4189_v25  ;;  %v3634_v25 = vmul.f32 1.442695, %v3586_v43  ;;  %v3640_v11 = vmul.f32 1.442695, %v3589_v56  ;;  %v3592_v14 = vsub.f32 %v10532_v44, %v9470_v48 }
 0x9bb   : > { %7083 = vpow2.f32 %v3634_v25  ;;  %v4062_v25 = vmul.f32 %v9733_v6, %v4030_v3  ;;  %v3646_v61 = vmul.f32 1.442695, %v3592_v14  ;;  %v10536_v3 = vld [vmem:[#allocation56_spill] sm:$0xff]  ;;  %v10537_v14 = vld [vmem:[#allocation55_spill] sm:$0xff] }
 0x9bc   : > { %v9833_v47 = vpop.eup %7079 }
 0x9bd   : > { %3823 = vperm.xlu2 %6732, %v9655_v20  }
 0x9bf   : > { %4383 = vperm.xlu1 %6734, %v9820_v1  }
 0x9c5   : > { %4328 = vperm.xlu2 %6732, %v7072_v59   ;;  %v9836_v59 = vpop.eup %7081 }
 0x9c6   : > { %v9845_v43 = vpop.eup %7083 }
 0x9c7   : > { %4398 = vperm.xlu1 %6734, %v9827_v13   ;;  %4129 = vadd.xlane.f32.xlu0 %v9629_v35  ;;  %v10530_v35 = vld [vmem:[#allocation60_spill] sm:$0xff] }
 0x9cc   : > { %v4121_v45 = vpop.xlane.xlu0 %4120 }
 0x9cd   : > { %v4191_v10 = vadd.f32 %v4121_v45, %v4063_v52  ;;  %4343 = vperm.xlu2 %6732, %v9833_v47  }
 0x9ce   : > { %v3804_v29 = vpop.permute.xlu1 %3803 }
 0x9cf   : > { %4223 = vst.msk [vmem:[#allocation4 + $0x160] sm:$0xff] %vm2217_vm4, %v4191_v10  ;;  %v3880_v19 = vsub.f32 %v10530_v35, %v3804_v29  ;;  %v3881_v40 = vsub.f32 %v10531_v2, %v3804_v29  ;;  %4413 = vperm.xlu1 %6734, %v9836_v59   ;;  %4138 = vadd.xlane.f32.xlu0 %v9677_v31  ;;  %v10533_v29 = vld [vmem:[#allocation66_spill] sm:$0xff] }
 0x9d0   : > { %v3595_v35 = vsub.f32 %v10533_v29, %v9542_v23  ;;  %v10534_v23 = vld [vmem:[#allocation61_spill] sm:$0xff] }
 0x9d1   : > { %v3998_v42 = vmul.f32 1.442695, %v3880_v19  ;;  %v4000_v0 = vmul.f32 1.442695, %v3881_v40 }
 0x9d3   : > { %7085 = vpow2.f32 %v3998_v42  ;;  %v9859_v48 = vpop.f32.mrf.mxu0 }
 0x9d4   : > { %7087 = vpow2.f32 %v4000_v0  ;;  %v9861_v6 = vpop.f32.mrf.mxu1  ;;  %v10535_v0 = vld [vmem:[#allocation62_spill] sm:$0xff] }
 0x9d5   : > { %4358 = vperm.xlu2 %6732, %v9845_v43   ;;  %7089 = vpow2.f32 %v3640_v11 }
 0x9d6   : > { %7091 = vpow2.f32 %v3646_v61  ;;  %v3598_v61 = vsub.f32 %v9603_v5, %v9610_v12 }
 0x9d7   : > { %v4118_v52 = vpop.xlane.xlu2 %4117  ;;  %4147 = vadd.xlane.f32.xlu0 %v9713_v32  ;;  %v4155_v32 = vadd.f32 %v9788_v36, %v9786_v24  ;;  %v4255_v24 = vld [vmem:[#allocation5 + $0x158] sm:$0xff] }
 0x9d8   : > { %v4190_v31 = vadd.f32 %v4118_v52, %v4062_v25 }
 0x9d9   : > { %v7086_v45 = vpop.eup %7085 }
 0x9da   : > { %v7088_v10 = vpop.eup %7087  ;;  %4222 = vst.msk [vmem:[#allocation4 + $0x158] sm:$0xff] %vm2217_vm4, %v4190_v31  ;;  %v4494_v56 = vpack.c.bf16 %v7086_v45, %v9798_v26  ;;  %v3652_v26 = vmul.f32 1.442695, %v3595_v35 }
 0x9db   : > { %v4495_v19 = vpack.c.bf16 %v7088_v10, %v9800_v53  ;;  %v9857_v2 = vpop.eup %7089  ;;  %v4164_v36 = vadd.f32 %v7088_v10, %v7086_v45  ;;  %v9875_v35 = vpop.f32.mrf.mxu0 }
 0x9dc   : > { %4669 = vmatmul.bf16.gmra.mxu0 %v4494_v56  ;;  %7093 = vpow2.f32 %v3652_v26 }
 0x9dd   : > { %4758 = vmatmul.bf16.gmra.mxu1 %v4495_v19  ;;  %4373 = vperm.xlu2 %6732, %v9857_v2   ;;  %v9870_v19 = vpop.eup %7091 }
 0x9df   : > { %v3814_v40 = vpop.permute.xlu0 %3813  ;;  %v3809_v42 = vpop.permute.xlu2 %3808  ;;  %4156 = vadd.xlane.f32.xlu0 %v4155_v32 }
 0x9e0   : > { %v3884_v53 = vsub.f32 %v10534_v23, %v3814_v40  ;;  %v3885_v11 = vsub.f32 %v10535_v0, %v3814_v40  ;;  %v3882_v44 = vsub.f32 %v10536_v3, %v3809_v42  ;;  %v3883_v25 = vsub.f32 %v10537_v14, %v3809_v42  ;;  %v9877_v32 = vpop.f32.mrf.mxu1  ;;  %v4258_v3 = vld [vmem:[#allocation5 + $0x170] sm:$0xff] }
 0x9e2   : > { %v4006_v52 = vmul.f32 1.442695, %v3884_v53  ;;  %v4008_v31 = vmul.f32 1.442695, %v3885_v11  ;;  %v4002_v56 = vmul.f32 1.442695, %v3882_v44  ;;  %v9879_v42 = vpop.eup %7093 }
 0x9e3   : > { %v4004_v29 = vmul.f32 1.442695, %v3883_v25  ;;  %v3658_v53 = vmul.f32 1.442695, %v3598_v61  ;;  %v4032_v61 = vld [vmem:[#allocation4 + $0x168] sm:$0xff] }
 0x9e4   : > { %7095 = vpow2.f32 %v4006_v52 }
 0x9e5   : > { %7097 = vpow2.f32 %v4008_v31  ;;  %4388 = vperm.xlu2 %6732, %v9870_v19  }
 0x9e6   : > { %7099 = vpow2.f32 %v4002_v56 }
 0x9e7   : > { %7101 = vpow2.f32 %v4004_v29  ;;  %v4334_v40 = vpop.permute.xlu0 %4333  ;;  %4165 = vadd.xlane.f32.xlu0 %v4164_v36  ;;  %v4261_v36 = vld [vmem:[#allocation5 + $0x188] sm:$0xff] }
 0x9e8   : > { %v4447_v26 = vmul.f32 %v4334_v40, %v4255_v24  ;;  %7103 = vpow2.f32 %v3658_v53 }
 0x9ea   : > { %v7096_v23 = vpop.eup %7095  ;;  %v4785_v0 = vadd.f32 %v9670_v50, %v4447_v26  ;;  %v4730_v50 = vadd.f32 %v9704_v38, %v9702_v21  ;;  %v4737_v26 = vadd.f32 %v9779_v16, %v9772_v33  ;;  %v4064_v21 = vmul.f32 %v9833_v47, %v4032_v61  ;;  %v4267_v47 = vld [vmem:[#allocation5 + $0x1b8] sm:$0xff]  ;;  %v4033_v61 = vld [vmem:[#allocation4 + $0x170] sm:$0xff] }
 0x9eb   : > { %v7098_v11 = vpop.eup %7097 }
 0x9ec   : > { %v7100_v45 = vpop.eup %7099  ;;  %4817 = vst.msk [vmem:[#allocation5 + $0x158] sm:$0xff] %vm1142_vm3, %v4785_v0  ;;  %v9883_v5 = vadd.f32 %v7098_v11, %v7096_v23 }
 0x9ed   : > { %v7102_v12 = vpop.eup %7101  ;;  %4403 = vperm.xlu2 %6732, %v9879_v42   ;;  %v4496_v10 = vpack.c.bf16 %v7096_v23, %v7100_v45 }
 0x9ee   : > { %v4497_v44 = vpack.c.bf16 %v7098_v11, %v7102_v12  ;;  %v4660_v14 = vpop.f32.mrf.mxu0  ;;  %v9890_v24 = vpop.eup %7103  ;;  %v4264_v11 = vld [vmem:[#allocation5 + $0x1a0] sm:$0xff] }
 0x9ef   : > { %4674 = vmatmul.bf16.gmra.mxu0 %v4496_v10  ;;  %v4749_v25 = vpop.f32.mrf.mxu1  ;;  %v4349_v52 = vpop.permute.xlu0 %4348 }
 0x9f0   : > { %4763 = vmatmul.bf16.gmra.mxu1 %v4497_v44  ;;  %v9888_v31 = vadd.f32 %v4749_v25, %v4660_v14  ;;  %v4450_v56 = vmul.f32 %v4349_v52, %v4258_v3  ;;  %v4745_v3 = vadd.f32 %v9861_v6, %v9859_v48 }
 0x9f2   : > { %v4788_v29 = vadd.f32 %v4730_v50, %v4450_v56 }
 0x9f4   : > { %4820 = vst.msk [vmem:[#allocation5 + $0x170] sm:$0xff] %vm1142_vm3, %v4788_v29 }
 0x9f5   : > { %4418 = vperm.xlu2 %6732, %v9890_v24  }
 0x9f6   : > { %v4662_v16 = vpop.f32.mrf.mxu0 }
 0x9f7   : > { %v4364_v40 = vpop.permute.xlu0 %4363 }
 0x9f8   : > { %v4453_v23 = vmul.f32 %v4364_v40, %v4261_v36  ;;  %v4065_v40 = vmul.f32 %v9741_v37, %v4033_v61  ;;  %v4265_v61 = vld [vmem:[#allocation5 + $0x1a8] sm:$0xff] }
 0x9f9   : > { %4132 = vadd.xlane.f32.xlu1 %v9661_v41  ;;  %v4124_v38 = vpop.xlane.xlu1 %4123  ;;  %v4751_v41 = vpop.f32.mrf.mxu1 }
 0x9fa   : > { %v4791_v53 = vadd.f32 %v4737_v26, %v4453_v23  ;;  %v4192_v0 = vadd.f32 %v4124_v38, %v4064_v21  ;;  %v4752_v25 = vadd.f32 %v4751_v41, %v4662_v16  ;;  %v4167_v26 = vadd.f32 %v7102_v12, %v7100_v45  ;;  %v4256_v23 = vld [vmem:[#allocation5 + $0x160] sm:$0xff] }
 0x9fc   : > { %4823 = vst.msk [vmem:[#allocation5 + $0x188] sm:$0xff] %vm1142_vm3, %v4791_v53 }
 0x9fd   : > { %4224 = vst.msk [vmem:[#allocation4 + $0x168] sm:$0xff] %vm2217_vm4, %v4192_v0 }
 0x9ff   : > { %v4379_v10 = vpop.permute.xlu0 %4378 }
 0xa00   : > { %v4456_v44 = vmul.f32 %v4379_v10, %v4264_v11  ;;  %v4259_v10 = vld [vmem:[#allocation5 + $0x178] sm:$0xff] }
 0xa01   : > { %4141 = vadd.xlane.f32.xlu1 %v9691_v4  ;;  %v10538_v4 = vld [vmem:[#allocation33_spill] sm:$0xff] }
 0xa02   : > { %v4794_v33 = vadd.f32 %v4745_v3, %v4456_v44 }
 0xa04   : > { %4826 = vst.msk [vmem:[#allocation5 + $0x1a0] sm:$0xff] %vm1142_vm3, %v4794_v33 }
 0xa07   : > { %v4394_v14 = vpop.permute.xlu0 %4393 }
 0xa08   : > { %v4459_v52 = vmul.f32 %v4394_v14, %v4267_v47  ;;  %v4254_v47 = vld [vmem:[#allocation5 + $0x150] sm:$0xff] }
 0xa09   : > { %4150 = vadd.xlane.f32.xlu1 %v9725_v8  ;;  %v4262_v14 = vld [vmem:[#allocation5 + $0x190] sm:$0xff] }
 0xa0a   : > { %v4797_v50 = vadd.f32 %v4752_v25, %v4459_v52 }
 0xa0c   : > { %4829 = vst.msk [vmem:[#allocation5 + $0x1b8] sm:$0xff] %vm1142_vm3, %v4797_v50 }
 0xa11   : > { %4159 = vadd.xlane.f32.xlu1 %v9796_v54  ;;  %v3819_v48 = vpop.permute.xlu1 %3818 }
 0xa12   : > { %v3886_v6 = vsub.f32 %v9544_v58, %v3819_v48  ;;  %v3887_v56 = vsub.f32 %v10538_v4, %v3819_v48 }
 0xa14   : > { %v4010_v29 = vmul.f32 1.442695, %v3886_v6  ;;  %v4012_v36 = vmul.f32 1.442695, %v3887_v56  ;;  %v10540_v6 = vld [vmem:[#allocation15_spill] sm:$0xff] }
 0xa16   : > { %7105 = vpow2.f32 %v4010_v29 }
 0xa17   : > { %7107 = vpow2.f32 %v4012_v36  ;;  %v4257_v36 = vld [vmem:[#allocation5 + $0x168] sm:$0xff] }
 0xa18   : > { %v4127_v8 = vpop.xlane.xlu2 %4126 }
 0xa19   : > { %v4193_v21 = vadd.f32 %v4127_v8, %v4065_v40  ;;  %4168 = vadd.xlane.f32.xlu1 %v4167_v26  ;;  %v4339_v38 = vpop.permute.xlu1 %4338  ;;  %v9928_v8 = vpop.permute.xlu0 %4408 }
 0xa1a   : > { %v4448_v53 = vmul.f32 %v4339_v38, %v4256_v23 }
 0xa1b   : > { %4225 = vst.msk [vmem:[#allocation4 + $0x170] sm:$0xff] %vm2217_vm4, %v4193_v21 }
 0xa1c   : > { %v7106_v54 = vpop.eup %7105  ;;  %v4786_v58 = vadd.f32 %v9689_v17, %v4448_v53  ;;  %v3599_v17 = vsub.f32 %v9631_v60, %v9634_v30  ;;  %v10541_v53 = vld [vmem:[#allocation13_spill] sm:$0xff] }
 0xa1d   : > { %v7108_v0 = vpop.eup %7107 }
 0xa1e   : > { %4818 = vst.msk [vmem:[#allocation5 + $0x160] sm:$0xff] %vm1142_vm3, %v4786_v58  ;;  %4135 = vadd.xlane.f32.xlu2 %v9668_v62  ;;  %v4173_v11 = vadd.f32 %v7108_v0, %v7106_v54  ;;  %v10539_v62 = vld [vmem:[#allocation14_spill] sm:$0xff]  ;;  %v3660_v25 = vmul.f32 1.442695, %v3599_v17 }
 0xa20   : > { %4174 = vadd.xlane.f32.xlu0 %v4173_v11  ;;  %v3824_v37 = vpop.permute.xlu2 %3823 }
 0xa21   : > { %v3888_v45 = vsub.f32 %v9566_v55, %v3824_v37  ;;  %v3889_v12 = vsub.f32 %v9568_v63, %v3824_v37  ;;  %v4354_v3 = vpop.permute.xlu1 %4353  ;;  %v10542_v37 = vld [vmem:[#allocation65_spill] sm:$0xff] }
 0xa22   : > { %v4451_v44 = vmul.f32 %v4354_v3, %v4259_v10 }
 0xa23   : > { %v4014_v33 = vmul.f32 1.442695, %v3888_v45  ;;  %v4016_v16 = vmul.f32 1.442695, %v3889_v12  ;;  %v3600_v45 = vsub.f32 %v10542_v37, %v9642_v28  ;;  %v4037_v28 = vld [vmem:[#allocation4 + $0x190] sm:$0xff] }
 0xa24   : > { %v4789_v41 = vadd.f32 %v9708_v22, %v4451_v44 }
 0xa25   : > { %7109 = vpow2.f32 %v4014_v33 }
 0xa26   : > { %7111 = vpow2.f32 %v4016_v16  ;;  %4821 = vst.msk [vmem:[#allocation5 + $0x178] sm:$0xff] %vm1142_vm3, %v4789_v41  ;;  %4144 = vadd.xlane.f32.xlu2 %v10539_v62 }
 0xa27   : > { %7113 = vpow2.f32 %v3660_v25  ;;  %v4069_v25 = vmul.f32 %v9813_v34, %v4037_v28 }
 0xa28   : > { %v4329_v55 = vpop.permute.xlu2 %4328 }
 0xa29   : > { %v4446_v63 = vmul.f32 %v4329_v55, %v4254_v47  ;;  %v4369_v52 = vpop.permute.xlu1 %4368  ;;  %v4665_v11 = vpop.f32.mrf.mxu0  ;;  %v3662_v47 = vmul.f32 1.442695, %v3600_v45 }
 0xa2a   : > { %v4454_v50 = vmul.f32 %v4369_v52, %v4262_v14  ;;  %v4263_v14 = vld [vmem:[#allocation5 + $0x198] sm:$0xff] }
 0xa2b   : > { %v7110_v48 = vpop.eup %7109  ;;  %v4784_v4 = vadd.f32 %v10540_v6, %v4446_v63  ;;  %7115 = vpow2.f32 %v3662_v47  ;;  %v10543_v6 = vld [vmem:[#allocation64_spill] sm:$0xff] }
 0xa2c   : > { %v7112_v22 = vpop.eup %7111  ;;  %v4498_v56 = vpack.c.bf16 %v7110_v48, %v7106_v54  ;;  %v4792_v60 = vadd.f32 %v9792_v7, %v4454_v50  ;;  %v4747_v7 = vadd.f32 %v9877_v32, %v9875_v35  ;;  %v4754_v35 = vpop.f32.mrf.mxu1  ;;  %v4268_v32 = vld [vmem:[#allocation5 + $0x1c0] sm:$0xff]  ;;  %v4266_v50 = vld [vmem:[#allocation5 + $0x1b0] sm:$0xff] }
 0xa2d   : > { %v4499_v30 = vpack.c.bf16 %v7112_v22, %v7108_v0  ;;  %4816 = vst.msk [vmem:[#allocation5 + $0x150] sm:$0xff] %vm1142_vm3, %v4784_v4  ;;  %v4176_v29 = vadd.f32 %v7112_v22, %v7110_v48  ;;  %v9930_v38 = vpop.eup %7113  ;;  %v4034_v0 = vld [vmem:[#allocation4 + $0x178] sm:$0xff]  ;;  %v4755_v33 = vadd.f32 %v4754_v35, %v4665_v11  ;;  %v4040_v48 = vld [vmem:[#allocation4 + $0x1a8] sm:$0xff]  ;;  %v3601_v4 = vsub.f32 %v10543_v6, %v9655_v20  ;;  %v4041_v6 = vld [vmem:[#allocation4 + $0x1b0] sm:$0xff] }
 0xa2e   : > { %4824 = vst.msk [vmem:[#allocation5 + $0x190] sm:$0xff] %vm1142_vm3, %v4792_v60  ;;  %4153 = vadd.xlane.f32.xlu2 %v9730_v46  ;;  %4679 = vmatmul.bf16.vlgmr.msra.gmra.mxu2 %v4498_v56  ;;  %v4260_v46 = vld [vmem:[#allocation5 + $0x180] sm:$0xff]  ;;  %v4066_v44 = vmul.f32 %v9802_v9, %v4034_v0  ;;  %v4072_v34 = vmul.f32 %v9820_v1, %v4040_v48 }
 0xa2f   : > { %4177 = vadd.xlane.f32.xlu1 %v4176_v29  ;;  %4768 = vmatmul.bf16.vlgmr.msra.gmra.mxu3 %v4499_v30 }
 0xa30   : > { %v4344_v40 = vpop.permute.xlu2 %4343 }
 0xa31   : > { %v4449_v26 = vmul.f32 %v4344_v40, %v4257_v36  ;;  %v4384_v23 = vpop.permute.xlu1 %4383  ;;  %v4667_v36 = vpop.f32.mrf.mxu0  ;;  %v4269_v40 = vld [vmem:[#allocation5 + $0x1c8] sm:$0xff] }
 0xa32   : > { %v4457_v21 = vmul.f32 %v4384_v23, %v4265_v61 }
 0xa33   : > { %v4787_v54 = vadd.f32 %v10541_v53, %v4449_v26  ;;  %v4043_v26 = vld [vmem:[#allocation4 + $0x1c0] sm:$0xff] }
 0xa34   : > { %v4795_v58 = vadd.f32 %v4747_v7, %v4457_v21  ;;  %4423 = vperm.xlu0 %6733, %v9930_v38   ;;  %v4756_v61 = vpop.f32.mrf.mxu1  ;;  %v4075_v21 = vmul.f32 %v9827_v13, %v4043_v26 }
 0xa35   : > { %4819 = vst.msk [vmem:[#allocation5 + $0x168] sm:$0xff] %vm1142_vm3, %v4787_v54  ;;  %v4757_v23 = vadd.f32 %v4756_v61, %v4667_v36  ;;  %v4036_v61 = vld [vmem:[#allocation4 + $0x188] sm:$0xff] }
 0xa36   : > { %4827 = vst.msk [vmem:[#allocation5 + $0x1a8] sm:$0xff] %vm1142_vm3, %v4795_v58  ;;  %4162 = vadd.xlane.f32.xlu2 %v9806_v51 }
 0xa38   : > { %v4359_v10 = vpop.permute.xlu2 %4358 }
 0xa39   : > { %v4452_v12 = vmul.f32 %v4359_v10, %v4260_v46  ;;  %v4399_v3 = vpop.permute.xlu1 %4398  ;;  %v4270_v46 = vld [vmem:[#allocation5 + $0x1d0] sm:$0xff] }
 0xa3a   : > { %v4460_v16 = vmul.f32 %v4399_v3, %v4268_v32  ;;  %v4130_v41 = vpop.xlane.xlu0 %4129  ;;  %v4462_v13 = vmul.f32 %v9928_v8, %v4270_v46 }
 0xa3b   : > { %v4790_v17 = vadd.f32 %v9735_v57, %v4452_v12  ;;  %v4194_v62 = vadd.f32 %v4130_v41, %v4066_v44  ;;  %v4271_v12 = vld [vmem:[#allocation5 + $0x1d8] sm:$0xff] }
 0xa3c   : > { %v4798_v51 = vadd.f32 %v4755_v33, %v4460_v16 }
 0xa3d   : > { %4822 = vst.msk [vmem:[#allocation5 + $0x180] sm:$0xff] %vm1142_vm3, %v4790_v17 }
 0xa3e   : > { %4830 = vst.msk [vmem:[#allocation5 + $0x1c0] sm:$0xff] %vm1142_vm3, %v4798_v51  ;;  %4171 = vadd.xlane.f32.xlu2 %v9883_v5  ;;  %v9949_v5 = vpop.eup %7115 }
 0xa3f   : > { %4226 = vst.msk [vmem:[#allocation4 + $0x178] sm:$0xff] %vm2217_vm4, %v4194_v62  ;;  %v4272_v62 = vld [vmem:[#allocation5 + $0x1e0] sm:$0xff] }
 0xa40   : > { %v4374_v55 = vpop.permute.xlu2 %4373 }
 0xa41   : > { %v4455_v9 = vmul.f32 %v4374_v55, %v4263_v14  ;;  %v4414_v3 = vpop.permute.xlu1 %4413 }
 0xa42   : > { %v4139_v63 = vpop.xlane.xlu0 %4138  ;;  %v4463_v16 = vmul.f32 %v4414_v3, %v4271_v12 }
 0xa43   : > { %v4793_v57 = vadd.f32 %v9811_v18, %v4455_v9  ;;  %v4197_v52 = vadd.f32 %v4139_v63, %v4069_v25  ;;  %v3664_v18 = vmul.f32 1.442695, %v3601_v4 }
 0xa45   : > { %4825 = vst.msk [vmem:[#allocation5 + $0x198] sm:$0xff] %vm1142_vm3, %v4793_v57  ;;  %7117 = vpow2.f32 %v3664_v18  ;;  %v4038_v57 = vld [vmem:[#allocation4 + $0x198] sm:$0xff] }
 0xa46   : > { %4229 = vst.msk [vmem:[#allocation4 + $0x190] sm:$0xff] %vm2217_vm4, %v4197_v52  ;;  %v4070_v52 = vmul.f32 %v9857_v2, %v4038_v57 }
 0xa48   : > { %4428 = vperm.xlu1 %6734, %v9949_v5   ;;  %v4389_v22 = vpop.permute.xlu2 %4388 }
 0xa49   : > { %v4458_v56 = vmul.f32 %v4389_v22, %v4266_v50 }
 0xa4a   : > { %v4148_v60 = vpop.xlane.xlu0 %4147 }
 0xa4b   : > { %v4796_v30 = vadd.f32 %v9888_v31, %v4458_v56  ;;  %v4200_v29 = vadd.f32 %v4148_v60, %v4072_v34  ;;  %v9959_v58 = vpop.eup %7117  ;;  %v4046_v31 = vld [vmem:[#allocation4 + $0x1d8] sm:$0xff]  ;;  %v4044_v56 = vld [vmem:[#allocation4 + $0x1c8] sm:$0xff] }
 0xa4c   : > { %v4078_v11 = vmul.f32 %v9836_v59, %v4046_v31  ;;  %v4035_v59 = vld [vmem:[#allocation4 + $0x180] sm:$0xff]  ;;  %v4076_v34 = vmul.f32 %v9879_v42, %v4044_v56  ;;  %v4050_v31 = vld [vmem:[#allocation4 + $0x1f8] sm:$0xff] }
 0xa4d   : > { %4828 = vst.msk [vmem:[#allocation5 + $0x1b0] sm:$0xff] %vm1142_vm3, %v4796_v30  ;;  %v4067_v8 = vmul.f32 %v9845_v43, %v4035_v59  ;;  %v4073_v43 = vmul.f32 %v9870_v19, %v4041_v6  ;;  %v4047_v30 = vld [vmem:[#allocation4 + $0x1e0] sm:$0xff]  ;;  %v4049_v19 = vld [vmem:[#allocation4 + $0x1f0] sm:$0xff] }
 0xa4e   : > { %4232 = vst.msk [vmem:[#allocation4 + $0x1a8] sm:$0xff] %vm2217_vm4, %v4200_v29  ;;  %v4079_v2 = vmul.f32 %v9890_v24, %v4047_v30 }
 0xa50   : > { %v4404_v20 = vpop.permute.xlu2 %4403 }
 0xa51   : > { %v4461_v7 = vmul.f32 %v4404_v20, %v4269_v40  ;;  %v4068_v40 = vmul.f32 %v9747_v49, %v4036_v61 }
 0xa52   : > { %v4157_v1 = vpop.xlane.xlu0 %4156 }
 0xa53   : > { %v4799_v53 = vadd.f32 %v4757_v23, %v4461_v7  ;;  %v4203_v54 = vadd.f32 %v4157_v1, %v4075_v21  ;;  %v4081_v23 = vmul.f32 %v9949_v5, %v4049_v19  ;;  %v4039_v21 = vld [vmem:[#allocation4 + $0x1a0] sm:$0xff]  ;;  %v4082_v5 = vmul.f32 %v9959_v58, %v4050_v31 }
 0xa54   : > { %v4071_v24 = vmul.f32 %v9753_v27, %v4039_v21  ;;  %v4045_v27 = vld [vmem:[#allocation4 + $0x1d0] sm:$0xff] }
 0xa55   : > { %4831 = vst.msk [vmem:[#allocation5 + $0x1c8] sm:$0xff] %vm1142_vm3, %v4799_v53  ;;  %v4077_v3 = vmul.f32 %v9769_v15, %v4045_v27 }
 0xa56   : > { %4235 = vst.msk [vmem:[#allocation4 + $0x1c0] sm:$0xff] %vm2217_vm4, %v4203_v54  ;;  %4433 = vperm.xlu2 %6732, %v9959_v58   ;;  %v4042_v54 = vld [vmem:[#allocation4 + $0x1b8] sm:$0xff]  ;;  %v4048_v58 = vld [vmem:[#allocation4 + $0x1e8] sm:$0xff] }
 0xa57   : > { %v4074_v49 = vmul.f32 %v9760_v39, %v4042_v54 }
 0xa58   : > { %v4419_v51 = vpop.permute.xlu2 %4418 }
 0xa59   : > { %v4670_v0 = vpop.f32.mrf.mxu0  ;;  %v4464_v9 = vmul.f32 %v4419_v51, %v4272_v62  ;;  %v4275_v51 = vld [vmem:[#allocation5 + $0x1f8] sm:$0xff] }
 0xa5a   : > { %v4759_v35 = vpop.f32.mrf.mxu1  ;;  %v4166_v32 = vpop.xlane.xlu0 %4165 }
 0xa5b   : > { %v4760_v10 = vadd.f32 %v4759_v35, %v4670_v0  ;;  %v4206_v37 = vadd.f32 %v4166_v32, %v4078_v11 }
 0xa5d   : > { %v4800_v45 = vadd.f32 %v4760_v10, %v4462_v13  ;;  %4238 = vst.msk [vmem:[#allocation4 + $0x1d8] sm:$0xff] %vm2217_vm4, %v4206_v37  ;;  %v4273_v10 = vld [vmem:[#allocation5 + $0x1e8] sm:$0xff] }
 0xa5f   : > { %4832 = vst.msk [vmem:[#allocation5 + $0x1d0] sm:$0xff] %vm1142_vm3, %v4800_v45 }
 0xa61   : > { %v4672_v44 = vpop.f32.mrf.mxu0 }
 0xa62   : > { %v4761_v33 = vpop.f32.mrf.mxu1 }
 0xa63   : > { %v4762_v41 = vadd.f32 %v4761_v33, %v4672_v44 }
 0xa65   : > { %v4801_v17 = vadd.f32 %v4762_v41, %v4463_v16  ;;  %v4080_v16 = vmul.f32 %v9930_v38, %v4048_v58 }
 0xa67   : > { %4833 = vst.msk [vmem:[#allocation5 + $0x1d8] sm:$0xff] %vm1142_vm3, %v4801_v17 }
 0xa6c   : > { %v4675_v47 = vpop.f32.mrf.mxu0  ;;  %v4133_v14 = vpop.xlane.xlu1 %4132 }
 0xa6d   : > { %v4764_v28 = vpop.f32.mrf.mxu1  ;;  %v4195_v55 = vadd.f32 %v4133_v14, %v4067_v8  ;;  %v4274_v8 = vld [vmem:[#allocation5 + $0x1f0] sm:$0xff] }
 0xa6e   : > { %v4765_v25 = vadd.f32 %v4764_v28, %v4675_v47 }
 0xa6f   : > { %4227 = vst.msk [vmem:[#allocation4 + $0x180] sm:$0xff] %vm2217_vm4, %v4195_v55 }
 0xa70   : > { %v4802_v63 = vadd.f32 %v4765_v25, %v4464_v9 }
 0xa72   : > { %4834 = vst.msk [vmem:[#allocation5 + $0x1e0] sm:$0xff] %vm1142_vm3, %v4802_v63 }
 0xa74   : > { %v4142_v50 = vpop.xlane.xlu1 %4141  ;;  %v4677_v32 = vpop.f32.mrf.mxu0 }
 0xa75   : > { %v4198_v48 = vadd.f32 %v4142_v50, %v4070_v52  ;;  %v4766_v13 = vpop.f32.mrf.mxu1 }
 0xa76   : > { %v4767_v45 = vadd.f32 %v4766_v13, %v4677_v32 }
 0xa77   : > { %4230 = vst.msk [vmem:[#allocation4 + $0x198] sm:$0xff] %vm2217_vm4, %v4198_v48 }
 0xa7c   : > { %v4151_v4 = vpop.xlane.xlu1 %4150 }
 0xa7d   : > { %v4201_v22 = vadd.f32 %v4151_v4, %v4073_v43 }
 0xa7f   : > { %4233 = vst.msk [vmem:[#allocation4 + $0x1b0] sm:$0xff] %vm2217_vm4, %v4201_v22 }
 0xa84   : > { %v4160_v60 = vpop.xlane.xlu1 %4159 }
 0xa85   : > { %v4204_v18 = vadd.f32 %v4160_v60, %v4076_v34 }
 0xa87   : > { %4236 = vst.msk [vmem:[#allocation4 + $0x1c8] sm:$0xff] %vm2217_vm4, %v4204_v18 }
 0xa8c   : > { %v4169_v29 = vpop.xlane.xlu1 %4168 }
 0xa8d   : > { %v4207_v36 = vadd.f32 %v4169_v29, %v4079_v2 }
 0xa8f   : > { %4239 = vst.msk [vmem:[#allocation4 + $0x1e0] sm:$0xff] %vm2217_vm4, %v4207_v36 }
 0xa91   : > { %v4136_v26 = vpop.xlane.xlu2 %4135 }
 0xa92   : > { %v4196_v20 = vadd.f32 %v4136_v26, %v4068_v40 }
 0xa93   : > { %v4175_v42 = vpop.xlane.xlu0 %4174 }
 0xa94   : > { %4228 = vst.msk [vmem:[#allocation4 + $0x188] sm:$0xff] %vm2217_vm4, %v4196_v20  ;;  %v4209_v7 = vadd.f32 %v4175_v42, %v4081_v23 }
 0xa96   : > { %4241 = vst.msk [vmem:[#allocation4 + $0x1f0] sm:$0xff] %vm2217_vm4, %v4209_v7 }
 0xa99   : > { %v4145_v1 = vpop.xlane.xlu2 %4144 }
 0xa9a   : > { %v4199_v53 = vadd.f32 %v4145_v1, %v4071_v24 }
 0xa9c   : > { %4231 = vst.msk [vmem:[#allocation4 + $0x1a0] sm:$0xff] %vm2217_vm4, %v4199_v53 }
 0xaa1   : > { %v4154_v46 = vpop.xlane.xlu2 %4153 }
 0xaa2   : > { %v4202_v0 = vadd.f32 %v4154_v46, %v4074_v49  ;;  %v4178_v11 = vpop.xlane.xlu1 %4177 }
 0xaa3   : > { %v4210_v35 = vadd.f32 %v4178_v11, %v4082_v5 }
 0xaa4   : > { %4234 = vst.msk [vmem:[#allocation4 + $0x1b8] sm:$0xff] %vm2217_vm4, %v4202_v0 }
 0xaa5   : > { %4242 = vst.msk [vmem:[#allocation4 + $0x1f8] sm:$0xff] %vm2217_vm4, %v4210_v35 }
 0xaa6   : > { %v4424_v37 = vpop.permute.xlu0 %4423 }
 0xaa7   : > { %v4465_v12 = vmul.f32 %v4424_v37, %v4273_v10 }
 0xaa9   : > { %v4803_v39 = vadd.f32 %v4767_v45, %v4465_v12  ;;  %v4163_v44 = vpop.xlane.xlu2 %4162 }
 0xaaa   : > { %v4205_v33 = vadd.f32 %v4163_v44, %v4077_v3 }
 0xaab   : > { %4835 = vst.msk [vmem:[#allocation5 + $0x1e8] sm:$0xff] %vm1142_vm3, %v4803_v39 }
 0xaac   : > { %4237 = vst.msk [vmem:[#allocation4 + $0x1d0] sm:$0xff] %vm2217_vm4, %v4205_v33 }
 0xab1   : > { %v4172_v41 = vpop.xlane.xlu2 %4171  ;;  %v4680_v17 = vpop.f32.mrf.mxu2 }
 0xab2   : > { %v4208_v59 = vadd.f32 %v4172_v41, %v4080_v16  ;;  %v4769_v62 = vpop.f32.mrf.mxu3 }
 0xab3   : > { %v4770_v9 = vadd.f32 %v4769_v62, %v4680_v17 }
 0xab4   : > { %4240 = vst.msk [vmem:[#allocation4 + $0x1e8] sm:$0xff] %vm2217_vm4, %v4208_v59 }
 0xab9   : > { %v4434_v47 = vpop.permute.xlu2 %4433  ;;  %v4682_v15 = vpop.f32.mrf.mxu2 }
 0xaba   : > { %v4467_v14 = vmul.f32 %v4434_v47, %v4275_v51  ;;  %v4771_v28 = vpop.f32.mrf.mxu3  ;;  %v4429_v55 = vpop.permute.xlu1 %4428 }
 0xabb   : > { %v4772_v25 = vadd.f32 %v4771_v28, %v4682_v15  ;;  %v4466_v63 = vmul.f32 %v4429_v55, %v4274_v8 }
 0xabc   : > { %4872 = sbr.rel (%p5879_p0) target bundleno = 3157 (0xc55), region = 40 }
 0xabd   : > { %v4805_v57 = vadd.f32 %v4772_v25, %v4467_v14  ;;  %v4804_v52 = vadd.f32 %v4770_v9, %v4466_v63 }
 0xabf   : > { %4837 = vst.msk [vmem:[#allocation5 + $0x1f8] sm:$0xff] %vm1142_vm3, %v4805_v57 }
 0xac0   : > { %4836 = vst.msk [vmem:[#allocation5 + $0x1f0] sm:$0xff] %vm1142_vm3, %v4804_v52 }
 0xac1   : > { %v4877_v38 = vld [vmem:[#allocation4 + $0x20] sm:$0xff]  ;;  %v4875_v50 = vld [vmem:[#allocation4 + $0x10] sm:$0xff]  ;;  %v7333_v6 = vmov 0   ;;  %v4878_v43 = vld [vmem:[#allocation4 + $0x28] sm:$0xff]  ;;  %vm5193_vm5 = vcmask 519168   ;;  %vm5674_vm6 = vcmask 1043968  }
 0xac2   : > { %v4873_v48 = vld [vmem:[#allocation4] sm:$0xff]  ;;  %7121 = vset.pattern.permute.xlu2 %v7333_v6  ;;  %7120 = vset.pattern.permute.xlu1 %v7333_v6  ;;  %7122 = vrcp.f32 %v4877_v38  ;;  %v4876_v4 = vld [vmem:[#allocation4 + $0x18] sm:$0xff]  ;;  %v4874_v22 = vld [vmem:[#allocation4 + $0x8] sm:$0xff] }
 0xac3   : > { %7119 = vset.pattern.permute.xlu0 %v7333_v6  ;;  %7124 = vrcp.f32 %v4875_v50  ;;  %v4881_v18 = vld [vmem:[#allocation4 + $0x40] sm:$0xff]  ;;  %v4880_v2 = vld [vmem:[#allocation4 + $0x38] sm:$0xff]  ;;  %v4879_v36 = vld [vmem:[#allocation4 + $0x30] sm:$0xff] }
 0xac4   : > { %7126 = vrcp.f32 %v4873_v48  ;;  %v4884_v19 = vld [vmem:[#allocation4 + $0x58] sm:$0xff]  ;;  %v4883_v26 = vld [vmem:[#allocation4 + $0x50] sm:$0xff]  ;;  %v4882_v23 = vld [vmem:[#allocation4 + $0x48] sm:$0xff] }
 0xac5   : > { %7128 = vrcp.f32 %v4878_v43  ;;  %v4887_v7 = vld [vmem:[#allocation4 + $0x70] sm:$0xff]  ;;  %v4886_v24 = vld [vmem:[#allocation4 + $0x68] sm:$0xff]  ;;  %v4885_v53 = vld [vmem:[#allocation4 + $0x60] sm:$0xff] }
 0xac6   : > { %7130 = vrcp.f32 %v4876_v4  ;;  %v4890_v31 = vld [vmem:[#allocation4 + $0x88] sm:$0xff]  ;;  %v4889_v46 = vld [vmem:[#allocation4 + $0x80] sm:$0xff]  ;;  %v4888_v0 = vld [vmem:[#allocation4 + $0x78] sm:$0xff] }
 0xac7   : > { %7132 = vrcp.f32 %v4874_v22  ;;  %v4893_v35 = vld [vmem:[#allocation4 + $0xa0] sm:$0xff]  ;;  %v4892_v13 = vld [vmem:[#allocation4 + $0x98] sm:$0xff]  ;;  %v4891_v27 = vld [vmem:[#allocation4 + $0x90] sm:$0xff] }
 0xac8   : > { %v7123_v56 = vpop.eup %7122  ;;  %7134 = vrcp.f32 %v4881_v18  ;;  %v4896_v45 = vld [vmem:[#allocation4 + $0xb8] sm:$0xff]  ;;  %v4895_v3 = vld [vmem:[#allocation4 + $0xb0] sm:$0xff]  ;;  %v4894_v44 = vld [vmem:[#allocation4 + $0xa8] sm:$0xff] }
 0xac9   : > { %v7125_v34 = vpop.eup %7124  ;;  %4991 = vperm.xlu2 %7121, %v7123_v56   ;;  %7136 = vrcp.f32 %v4880_v2  ;;  %v4899_v58 = vld [vmem:[#allocation4 + $0xd0] sm:$0xff]  ;;  %v4898_v41 = vld [vmem:[#allocation4 + $0xc8] sm:$0xff]  ;;  %v4897_v59 = vld [vmem:[#allocation4 + $0xc0] sm:$0xff] }
 0xaca   : > { %v7127_v60 = vpop.eup %7126  ;;  %4981 = vperm.xlu1 %7120, %v7125_v34   ;;  %7138 = vrcp.f32 %v4879_v36  ;;  %v4902_v51 = vld [vmem:[#allocation4 + $0xe8] sm:$0xff]  ;;  %v4901_v47 = vld [vmem:[#allocation4 + $0xe0] sm:$0xff]  ;;  %v4900_v14 = vld [vmem:[#allocation4 + $0xd8] sm:$0xff] }
 0xacb   : > { %4971 = vperm.xlu0 %7119, %v7127_v60   ;;  %v7129_v30 = vpop.eup %7128  ;;  %7140 = vrcp.f32 %v4884_v19  ;;  %v5226_v55 = vld [vmem:[#allocation4 + $0x100] sm:$0xff]  ;;  %v4904_v25 = vld [vmem:[#allocation4 + $0xf8] sm:$0xff]  ;;  %v4903_v57 = vld [vmem:[#allocation4 + $0xf0] sm:$0xff] }
 0xacc   : > { %v7131_v29 = vpop.eup %7130  ;;  %7142 = vrcp.f32 %v4883_v26  ;;  %v5229_v38 = vld [vmem:[#allocation4 + $0x118] sm:$0xff]  ;;  %v5228_v48 = vld [vmem:[#allocation4 + $0x110] sm:$0xff]  ;;  %v5227_v43 = vld [vmem:[#allocation4 + $0x108] sm:$0xff] }
 0xacd   : > { %v7133_v61 = vpop.eup %7132  ;;  %7144 = vrcp.f32 %v4882_v23  ;;  %v5232_v22 = vld [vmem:[#allocation4 + $0x130] sm:$0xff]  ;;  %v5231_v34 = vld [vmem:[#allocation4 + $0x128] sm:$0xff]  ;;  %v5230_v18 = vld [vmem:[#allocation4 + $0x120] sm:$0xff] }
 0xace   : > { %v7135_v40 = vpop.eup %7134  ;;  %7146 = vrcp.f32 %v4887_v7  ;;  %v4941_v2 = vld [vmem:[#allocation5 + $0x20] sm:$0xff]  ;;  %v5233_v23 = vld [vmem:[#allocation4 + $0x138] sm:$0xff]  ;;  %v4942_v7 = vld [vmem:[#allocation5 + $0x28] sm:$0xff] }
 0xacf   : > { %v7137_v20 = vpop.eup %7136  ;;  %7148 = vrcp.f32 %v4886_v24  ;;  %v5234_v26 = vld [vmem:[#allocation4 + $0x140] sm:$0xff] }
 0xad0   : > { %v7139_v42 = vpop.eup %7138  ;;  %7150 = vrcp.f32 %v4885_v53 }
 0xad1   : > { %4996 = vperm.xlu2 %7121, %v7129_v30   ;;  %v7141_v21 = vpop.eup %7140  ;;  %7152 = vrcp.f32 %v4890_v31  ;;  %v5237_v31 = vld [vmem:[#allocation4 + $0x158] sm:$0xff] }
 0xad2   : > { %4986 = vperm.xlu1 %7120, %v7131_v29   ;;  %v7143_v1 = vpop.eup %7142  ;;  %7154 = vrcp.f32 %v4889_v46  ;;  %v5236_v46 = vld [vmem:[#allocation4 + $0x150] sm:$0xff] }
 0xad3   : > { %4976 = vperm.xlu0 %7119, %v7133_v61   ;;  %v7145_v54 = vpop.eup %7144  ;;  %7156 = vrcp.f32 %v4888_v0  ;;  %v5235_v61 = vld [vmem:[#allocation4 + $0x148] sm:$0xff]  ;;  %v4945_v0 = vld [vmem:[#allocation5 + $0x40] sm:$0xff] }
 0xad4   : > { %v7147_v49 = vpop.eup %7146  ;;  %7158 = vrcp.f32 %v4893_v35 }
 0xad5   : > { %v7149_v5 = vpop.eup %7148  ;;  %7160 = vrcp.f32 %v4892_v13 }
 0xad6   : > { %v7151_v11 = vpop.eup %7150  ;;  %7162 = vrcp.f32 %v4891_v27  ;;  %v5240_v27 = vld [vmem:[#allocation4 + $0x170] sm:$0xff] }
 0xad7   : > { %v7153_v32 = vpop.eup %7152  ;;  %7164 = vrcp.f32 %v4896_v45  ;;  %v5239_v45 = vld [vmem:[#allocation4 + $0x168] sm:$0xff] }
 0xad8   : > { %v7155_v10 = vpop.eup %7154  ;;  %7166 = vrcp.f32 %v4895_v3  ;;  %v4948_v3 = vld [vmem:[#allocation5 + $0x58] sm:$0xff] }
 0xad9   : > { %5011 = vperm.xlu2 %7121, %v7135_v40   ;;  %v7157_v37 = vpop.eup %7156  ;;  %7168 = vrcp.f32 %v4894_v44 }
 0xada   : > { %5006 = vperm.xlu1 %7120, %v7137_v20   ;;  %v7159_v12 = vpop.eup %7158  ;;  %7170 = vrcp.f32 %v4899_v58 }
 0xadb   : > { %5001 = vperm.xlu0 %7119, %v7139_v42   ;;  %v7161_v39 = vpop.eup %7160  ;;  %7172 = vrcp.f32 %v4898_v41 }
 0xadc   : > { %v7163_v33 = vpop.eup %7162  ;;  %7174 = vrcp.f32 %v4897_v59  ;;  %v5244_v59 = vld [vmem:[#allocation4 + $0x190] sm:$0xff] }
 0xadd   : > { %v7165_v16 = vpop.eup %7164  ;;  %7176 = vrcp.f32 %v4902_v51 }
 0xade   : > { %v7167_v17 = vpop.eup %7166  ;;  %7178 = vrcp.f32 %v4901_v47  ;;  %v5243_v47 = vld [vmem:[#allocation4 + $0x188] sm:$0xff] }
 0xadf   : > { %v7169_v62 = vpop.eup %7168  ;;  %7180 = vrcp.f32 %v4900_v14 }
 0xae0   : > { %v7171_v8 = vpop.eup %7170  ;;  %7182 = vrcp.f32 %v5226_v55 }
 0xae1   : > { %5026 = vperm.xlu2 %7121, %v7141_v21   ;;  %v7173_v15 = vpop.eup %7172  ;;  %7184 = vrcp.f32 %v4904_v25  ;;  %v4951_v25 = vld [vmem:[#allocation5 + $0x70] sm:$0xff] }
 0xae2   : > { %5021 = vperm.xlu1 %7120, %v7143_v1   ;;  %v7175_v28 = vpop.eup %7174  ;;  %7186 = vrcp.f32 %v4903_v57  ;;  %v5238_v1 = vld [vmem:[#allocation4 + $0x160] sm:$0xff] }
 0xae3   : > { %5016 = vperm.xlu0 %7119, %v7145_v54   ;;  %v7177_v9 = vpop.eup %7176  ;;  %7188 = vrcp.f32 %v5229_v38 }
 0xae4   : > { %v7179_v63 = vpop.eup %7178  ;;  %7190 = vrcp.f32 %v5228_v48 }
 0xae5   : > { %v7181_v52 = vpop.eup %7180  ;;  %7192 = vrcp.f32 %v5227_v43  ;;  %v5247_v43 = vld [vmem:[#allocation4 + $0x1a8] sm:$0xff] }
 0xae6   : > { %v7183_v50 = vpop.eup %7182  ;;  %7194 = vrcp.f32 %v5232_v22 }
 0xae7   : > { %v7185_v6 = vpop.eup %7184  ;;  %7196 = vrcp.f32 %v5231_v34  ;;  %v5246_v34 = vld [vmem:[#allocation4 + $0x1a0] sm:$0xff] }
 0xae8   : > { %v7187_v4 = vpop.eup %7186  ;;  %7198 = vrcp.f32 %v5230_v18 }
 0xae9   : > { %5041 = vperm.xlu2 %7121, %v7147_v49   ;;  %v7189_v56 = vpop.eup %7188  ;;  %7200 = vrcp.f32 %v5235_v61  ;;  %v4944_v61 = vld [vmem:[#allocation5 + $0x38] sm:$0xff] }
 0xaea   : > { %5036 = vperm.xlu1 %7120, %v7149_v5   ;;  %v7191_v60 = vpop.eup %7190  ;;  %7202 = vrcp.f32 %v5234_v26 }
 0xaeb   : > { %5031 = vperm.xlu0 %7119, %v7151_v11   ;;  %v7193_v30 = vpop.eup %7192  ;;  %7204 = vrcp.f32 %v5233_v23 }
 0xaec   : > { %v7195_v19 = vpop.eup %7194  ;;  %7206 = vrcp.f32 %v5238_v1 }
 0xaed   : > { %v7197_v20 = vpop.eup %7196  ;;  %7208 = vrcp.f32 %v5237_v31 }
 0xaee   : > { %v7199_v42 = vpop.eup %7198  ;;  %7210 = vrcp.f32 %v5236_v46 }
 0xaef   : > { %v7201_v53 = vpop.eup %7200 }
 0xaf0   : > { %v7203_v49 = vpop.eup %7202 }
 0xaf1   : > { %5056 = vperm.xlu2 %7121, %v7153_v32   ;;  %v7205_v5 = vpop.eup %7204  ;;  %v5241_v32 = vld [vmem:[#allocation4 + $0x178] sm:$0xff] }
 0xaf2   : > { %5051 = vperm.xlu1 %7120, %v7155_v10   ;;  %v7207_v13 = vpop.eup %7206  ;;  %7212 = vrcp.f32 %v5241_v32  ;;  %v4946_v32 = vld [vmem:[#allocation5 + $0x48] sm:$0xff] }
 0xaf3   : > { %5046 = vperm.xlu0 %7119, %v7157_v37   ;;  %v7209_v37 = vpop.eup %7208  ;;  %7214 = vrcp.f32 %v5240_v27 }
 0xaf4   : > { %7216 = vrcp.f32 %v5239_v45  ;;  %v5253_v45 = vld [vmem:[#allocation4 + $0x1d8] sm:$0xff] }
 0xaf5   : > { %7218 = vrcp.f32 %v5244_v59  ;;  %v4960_v59 = vld [vmem:[#allocation5 + $0xb8] sm:$0xff] }
 0xaf6   : > { %7220 = vrcp.f32 %v5243_v47 }
 0xaf9   : > { %5071 = vperm.xlu2 %7121, %v7159_v12   ;;  %v7211_v12 = vpop.eup %7210 }
 0xafa   : > { %5066 = vperm.xlu1 %7120, %v7161_v39   ;;  %v4939_v39 = vld [vmem:[#allocation5 + $0x10] sm:$0xff] }
 0xafb   : > { %5061 = vperm.xlu0 %7119, %v7163_v33   ;;  %v4937_v33 = vld [vmem:[#allocation5] sm:$0xff] }
 0xb01   : > { %5086 = vperm.xlu2 %7121, %v7165_v16  }
 0xb02   : > { %5081 = vperm.xlu1 %7120, %v7167_v17  }
 0xb03   : > { %5076 = vperm.xlu0 %7119, %v7169_v62   ;;  %v7213_v62 = vpop.eup %7212 }
 0xb09   : > { %5101 = vperm.xlu2 %7121, %v7171_v8  }
 0xb0a   : > { %5096 = vperm.xlu1 %7120, %v7173_v15   ;;  %v7215_v15 = vpop.eup %7214 }
 0xb0b   : > { %5091 = vperm.xlu0 %7119, %v7175_v28   ;;  %v5242_v28 = vld [vmem:[#allocation4 + $0x180] sm:$0xff]  ;;  %v7217_v55 = vpop.eup %7216 }
 0xb0c   : > { %7222 = vrcp.f32 %v5242_v28 }
 0xb0d   : > { %7224 = vrcp.f32 %v5247_v43  ;;  %v4963_v43 = vld [vmem:[#allocation5 + $0xd0] sm:$0xff] }
 0xb0e   : > { %7226 = vrcp.f32 %v5246_v34 }
 0xb11   : > { %5116 = vperm.xlu2 %7121, %v7177_v9  }
 0xb12   : > { %5111 = vperm.xlu1 %7120, %v7179_v63   ;;  %v4940_v63 = vld [vmem:[#allocation5 + $0x18] sm:$0xff] }
 0xb13   : > { %5106 = vperm.xlu0 %7119, %v7181_v52   ;;  %v4938_v52 = vld [vmem:[#allocation5 + $0x8] sm:$0xff] }
 0xb19   : > { %5324 = vperm.xlu2 %7121, %v7183_v50  }
 0xb1a   : > { %5126 = vperm.xlu1 %7120, %v7185_v6  }
 0xb1b   : > { %5121 = vperm.xlu0 %7119, %v7187_v4   ;;  %v7219_v4 = vpop.eup %7218 }
 0xb21   : > { %5339 = vperm.xlu2 %7121, %v7189_v56  }
 0xb22   : > { %5334 = vperm.xlu1 %7120, %v7191_v60   ;;  %v7221_v60 = vpop.eup %7220 }
 0xb23   : > { %5329 = vperm.xlu0 %7119, %v7193_v30   ;;  %v4992_v29 = vpop.permute.xlu2 %4991  ;;  %v5245_v30 = vld [vmem:[#allocation4 + $0x198] sm:$0xff] }
 0xb24   : > { %v5133_v36 = vmul.f32 %v4992_v29, %v4941_v2  ;;  %v7223_v2 = vpop.eup %7222  ;;  %7228 = vrcp.f32 %v5245_v30 }
 0xb26   : > { %v5165_v40 = vpack.c.bf16 %v5133_v36, %v5133_v36  ;;  %v4954_v36 = vld [vmem:[#allocation5 + $0x88] sm:$0xff] }
 0xb28   : > { %5198 = vst.msk [vmem:[%s7451_s14 + $0x10] sm:$0xf] %vm5193_vm5, %v5165_v40  ;;  %v4943_v40 = vld [vmem:[#allocation5 + $0x30] sm:$0xff] }
 0xb29   : > { %5354 = vperm.xlu2 %7121, %v7195_v19  }
 0xb2a   : > { %5349 = vperm.xlu1 %7120, %v7197_v20  }
 0xb2b   : > { %5344 = vperm.xlu0 %7119, %v7199_v42   ;;  %v4997_v21 = vpop.permute.xlu2 %4996 }
 0xb2c   : > { %v5134_v24 = vmul.f32 %v4997_v21, %v4942_v7  ;;  %v5250_v7 = vld [vmem:[#allocation4 + $0x1c0] sm:$0xff]  ;;  %v7225_v21 = vpop.eup %7224 }
 0xb2d   : > { %7230 = vrcp.f32 %v5250_v7 }
 0xb2e   : > { %v5166_v54 = vpack.c.bf16 %v5134_v24, %v5134_v24 }
 0xb30   : > { %5199 = vst.msk [vmem:[%s7451_s14 + $0x14] sm:$0xf] %vm5193_vm5, %v5166_v54  ;;  %v7227_v54 = vpop.eup %7226 }
 0xb31   : > { %5369 = vperm.xlu2 %7121, %v7201_v53   ;;  %v5249_v53 = vld [vmem:[#allocation4 + $0x1b8] sm:$0xff]  ;;  %v7229_v46 = vpop.eup %7228 }
 0xb32   : > { %5364 = vperm.xlu1 %7120, %v7203_v49   ;;  %v5248_v49 = vld [vmem:[#allocation4 + $0x1b0] sm:$0xff]  ;;  %7232 = vrcp.f32 %v5249_v53 }
 0xb33   : > { %5359 = vperm.xlu0 %7119, %v7205_v5   ;;  %v5012_v11 = vpop.permute.xlu2 %5011  ;;  %7234 = vrcp.f32 %v5248_v49 }
 0xb34   : > { %v5137_v35 = vmul.f32 %v5012_v11, %v4945_v0  ;;  %v4957_v0 = vld [vmem:[#allocation5 + $0xa0] sm:$0xff]  ;;  %v4947_v11 = vld [vmem:[#allocation5 + $0x50] sm:$0xff]  ;;  %7236 = vrcp.f32 %v5253_v45 }
 0xb36   : > { %v5169_v10 = vpack.c.bf16 %v5137_v35, %v5137_v35 }
 0xb38   : > { %5202 = vst.msk [vmem:[%s7451_s14 + $0x20] sm:$0xf] %vm5193_vm5, %v5169_v10 }
 0xb39   : > { %5384 = vperm.xlu2 %7121, %v7207_v13  }
 0xb3a   : > { %5379 = vperm.xlu1 %7120, %v7209_v37  }
 0xb3b   : > { %5374 = vperm.xlu0 %7119, %v7211_v12   ;;  %v5027_v44 = vpop.permute.xlu2 %5026  ;;  %v7231_v12 = vpop.eup %7230 }
 0xb3c   : > { %v5140_v58 = vmul.f32 %v5027_v44, %v4948_v3  ;;  %v4982_v16 = vpop.permute.xlu1 %4981  ;;  %v5252_v44 = vld [vmem:[#allocation4 + $0x1d0] sm:$0xff] }
 0xb3d   : > { %v5131_v41 = vmul.f32 %v4982_v16, %v4939_v39  ;;  %v4972_v17 = vpop.permute.xlu0 %4971  ;;  %v5251_v16 = vld [vmem:[#allocation4 + $0x1c8] sm:$0xff]  ;;  %7238 = vrcp.f32 %v5252_v44 }
 0xb3e   : > { %v5172_v51 = vpack.c.bf16 %v5140_v58, %v5140_v58  ;;  %v5129_v8 = vmul.f32 %v4972_v17, %v4937_v33  ;;  %v7233_v33 = vpop.eup %7232  ;;  %7240 = vrcp.f32 %v5251_v16 }
 0xb3f   : > { %v5163_v14 = vpack.c.bf16 %v5131_v41, %v5131_v41  ;;  %v7235_v41 = vpop.eup %7234 }
 0xb40   : > { %5205 = vst.msk [vmem:[%s7451_s14 + $0x2c] sm:$0xf] %vm5193_vm5, %v5172_v51  ;;  %v5161_v9 = vpack.c.bf16 %v5129_v8, %v5129_v8  ;;  %v4949_v8 = vld [vmem:[#allocation5 + $0x60] sm:$0xff] }
 0xb41   : > { %5196 = vst.msk [vmem:[%s7451_s14 + $0x8] sm:$0xf] %vm5193_vm5, %v5163_v14  ;;  %5399 = vperm.xlu2 %7121, %v7213_v62   ;;  %v4950_v62 = vld [vmem:[#allocation5 + $0x68] sm:$0xff] }
 0xb42   : > { %5194 = vst.msk [vmem:[%s7451_s14] sm:$0xf] %vm5193_vm5, %v5161_v9  ;;  %5394 = vperm.xlu1 %7120, %v7215_v15   ;;  %v7237_v9 = vpop.eup %7236 }
 0xb43   : > { %5389 = vperm.xlu0 %7119, %v7217_v55   ;;  %v5042_v57 = vpop.permute.xlu2 %5041  ;;  %v5256_v55 = vld [vmem:[#allocation4 + $0x1f0] sm:$0xff] }
 0xb44   : > { %v5143_v38 = vmul.f32 %v5042_v57, %v4951_v25  ;;  %v4987_v50 = vpop.permute.xlu1 %4986  ;;  %v5255_v57 = vld [vmem:[#allocation4 + $0x1e8] sm:$0xff]  ;;  %7242 = vrcp.f32 %v5256_v55  ;;  %v4965_v55 = vld [vmem:[#allocation5 + $0xe0] sm:$0xff] }
 0xb45   : > { %v5132_v48 = vmul.f32 %v4987_v50, %v4940_v63  ;;  %v4977_v6 = vpop.permute.xlu0 %4976  ;;  %v5254_v50 = vld [vmem:[#allocation4 + $0x1e0] sm:$0xff]  ;;  %7244 = vrcp.f32 %v5255_v57 }
 0xb46   : > { %v5175_v22 = vpack.c.bf16 %v5143_v38, %v5143_v38  ;;  %v5130_v56 = vmul.f32 %v4977_v6, %v4938_v52  ;;  %v7239_v52 = vpop.eup %7238  ;;  %7246 = vrcp.f32 %v5254_v50 }
 0xb47   : > { %v5164_v18 = vpack.c.bf16 %v5132_v48, %v5132_v48  ;;  %v7241_v48 = vpop.eup %7240 }
 0xb48   : > { %5208 = vst.msk [vmem:[%s7451_s14 + $0x38] sm:$0xf] %vm5193_vm5, %v5175_v22  ;;  %v5162_v29 = vpack.c.bf16 %v5130_v56, %v5130_v56  ;;  %v4952_v56 = vld [vmem:[#allocation5 + $0x78] sm:$0xff] }
 0xb49   : > { %5197 = vst.msk [vmem:[%s7451_s14 + $0xc] sm:$0xf] %vm5193_vm5, %v5164_v18  ;;  %5414 = vperm.xlu2 %7121, %v7219_v4   ;;  %v4953_v4 = vld [vmem:[#allocation5 + $0x80] sm:$0xff] }
 0xb4a   : > { %5195 = vst.msk [vmem:[%s7451_s14 + $0x4] sm:$0xf] %vm5193_vm5, %v5162_v29  ;;  %5409 = vperm.xlu1 %7120, %v7221_v60  }
 0xb4b   : > { %5404 = vperm.xlu0 %7119, %v7223_v2   ;;  %v5057_v19 = vpop.permute.xlu2 %5056  ;;  %v7243_v2 = vpop.eup %7242 }
 0xb4c   : > { %v5146_v26 = vmul.f32 %v5057_v19, %v4954_v36  ;;  %v5007_v20 = vpop.permute.xlu1 %5006 }
 0xb4d   : > { %v5136_v23 = vmul.f32 %v5007_v20, %v4944_v61  ;;  %v5002_v42 = vpop.permute.xlu0 %5001  ;;  %v7245_v61 = vpop.eup %7244 }
 0xb4e   : > { %v5178_v24 = vpack.c.bf16 %v5146_v26, %v5146_v26  ;;  %v5135_v1 = vmul.f32 %v5002_v42, %v4943_v40  ;;  %v5257_v40 = vld [vmem:[#allocation4 + $0x1f8] sm:$0xff]  ;;  %v7247_v26 = vpop.eup %7246 }
 0xb4f   : > { %v5168_v31 = vpack.c.bf16 %v5136_v23, %v5136_v23  ;;  %v4966_v23 = vld [vmem:[#allocation5 + $0xe8] sm:$0xff]  ;;  %v4956_v42 = vld [vmem:[#allocation5 + $0x98] sm:$0xff]  ;;  %7248 = vrcp.f32 %v5257_v40  ;;  %v5302_v40 = vld [vmem:[#allocation5 + $0x160] sm:$0xff] }
 0xb50   : > { %5211 = vst.msk [vmem:[%s7451_s14 + $0x44] sm:$0xf] %vm5193_vm5, %v5178_v24  ;;  %v5167_v5 = vpack.c.bf16 %v5135_v1, %v5135_v1 }
 0xb51   : > { %5201 = vst.msk [vmem:[%s7451_s14 + $0x1c] sm:$0xf] %vm5193_vm5, %v5168_v31  ;;  %5429 = vperm.xlu2 %7121, %v7225_v21   ;;  %v4955_v21 = vld [vmem:[#allocation5 + $0x90] sm:$0xff] }
 0xb52   : > { %5200 = vst.msk [vmem:[%s7451_s14 + $0x18] sm:$0xf] %vm5193_vm5, %v5167_v5  ;;  %5424 = vperm.xlu1 %7120, %v7227_v54  }
 0xb53   : > { %5419 = vperm.xlu0 %7119, %v7229_v46   ;;  %v5072_v35 = vpop.permute.xlu2 %5071 }
 0xb54   : > { %v5149_v13 = vmul.f32 %v5072_v35, %v4957_v0  ;;  %v5022_v10 = vpop.permute.xlu1 %5021  ;;  %v4959_v35 = vld [vmem:[#allocation5 + $0xb0] sm:$0xff] }
 0xb55   : > { %v5139_v27 = vmul.f32 %v5022_v10, %v4947_v11  ;;  %v5017_v37 = vpop.permute.xlu0 %5016  ;;  %v7249_v5 = vpop.eup %7248  ;;  %v5290_v11 = vld [vmem:[#allocation5 + $0x100] sm:$0xff] }
 0xb56   : > { %v5181_v3 = vpack.c.bf16 %v5149_v13, %v5149_v13  ;;  %v5138_v39 = vmul.f32 %v5017_v37, %v4946_v32  ;;  %v4958_v13 = vld [vmem:[#allocation5 + $0xa8] sm:$0xff] }
 0xb57   : > { %v5171_v58 = vpack.c.bf16 %v5139_v27, %v5139_v27 }
 0xb58   : > { %5214 = vst.msk [vmem:[%s7451_s14 + $0x50] sm:$0xf] %vm5193_vm5, %v5181_v3  ;;  %v5170_v17 = vpack.c.bf16 %v5138_v39, %v5138_v39 }
 0xb59   : > { %5204 = vst.msk [vmem:[%s7451_s14 + $0x28] sm:$0xf] %vm5193_vm5, %v5171_v58  ;;  %5444 = vperm.xlu2 %7121, %v7231_v12   ;;  %v4962_v58 = vld [vmem:[#allocation5 + $0xc8] sm:$0xff] }
 0xb5a   : > { %5203 = vst.msk [vmem:[%s7451_s14 + $0x24] sm:$0xf] %vm5193_vm5, %v5170_v17  ;;  %5439 = vperm.xlu1 %7120, %v7233_v33   ;;  %v5293_v33 = vld [vmem:[#allocation5 + $0x118] sm:$0xff] }
 0xb5b   : > { %5434 = vperm.xlu0 %7119, %v7235_v41   ;;  %v5087_v51 = vpop.permute.xlu2 %5086  ;;  %v4961_v41 = vld [vmem:[#allocation5 + $0xc0] sm:$0xff] }
 0xb5c   : > { %v5152_v47 = vmul.f32 %v5087_v51, %v4960_v59  ;;  %v5037_v15 = vpop.permute.xlu1 %5036 }
 0xb5d   : > { %v5142_v14 = vmul.f32 %v5037_v15, %v4950_v62  ;;  %v5032_v28 = vpop.permute.xlu0 %5031 }
 0xb5e   : > { %v5184_v25 = vpack.c.bf16 %v5152_v47, %v5152_v47  ;;  %v5141_v63 = vmul.f32 %v5032_v28, %v4949_v8  ;;  %v5296_v28 = vld [vmem:[#allocation5 + $0x130] sm:$0xff] }
 0xb5f   : > { %v5174_v38 = vpack.c.bf16 %v5142_v14, %v5142_v14 }
 0xb60   : > { %5217 = vst.msk [vmem:[%s7451_s14 + $0x5c] sm:$0xf] %vm5193_vm5, %v5184_v25  ;;  %v5173_v6 = vpack.c.bf16 %v5141_v63, %v5141_v63  ;;  %v4964_v25 = vld [vmem:[#allocation5 + $0xd8] sm:$0xff] }
 0xb61   : > { %5207 = vst.msk [vmem:[%s7451_s14 + $0x34] sm:$0xf] %vm5193_vm5, %v5174_v38  ;;  %5459 = vperm.xlu2 %7121, %v7237_v9  }
 0xb62   : > { %5206 = vst.msk [vmem:[%s7451_s14 + $0x30] sm:$0xf] %vm5193_vm5, %v5173_v6  ;;  %5454 = vperm.xlu1 %7120, %v7239_v52  }
 0xb63   : > { %5449 = vperm.xlu0 %7119, %v7241_v48   ;;  %v5102_v22 = vpop.permute.xlu2 %5101 }
 0xb64   : > { %v5155_v34 = vmul.f32 %v5102_v22, %v4963_v43  ;;  %v5052_v60 = vpop.permute.xlu1 %5051  ;;  %v4968_v22 = vld [vmem:[#allocation5 + $0xf8] sm:$0xff] }
 0xb65   : > { %v5145_v18 = vmul.f32 %v5052_v60, %v4953_v4  ;;  %v5047_v30 = vpop.permute.xlu0 %5046  ;;  %v5299_v4 = vld [vmem:[#allocation5 + $0x148] sm:$0xff] }
 0xb66   : > { %v5187_v29 = vpack.c.bf16 %v5155_v34, %v5155_v34  ;;  %v5144_v36 = vmul.f32 %v5047_v30, %v4952_v56  ;;  %v4967_v34 = vld [vmem:[#allocation5 + $0xf0] sm:$0xff] }
 0xb67   : > { %v5177_v19 = vpack.c.bf16 %v5145_v18, %v5145_v18 }
 0xb68   : > { %5220 = vst.msk [vmem:[%s7451_s14 + $0x68] sm:$0xf] %vm5193_vm5, %v5187_v29  ;;  %v5176_v20 = vpack.c.bf16 %v5144_v36, %v5144_v36 }
 0xb69   : > { %5210 = vst.msk [vmem:[%s7451_s14 + $0x40] sm:$0xf] %vm5193_vm5, %v5177_v19  ;;  %5474 = vperm.xlu2 %7121, %v7243_v2  }
 0xb6a   : > { %5209 = vst.msk [vmem:[%s7451_s14 + $0x3c] sm:$0xf] %vm5193_vm5, %v5176_v20  ;;  %5469 = vperm.xlu1 %7120, %v7245_v61  }
 0xb6b   : > { %5464 = vperm.xlu0 %7119, %v7247_v26   ;;  %v5117_v7 = vpop.permute.xlu2 %5116  ;;  %v5292_v26 = vld [vmem:[#allocation5 + $0x110] sm:$0xff] }
 0xb6c   : > { %v5158_v24 = vmul.f32 %v5117_v7, %v4966_v23  ;;  %v5067_v1 = vpop.permute.xlu1 %5066  ;;  %v5291_v23 = vld [vmem:[#allocation5 + $0x108] sm:$0xff] }
 0xb6d   : > { %v5148_v53 = vmul.f32 %v5067_v1, %v4956_v42  ;;  %v5062_v54 = vpop.permute.xlu0 %5061 }
 0xb6e   : > { %v5190_v31 = vpack.c.bf16 %v5158_v24, %v5158_v24  ;;  %v5147_v49 = vmul.f32 %v5062_v54, %v4955_v21 }
 0xb6f   : > { %v5180_v46 = vpack.c.bf16 %v5148_v53, %v5148_v53 }
 0xb70   : > { %5223 = vst.msk [vmem:[%s7451_s14 + $0x74] sm:$0xf] %vm5193_vm5, %v5190_v31  ;;  %v5179_v0 = vpack.c.bf16 %v5147_v49, %v5147_v49  ;;  %v5305_v49 = vld [vmem:[#allocation5 + $0x178] sm:$0xff] }
 0xb71   : > { %5213 = vst.msk [vmem:[%s7451_s14 + $0x4c] sm:$0xf] %vm5193_vm5, %v5180_v46  ;;  %v5295_v46 = vld [vmem:[#allocation5 + $0x128] sm:$0xff] }
 0xb72   : > { %5212 = vst.msk [vmem:[%s7451_s14 + $0x48] sm:$0xf] %vm5193_vm5, %v5179_v0  ;;  %v5294_v0 = vld [vmem:[#allocation5 + $0x120] sm:$0xff] }
 0xb73   : > { %5479 = vperm.xlu0 %7119, %v7249_v5   ;;  %v5325_v32 = vpop.permute.xlu2 %5324 }
 0xb74   : > { %v5482_v10 = vmul.f32 %v5325_v32, %v5290_v11  ;;  %v5082_v27 = vpop.permute.xlu1 %5081 }
 0xb75   : > { %v5151_v37 = vmul.f32 %v5082_v27, %v4959_v35  ;;  %v5077_v45 = vpop.permute.xlu0 %5076 }
 0xb76   : > { %v5514_v12 = vpack.c.bf16 %v5482_v10, %v5482_v10  ;;  %v5150_v3 = vmul.f32 %v5077_v45, %v4958_v13 }
 0xb77   : > { %v5183_v39 = vpack.c.bf16 %v5151_v37, %v5151_v37 }
 0xb78   : > { %v5182_v44 = vpack.c.bf16 %v5150_v3, %v5150_v3  ;;  %5578 = vrot.lane.b32.xlu1 %v5514_v12, %s7334_s28  ;;  %v5308_v12 = vld [vmem:[#allocation5 + $0x190] sm:$0xff]  ;;  %v5298_v3 = vld [vmem:[#allocation5 + $0x140] sm:$0xff] }
 0xb79   : > { %5216 = vst.msk [vmem:[%s7451_s14 + $0x58] sm:$0xf] %vm5193_vm5, %v5183_v39 }
 0xb7a   : > { %5215 = vst.msk [vmem:[%s7451_s14 + $0x54] sm:$0xf] %vm5193_vm5, %v5182_v44  ;;  %v5297_v44 = vld [vmem:[#allocation5 + $0x138] sm:$0xff] }
 0xb7b   : > { %v5340_v16 = vpop.permute.xlu2 %5339 }
 0xb7c   : > { %v5485_v17 = vmul.f32 %v5340_v16, %v5293_v33  ;;  %v5097_v59 = vpop.permute.xlu1 %5096 }
 0xb7d   : > { %v5154_v62 = vmul.f32 %v5097_v59, %v4962_v58  ;;  %v5092_v51 = vpop.permute.xlu0 %5091 }
 0xb7e   : > { %v5517_v8 = vpack.c.bf16 %v5485_v17, %v5485_v17  ;;  %v5153_v47 = vmul.f32 %v5092_v51, %v4961_v41 }
 0xb7f   : > { %v5186_v15 = vpack.c.bf16 %v5154_v62, %v5154_v62 }
 0xb80   : > { %v5185_v14 = vpack.c.bf16 %v5153_v47, %v5153_v47  ;;  %5584 = vrot.lane.b32.xlu1 %v5517_v8, %s7334_s28  ;;  %v5311_v8 = vld [vmem:[#allocation5 + $0x1a8] sm:$0xff]  ;;  %v5301_v47 = vld [vmem:[#allocation5 + $0x158] sm:$0xff] }
 0xb81   : > { %5219 = vst.msk [vmem:[%s7451_s14 + $0x64] sm:$0xf] %vm5193_vm5, %v5186_v15 }
 0xb82   : > { %5218 = vst.msk [vmem:[%s7451_s14 + $0x60] sm:$0xf] %vm5193_vm5, %v5185_v14  ;;  %v5300_v14 = vld [vmem:[#allocation5 + $0x150] sm:$0xff] }
 0xb83   : > { %v5355_v9 = vpop.permute.xlu2 %5354 }
 0xb84   : > { %v5488_v63 = vmul.f32 %v5355_v9, %v5296_v28  ;;  %v5112_v57 = vpop.permute.xlu1 %5111 }
 0xb85   : > { %v5157_v52 = vmul.f32 %v5112_v57, %v4965_v55  ;;  %v5107_v38 = vpop.permute.xlu0 %5106 }
 0xb86   : > { %v5520_v50 = vpack.c.bf16 %v5488_v63, %v5488_v63  ;;  %v5156_v48 = vmul.f32 %v5107_v38, %v4964_v25 }
 0xb87   : > { %v5189_v6 = vpack.c.bf16 %v5157_v52, %v5157_v52 }
 0xb88   : > { %v5188_v43 = vpack.c.bf16 %v5156_v48, %v5156_v48  ;;  %5590 = vrot.lane.b32.xlu1 %v5520_v50, %s7334_s28  ;;  %v5314_v50 = vld [vmem:[#allocation5 + $0x1c0] sm:$0xff]  ;;  %v5304_v48 = vld [vmem:[#allocation5 + $0x170] sm:$0xff] }
 0xb89   : > { %5222 = vst.msk [vmem:[%s7451_s14 + $0x70] sm:$0xf] %vm5193_vm5, %v5189_v6 }
 0xb8a   : > { %5221 = vst.msk [vmem:[%s7451_s14 + $0x6c] sm:$0xf] %vm5193_vm5, %v5188_v43  ;;  %v5303_v43 = vld [vmem:[#allocation5 + $0x168] sm:$0xff] }
 0xb8b   : > { %v5370_v56 = vpop.permute.xlu2 %5369 }
 0xb8c   : > { %v5491_v60 = vmul.f32 %v5370_v56, %v5299_v4  ;;  %v5127_v18 = vpop.permute.xlu1 %5126 }
 0xb8d   : > { %v5160_v30 = vmul.f32 %v5127_v18, %v4968_v22  ;;  %v5122_v2 = vpop.permute.xlu0 %5121 }
 0xb8e   : > { %v5523_v29 = vpack.c.bf16 %v5491_v60, %v5491_v60  ;;  %v5159_v36 = vmul.f32 %v5122_v2, %v4967_v34 }
 0xb8f   : > { %v5192_v61 = vpack.c.bf16 %v5160_v30, %v5160_v30 }
 0xb90   : > { %v5191_v19 = vpack.c.bf16 %v5159_v36, %v5159_v36  ;;  %5596 = vrot.lane.b32.xlu1 %v5523_v29, %s7334_s28  ;;  %v5317_v29 = vld [vmem:[#allocation5 + $0x1d8] sm:$0xff]  ;;  %v5307_v36 = vld [vmem:[#allocation5 + $0x188] sm:$0xff] }
 0xb91   : > { %5225 = vst.msk [vmem:[%s7451_s14 + $0x7c] sm:$0xf] %vm5193_vm5, %v5192_v61 }
 0xb92   : > { %5224 = vst.msk [vmem:[%s7451_s14 + $0x78] sm:$0xf] %vm5193_vm5, %v5191_v19  ;;  %v5306_v19 = vld [vmem:[#allocation5 + $0x180] sm:$0xff] }
 0xb93   : > { %v5385_v20 = vpop.permute.xlu2 %5384 }
 0xb94   : > { %v5494_v42 = vmul.f32 %v5385_v20, %v5302_v40  ;;  %v5335_v7 = vpop.permute.xlu1 %5334 }
 0xb95   : > { %v5484_v21 = vmul.f32 %v5335_v7, %v5292_v26  ;;  %v5330_v24 = vpop.permute.xlu0 %5329 }
 0xb96   : > { %v5526_v1 = vpack.c.bf16 %v5494_v42, %v5494_v42  ;;  %v5483_v53 = vmul.f32 %v5330_v24, %v5291_v23 }
 0xb97   : > { %v5516_v54 = vpack.c.bf16 %v5484_v21, %v5484_v21 }
 0xb98   : > { %v5515_v31 = vpack.c.bf16 %v5483_v53, %v5483_v53  ;;  %5602 = vrot.lane.b32.xlu1 %v5526_v1, %s7334_s28  ;;  %v5320_v1 = vld [vmem:[#allocation5 + $0x1f0] sm:$0xff]  ;;  %v5310_v53 = vld [vmem:[#allocation5 + $0x1a0] sm:$0xff] }
 0xb99   : > { %5582 = vrot.lane.b32.xlu0 %v5516_v54, %s7334_s28 }
 0xb9a   : > { %5580 = vrot.lane.b32.xlu2 %v5515_v31, %s7334_s28  ;;  %v5309_v31 = vld [vmem:[#allocation5 + $0x198] sm:$0xff] }
 0xb9b   : > { %v5400_v5 = vpop.permute.xlu2 %5399 }
 0xb9c   : > { %v5497_v11 = vmul.f32 %v5400_v5, %v5305_v49  ;;  %v5350_v35 = vpop.permute.xlu1 %5349 }
 0xb9d   : > { %v5487_v32 = vmul.f32 %v5350_v35, %v5295_v46  ;;  %v5345_v13 = vpop.permute.xlu0 %5344 }
 0xb9e   : > { %v5529_v10 = vpack.c.bf16 %v5497_v11, %v5497_v11  ;;  %v5486_v27 = vmul.f32 %v5345_v13, %v5294_v0 }
 0xb9f   : > { %v5519_v37 = vpack.c.bf16 %v5487_v32, %v5487_v32 }
 0xba0   : > { %v5518_v45 = vpack.c.bf16 %v5486_v27, %v5486_v27  ;;  %5608 = vrot.lane.b32.xlu1 %v5529_v10, %s7334_s28  ;;  %v5313_v10 = vld [vmem:[#allocation5 + $0x1b8] sm:$0xff]  ;;  %v5312_v27 = vld [vmem:[#allocation5 + $0x1b0] sm:$0xff] }
 0xba1   : > { %5588 = vrot.lane.b32.xlu0 %v5519_v37, %s7334_s28 }
 0xba2   : > { %5586 = vrot.lane.b32.xlu2 %v5518_v45, %s7334_s28 }
 0xba3   : > { %v5415_v39 = vpop.permute.xlu2 %5414 }
 0xba4   : > { %v5500_v33 = vmul.f32 %v5415_v39, %v5308_v12  ;;  %v5365_v58 = vpop.permute.xlu1 %5364 }
 0xba5   : > { %v5490_v16 = vmul.f32 %v5365_v58, %v5298_v3  ;;  %v5360_v41 = vpop.permute.xlu0 %5359  ;;  %v5315_v58 = vld [vmem:[#allocation5 + $0x1c8] sm:$0xff] }
 0xba6   : > { %v5532_v17 = vpack.c.bf16 %v5500_v33, %v5500_v33  ;;  %v5489_v59 = vmul.f32 %v5360_v41, %v5297_v44  ;;  %v5316_v33 = vld [vmem:[#allocation5 + $0x1d0] sm:$0xff] }
 0xba7   : > { %v5522_v62 = vpack.c.bf16 %v5490_v16, %v5490_v16 }
 0xba8   : > { %v5521_v51 = vpack.c.bf16 %v5489_v59, %v5489_v59  ;;  %5614 = vrot.lane.b32.xlu1 %v5532_v17, %s7334_s28 }
 0xba9   : > { %5594 = vrot.lane.b32.xlu0 %v5522_v62, %s7334_s28 }
 0xbaa   : > { %5592 = vrot.lane.b32.xlu2 %v5521_v51, %s7334_s28 }
 0xbab   : > { %v5430_v15 = vpop.permute.xlu2 %5429 }
 0xbac   : > { %v5503_v28 = vmul.f32 %v5430_v15, %v5311_v8  ;;  %v5380_v55 = vpop.permute.xlu1 %5379  ;;  %v5319_v8 = vld [vmem:[#allocation5 + $0x1e8] sm:$0xff] }
 0xbad   : > { %v5493_v9 = vmul.f32 %v5380_v55, %v5301_v47  ;;  %v5375_v25 = vpop.permute.xlu0 %5374  ;;  %v5318_v47 = vld [vmem:[#allocation5 + $0x1e0] sm:$0xff] }
 0xbae   : > { %v5535_v63 = vpack.c.bf16 %v5503_v28, %v5503_v28  ;;  %v5492_v57 = vmul.f32 %v5375_v25, %v5300_v14 }
 0xbaf   : > { %v5525_v52 = vpack.c.bf16 %v5493_v9, %v5493_v9 }
 0xbb0   : > { %v5524_v38 = vpack.c.bf16 %v5492_v57, %v5492_v57  ;;  %5620 = vrot.lane.b32.xlu1 %v5535_v63, %s7334_s28  ;;  %v5321_v63 = vld [vmem:[#allocation5 + $0x1f8] sm:$0xff] }
 0xbb1   : > { %5600 = vrot.lane.b32.xlu0 %v5525_v52, %s7334_s28 }
 0xbb2   : > { %5598 = vrot.lane.b32.xlu2 %v5524_v38, %s7334_s28 }
 0xbb3   : > { %v5445_v6 = vpop.permute.xlu2 %5444 }
 0xbb4   : > { %v5506_v4 = vmul.f32 %v5445_v6, %v5314_v50  ;;  %v5395_v22 = vpop.permute.xlu1 %5394 }
 0xbb5   : > { %v5496_v56 = vmul.f32 %v5395_v22, %v5304_v48  ;;  %v5390_v34 = vpop.permute.xlu0 %5389 }
 0xbb6   : > { %v5538_v60 = vpack.c.bf16 %v5506_v4, %v5506_v4  ;;  %v5495_v18 = vmul.f32 %v5390_v34, %v5303_v43 }
 0xbb7   : > { %v5528_v30 = vpack.c.bf16 %v5496_v56, %v5496_v56 }
 0xbb8   : > { %v5527_v2 = vpack.c.bf16 %v5495_v18, %v5495_v18  ;;  %5626 = vrot.lane.b32.xlu1 %v5538_v60, %s7334_s28 }
 0xbb9   : > { %5606 = vrot.lane.b32.xlu0 %v5528_v30, %s7334_s28 }
 0xbba   : > { %5604 = vrot.lane.b32.xlu2 %v5527_v2, %s7334_s28 }
 0xbbb   : > { %v5460_v61 = vpop.permute.xlu2 %5459 }
 0xbbc   : > { %v5509_v40 = vmul.f32 %v5460_v61, %v5317_v29  ;;  %v5410_v26 = vpop.permute.xlu1 %5409 }
 0xbbd   : > { %v5499_v20 = vmul.f32 %v5410_v26, %v5307_v36  ;;  %v5405_v23 = vpop.permute.xlu0 %5404 }
 0xbbe   : > { %v5541_v42 = vpack.c.bf16 %v5509_v40, %v5509_v40  ;;  %v5498_v7 = vmul.f32 %v5405_v23, %v5306_v19 }
 0xbbf   : > { %v5531_v21 = vpack.c.bf16 %v5499_v20, %v5499_v20 }
 0xbc0   : > { %v5530_v24 = vpack.c.bf16 %v5498_v7, %v5498_v7  ;;  %5632 = vrot.lane.b32.xlu1 %v5541_v42, %s7334_s28 }
 0xbc1   : > { %5612 = vrot.lane.b32.xlu0 %v5531_v21, %s7334_s28 }
 0xbc2   : > { %5610 = vrot.lane.b32.xlu2 %v5530_v24, %s7334_s28 }
 0xbc3   : > { %v5475_v54 = vpop.permute.xlu2 %5474 }
 0xbc4   : > { %v5512_v49 = vmul.f32 %v5475_v54, %v5320_v1  ;;  %v5425_v46 = vpop.permute.xlu1 %5424 }
 0xbc5   : > { %v5502_v5 = vmul.f32 %v5425_v46, %v5310_v53  ;;  %v5420_v0 = vpop.permute.xlu0 %5419 }
 0xbc6   : > { %v5544_v11 = vpack.c.bf16 %v5512_v49, %v5512_v49  ;;  %v5501_v35 = vmul.f32 %v5420_v0, %v5309_v31 }
 0xbc7   : > { %v5534_v32 = vpack.c.bf16 %v5502_v5, %v5502_v5 }
 0xbc8   : > { %v5533_v13 = vpack.c.bf16 %v5501_v35, %v5501_v35  ;;  %5638 = vrot.lane.b32.xlu1 %v5544_v11, %s7334_s28 }
 0xbc9   : > { %5618 = vrot.lane.b32.xlu0 %v5534_v32, %s7334_s28 }
 0xbca   : > { %5616 = vrot.lane.b32.xlu2 %v5533_v13, %s7334_s28 }
 0xbcc   : > { %v5440_v37 = vpop.permute.xlu1 %5439 }
 0xbcd   : > { %v5505_v45 = vmul.f32 %v5440_v37, %v5313_v10  ;;  %v5435_v12 = vpop.permute.xlu0 %5434 }
 0xbce   : > { %v5504_v3 = vmul.f32 %v5435_v12, %v5312_v27 }
 0xbcf   : > { %v5537_v39 = vpack.c.bf16 %v5505_v45, %v5505_v45 }
 0xbd0   : > { %v5536_v44 = vpack.c.bf16 %v5504_v3, %v5504_v3 }
 0xbd1   : > { %5624 = vrot.lane.b32.xlu0 %v5537_v39, %s7334_s28 }
 0xbd2   : > { %5622 = vrot.lane.b32.xlu2 %v5536_v44, %s7334_s28 }
 0xbd4   : > { %v5455_v16 = vpop.permute.xlu1 %5454 }
 0xbd5   : > { %v5508_v41 = vmul.f32 %v5455_v16, %v5316_v33  ;;  %v5450_v17 = vpop.permute.xlu0 %5449 }
 0xbd6   : > { %v5507_v59 = vmul.f32 %v5450_v17, %v5315_v58 }
 0xbd7   : > { %v5540_v62 = vpack.c.bf16 %v5508_v41, %v5508_v41 }
 0xbd8   : > { %v5539_v51 = vpack.c.bf16 %v5507_v59, %v5507_v59 }
 0xbd9   : > { %5630 = vrot.lane.b32.xlu0 %v5540_v62, %s7334_s28 }
 0xbda   : > { %5628 = vrot.lane.b32.xlu2 %v5539_v51, %s7334_s28 }
 0xbdc   : > { %v5470_v15 = vpop.permute.xlu1 %5469 }
 0xbdd   : > { %v5511_v14 = vmul.f32 %v5470_v15, %v5319_v8  ;;  %v5465_v28 = vpop.permute.xlu0 %5464 }
 0xbde   : > { %v5510_v55 = vmul.f32 %v5465_v28, %v5318_v47 }
 0xbdf   : > { %v5543_v9 = vpack.c.bf16 %v5511_v14, %v5511_v14 }
 0xbe0   : > { %v5542_v25 = vpack.c.bf16 %v5510_v55, %v5510_v55 }
 0xbe1   : > { %5636 = vrot.lane.b32.xlu0 %v5543_v9, %s7334_s28 }
 0xbe2   : > { %5634 = vrot.lane.b32.xlu2 %v5542_v25, %s7334_s28 }
 0xbe5   : > { %v5480_v57 = vpop.permute.xlu0 %5479 }
 0xbe6   : > { %v5513_v52 = vmul.f32 %v5480_v57, %v5321_v63 }
 0xbe8   : > { %v5545_v38 = vpack.c.bf16 %v5513_v52, %v5513_v52 }
 0xbea   : > { %5640 = vrot.lane.b32.xlu2 %v5545_v38, %s7334_s28  ;;  %v5579_v50 = vpop.permute.xlu1 %5578 }
 0xbeb   : > { %5675 = vst.msk [vmem:[%s7451_s14] sm:$0xf] %vm5674_vm6, %v5579_v50 }
 0xbf2   : > { %v5585_v48 = vpop.permute.xlu1 %5584 }
 0xbf3   : > { %5678 = vst.msk [vmem:[%s7451_s14 + $0xc] sm:$0xf] %vm5674_vm6, %v5585_v48 }
 0xbf4   : > { %v5581_v6 = vpop.permute.xlu2 %5580 }
 0xbf5   : > { %5676 = vst.msk [vmem:[%s7451_s14 + $0x4] sm:$0xf] %vm5674_vm6, %v5581_v6 }
 0xbfa   : > { %v5591_v43 = vpop.permute.xlu1 %5590 }
 0xbfb   : > { %5681 = vst.msk [vmem:[%s7451_s14 + $0x18] sm:$0xf] %vm5674_vm6, %v5591_v43 }
 0xbfc   : > { %v5587_v4 = vpop.permute.xlu2 %5586 }
 0xbfd   : > { %5679 = vst.msk [vmem:[%s7451_s14 + $0x10] sm:$0xf] %vm5674_vm6, %v5587_v4 }
 0xc02   : > { %v5597_v22 = vpop.permute.xlu1 %5596 }
 0xc03   : > { %5684 = vst.msk [vmem:[%s7451_s14 + $0x24] sm:$0xf] %vm5674_vm6, %v5597_v22 }
 0xc04   : > { %v5593_v56 = vpop.permute.xlu2 %5592 }
 0xc05   : > { %5682 = vst.msk [vmem:[%s7451_s14 + $0x1c] sm:$0xf] %vm5674_vm6, %v5593_v56 }
 0xc0a   : > { %v5603_v34 = vpop.permute.xlu1 %5602 }
 0xc0b   : > { %5687 = vst.msk [vmem:[%s7451_s14 + $0x30] sm:$0xf] %vm5674_vm6, %v5603_v34  ;;  %v5583_v60 = vpop.permute.xlu0 %5582 }
 0xc0c   : > { %v5599_v18 = vpop.permute.xlu2 %5598  ;;  %5677 = vst.msk [vmem:[%s7451_s14 + $0x8] sm:$0xf] %vm5674_vm6, %v5583_v60 }
 0xc0d   : > { %5685 = vst.msk [vmem:[%s7451_s14 + $0x28] sm:$0xf] %vm5674_vm6, %v5599_v18 }
 0xc12   : > { %v5609_v30 = vpop.permute.xlu1 %5608 }
 0xc13   : > { %5690 = vst.msk [vmem:[%s7451_s14 + $0x3c] sm:$0xf] %vm5674_vm6, %v5609_v30  ;;  %v5589_v2 = vpop.permute.xlu0 %5588 }
 0xc14   : > { %v5605_v29 = vpop.permute.xlu2 %5604  ;;  %5680 = vst.msk [vmem:[%s7451_s14 + $0x14] sm:$0xf] %vm5674_vm6, %v5589_v2 }
 0xc15   : > { %5688 = vst.msk [vmem:[%s7451_s14 + $0x34] sm:$0xf] %vm5674_vm6, %v5605_v29 }
 0xc1a   : > { %v5615_v36 = vpop.permute.xlu1 %5614 }
 0xc1b   : > { %5693 = vst.msk [vmem:[%s7451_s14 + $0x48] sm:$0xf] %vm5674_vm6, %v5615_v36  ;;  %v5595_v61 = vpop.permute.xlu0 %5594 }
 0xc1c   : > { %v5611_v19 = vpop.permute.xlu2 %5610  ;;  %5683 = vst.msk [vmem:[%s7451_s14 + $0x20] sm:$0xf] %vm5674_vm6, %v5595_v61 }
 0xc1d   : > { %5691 = vst.msk [vmem:[%s7451_s14 + $0x40] sm:$0xf] %vm5674_vm6, %v5611_v19 }
 0xc22   : > { %v5621_v40 = vpop.permute.xlu1 %5620 }
 0xc23   : > { %5696 = vst.msk [vmem:[%s7451_s14 + $0x54] sm:$0xf] %vm5674_vm6, %v5621_v40  ;;  %v5601_v26 = vpop.permute.xlu0 %5600 }
 0xc24   : > { %v5617_v20 = vpop.permute.xlu2 %5616  ;;  %5686 = vst.msk [vmem:[%s7451_s14 + $0x2c] sm:$0xf] %vm5674_vm6, %v5601_v26 }
 0xc25   : > { %5694 = vst.msk [vmem:[%s7451_s14 + $0x4c] sm:$0xf] %vm5674_vm6, %v5617_v20 }
 0xc2a   : > { %v5627_v23 = vpop.permute.xlu1 %5626 }
 0xc2b   : > { %5699 = vst.msk [vmem:[%s7451_s14 + $0x60] sm:$0xf] %vm5674_vm6, %v5627_v23  ;;  %v5607_v42 = vpop.permute.xlu0 %5606 }
 0xc2c   : > { %v5623_v7 = vpop.permute.xlu2 %5622  ;;  %5689 = vst.msk [vmem:[%s7451_s14 + $0x38] sm:$0xf] %vm5674_vm6, %v5607_v42 }
 0xc2d   : > { %5697 = vst.msk [vmem:[%s7451_s14 + $0x58] sm:$0xf] %vm5674_vm6, %v5623_v7 }
 0xc32   : > { %v5633_v21 = vpop.permute.xlu1 %5632 }
 0xc33   : > { %5702 = vst.msk [vmem:[%s7451_s14 + $0x6c] sm:$0xf] %vm5674_vm6, %v5633_v21  ;;  %v5613_v24 = vpop.permute.xlu0 %5612 }
 0xc34   : > { %v5629_v1 = vpop.permute.xlu2 %5628  ;;  %5692 = vst.msk [vmem:[%s7451_s14 + $0x44] sm:$0xf] %vm5674_vm6, %v5613_v24 }
 0xc35   : > { %5700 = vst.msk [vmem:[%s7451_s14 + $0x64] sm:$0xf] %vm5674_vm6, %v5629_v1 }
 0xc3a   : > { %v5639_v53 = vpop.permute.xlu1 %5638 }
 0xc3b   : > { %5705 = vst.msk [vmem:[%s7451_s14 + $0x78] sm:$0xf] %vm5674_vm6, %v5639_v53  ;;  %v5619_v54 = vpop.permute.xlu0 %5618 }
 0xc3c   : > { %v5635_v31 = vpop.permute.xlu2 %5634  ;;  %5695 = vst.msk [vmem:[%s7451_s14 + $0x50] sm:$0xf] %vm5674_vm6, %v5619_v54 }
 0xc3d   : > { %5703 = vst.msk [vmem:[%s7451_s14 + $0x70] sm:$0xf] %vm5674_vm6, %v5635_v31 }
 0xc43   : > { %v5625_v49 = vpop.permute.xlu0 %5624 }
 0xc44   : > { %v5641_v46 = vpop.permute.xlu2 %5640  ;;  %5698 = vst.msk [vmem:[%s7451_s14 + $0x5c] sm:$0xf] %vm5674_vm6, %v5625_v49 }
 0xc45   : > { %5706 = vst.msk [vmem:[%s7451_s14 + $0x7c] sm:$0xf] %vm5674_vm6, %v5641_v46 }
 0xc4b   : > { %v5631_v5 = vpop.permute.xlu0 %5630 }
 0xc4c   : > { %5701 = vst.msk [vmem:[%s7451_s14 + $0x68] sm:$0xf] %vm5674_vm6, %v5631_v5 }
 0xc53   : > { %v5637_v0 = vpop.permute.xlu0 %5636 }
 0xc54   : > { %5704 = vst.msk [vmem:[%s7451_s14 + $0x74] sm:$0xf] %vm5674_vm6, %v5637_v0 }
 0xc55 PF: > { %s5715_s9 = sld [smem:[#allocation7]]  ;;  %s6395_s11 = sshll.u32 %s7320_s25, 5 }
 0xc56   : > { %s5724_s12 = sshll.u32 %s7451_s14, 4  ;;  %s10544_s0 = sand.u32 1, %s7312_s23   ;;  %s5725_s12 = int_to_ptr.vmem [resolvable:$true] %s5724_s12 }
 0xc57   : > { %s5708_s1 = scalar_lea.sflag [#allocation10], %s10544_s0  ;;  %s7270_s13 = scalar_lea.hbm %s10203_s5, 256 }
 0xc5b   : > { %s6394_s15 = sshll.u32 %s5715_s9, 5 }
 0xc5c   : > { %s5721_s16 = sadd.s32 %s6395_s11, %s6394_s15 }
 0xc5d   : > { %s6396_s17 = sshll.u32 %s5721_s16, 2 }
 0xc5e   : > { %s5723_s20 = scalar_lea.hbm %s10203_s5, %s6396_s17 }
 0xc5f   : > { %s5726_s21 = sshll.u32 %s5723_s20, 4  ;;  %s5727_s21 = int_to_ptr.hbm [resolvable:$true] %s5726_s21 }
 0xc60   : > { %s7264_s29 = sshra.s32 %s5727_s21, 4  ;;  %s7265_s29 = int_to_ptr.hbm [resolvable:$true] %s7264_s29 }
 0xc61   : > { %s7266_s6 = scalar_lea.hbm %s7265_s29, 128  ;;  %p7271_p5 = scmp.lt.s32.totalorder %s7265_s29, %s10203_s5 }
 0xc62   : > { %p7267_p1 = scmp.ne.s32.totalorder %s7265_s29, %s7266_s6  ;;  %p7272_p6 = scmp.lt.s32.totalorder %s7270_s13, %s7266_s6 }
 0xc64   : > { %p7268_p2 = pnand %p7267_p1, %p7411_p3  ;;  %p7273_p8 = por %p7272_p6, %p7271_p5 }
 0xc66   : > { %p7269_p4 = pneg %p7268_p2 }
 0xc68   : > { %p7274_p9 = pnand %p7273_p8, %p7269_p4 }
 0xc6a   : > { %7277 = shalt.err (!%p7274_p9)
}
 0xc6b   : > { %s7335_s9 = smov 64   ;;  %s7336_s11 = smov 4  }
 0xc6c   : > { %6670 = dma.vmem_to_hbm [thread:$0]  (%p7411_p3), %s5725_s12, 2048, %s5727_s21, %s5708_s1, %s7335_s9, %s7335_s9, %s7336_s11  }
 0xc6d PF: > { %p6676_p10 = scmp.ge.s32.totalorder %s7328_s27, 2  ;;  %s5741_s15 = sand.u32 1, %s7308_s22  }
 0xc6e   : > { %s5742_s16 = scalar_lea.sflag [#allocation10], %s5741_s15 }
 0xc6f   : > { %p6673_p11 = pnand %p6676_p10, %p7420_p7 }
 0xc71   : > { %p6674_p12 = pneg %p6673_p11 }
 0xc73   : > { %7303 = dma.done.wait (%p6674_p12), %s5742_s16, 2048  }
 0xc74   : > { %7305 = vsyncadd (%p6674_p12), %s5742_s16, 4294965248  ;;  %s20_s27 = sadd.s32 1, %s7328_s27   ;;  %s10545_s30 = sld [smem:[#allocation12_spill]] }
 0xc75   : > { %p17_p13 = scmp.ge.s32.totalorder %s20_s27, 4   ;;  %s10546_s22 = smov %s7312_s23 }
 0xc76   : > { %s10547_s23 = smov %s7316_s24  ;;  %s10548_s24 = smov %s7426_s8 }
 0xc77   : > { %s10549_s25 = smov %s7324_s26  ;;  %19 = sbr.rel (!%p17_p13) target bundleno = 7 (0x7), region = 87 }
 0xc7a   : > { %s10550_s26 = smov %s10545_s30 }
 0xc7c   :  { %5748 = vsyncpa [#allocation10], 1 }
 0xc7d   :  { %5750 = vsyncpa [#allocation10 + $0x1], 1 }

</bundles_post_ra>
